<compile_context>
chip_gen: v7x
topology: tpu7x:2x2x1
jax: 0.10.0
libtpu: 0.0.40
codegen_flags: <defaults>
</compile_context>

<pallas_src>
import numpy as np
import jax
import jax.numpy as jnp
from jax.experimental import pallas as pl
from jax.experimental.pallas import tpu as pltpu


# --------------------------------------------------------------------------
# Fused conv kernel:  out = [+res] [PReLU] [InstanceNorm] (sum_t W_t @ x_t + b)
# One grid step == one batch element; everything for that element lives in a
# single VMEM block, so the whole ADN layer is one launch and one HBM pass.
# --------------------------------------------------------------------------

def _make_conv_kernel(tap_offsets, seg_len, valid_count,
                      has_in, needs_mask, has_prelu, has_res):
    def kernel(*refs):
        x_ref, w_ref, b_ref = refs[0], refs[1], refs[2]
        i = 3
        mask_ref = alpha_ref = res_ref = None
        if needs_mask:
            mask_ref = refs[i]; i += 1
        if has_prelu:
            alpha_ref = refs[i]; i += 1
        if has_res:
            res_ref = refs[i]; i += 1
        o_ref = refs[i]

        acc = None
        for t, off in enumerate(tap_offsets):           # static unrolled taps
            xs = x_ref[:, pl.ds(off, seg_len)]           # (K, seg) bf16 slice
            p = jnp.dot(w_ref[t], xs, preferred_element_type=jnp.float32)
            acc = p if acc is None else acc + p
        y = acc + b_ref[...]                              # (Cout, seg) f32

        if has_in:                                        # InstanceNorm2d eps=1e-5
            inv_n = 1.0 / float(valid_count)
            if needs_mask:                                # mask out pitch pad cols
                m = mask_ref[...]
                mean = jnp.sum(y * m, axis=-1, keepdims=True) * inv_n
                c = y - mean
                var = jnp.sum(c * c * m, axis=-1, keepdims=True) * inv_n
            else:
                mean = jnp.sum(y, axis=-1, keepdims=True) * inv_n
                c = y - mean
                var = jnp.sum(c * c, axis=-1, keepdims=True) * inv_n
            y = c * jax.lax.rsqrt(var + 1e-5)
        if has_prelu:
            a = alpha_ref[0]
            y = jnp.where(y >= 0.0, y, a * y)
        if has_res:
            y = y + res_ref[...]
        o_ref[...] = y
    return kernel


def _conv_pallas_call(x_in, w_taps, bias, *, tap_offsets, seg_len, valid_count,
                      mask=None, alpha=None, instance_norm=False, residual=None):
    B, K, L_in = x_in.shape
    T, Cout, K2 = w_taps.shape
    assert K == K2
    needs_mask = mask is not None
    kernel = _make_conv_kernel(tap_offsets, seg_len, valid_count,
                               instance_norm, needs_mask,
                               alpha is not None, residual is not None)
    in_specs = [
        pl.BlockSpec((None, K, L_in), lambda b: (b, 0, 0)),      # activation
        pl.BlockSpec((T, Cout, K), lambda b: (0, 0, 0)),         # weights pinned
        pl.BlockSpec((Cout, 1), lambda b: (0, 0)),               # bias pinned
    ]
    inputs = [x_in, w_taps, bias.astype(jnp.float32).reshape(Cout, 1)]
    if needs_mask:
        in_specs.append(pl.BlockSpec((1, seg_len), lambda b: (0, 0)))
        inputs.append(mask)
    if alpha is not None:
        in_specs.append(pl.BlockSpec(memory_space=pltpu.MemorySpace.SMEM))
        inputs.append(jnp.asarray(alpha, jnp.float32).reshape(1))
    if residual is not None:
        in_specs.append(pl.BlockSpec((None, Cout, seg_len), lambda b: (b, 0, 0)))
        inputs.append(residual.astype(jnp.float32))
    return pl.pallas_call(
        kernel,
        out_shape=jax.ShapeDtypeStruct((B, Cout, seg_len), jnp.float32),
        grid_spec=pltpu.PrefetchScalarGridSpec(
            num_scalar_prefetch=0,
            grid=(B,),
            in_specs=in_specs,
            out_specs=pl.BlockSpec((None, Cout, seg_len), lambda b: (b, 0, 0)),
        ),
        compiler_params=pltpu.CompilerParams(
            dimension_semantics=("parallel",)),
    )(*inputs)


# --------------------------------------------------------------------------
# Conv2d / ConvTranspose2d / AvgPool / bicubic wrappers
# --------------------------------------------------------------------------

def conv2d(x, w, b, *, stride=1, padding=0, alpha=None, instance_norm=False,
           residual=None):
    """PyTorch Conv2d with fused (InstanceNorm, PReLU, residual) epilogue.

    x: (B, Cin, H, W) f32; w: (Cout, Cin, kh, kw); returns (B, Cout, Ho, Wo).
    """
    B, Cin, H, W = x.shape
    Cout, Cin2, kh, kw = w.shape
    assert Cin == Cin2
    Hp, Wp = H + 2 * padding, W + 2 * padding
    Ho = (Hp - kh) // stride + 1
    Wo = (Wp - kw) // stride + 1
    xp = x if padding == 0 else jnp.pad(
        x, ((0, 0), (0, 0), (padding, padding), (padding, padding)))

    if stride == 1:
        # Flat-shift path: one copy of the padded activation; each tap is a
        # static in-kernel slice.  Output rows have pitch Wp; columns >= Wo
        # are junk, masked out of the IN stats and sliced away below.
        pitch = Wp
        xf = xp.reshape(B, Cin, Hp * Wp)
        if kw > 1:
            xf = jnp.pad(xf, ((0, 0), (0, 0), (0, kw - 1)))
        x_in = xf.astype(jnp.bfloat16)
        tap_offsets = [i * Wp + j for i in range(kh) for j in range(kw)]
        w_taps = w.reshape(Cout, Cin, kh * kw).transpose(2, 0, 1)
        w_taps = w_taps.astype(jnp.bfloat16)                   # (T, Cout, Cin)
    else:
        # Strided conv (down path only): XLA-built im2col patches, single tap.
        pitch = Wo
        taps = []
        for i in range(kh):
            for j in range(kw):
                taps.append(xp[:, :,
                               i:i + (Ho - 1) * stride + 1:stride,
                               j:j + (Wo - 1) * stride + 1:stride])
        x_in = jnp.stack(taps, axis=2).reshape(
            B, Cin * kh * kw, Ho * Wo).astype(jnp.bfloat16)
        tap_offsets = [0]
        w_taps = w.reshape(1, Cout, Cin * kh * kw).astype(jnp.bfloat16)

    seg_len = Ho * pitch
    mask = None
    if instance_norm and pitch != Wo:
        m = np.zeros((1, Ho, pitch), np.float32)
        m[:, :, :Wo] = 1.0
        mask = jnp.asarray(m.reshape(1, seg_len))
    res_flat = None
    if residual is not None:
        r = residual
        if pitch != Wo:
            r = jnp.pad(r, ((0, 0), (0, 0), (0, 0), (0, pitch - Wo)))
        res_flat = r.reshape(B, Cout, seg_len)

    out = _conv_pallas_call(x_in, w_taps, b, tap_offsets=tap_offsets,
                            seg_len=seg_len, valid_count=Ho * Wo, mask=mask,
                            alpha=alpha, instance_norm=instance_norm,
                            residual=res_flat)
    out = out.reshape(B, Cout, Ho, pitch)
    return out[:, :, :, :Wo] if pitch != Wo else out


def conv_transpose2d(x, w, b, *, stride, padding, output_padding,
                     alpha=None, instance_norm=False):
    """PyTorch ConvTranspose2d (w: (Cin, Cout, kh, kw)) with fused IN/PReLU.

    Lowered as zero-interleave (no scatter) + stride-1 flat conv with the
    flipped kernel.  TODO(synk): sub-pixel phase decomposition would avoid
    the ~s^2 x dilation zeros.
    """
    B, Cin, H, W = x.shape
    Cin2, Cout, kh, kw = w.shape
    assert Cin == Cin2
    s = stride
    Hd, Wd = (H - 1) * s + 1, (W - 1) * s + 1
    zw = jnp.zeros((B, Cin, H, W, s - 1), x.dtype)
    xw = jnp.concatenate([x[..., None], zw], axis=-1).reshape(
        B, Cin, H, W * s)[..., :Wd]
    zh = jnp.zeros((B, Cin, H, s - 1, Wd), x.dtype)
    xd = jnp.concatenate([xw[:, :, :, None, :], zh], axis=3).reshape(
        B, Cin, H * s, Wd)[:, :, :Hd, :]
    pb_h, pa_h = kh - 1 - padding, kh - 1 - padding + output_padding
    pb_w, pa_w = kw - 1 - padding, kw - 1 - padding + output_padding
    xp = jnp.pad(xd, ((0, 0), (0, 0), (pb_h, pa_h), (pb_w, pa_w)))
    w_eq = jnp.flip(w, axis=(2, 3)).transpose(1, 0, 2, 3)    # (Cout, Cin, kh, kw)
    return conv2d(xp, w_eq, b, stride=1, padding=0,
                  alpha=alpha, instance_norm=instance_norm)


def avg_pool2d(x, k):
    # Pure VPU reduction in XLA; no MXU, no transposes.
    B, C, H, W = x.shape
    Ho, Wo = H // k, W // k
    x = x.reshape(B, C, H, Wo, k).mean(axis=-1)
    x = x.reshape(B, C, Ho, k, Wo).mean(axis=3)
    return x


def _bicubic_matrix(n_in, scale):
    # PyTorch upsample_bicubic2d, align_corners=False, A=-0.75, border clamp.
    A = -0.75
    n_out = n_in * scale
    o = np.arange(n_out)
    src = (o + 0.5) / scale - 0.5
    i0 = np.floor(src).astype(np.int64)
    t = src - i0

    def c1(z):
        return ((A + 2) * z - (A + 3)) * z * z + 1

    def c2(z):
        return ((A * z - 5 * A) * z + 8 * A) * z - 4 * A

    w = np.stack([c2(t + 1), c1(t), c1(1 - t), c2(2 - t)], axis=1)
    M = np.zeros((n_out, n_in), np.float32)
    for tap in range(4):
        idx = np.clip(i0 - 1 + tap, 0, n_in - 1)
        np.add.at(M, (o, idx), w[:, tap])
    return M


def _make_bicubic_kernel(C):
    def kernel(x_ref, uwt_ref, uh_ref, res_ref, o_ref):
        uwt = uwt_ref[...]
        uh = uh_ref[...]
        for c in range(C):                               # static channel loop
            y1 = jnp.dot(x_ref[c], uwt, preferred_element_type=jnp.float32)
            y2 = jnp.dot(uh, y1, preferred_element_type=jnp.float32)
            o_ref[c] = y2 + res_ref[c]                   # fused out_la + out_sc
    return kernel


def upsample_bicubic_add(x, scale, residual):
    """Separable bicubic upsample of (B,C,h,w) by `scale`, fused + residual."""
    B, C, h, w = x.shape
    H, W = h * scale, w * scale
    UwT = jnp.asarray(_bicubic_matrix(w, scale).T)       # (w, W)
    Uh = jnp.asarray(_bicubic_matrix(h, scale))          # (H, h)
    return pl.pallas_call(
        _make_bicubic_kernel(C),
        out_shape=jax.ShapeDtypeStruct((B, C, H, W), jnp.float32),
        grid_spec=pltpu.PrefetchScalarGridSpec(
            num_scalar_prefetch=0,
            grid=(B,),
            in_specs=[
                pl.BlockSpec((None, C, h, w), lambda b: (b, 0, 0, 0)),
                pl.BlockSpec((w, W), lambda b: (0, 0)),
                pl.BlockSpec((H, h), lambda b: (0, 0)),
                pl.BlockSpec((None, C, H, W), lambda b: (b, 0, 0, 0)),
            ],
            out_specs=pl.BlockSpec((None, C, H, W), lambda b: (b, 0, 0, 0)),
        ),
        compiler_params=pltpu.CompilerParams(
            dimension_semantics=("parallel",)),
    )(x.astype(jnp.float32), UwT, Uh, residual.astype(jnp.float32))


# --------------------------------------------------------------------------
# Parameters (deterministic synthetic init) + module forwards
# --------------------------------------------------------------------------

class ParamGen:
    def __init__(self, seed):
        self._key = jax.random.PRNGKey(seed)

    def normal(self, shape, scale=1.0):
        self._key, sub = jax.random.split(self._key)
        return scale * jax.random.normal(sub, shape, jnp.float32)


def make_conv_params(pg, cin, cout, k):
    fan_in = cin * k * k
    return {'w': pg.normal((cout, cin, k, k), 1.0 / np.sqrt(fan_in)),
            'b': pg.normal((cout,), 0.01)}


def make_res_unit_params(pg, cin, cout, stride, subunits, k, last_conv_only):
    units = []
    sch = cin
    for su in range(max(1, subunits)):
        conv_only = last_conv_only and su == max(1, subunits) - 1
        u = make_conv_params(pg, sch, cout, k)
        u['alpha'] = None if conv_only else jnp.array([0.25], jnp.float32)
        units.append(u)
        sch = cout
    res = None
    if stride != 1 or cin != cout:
        rk = k if stride != 1 else 1
        res = make_conv_params(pg, cin, cout, rk)
        res['pad'] = (k - 1) // 2 if stride != 1 else 0
    return {'units': units, 'res': res, 'stride': stride, 'k': k}


def residual_unit_forward(x, p):
    k = p['k']
    pad = (k - 1) // 2
    if p['res'] is None:
        res = x
    else:
        res = conv2d(x, p['res']['w'], p['res']['b'],
                     stride=p['stride'], padding=p['res']['pad'])
    h = x
    n = len(p['units'])
    for i, u in enumerate(p['units']):
        s = p['stride'] if i == 0 else 1
        is_last = (i == n - 1)
        r = res if is_last else None
        if u['alpha'] is None:          # conv-only subunit: residual fused in
            h = conv2d(h, u['w'], u['b'], stride=s, padding=pad, residual=r)
        else:                           # ADN "NDA": IN -> (drop p=0) -> PReLU fused
            h = conv2d(h, u['w'], u['b'], stride=s, padding=pad,
                       alpha=u['alpha'], instance_norm=True, residual=r)
    return h


def make_up_params(pg, cin, cout, stride, k_up, k, is_top):
    fan_in = cin * k_up * k_up
    ct = {'w': pg.normal((cin, cout, k_up, k_up), 1.0 / np.sqrt(fan_in)),
          'b': pg.normal((cout,), 0.01),
          'alpha': jnp.array([0.25], jnp.float32)}
    ru = make_res_unit_params(pg, cout, cout, 1, 1, k, last_conv_only=is_top)
    return {'ct': ct, 'ru': ru, 'stride': stride, 'k_up': k_up}


def up_forward(x, p):
    s, k_up = p['stride'], p['k_up']
    h = conv_transpose2d(x, p['ct']['w'], p['ct']['b'],
                         stride=s, padding=(k_up - 1) // 2, output_padding=s - 1,
                         alpha=p['ct']['alpha'], instance_norm=True)
    return residual_unit_forward(h, p['ru'])


def make_unet_params(pg, in_ch, out_ch, channels, strides, k, up_k, num_res_units):
    n = len(strides)
    downs, prev = [], in_ch
    for i in range(n):
        downs.append(make_res_unit_params(pg, prev, channels[i], strides[i],
                                          num_res_units, k, False))
        prev = channels[i]
    bottom = make_res_unit_params(pg, channels[n - 1], channels[n], 1,
                                  num_res_units, k, False)
    ups = []
    for i in range(n):
        is_top = (i == 0)
        outc = out_ch if i == 0 else channels[i - 1]
        upc = (channels[i] + channels[i + 1]) if i == n - 1 else channels[i] * 2
        ups.append(make_up_params(pg, upc, outc, strides[i], up_k, k, is_top))
    return {'downs': downs, 'bottom': bottom, 'ups': ups}


def unet_forward(x, P):
    skips, h = [], x
    for d in P['downs']:
        h = residual_unit_forward(h, d)
        skips.append(h)
    h = residual_unit_forward(h, P['bottom'])
    for i in reversed(range(len(P['ups']))):
        h = jnp.concatenate([skips[i], h], axis=1)        # channel axis
        h = up_forward(h, P['ups'][i])
    return h


def make_sc_params(pg, in_ch, out_ch, sp_ch, k):
    ins = [in_ch, sp_ch, sp_ch, sp_ch]
    outs = [sp_ch, sp_ch, sp_ch, out_ch]
    convs = [make_conv_params(pg, ci, co, k) for ci, co in zip(ins, outs)]
    alphas = [jnp.array([0.25], jnp.float32) for _ in range(3)]
    return {'convs': convs, 'alphas': alphas, 'k': k}


def sc_forward(x, out_la, p, downsample):
    """SC branch; the bicubic upsample epilogue also adds out_la (PSCN add)."""
    h = avg_pool2d(x, downsample)
    pad = (p['k'] - 1) // 2
    for i, c in enumerate(p['convs']):
        al = p['alphas'][i] if i < 3 else None            # PReLU fused in epilogue
        h = conv2d(h, c['w'], c['b'], stride=1, padding=pad, alpha=al)
    return upsample_bicubic_add(h, downsample, out_la)


def make_model(seed, in_channels, out_channels, la_channels, la_strides,
               la_kernel_size, la_num_res_units, sp_channels, sp_kernel_size,
               sp_downsample, sp_image_input=True, la_dropout=0.0):
    # TODO(synk): dropout>0 and tuple kernel sizes are not supported.
    assert la_dropout == 0.0, "dropout>0 not supported"
    assert isinstance(la_kernel_size, int) and isinstance(sp_kernel_size, int)
    pg = ParamGen(seed)
    unet_p = make_unet_params(pg, in_channels, out_channels, la_channels,
                              la_strides, la_kernel_size, 3, la_num_res_units)
    sc_in = out_channels + (in_channels if sp_image_input else 0)
    sc_p = make_sc_params(pg, sc_in, out_channels, sp_channels, sp_kernel_size)

    def forward(x):
        x = x.astype(jnp.float32)                         # (B, C, H, W)
        out_la = unet_forward(x, unet_p)
        sc_x = jnp.concatenate([x, out_la], axis=1) if sp_image_input else out_la
        # SC branch; the bicubic kernel's epilogue performs out_la + out_sc.
        return sc_forward(sc_x, out_la, sc_p, sp_downsample)

    return {'unet': unet_p, 'sc': sc_p}, forward


if __name__ == "__main__":
    B, Cin, H, W = 2, 1, 16, 16
    cfg = dict(in_channels=Cin, out_channels=4,
               la_channels=(8, 8, 8), la_strides=(2, 2),
               la_kernel_size=3, la_num_res_units=2,
               sp_channels=8, sp_kernel_size=5, sp_downsample=4,
               sp_image_input=True)
    params, forward = make_model(1, **cfg)
    x = jax.random.normal(jax.random.PRNGKey(0), (B, Cin, H, W), jnp.float32)
    out = jax.jit(forward)(x)
    out = jax.block_until_ready(out)
    assert out.shape == (B, cfg['out_channels'], H, W), out.shape
    assert bool(jnp.all(jnp.isfinite(out)))
    print("KERNEL_OK")
</pallas_src>

<mosaic_0001>
module attributes {stable_mosaic.version = 11 : i64} {
  func.func @kernel(%arg0: i32, %arg1: memref<1x9x64xbf16, #tpu.memory_space<vmem>>, %arg2: memref<1x8x9xbf16, #tpu.memory_space<vmem>>, %arg3: memref<8x1xf32, #tpu.memory_space<vmem>>, %arg4: memref<1x8x64xf32, #tpu.memory_space<vmem>>) attributes {dimension_semantics = [#tpu.dimension_semantics<parallel>], iteration_bounds = array<i64: 2>, scalar_prefetch = 0 : i64, scratch_operands = 0 : i64, tpu.core_type = #tpu.core_type<tc>, window_params = [{transform_indices = @transform_0, window_bounds = array<i64: 1, 9, 64>}, {pipeline_mode = #tpu.pipeline_mode<synchronous>, transform_indices = @transform_1, window_bounds = array<i64: 1, 8, 9>}, {pipeline_mode = #tpu.pipeline_mode<synchronous>, transform_indices = @transform_2, window_bounds = array<i64: 8, 1>}, {transform_indices = @transform_3, window_bounds = array<i64: 1, 8, 64>}]} {
    %c0 = arith.constant 0 : index
    %c0_0 = arith.constant 0 : index
    %c0_1 = arith.constant 0 : index
    %0 = vector.load %arg1[%c0, %c0_0, %c0_1] : memref<1x9x64xbf16, #tpu.memory_space<vmem>>, vector<1x9x64xbf16>
    %1 = vector.shape_cast %0 : vector<1x9x64xbf16> to vector<9x64xbf16>
    %c0_2 = arith.constant 0 : index
    %c0_3 = arith.constant 0 : index
    %c0_4 = arith.constant 0 : index
    %2 = vector.load %arg2[%c0_2, %c0_3, %c0_4] : memref<1x8x9xbf16, #tpu.memory_space<vmem>>, vector<1x8x9xbf16>
    %3 = vector.shape_cast %2 : vector<1x8x9xbf16> to vector<8x9xbf16>
    %cst = arith.constant dense<0.000000e+00> : vector<8x64xf32>
    %4 = tpu.matmul %3, %1, %cst {dimension_numbers = #tpu.dot_dimension_numbers<[1], [0], [0], [1], [0, 0, 1, 1], [], []>} : vector<8x9xbf16>, vector<9x64xbf16>, vector<8x64xf32> -> vector<8x64xf32>
    %c0_5 = arith.constant 0 : index
    %c0_6 = arith.constant 0 : index
    %5 = vector.load %arg3[%c0_5, %c0_6] : memref<8x1xf32, #tpu.memory_space<vmem>>, vector<8x1xf32>
    %6 = vector.broadcast %5 : vector<8x1xf32> to vector<8x64xf32>
    %7 = arith.addf %4, %6 : vector<8x64xf32>
    %c0_7 = arith.constant 0 : index
    %c0_8 = arith.constant 0 : index
    %c0_9 = arith.constant 0 : index
    %8 = vector.load %arg4[%c0_7, %c0_8, %c0_9] : memref<1x8x64xf32, #tpu.memory_space<vmem>>, vector<1x8x64xf32>
    %9 = vector.shape_cast %8 : vector<1x8x64xf32> to vector<8x64xf32>
    %10 = vector.shape_cast %7 : vector<8x64xf32> to vector<1x8x64xf32>
    tpu.vector_store %arg4[%c0_7, %c0_8, %c0_9], %10 {strides = array<i32>} : memref<1x8x64xf32, #tpu.memory_space<vmem>>, vector<1x8x64xf32>,
    return
  }
  func.func @transform_0(%arg0: i32) -> (i32, i32, i32) {
    %c0_i32 = arith.constant 0 : i32
    %c0_i32_0 = arith.constant 0 : i32
    %c0_i32_1 = arith.constant 0 : i32
    return %arg0, %c0_i32, %c0_i32_0 : i32, i32, i32
  }
  func.func @transform_1(%arg0: i32) -> (i32, i32, i32) {
    %c0_i32 = arith.constant 0 : i32
    %c0_i32_0 = arith.constant 0 : i32
    %c0_i32_1 = arith.constant 0 : i32
    %c0_i32_2 = arith.constant 0 : i32
    return %c0_i32, %c0_i32_0, %c0_i32_1 : i32, i32, i32
  }
  func.func @transform_2(%arg0: i32) -> (i32, i32) {
    %c0_i32 = arith.constant 0 : i32
    %c0_i32_0 = arith.constant 0 : i32
    %c0_i32_1 = arith.constant 0 : i32
    return %c0_i32, %c0_i32_0 : i32, i32
  }
  func.func @transform_3(%arg0: i32) -> (i32, i32, i32) {
    %c0_i32 = arith.constant 0 : i32
    %c0_i32_0 = arith.constant 0 : i32
    %c0_i32_1 = arith.constant 0 : i32
    return %arg0, %c0_i32, %c0_i32_0 : i32, i32, i32
  }
}

module attributes {stable_mosaic.version = 11 : i64} {
  func.func @kernel(%arg0: i32, %arg1: memref<1x9x64xbf16, #tpu.memory_space<vmem>>, %arg2: memref<1x8x9xbf16, #tpu.memory_space<vmem>>, %arg3: memref<8x1xf32, #tpu.memory_space<vmem>>, %arg4: memref<1xf32, #tpu.memory_space<smem>>, %arg5: memref<1x8x64xf32, #tpu.memory_space<vmem>>) attributes {dimension_semantics = [#tpu.dimension_semantics<parallel>], iteration_bounds = array<i64: 2>, scalar_prefetch = 0 : i64, scratch_operands = 0 : i64, tpu.core_type = #tpu.core_type<tc>, window_params = [{transform_indices = @transform_0, window_bounds = array<i64: 1, 9, 64>}, {pipeline_mode = #tpu.pipeline_mode<synchronous>, transform_indices = @transform_1, window_bounds = array<i64: 1, 8, 9>}, {pipeline_mode = #tpu.pipeline_mode<synchronous>, transform_indices = @transform_2, window_bounds = array<i64: 8, 1>}, {transform_indices = @transform_3, window_bounds = array<i64: 1>}, {transform_indices = @transform_4, window_bounds = array<i64: 1, 8, 64>}]} {
    %c0 = arith.constant 0 : index
    %c0_0 = arith.constant 0 : index
    %c0_1 = arith.constant 0 : index
    %0 = vector.load %arg1[%c0, %c0_0, %c0_1] : memref<1x9x64xbf16, #tpu.memory_space<vmem>>, vector<1x9x64xbf16>
    %1 = vector.shape_cast %0 : vector<1x9x64xbf16> to vector<9x64xbf16>
    %c0_2 = arith.constant 0 : index
    %c0_3 = arith.constant 0 : index
    %c0_4 = arith.constant 0 : index
    %2 = vector.load %arg2[%c0_2, %c0_3, %c0_4] : memref<1x8x9xbf16, #tpu.memory_space<vmem>>, vector<1x8x9xbf16>
    %3 = vector.shape_cast %2 : vector<1x8x9xbf16> to vector<8x9xbf16>
    %cst = arith.constant dense<0.000000e+00> : vector<8x64xf32>
    %4 = tpu.matmul %3, %1, %cst {dimension_numbers = #tpu.dot_dimension_numbers<[1], [0], [0], [1], [0, 0, 1, 1], [], []>} : vector<8x9xbf16>, vector<9x64xbf16>, vector<8x64xf32> -> vector<8x64xf32>
    %c0_5 = arith.constant 0 : index
    %c0_6 = arith.constant 0 : index
    %5 = vector.load %arg3[%c0_5, %c0_6] : memref<8x1xf32, #tpu.memory_space<vmem>>, vector<8x1xf32>
    %6 = vector.broadcast %5 : vector<8x1xf32> to vector<8x64xf32>
    %7 = arith.addf %4, %6 : vector<8x64xf32>
    %cst_7 = arith.constant dense<0.000000e+00> : vector<8xf32>
    %8 = vector.multi_reduction <add>, %7, %cst_7 [1] : vector<8x64xf32> to vector<8xf32>
    %9 = vector.shape_cast %8 : vector<8xf32> to vector<8x1xf32>
    %cst_8 = arith.constant 1.562500e-02 : f32
    %10 = vector.broadcast %cst_8 : f32 to vector<8x1xf32>
    %11 = arith.mulf %9, %10 : vector<8x1xf32>
    %12 = vector.broadcast %11 : vector<8x1xf32> to vector<8x64xf32>
    %13 = arith.subf %7, %12 : vector<8x64xf32>
    %14 = arith.mulf %13, %13 : vector<8x64xf32>
    %cst_9 = arith.constant dense<0.000000e+00> : vector<8xf32>
    %15 = vector.multi_reduction <add>, %14, %cst_9 [1] : vector<8x64xf32> to vector<8xf32>
    %16 = vector.shape_cast %15 : vector<8xf32> to vector<8x1xf32>
    %cst_10 = arith.constant 1.562500e-02 : f32
    %17 = vector.broadcast %cst_10 : f32 to vector<8x1xf32>
    %18 = arith.mulf %16, %17 : vector<8x1xf32>
    %cst_11 = arith.constant 9.99999974E-6 : f32
    %19 = vector.broadcast %cst_11 : f32 to vector<8x1xf32>
    %20 = arith.addf %18, %19 : vector<8x1xf32>
    %21 = math.rsqrt %20 : vector<8x1xf32>
    %22 = vector.broadcast %21 : vector<8x1xf32> to vector<8x64xf32>
    %23 = arith.mulf %13, %22 : vector<8x64xf32>
    %c0_12 = arith.constant 0 : index
    %24 = memref.load %arg4[%c0_12] : memref<1xf32, #tpu.memory_space<smem>>
    %cst_13 = arith.constant 0.000000e+00 : f32
    %25 = vector.broadcast %cst_13 : f32 to vector<8x64xf32>
    %26 = arith.cmpf oge, %23, %25 : vector<8x64xf32>
    %27 = vector.broadcast %24 : f32 to vector<8x64xf32>
    %28 = arith.mulf %27, %23 : vector<8x64xf32>
    %29 = arith.select %26, %23, %28 : vector<8x64xi1>, vector<8x64xf32>
    %c0_14 = arith.constant 0 : index
    %c0_15 = arith.constant 0 : index
    %c0_16 = arith.constant 0 : index
    %30 = vector.load %arg5[%c0_14, %c0_15, %c0_16] : memref<1x8x64xf32, #tpu.memory_space<vmem>>, vector<1x8x64xf32>
    %31 = vector.shape_cast %30 : vector<1x8x64xf32> to vector<8x64xf32>
    %32 = vector.shape_cast %29 : vector<8x64xf32> to vector<1x8x64xf32>
    tpu.vector_store %arg5[%c0_14, %c0_15, %c0_16], %32 {strides = array<i32>} : memref<1x8x64xf32, #tpu.memory_space<vmem>>, vector<1x8x64xf32>,
    return
  }
  func.func @transform_0(%arg0: i32) -> (i32, i32, i32) {
    %c0_i32 = arith.constant 0 : i32
    %c0_i32_0 = arith.constant 0 : i32
    %c0_i32_1 = arith.constant 0 : i32
    return %arg0, %c0_i32, %c0_i32_0 : i32, i32, i32
  }
  func.func @transform_1(%arg0: i32) -> (i32, i32, i32) {
    %c0_i32 = arith.constant 0 : i32
    %c0_i32_0 = arith.constant 0 : i32
    %c0_i32_1 = arith.constant 0 : i32
    %c0_i32_2 = arith.constant 0 : i32
    return %c0_i32, %c0_i32_0, %c0_i32_1 : i32, i32, i32
  }
  func.func @transform_2(%arg0: i32) -> (i32, i32) {
    %c0_i32 = arith.constant 0 : i32
    %c0_i32_0 = arith.constant 0 : i32
    %c0_i32_1 = arith.constant 0 : i32
    return %c0_i32, %c0_i32_0 : i32, i32
  }
  func.func @transform_3(%arg0: i32) -> i32 {
    %c0_i32 = arith.constant 0 : i32
    %c0_i32_0 = arith.constant 0 : i32
    return %c0_i32 : i32
  }
  func.func @transform_4(%arg0: i32) -> (i32, i32, i32) {
    %c0_i32 = arith.constant 0 : i32
    %c0_i32_0 = arith.constant 0 : i32
    %c0_i32_1 = arith.constant 0 : i32
    return %arg0, %c0_i32, %c0_i32_0 : i32, i32, i32
  }
}

module attributes {stable_mosaic.version = 11 : i64} {
  func.func @kernel(%arg0: i32, %arg1: memref<1x8x102xbf16, #tpu.memory_space<vmem>>, %arg2: memref<9x8x8xbf16, #tpu.memory_space<vmem>>, %arg3: memref<8x1xf32, #tpu.memory_space<vmem>>, %arg4: memref<1x80xf32, #tpu.memory_space<vmem>>, %arg5: memref<1xf32, #tpu.memory_space<smem>>, %arg6: memref<1x8x80xf32, #tpu.memory_space<vmem>>, %arg7: memref<1x8x80xf32, #tpu.memory_space<vmem>>) attributes {dimension_semantics = [#tpu.dimension_semantics<parallel>], iteration_bounds = array<i64: 2>, scalar_prefetch = 0 : i64, scratch_operands = 0 : i64, tpu.core_type = #tpu.core_type<tc>, window_params = [{transform_indices = @transform_0, window_bounds = array<i64: 1, 8, 102>}, {pipeline_mode = #tpu.pipeline_mode<synchronous>, transform_indices = @transform_1, window_bounds = array<i64: 9, 8, 8>}, {pipeline_mode = #tpu.pipeline_mode<synchronous>, transform_indices = @transform_2, window_bounds = array<i64: 8, 1>}, {pipeline_mode = #tpu.pipeline_mode<synchronous>, transform_indices = @transform_3, window_bounds = array<i64: 1, 80>}, {transform_indices = @transform_4, window_bounds = array<i64: 1>}, {transform_indices = @transform_5, window_bounds = array<i64: 1, 8, 80>}, {transform_indices = @transform_6, window_bounds = array<i64: 1, 8, 80>}]} {
    %c0 = arith.constant 0 : index
    %c0_0 = arith.constant 0 : index
    %c0_1 = arith.constant 0 : index
    %0 = vector.load %arg1[%c0, %c0_0, %c0_1] : memref<1x8x102xbf16, #tpu.memory_space<vmem>>, vector<1x8x80xbf16>
    %1 = vector.shape_cast %0 : vector<1x8x80xbf16> to vector<8x80xbf16>
    %c0_2 = arith.constant 0 : index
    %c0_3 = arith.constant 0 : index
    %c0_4 = arith.constant 0 : index
    %2 = vector.load %arg2[%c0_2, %c0_3, %c0_4] : memref<9x8x8xbf16, #tpu.memory_space<vmem>>, vector<1x8x8xbf16>
    %3 = vector.shape_cast %2 : vector<1x8x8xbf16> to vector<8x8xbf16>
    %cst = arith.constant dense<0.000000e+00> : vector<8x80xf32>
    %4 = tpu.matmul %3, %1, %cst {dimension_numbers = #tpu.dot_dimension_numbers<[1], [0], [0], [1], [0, 0, 1, 1], [], []>} : vector<8x8xbf16>, vector<8x80xbf16>, vector<8x80xf32> -> vector<8x80xf32>
    %c0_5 = arith.constant 0 : index
    %c0_6 = arith.constant 0 : index
    %c1 = arith.constant 1 : index
    %5 = vector.load %arg1[%c0_5, %c0_6, %c1] : memref<1x8x102xbf16, #tpu.memory_space<vmem>>, vector<1x8x80xbf16>
    %6 = vector.shape_cast %5 : vector<1x8x80xbf16> to vector<8x80xbf16>
    %c1_7 = arith.constant 1 : index
    %c0_8 = arith.constant 0 : index
    %c0_9 = arith.constant 0 : index
    %7 = vector.load %arg2[%c1_7, %c0_8, %c0_9] : memref<9x8x8xbf16, #tpu.memory_space<vmem>>, vector<1x8x8xbf16>
    %8 = vector.shape_cast %7 : vector<1x8x8xbf16> to vector<8x8xbf16>
    %cst_10 = arith.constant dense<0.000000e+00> : vector<8x80xf32>
    %9 = tpu.matmul %8, %6, %cst_10 {dimension_numbers = #tpu.dot_dimension_numbers<[1], [0], [0], [1], [0, 0, 1, 1], [], []>} : vector<8x8xbf16>, vector<8x80xbf16>, vector<8x80xf32> -> vector<8x80xf32>
    %10 = arith.addf %4, %9 : vector<8x80xf32>
    %c0_11 = arith.constant 0 : index
    %c0_12 = arith.constant 0 : index
    %c2 = arith.constant 2 : index
    %11 = vector.load %arg1[%c0_11, %c0_12, %c2] : memref<1x8x102xbf16, #tpu.memory_space<vmem>>, vector<1x8x80xbf16>
    %12 = vector.shape_cast %11 : vector<1x8x80xbf16> to vector<8x80xbf16>
    %c2_13 = arith.constant 2 : index
    %c0_14 = arith.constant 0 : index
    %c0_15 = arith.constant 0 : index
    %13 = vector.load %arg2[%c2_13, %c0_14, %c0_15] : memref<9x8x8xbf16, #tpu.memory_space<vmem>>, vector<1x8x8xbf16>
    %14 = vector.shape_cast %13 : vector<1x8x8xbf16> to vector<8x8xbf16>
    %cst_16 = arith.constant dense<0.000000e+00> : vector<8x80xf32>
    %15 = tpu.matmul %14, %12, %cst_16 {dimension_numbers = #tpu.dot_dimension_numbers<[1], [0], [0], [1], [0, 0, 1, 1], [], []>} : vector<8x8xbf16>, vector<8x80xbf16>, vector<8x80xf32> -> vector<8x80xf32>
    %16 = arith.addf %10, %15 : vector<8x80xf32>
    %c0_17 = arith.constant 0 : index
    %c0_18 = arith.constant 0 : index
    %c10 = arith.constant 10 : index
    %17 = vector.load %arg1[%c0_17, %c0_18, %c10] : memref<1x8x102xbf16, #tpu.memory_space<vmem>>, vector<1x8x80xbf16>
    %18 = vector.shape_cast %17 : vector<1x8x80xbf16> to vector<8x80xbf16>
    %c3 = arith.constant 3 : index
    %c0_19 = arith.constant 0 : index
    %c0_20 = arith.constant 0 : index
    %19 = vector.load %arg2[%c3, %c0_19, %c0_20] : memref<9x8x8xbf16, #tpu.memory_space<vmem>>, vector<1x8x8xbf16>
    %20 = vector.shape_cast %19 : vector<1x8x8xbf16> to vector<8x8xbf16>
    %cst_21 = arith.constant dense<0.000000e+00> : vector<8x80xf32>
    %21 = tpu.matmul %20, %18, %cst_21 {dimension_numbers = #tpu.dot_dimension_numbers<[1], [0], [0], [1], [0, 0, 1, 1], [], []>} : vector<8x8xbf16>, vector<8x80xbf16>, vector<8x80xf32> -> vector<8x80xf32>
    %22 = arith.addf %16, %21 : vector<8x80xf32>
    %c0_22 = arith.constant 0 : index
    %c0_23 = arith.constant 0 : index
    %c11 = arith.constant 11 : index
    %23 = vector.load %arg1[%c0_22, %c0_23, %c11] : memref<1x8x102xbf16, #tpu.memory_space<vmem>>, vector<1x8x80xbf16>
    %24 = vector.shape_cast %23 : vector<1x8x80xbf16> to vector<8x80xbf16>
    %c4 = arith.constant 4 : index
    %c0_24 = arith.constant 0 : index
    %c0_25 = arith.constant 0 : index
    %25 = vector.load %arg2[%c4, %c0_24, %c0_25] : memref<9x8x8xbf16, #tpu.memory_space<vmem>>, vector<1x8x8xbf16>
    %26 = vector.shape_cast %25 : vector<1x8x8xbf16> to vector<8x8xbf16>
    %cst_26 = arith.constant dense<0.000000e+00> : vector<8x80xf32>
    %27 = tpu.matmul %26, %24, %cst_26 {dimension_numbers = #tpu.dot_dimension_numbers<[1], [0], [0], [1], [0, 0, 1, 1], [], []>} : vector<8x8xbf16>, vector<8x80xbf16>, vector<8x80xf32> -> vector<8x80xf32>
    %28 = arith.addf %22, %27 : vector<8x80xf32>
    %c0_27 = arith.constant 0 : index
    %c0_28 = arith.constant 0 : index
    %c12 = arith.constant 12 : index
    %29 = vector.load %arg1[%c0_27, %c0_28, %c12] : memref<1x8x102xbf16, #tpu.memory_space<vmem>>, vector<1x8x80xbf16>
    %30 = vector.shape_cast %29 : vector<1x8x80xbf16> to vector<8x80xbf16>
    %c5 = arith.constant 5 : index
    %c0_29 = arith.constant 0 : index
    %c0_30 = arith.constant 0 : index
    %31 = vector.load %arg2[%c5, %c0_29, %c0_30] : memref<9x8x8xbf16, #tpu.memory_space<vmem>>, vector<1x8x8xbf16>
    %32 = vector.shape_cast %31 : vector<1x8x8xbf16> to vector<8x8xbf16>
    %cst_31 = arith.constant dense<0.000000e+00> : vector<8x80xf32>
    %33 = tpu.matmul %32, %30, %cst_31 {dimension_numbers = #tpu.dot_dimension_numbers<[1], [0], [0], [1], [0, 0, 1, 1], [], []>} : vector<8x8xbf16>, vector<8x80xbf16>, vector<8x80xf32> -> vector<8x80xf32>
    %34 = arith.addf %28, %33 : vector<8x80xf32>
    %c0_32 = arith.constant 0 : index
    %c0_33 = arith.constant 0 : index
    %c20 = arith.constant 20 : index
    %35 = vector.load %arg1[%c0_32, %c0_33, %c20] : memref<1x8x102xbf16, #tpu.memory_space<vmem>>, vector<1x8x80xbf16>
    %36 = vector.shape_cast %35 : vector<1x8x80xbf16> to vector<8x80xbf16>
    %c6 = arith.constant 6 : index
    %c0_34 = arith.constant 0 : index
    %c0_35 = arith.constant 0 : index
    %37 = vector.load %arg2[%c6, %c0_34, %c0_35] : memref<9x8x8xbf16, #tpu.memory_space<vmem>>, vector<1x8x8xbf16>
    %38 = vector.shape_cast %37 : vector<1x8x8xbf16> to vector<8x8xbf16>
    %cst_36 = arith.constant dense<0.000000e+00> : vector<8x80xf32>
    %39 = tpu.matmul %38, %36, %cst_36 {dimension_numbers = #tpu.dot_dimension_numbers<[1], [0], [0], [1], [0, 0, 1, 1], [], []>} : vector<8x8xbf16>, vector<8x80xbf16>, vector<8x80xf32> -> vector<8x80xf32>
    %40 = arith.addf %34, %39 : vector<8x80xf32>
    %c0_37 = arith.constant 0 : index
    %c0_38 = arith.constant 0 : index
    %c21 = arith.constant 21 : index
    %41 = vector.load %arg1[%c0_37, %c0_38, %c21] : memref<1x8x102xbf16, #tpu.memory_space<vmem>>, vector<1x8x80xbf16>
    %42 = vector.shape_cast %41 : vector<1x8x80xbf16> to vector<8x80xbf16>
    %c7 = arith.constant 7 : index
    %c0_39 = arith.constant 0 : index
    %c0_40 = arith.constant 0 : index
    %43 = vector.load %arg2[%c7, %c0_39, %c0_40] : memref<9x8x8xbf16, #tpu.memory_space<vmem>>, vector<1x8x8xbf16>
    %44 = vector.shape_cast %43 : vector<1x8x8xbf16> to vector<8x8xbf16>
    %cst_41 = arith.constant dense<0.000000e+00> : vector<8x80xf32>
    %45 = tpu.matmul %44, %42, %cst_41 {dimension_numbers = #tpu.dot_dimension_numbers<[1], [0], [0], [1], [0, 0, 1, 1], [], []>} : vector<8x8xbf16>, vector<8x80xbf16>, vector<8x80xf32> -> vector<8x80xf32>
    %46 = arith.addf %40, %45 : vector<8x80xf32>
    %c0_42 = arith.constant 0 : index
    %c0_43 = arith.constant 0 : index
    %c22 = arith.constant 22 : index
    %47 = vector.load %arg1[%c0_42, %c0_43, %c22] : memref<1x8x102xbf16, #tpu.memory_space<vmem>>, vector<1x8x80xbf16>
    %48 = vector.shape_cast %47 : vector<1x8x80xbf16> to vector<8x80xbf16>
    %c8 = arith.constant 8 : index
    %c0_44 = arith.constant 0 : index
    %c0_45 = arith.constant 0 : index
    %49 = vector.load %arg2[%c8, %c0_44, %c0_45] : memref<9x8x8xbf16, #tpu.memory_space<vmem>>, vector<1x8x8xbf16>
    %50 = vector.shape_cast %49 : vector<1x8x8xbf16> to vector<8x8xbf16>
    %cst_46 = arith.constant dense<0.000000e+00> : vector<8x80xf32>
    %51 = tpu.matmul %50, %48, %cst_46 {dimension_numbers = #tpu.dot_dimension_numbers<[1], [0], [0], [1], [0, 0, 1, 1], [], []>} : vector<8x8xbf16>, vector<8x80xbf16>, vector<8x80xf32> -> vector<8x80xf32>
    %52 = arith.addf %46, %51 : vector<8x80xf32>
    %c0_47 = arith.constant 0 : index
    %c0_48 = arith.constant 0 : index
    %53 = vector.load %arg3[%c0_47, %c0_48] : memref<8x1xf32, #tpu.memory_space<vmem>>, vector<8x1xf32>
    %54 = vector.broadcast %53 : vector<8x1xf32> to vector<8x80xf32>
    %55 = arith.addf %52, %54 : vector<8x80xf32>
    %c0_49 = arith.constant 0 : index
    %c0_50 = arith.constant 0 : index
    %56 = vector.load %arg4[%c0_49, %c0_50] : memref<1x80xf32, #tpu.memory_space<vmem>>, vector<1x80xf32>
    %57 = vector.broadcast %56 : vector<1x80xf32> to vector<8x80xf32>
    %58 = arith.mulf %55, %57 : vector<8x80xf32>
    %cst_51 = arith.constant dense<0.000000e+00> : vector<8xf32>
    %59 = vector.multi_reduction <add>, %58, %cst_51 [1] : vector<8x80xf32> to vector<8xf32>
    %60 = vector.shape_cast %59 : vector<8xf32> to vector<8x1xf32>
    %cst_52 = arith.constant 1.562500e-02 : f32
    %61 = vector.broadcast %cst_52 : f32 to vector<8x1xf32>
    %62 = arith.mulf %60, %61 : vector<8x1xf32>
    %63 = vector.broadcast %62 : vector<8x1xf32> to vector<8x80xf32>
    %64 = arith.subf %55, %63 : vector<8x80xf32>
    %65 = arith.mulf %64, %64 : vector<8x80xf32>
    %66 = vector.broadcast %56 : vector<1x80xf32> to vector<8x80xf32>
    %67 = arith.mulf %65, %66 : vector<8x80xf32>
    %cst_53 = arith.constant dense<0.000000e+00> : vector<8xf32>
    %68 = vector.multi_reduction <add>, %67, %cst_53 [1] : vector<8x80xf32> to vector<8xf32>
    %69 = vector.shape_cast %68 : vector<8xf32> to vector<8x1xf32>
    %cst_54 = arith.constant 1.562500e-02 : f32
    %70 = vector.broadcast %cst_54 : f32 to vector<8x1xf32>
    %71 = arith.mulf %69, %70 : vector<8x1xf32>
    %cst_55 = arith.constant 9.99999974E-6 : f32
    %72 = vector.broadcast %cst_55 : f32 to vector<8x1xf32>
    %73 = arith.addf %71, %72 : vector<8x1xf32>
    %74 = math.rsqrt %73 : vector<8x1xf32>
    %75 = vector.broadcast %74 : vector<8x1xf32> to vector<8x80xf32>
    %76 = arith.mulf %64, %75 : vector<8x80xf32>
    %c0_56 = arith.constant 0 : index
    %77 = memref.load %arg5[%c0_56] : memref<1xf32, #tpu.memory_space<smem>>
    %cst_57 = arith.constant 0.000000e+00 : f32
    %78 = vector.broadcast %cst_57 : f32 to vector<8x80xf32>
    %79 = arith.cmpf oge, %76, %78 : vector<8x80xf32>
    %80 = vector.broadcast %77 : f32 to vector<8x80xf32>
    %81 = arith.mulf %80, %76 : vector<8x80xf32>
    %82 = arith.select %79, %76, %81 : vector<8x80xi1>, vector<8x80xf32>
    %c0_58 = arith.constant 0 : index
    %c0_59 = arith.constant 0 : index
    %c0_60 = arith.constant 0 : index
    %83 = vector.load %arg6[%c0_58, %c0_59, %c0_60] : memref<1x8x80xf32, #tpu.memory_space<vmem>>, vector<1x8x80xf32>
    %84 = vector.shape_cast %83 : vector<1x8x80xf32> to vector<8x80xf32>
    %85 = arith.addf %82, %84 : vector<8x80xf32>
    %c0_61 = arith.constant 0 : index
    %c0_62 = arith.constant 0 : index
    %c0_63 = arith.constant 0 : index
    %86 = vector.load %arg7[%c0_61, %c0_62, %c0_63] : memref<1x8x80xf32, #tpu.memory_space<vmem>>, vector<1x8x80xf32>
    %87 = vector.shape_cast %86 : vector<1x8x80xf32> to vector<8x80xf32>
    %88 = vector.shape_cast %85 : vector<8x80xf32> to vector<1x8x80xf32>
    tpu.vector_store %arg7[%c0_61, %c0_62, %c0_63], %88 {strides = array<i32>} : memref<1x8x80xf32, #tpu.memory_space<vmem>>, vector<1x8x80xf32>,
    return
  }
  func.func @transform_0(%arg0: i32) -> (i32, i32, i32) {
    %c0_i32 = arith.constant 0 : i32
    %c0_i32_0 = arith.constant 0 : i32
    %c0_i32_1 = arith.constant 0 : i32
    return %arg0, %c0_i32, %c0_i32_0 : i32, i32, i32
  }
  func.func @transform_1(%arg0: i32) -> (i32, i32, i32) {
    %c0_i32 = arith.constant 0 : i32
    %c0_i32_0 = arith.constant 0 : i32
    %c0_i32_1 = arith.constant 0 : i32
    %c0_i32_2 = arith.constant 0 : i32
    return %c0_i32, %c0_i32_0, %c0_i32_1 : i32, i32, i32
  }
  func.func @transform_2(%arg0: i32) -> (i32, i32) {
    %c0_i32 = arith.constant 0 : i32
    %c0_i32_0 = arith.constant 0 : i32
    %c0_i32_1 = arith.constant 0 : i32
    return %c0_i32, %c0_i32_0 : i32, i32
  }
  func.func @transform_3(%arg0: i32) -> (i32, i32) {
    %c0_i32 = arith.constant 0 : i32
    %c0_i32_0 = arith.constant 0 : i32
    %c0_i32_1 = arith.constant 0 : i32
    return %c0_i32, %c0_i32_0 : i32, i32
  }
  func.func @transform_4(%arg0: i32) -> i32 {
    %c0_i32 = arith.constant 0 : i32
    %c0_i32_0 = arith.constant 0 : i32
    return %c0_i32 : i32
  }
  func.func @transform_5(%arg0: i32) -> (i32, i32, i32) {
    %c0_i32 = arith.constant 0 : i32
    %c0_i32_0 = arith.constant 0 : i32
    %c0_i32_1 = arith.constant 0 : i32
    return %arg0, %c0_i32, %c0_i32_0 : i32, i32, i32
  }
  func.func @transform_6(%arg0: i32) -> (i32, i32, i32) {
    %c0_i32 = arith.constant 0 : i32
    %c0_i32_0 = arith.constant 0 : i32
    %c0_i32_1 = arith.constant 0 : i32
    return %arg0, %c0_i32, %c0_i32_0 : i32, i32, i32
  }
}

module attributes {stable_mosaic.version = 11 : i64} {
  func.func @kernel(%arg0: i32, %arg1: memref<1x72x16xbf16, #tpu.memory_space<vmem>>, %arg2: memref<1x8x72xbf16, #tpu.memory_space<vmem>>, %arg3: memref<8x1xf32, #tpu.memory_space<vmem>>, %arg4: memref<1xf32, #tpu.memory_space<smem>>, %arg5: memref<1x8x16xf32, #tpu.memory_space<vmem>>) attributes {dimension_semantics = [#tpu.dimension_semantics<parallel>], iteration_bounds = array<i64: 2>, scalar_prefetch = 0 : i64, scratch_operands = 0 : i64, tpu.core_type = #tpu.core_type<tc>, window_params = [{transform_indices = @transform_0, window_bounds = array<i64: 1, 72, 16>}, {pipeline_mode = #tpu.pipeline_mode<synchronous>, transform_indices = @transform_1, window_bounds = array<i64: 1, 8, 72>}, {pipeline_mode = #tpu.pipeline_mode<synchronous>, transform_indices = @transform_2, window_bounds = array<i64: 8, 1>}, {transform_indices = @transform_3, window_bounds = array<i64: 1>}, {transform_indices = @transform_4, window_bounds = array<i64: 1, 8, 16>}]} {
    %c0 = arith.constant 0 : index
    %c0_0 = arith.constant 0 : index
    %c0_1 = arith.constant 0 : index
    %0 = vector.load %arg1[%c0, %c0_0, %c0_1] : memref<1x72x16xbf16, #tpu.memory_space<vmem>>, vector<1x72x16xbf16>
    %1 = vector.shape_cast %0 : vector<1x72x16xbf16> to vector<72x16xbf16>
    %c0_2 = arith.constant 0 : index
    %c0_3 = arith.constant 0 : index
    %c0_4 = arith.constant 0 : index
    %2 = vector.load %arg2[%c0_2, %c0_3, %c0_4] : memref<1x8x72xbf16, #tpu.memory_space<vmem>>, vector<1x8x72xbf16>
    %3 = vector.shape_cast %2 : vector<1x8x72xbf16> to vector<8x72xbf16>
    %cst = arith.constant dense<0.000000e+00> : vector<8x16xf32>
    %4 = tpu.matmul %3, %1, %cst {dimension_numbers = #tpu.dot_dimension_numbers<[1], [0], [0], [1], [0, 0, 1, 1], [], []>} : vector<8x72xbf16>, vector<72x16xbf16>, vector<8x16xf32> -> vector<8x16xf32>
    %c0_5 = arith.constant 0 : index
    %c0_6 = arith.constant 0 : index
    %5 = vector.load %arg3[%c0_5, %c0_6] : memref<8x1xf32, #tpu.memory_space<vmem>>, vector<8x1xf32>
    %6 = vector.broadcast %5 : vector<8x1xf32> to vector<8x16xf32>
    %7 = arith.addf %4, %6 : vector<8x16xf32>
    %cst_7 = arith.constant dense<0.000000e+00> : vector<8xf32>
    %8 = vector.multi_reduction <add>, %7, %cst_7 [1] : vector<8x16xf32> to vector<8xf32>
    %9 = vector.shape_cast %8 : vector<8xf32> to vector<8x1xf32>
    %cst_8 = arith.constant 6.250000e-02 : f32
    %10 = vector.broadcast %cst_8 : f32 to vector<8x1xf32>
    %11 = arith.mulf %9, %10 : vector<8x1xf32>
    %12 = vector.broadcast %11 : vector<8x1xf32> to vector<8x16xf32>
    %13 = arith.subf %7, %12 : vector<8x16xf32>
    %14 = arith.mulf %13, %13 : vector<8x16xf32>
    %cst_9 = arith.constant dense<0.000000e+00> : vector<8xf32>
    %15 = vector.multi_reduction <add>, %14, %cst_9 [1] : vector<8x16xf32> to vector<8xf32>
    %16 = vector.shape_cast %15 : vector<8xf32> to vector<8x1xf32>
    %cst_10 = arith.constant 6.250000e-02 : f32
    %17 = vector.broadcast %cst_10 : f32 to vector<8x1xf32>
    %18 = arith.mulf %16, %17 : vector<8x1xf32>
    %cst_11 = arith.constant 9.99999974E-6 : f32
    %19 = vector.broadcast %cst_11 : f32 to vector<8x1xf32>
    %20 = arith.addf %18, %19 : vector<8x1xf32>
    %21 = math.rsqrt %20 : vector<8x1xf32>
    %22 = vector.broadcast %21 : vector<8x1xf32> to vector<8x16xf32>
    %23 = arith.mulf %13, %22 : vector<8x16xf32>
    %c0_12 = arith.constant 0 : index
    %24 = memref.load %arg4[%c0_12] : memref<1xf32, #tpu.memory_space<smem>>
    %cst_13 = arith.constant 0.000000e+00 : f32
    %25 = vector.broadcast %cst_13 : f32 to vector<8x16xf32>
    %26 = arith.cmpf oge, %23, %25 : vector<8x16xf32>
    %27 = vector.broadcast %24 : f32 to vector<8x16xf32>
    %28 = arith.mulf %27, %23 : vector<8x16xf32>
    %29 = arith.select %26, %23, %28 : vector<8x16xi1>, vector<8x16xf32>
    %c0_14 = arith.constant 0 : index
    %c0_15 = arith.constant 0 : index
    %c0_16 = arith.constant 0 : index
    %30 = vector.load %arg5[%c0_14, %c0_15, %c0_16] : memref<1x8x16xf32, #tpu.memory_space<vmem>>, vector<1x8x16xf32>
    %31 = vector.shape_cast %30 : vector<1x8x16xf32> to vector<8x16xf32>
    %32 = vector.shape_cast %29 : vector<8x16xf32> to vector<1x8x16xf32>
    tpu.vector_store %arg5[%c0_14, %c0_15, %c0_16], %32 {strides = array<i32>} : memref<1x8x16xf32, #tpu.memory_space<vmem>>, vector<1x8x16xf32>,
    return
  }
  func.func @transform_0(%arg0: i32) -> (i32, i32, i32) {
    %c0_i32 = arith.constant 0 : i32
    %c0_i32_0 = arith.constant 0 : i32
    %c0_i32_1 = arith.constant 0 : i32
    return %arg0, %c0_i32, %c0_i32_0 : i32, i32, i32
  }
  func.func @transform_1(%arg0: i32) -> (i32, i32, i32) {
    %c0_i32 = arith.constant 0 : i32
    %c0_i32_0 = arith.constant 0 : i32
    %c0_i32_1 = arith.constant 0 : i32
    %c0_i32_2 = arith.constant 0 : i32
    return %c0_i32, %c0_i32_0, %c0_i32_1 : i32, i32, i32
  }
  func.func @transform_2(%arg0: i32) -> (i32, i32) {
    %c0_i32 = arith.constant 0 : i32
    %c0_i32_0 = arith.constant 0 : i32
    %c0_i32_1 = arith.constant 0 : i32
    return %c0_i32, %c0_i32_0 : i32, i32
  }
  func.func @transform_3(%arg0: i32) -> i32 {
    %c0_i32 = arith.constant 0 : i32
    %c0_i32_0 = arith.constant 0 : i32
    return %c0_i32 : i32
  }
  func.func @transform_4(%arg0: i32) -> (i32, i32, i32) {
    %c0_i32 = arith.constant 0 : i32
    %c0_i32_0 = arith.constant 0 : i32
    %c0_i32_1 = arith.constant 0 : i32
    return %arg0, %c0_i32, %c0_i32_0 : i32, i32, i32
  }
}

module attributes {stable_mosaic.version = 11 : i64} {
  func.func @kernel(%arg0: i32, %arg1: memref<1x72x16xbf16, #tpu.memory_space<vmem>>, %arg2: memref<1x8x72xbf16, #tpu.memory_space<vmem>>, %arg3: memref<8x1xf32, #tpu.memory_space<vmem>>, %arg4: memref<1x8x16xf32, #tpu.memory_space<vmem>>) attributes {dimension_semantics = [#tpu.dimension_semantics<parallel>], iteration_bounds = array<i64: 2>, scalar_prefetch = 0 : i64, scratch_operands = 0 : i64, tpu.core_type = #tpu.core_type<tc>, window_params = [{transform_indices = @transform_0, window_bounds = array<i64: 1, 72, 16>}, {pipeline_mode = #tpu.pipeline_mode<synchronous>, transform_indices = @transform_1, window_bounds = array<i64: 1, 8, 72>}, {pipeline_mode = #tpu.pipeline_mode<synchronous>, transform_indices = @transform_2, window_bounds = array<i64: 8, 1>}, {transform_indices = @transform_3, window_bounds = array<i64: 1, 8, 16>}]} {
    %c0 = arith.constant 0 : index
    %c0_0 = arith.constant 0 : index
    %c0_1 = arith.constant 0 : index
    %0 = vector.load %arg1[%c0, %c0_0, %c0_1] : memref<1x72x16xbf16, #tpu.memory_space<vmem>>, vector<1x72x16xbf16>
    %1 = vector.shape_cast %0 : vector<1x72x16xbf16> to vector<72x16xbf16>
    %c0_2 = arith.constant 0 : index
    %c0_3 = arith.constant 0 : index
    %c0_4 = arith.constant 0 : index
    %2 = vector.load %arg2[%c0_2, %c0_3, %c0_4] : memref<1x8x72xbf16, #tpu.memory_space<vmem>>, vector<1x8x72xbf16>
    %3 = vector.shape_cast %2 : vector<1x8x72xbf16> to vector<8x72xbf16>
    %cst = arith.constant dense<0.000000e+00> : vector<8x16xf32>
    %4 = tpu.matmul %3, %1, %cst {dimension_numbers = #tpu.dot_dimension_numbers<[1], [0], [0], [1], [0, 0, 1, 1], [], []>} : vector<8x72xbf16>, vector<72x16xbf16>, vector<8x16xf32> -> vector<8x16xf32>
    %c0_5 = arith.constant 0 : index
    %c0_6 = arith.constant 0 : index
    %5 = vector.load %arg3[%c0_5, %c0_6] : memref<8x1xf32, #tpu.memory_space<vmem>>, vector<8x1xf32>
    %6 = vector.broadcast %5 : vector<8x1xf32> to vector<8x16xf32>
    %7 = arith.addf %4, %6 : vector<8x16xf32>
    %c0_7 = arith.constant 0 : index
    %c0_8 = arith.constant 0 : index
    %c0_9 = arith.constant 0 : index
    %8 = vector.load %arg4[%c0_7, %c0_8, %c0_9] : memref<1x8x16xf32, #tpu.memory_space<vmem>>, vector<1x8x16xf32>
    %9 = vector.shape_cast %8 : vector<1x8x16xf32> to vector<8x16xf32>
    %10 = vector.shape_cast %7 : vector<8x16xf32> to vector<1x8x16xf32>
    tpu.vector_store %arg4[%c0_7, %c0_8, %c0_9], %10 {strides = array<i32>} : memref<1x8x16xf32, #tpu.memory_space<vmem>>, vector<1x8x16xf32>,
    return
  }
  func.func @transform_0(%arg0: i32) -> (i32, i32, i32) {
    %c0_i32 = arith.constant 0 : i32
    %c0_i32_0 = arith.constant 0 : i32
    %c0_i32_1 = arith.constant 0 : i32
    return %arg0, %c0_i32, %c0_i32_0 : i32, i32, i32
  }
  func.func @transform_1(%arg0: i32) -> (i32, i32, i32) {
    %c0_i32 = arith.constant 0 : i32
    %c0_i32_0 = arith.constant 0 : i32
    %c0_i32_1 = arith.constant 0 : i32
    %c0_i32_2 = arith.constant 0 : i32
    return %c0_i32, %c0_i32_0, %c0_i32_1 : i32, i32, i32
  }
  func.func @transform_2(%arg0: i32) -> (i32, i32) {
    %c0_i32 = arith.constant 0 : i32
    %c0_i32_0 = arith.constant 0 : i32
    %c0_i32_1 = arith.constant 0 : i32
    return %c0_i32, %c0_i32_0 : i32, i32
  }
  func.func @transform_3(%arg0: i32) -> (i32, i32, i32) {
    %c0_i32 = arith.constant 0 : i32
    %c0_i32_0 = arith.constant 0 : i32
    %c0_i32_1 = arith.constant 0 : i32
    return %arg0, %c0_i32, %c0_i32_0 : i32, i32, i32
  }
}

module attributes {stable_mosaic.version = 11 : i64} {
  func.func @kernel(%arg0: i32, %arg1: memref<1x8x38xbf16, #tpu.memory_space<vmem>>, %arg2: memref<9x8x8xbf16, #tpu.memory_space<vmem>>, %arg3: memref<8x1xf32, #tpu.memory_space<vmem>>, %arg4: memref<1x24xf32, #tpu.memory_space<vmem>>, %arg5: memref<1xf32, #tpu.memory_space<smem>>, %arg6: memref<1x8x24xf32, #tpu.memory_space<vmem>>, %arg7: memref<1x8x24xf32, #tpu.memory_space<vmem>>) attributes {dimension_semantics = [#tpu.dimension_semantics<parallel>], iteration_bounds = array<i64: 2>, scalar_prefetch = 0 : i64, scratch_operands = 0 : i64, tpu.core_type = #tpu.core_type<tc>, window_params = [{transform_indices = @transform_0, window_bounds = array<i64: 1, 8, 38>}, {pipeline_mode = #tpu.pipeline_mode<synchronous>, transform_indices = @transform_1, window_bounds = array<i64: 9, 8, 8>}, {pipeline_mode = #tpu.pipeline_mode<synchronous>, transform_indices = @transform_2, window_bounds = array<i64: 8, 1>}, {pipeline_mode = #tpu.pipeline_mode<synchronous>, transform_indices = @transform_3, window_bounds = array<i64: 1, 24>}, {transform_indices = @transform_4, window_bounds = array<i64: 1>}, {transform_indices = @transform_5, window_bounds = array<i64: 1, 8, 24>}, {transform_indices = @transform_6, window_bounds = array<i64: 1, 8, 24>}]} {
    %c0 = arith.constant 0 : index
    %c0_0 = arith.constant 0 : index
    %c0_1 = arith.constant 0 : index
    %0 = vector.load %arg1[%c0, %c0_0, %c0_1] : memref<1x8x38xbf16, #tpu.memory_space<vmem>>, vector<1x8x24xbf16>
    %1 = vector.shape_cast %0 : vector<1x8x24xbf16> to vector<8x24xbf16>
    %c0_2 = arith.constant 0 : index
    %c0_3 = arith.constant 0 : index
    %c0_4 = arith.constant 0 : index
    %2 = vector.load %arg2[%c0_2, %c0_3, %c0_4] : memref<9x8x8xbf16, #tpu.memory_space<vmem>>, vector<1x8x8xbf16>
    %3 = vector.shape_cast %2 : vector<1x8x8xbf16> to vector<8x8xbf16>
    %cst = arith.constant dense<0.000000e+00> : vector<8x24xf32>
    %4 = tpu.matmul %3, %1, %cst {dimension_numbers = #tpu.dot_dimension_numbers<[1], [0], [0], [1], [0, 0, 1, 1], [], []>} : vector<8x8xbf16>, vector<8x24xbf16>, vector<8x24xf32> -> vector<8x24xf32>
    %c0_5 = arith.constant 0 : index
    %c0_6 = arith.constant 0 : index
    %c1 = arith.constant 1 : index
    %5 = vector.load %arg1[%c0_5, %c0_6, %c1] : memref<1x8x38xbf16, #tpu.memory_space<vmem>>, vector<1x8x24xbf16>
    %6 = vector.shape_cast %5 : vector<1x8x24xbf16> to vector<8x24xbf16>
    %c1_7 = arith.constant 1 : index
    %c0_8 = arith.constant 0 : index
    %c0_9 = arith.constant 0 : index
    %7 = vector.load %arg2[%c1_7, %c0_8, %c0_9] : memref<9x8x8xbf16, #tpu.memory_space<vmem>>, vector<1x8x8xbf16>
    %8 = vector.shape_cast %7 : vector<1x8x8xbf16> to vector<8x8xbf16>
    %cst_10 = arith.constant dense<0.000000e+00> : vector<8x24xf32>
    %9 = tpu.matmul %8, %6, %cst_10 {dimension_numbers = #tpu.dot_dimension_numbers<[1], [0], [0], [1], [0, 0, 1, 1], [], []>} : vector<8x8xbf16>, vector<8x24xbf16>, vector<8x24xf32> -> vector<8x24xf32>
    %10 = arith.addf %4, %9 : vector<8x24xf32>
    %c0_11 = arith.constant 0 : index
    %c0_12 = arith.constant 0 : index
    %c2 = arith.constant 2 : index
    %11 = vector.load %arg1[%c0_11, %c0_12, %c2] : memref<1x8x38xbf16, #tpu.memory_space<vmem>>, vector<1x8x24xbf16>
    %12 = vector.shape_cast %11 : vector<1x8x24xbf16> to vector<8x24xbf16>
    %c2_13 = arith.constant 2 : index
    %c0_14 = arith.constant 0 : index
    %c0_15 = arith.constant 0 : index
    %13 = vector.load %arg2[%c2_13, %c0_14, %c0_15] : memref<9x8x8xbf16, #tpu.memory_space<vmem>>, vector<1x8x8xbf16>
    %14 = vector.shape_cast %13 : vector<1x8x8xbf16> to vector<8x8xbf16>
    %cst_16 = arith.constant dense<0.000000e+00> : vector<8x24xf32>
    %15 = tpu.matmul %14, %12, %cst_16 {dimension_numbers = #tpu.dot_dimension_numbers<[1], [0], [0], [1], [0, 0, 1, 1], [], []>} : vector<8x8xbf16>, vector<8x24xbf16>, vector<8x24xf32> -> vector<8x24xf32>
    %16 = arith.addf %10, %15 : vector<8x24xf32>
    %c0_17 = arith.constant 0 : index
    %c0_18 = arith.constant 0 : index
    %c6 = arith.constant 6 : index
    %17 = vector.load %arg1[%c0_17, %c0_18, %c6] : memref<1x8x38xbf16, #tpu.memory_space<vmem>>, vector<1x8x24xbf16>
    %18 = vector.shape_cast %17 : vector<1x8x24xbf16> to vector<8x24xbf16>
    %c3 = arith.constant 3 : index
    %c0_19 = arith.constant 0 : index
    %c0_20 = arith.constant 0 : index
    %19 = vector.load %arg2[%c3, %c0_19, %c0_20] : memref<9x8x8xbf16, #tpu.memory_space<vmem>>, vector<1x8x8xbf16>
    %20 = vector.shape_cast %19 : vector<1x8x8xbf16> to vector<8x8xbf16>
    %cst_21 = arith.constant dense<0.000000e+00> : vector<8x24xf32>
    %21 = tpu.matmul %20, %18, %cst_21 {dimension_numbers = #tpu.dot_dimension_numbers<[1], [0], [0], [1], [0, 0, 1, 1], [], []>} : vector<8x8xbf16>, vector<8x24xbf16>, vector<8x24xf32> -> vector<8x24xf32>
    %22 = arith.addf %16, %21 : vector<8x24xf32>
    %c0_22 = arith.constant 0 : index
    %c0_23 = arith.constant 0 : index
    %c7 = arith.constant 7 : index
    %23 = vector.load %arg1[%c0_22, %c0_23, %c7] : memref<1x8x38xbf16, #tpu.memory_space<vmem>>, vector<1x8x24xbf16>
    %24 = vector.shape_cast %23 : vector<1x8x24xbf16> to vector<8x24xbf16>
    %c4 = arith.constant 4 : index
    %c0_24 = arith.constant 0 : index
    %c0_25 = arith.constant 0 : index
    %25 = vector.load %arg2[%c4, %c0_24, %c0_25] : memref<9x8x8xbf16, #tpu.memory_space<vmem>>, vector<1x8x8xbf16>
    %26 = vector.shape_cast %25 : vector<1x8x8xbf16> to vector<8x8xbf16>
    %cst_26 = arith.constant dense<0.000000e+00> : vector<8x24xf32>
    %27 = tpu.matmul %26, %24, %cst_26 {dimension_numbers = #tpu.dot_dimension_numbers<[1], [0], [0], [1], [0, 0, 1, 1], [], []>} : vector<8x8xbf16>, vector<8x24xbf16>, vector<8x24xf32> -> vector<8x24xf32>
    %28 = arith.addf %22, %27 : vector<8x24xf32>
    %c0_27 = arith.constant 0 : index
    %c0_28 = arith.constant 0 : index
    %c8 = arith.constant 8 : index
    %29 = vector.load %arg1[%c0_27, %c0_28, %c8] : memref<1x8x38xbf16, #tpu.memory_space<vmem>>, vector<1x8x24xbf16>
    %30 = vector.shape_cast %29 : vector<1x8x24xbf16> to vector<8x24xbf16>
    %c5 = arith.constant 5 : index
    %c0_29 = arith.constant 0 : index
    %c0_30 = arith.constant 0 : index
    %31 = vector.load %arg2[%c5, %c0_29, %c0_30] : memref<9x8x8xbf16, #tpu.memory_space<vmem>>, vector<1x8x8xbf16>
    %32 = vector.shape_cast %31 : vector<1x8x8xbf16> to vector<8x8xbf16>
    %cst_31 = arith.constant dense<0.000000e+00> : vector<8x24xf32>
    %33 = tpu.matmul %32, %30, %cst_31 {dimension_numbers = #tpu.dot_dimension_numbers<[1], [0], [0], [1], [0, 0, 1, 1], [], []>} : vector<8x8xbf16>, vector<8x24xbf16>, vector<8x24xf32> -> vector<8x24xf32>
    %34 = arith.addf %28, %33 : vector<8x24xf32>
    %c0_32 = arith.constant 0 : index
    %c0_33 = arith.constant 0 : index
    %c12 = arith.constant 12 : index
    %35 = vector.load %arg1[%c0_32, %c0_33, %c12] : memref<1x8x38xbf16, #tpu.memory_space<vmem>>, vector<1x8x24xbf16>
    %36 = vector.shape_cast %35 : vector<1x8x24xbf16> to vector<8x24xbf16>
    %c6_34 = arith.constant 6 : index
    %c0_35 = arith.constant 0 : index
    %c0_36 = arith.constant 0 : index
    %37 = vector.load %arg2[%c6_34, %c0_35, %c0_36] : memref<9x8x8xbf16, #tpu.memory_space<vmem>>, vector<1x8x8xbf16>
    %38 = vector.shape_cast %37 : vector<1x8x8xbf16> to vector<8x8xbf16>
    %cst_37 = arith.constant dense<0.000000e+00> : vector<8x24xf32>
    %39 = tpu.matmul %38, %36, %cst_37 {dimension_numbers = #tpu.dot_dimension_numbers<[1], [0], [0], [1], [0, 0, 1, 1], [], []>} : vector<8x8xbf16>, vector<8x24xbf16>, vector<8x24xf32> -> vector<8x24xf32>
    %40 = arith.addf %34, %39 : vector<8x24xf32>
    %c0_38 = arith.constant 0 : index
    %c0_39 = arith.constant 0 : index
    %c13 = arith.constant 13 : index
    %41 = vector.load %arg1[%c0_38, %c0_39, %c13] : memref<1x8x38xbf16, #tpu.memory_space<vmem>>, vector<1x8x24xbf16>
    %42 = vector.shape_cast %41 : vector<1x8x24xbf16> to vector<8x24xbf16>
    %c7_40 = arith.constant 7 : index
    %c0_41 = arith.constant 0 : index
    %c0_42 = arith.constant 0 : index
    %43 = vector.load %arg2[%c7_40, %c0_41, %c0_42] : memref<9x8x8xbf16, #tpu.memory_space<vmem>>, vector<1x8x8xbf16>
    %44 = vector.shape_cast %43 : vector<1x8x8xbf16> to vector<8x8xbf16>
    %cst_43 = arith.constant dense<0.000000e+00> : vector<8x24xf32>
    %45 = tpu.matmul %44, %42, %cst_43 {dimension_numbers = #tpu.dot_dimension_numbers<[1], [0], [0], [1], [0, 0, 1, 1], [], []>} : vector<8x8xbf16>, vector<8x24xbf16>, vector<8x24xf32> -> vector<8x24xf32>
    %46 = arith.addf %40, %45 : vector<8x24xf32>
    %c0_44 = arith.constant 0 : index
    %c0_45 = arith.constant 0 : index
    %c14 = arith.constant 14 : index
    %47 = vector.load %arg1[%c0_44, %c0_45, %c14] : memref<1x8x38xbf16, #tpu.memory_space<vmem>>, vector<1x8x24xbf16>
    %48 = vector.shape_cast %47 : vector<1x8x24xbf16> to vector<8x24xbf16>
    %c8_46 = arith.constant 8 : index
    %c0_47 = arith.constant 0 : index
    %c0_48 = arith.constant 0 : index
    %49 = vector.load %arg2[%c8_46, %c0_47, %c0_48] : memref<9x8x8xbf16, #tpu.memory_space<vmem>>, vector<1x8x8xbf16>
    %50 = vector.shape_cast %49 : vector<1x8x8xbf16> to vector<8x8xbf16>
    %cst_49 = arith.constant dense<0.000000e+00> : vector<8x24xf32>
    %51 = tpu.matmul %50, %48, %cst_49 {dimension_numbers = #tpu.dot_dimension_numbers<[1], [0], [0], [1], [0, 0, 1, 1], [], []>} : vector<8x8xbf16>, vector<8x24xbf16>, vector<8x24xf32> -> vector<8x24xf32>
    %52 = arith.addf %46, %51 : vector<8x24xf32>
    %c0_50 = arith.constant 0 : index
    %c0_51 = arith.constant 0 : index
    %53 = vector.load %arg3[%c0_50, %c0_51] : memref<8x1xf32, #tpu.memory_space<vmem>>, vector<8x1xf32>
    %54 = vector.broadcast %53 : vector<8x1xf32> to vector<8x24xf32>
    %55 = arith.addf %52, %54 : vector<8x24xf32>
    %c0_52 = arith.constant 0 : index
    %c0_53 = arith.constant 0 : index
    %56 = vector.load %arg4[%c0_52, %c0_53] : memref<1x24xf32, #tpu.memory_space<vmem>>, vector<1x24xf32>
    %57 = vector.broadcast %56 : vector<1x24xf32> to vector<8x24xf32>
    %58 = arith.mulf %55, %57 : vector<8x24xf32>
    %cst_54 = arith.constant dense<0.000000e+00> : vector<8xf32>
    %59 = vector.multi_reduction <add>, %58, %cst_54 [1] : vector<8x24xf32> to vector<8xf32>
    %60 = vector.shape_cast %59 : vector<8xf32> to vector<8x1xf32>
    %cst_55 = arith.constant 6.250000e-02 : f32
    %61 = vector.broadcast %cst_55 : f32 to vector<8x1xf32>
    %62 = arith.mulf %60, %61 : vector<8x1xf32>
    %63 = vector.broadcast %62 : vector<8x1xf32> to vector<8x24xf32>
    %64 = arith.subf %55, %63 : vector<8x24xf32>
    %65 = arith.mulf %64, %64 : vector<8x24xf32>
    %66 = vector.broadcast %56 : vector<1x24xf32> to vector<8x24xf32>
    %67 = arith.mulf %65, %66 : vector<8x24xf32>
    %cst_56 = arith.constant dense<0.000000e+00> : vector<8xf32>
    %68 = vector.multi_reduction <add>, %67, %cst_56 [1] : vector<8x24xf32> to vector<8xf32>
    %69 = vector.shape_cast %68 : vector<8xf32> to vector<8x1xf32>
    %cst_57 = arith.constant 6.250000e-02 : f32
    %70 = vector.broadcast %cst_57 : f32 to vector<8x1xf32>
    %71 = arith.mulf %69, %70 : vector<8x1xf32>
    %cst_58 = arith.constant 9.99999974E-6 : f32
    %72 = vector.broadcast %cst_58 : f32 to vector<8x1xf32>
    %73 = arith.addf %71, %72 : vector<8x1xf32>
    %74 = math.rsqrt %73 : vector<8x1xf32>
    %75 = vector.broadcast %74 : vector<8x1xf32> to vector<8x24xf32>
    %76 = arith.mulf %64, %75 : vector<8x24xf32>
    %c0_59 = arith.constant 0 : index
    %77 = memref.load %arg5[%c0_59] : memref<1xf32, #tpu.memory_space<smem>>
    %cst_60 = arith.constant 0.000000e+00 : f32
    %78 = vector.broadcast %cst_60 : f32 to vector<8x24xf32>
    %79 = arith.cmpf oge, %76, %78 : vector<8x24xf32>
    %80 = vector.broadcast %77 : f32 to vector<8x24xf32>
    %81 = arith.mulf %80, %76 : vector<8x24xf32>
    %82 = arith.select %79, %76, %81 : vector<8x24xi1>, vector<8x24xf32>
    %c0_61 = arith.constant 0 : index
    %c0_62 = arith.constant 0 : index
    %c0_63 = arith.constant 0 : index
    %83 = vector.load %arg6[%c0_61, %c0_62, %c0_63] : memref<1x8x24xf32, #tpu.memory_space<vmem>>, vector<1x8x24xf32>
    %84 = vector.shape_cast %83 : vector<1x8x24xf32> to vector<8x24xf32>
    %85 = arith.addf %82, %84 : vector<8x24xf32>
    %c0_64 = arith.constant 0 : index
    %c0_65 = arith.constant 0 : index
    %c0_66 = arith.constant 0 : index
    %86 = vector.load %arg7[%c0_64, %c0_65, %c0_66] : memref<1x8x24xf32, #tpu.memory_space<vmem>>, vector<1x8x24xf32>
    %87 = vector.shape_cast %86 : vector<1x8x24xf32> to vector<8x24xf32>
    %88 = vector.shape_cast %85 : vector<8x24xf32> to vector<1x8x24xf32>
    tpu.vector_store %arg7[%c0_64, %c0_65, %c0_66], %88 {strides = array<i32>} : memref<1x8x24xf32, #tpu.memory_space<vmem>>, vector<1x8x24xf32>,
    return
  }
  func.func @transform_0(%arg0: i32) -> (i32, i32, i32) {
    %c0_i32 = arith.constant 0 : i32
    %c0_i32_0 = arith.constant 0 : i32
    %c0_i32_1 = arith.constant 0 : i32
    return %arg0, %c0_i32, %c0_i32_0 : i32, i32, i32
  }
  func.func @transform_1(%arg0: i32) -> (i32, i32, i32) {
    %c0_i32 = arith.constant 0 : i32
    %c0_i32_0 = arith.constant 0 : i32
    %c0_i32_1 = arith.constant 0 : i32
    %c0_i32_2 = arith.constant 0 : i32
    return %c0_i32, %c0_i32_0, %c0_i32_1 : i32, i32, i32
  }
  func.func @transform_2(%arg0: i32) -> (i32, i32) {
    %c0_i32 = arith.constant 0 : i32
    %c0_i32_0 = arith.constant 0 : i32
    %c0_i32_1 = arith.constant 0 : i32
    return %c0_i32, %c0_i32_0 : i32, i32
  }
  func.func @transform_3(%arg0: i32) -> (i32, i32) {
    %c0_i32 = arith.constant 0 : i32
    %c0_i32_0 = arith.constant 0 : i32
    %c0_i32_1 = arith.constant 0 : i32
    return %c0_i32, %c0_i32_0 : i32, i32
  }
  func.func @transform_4(%arg0: i32) -> i32 {
    %c0_i32 = arith.constant 0 : i32
    %c0_i32_0 = arith.constant 0 : i32
    return %c0_i32 : i32
  }
  func.func @transform_5(%arg0: i32) -> (i32, i32, i32) {
    %c0_i32 = arith.constant 0 : i32
    %c0_i32_0 = arith.constant 0 : i32
    %c0_i32_1 = arith.constant 0 : i32
    return %arg0, %c0_i32, %c0_i32_0 : i32, i32, i32
  }
  func.func @transform_6(%arg0: i32) -> (i32, i32, i32) {
    %c0_i32 = arith.constant 0 : i32
    %c0_i32_0 = arith.constant 0 : i32
    %c0_i32_1 = arith.constant 0 : i32
    return %arg0, %c0_i32, %c0_i32_0 : i32, i32, i32
  }
}

module attributes {stable_mosaic.version = 11 : i64} {
  func.func @kernel(%arg0: i32, %arg1: memref<1x8x38xbf16, #tpu.memory_space<vmem>>, %arg2: memref<9x8x8xbf16, #tpu.memory_space<vmem>>, %arg3: memref<8x1xf32, #tpu.memory_space<vmem>>, %arg4: memref<1x24xf32, #tpu.memory_space<vmem>>, %arg5: memref<1xf32, #tpu.memory_space<smem>>, %arg6: memref<1x8x24xf32, #tpu.memory_space<vmem>>) attributes {dimension_semantics = [#tpu.dimension_semantics<parallel>], iteration_bounds = array<i64: 2>, scalar_prefetch = 0 : i64, scratch_operands = 0 : i64, tpu.core_type = #tpu.core_type<tc>, window_params = [{transform_indices = @transform_0, window_bounds = array<i64: 1, 8, 38>}, {pipeline_mode = #tpu.pipeline_mode<synchronous>, transform_indices = @transform_1, window_bounds = array<i64: 9, 8, 8>}, {pipeline_mode = #tpu.pipeline_mode<synchronous>, transform_indices = @transform_2, window_bounds = array<i64: 8, 1>}, {pipeline_mode = #tpu.pipeline_mode<synchronous>, transform_indices = @transform_3, window_bounds = array<i64: 1, 24>}, {transform_indices = @transform_4, window_bounds = array<i64: 1>}, {transform_indices = @transform_5, window_bounds = array<i64: 1, 8, 24>}]} {
    %c0 = arith.constant 0 : index
    %c0_0 = arith.constant 0 : index
    %c0_1 = arith.constant 0 : index
    %0 = vector.load %arg1[%c0, %c0_0, %c0_1] : memref<1x8x38xbf16, #tpu.memory_space<vmem>>, vector<1x8x24xbf16>
    %1 = vector.shape_cast %0 : vector<1x8x24xbf16> to vector<8x24xbf16>
    %c0_2 = arith.constant 0 : index
    %c0_3 = arith.constant 0 : index
    %c0_4 = arith.constant 0 : index
    %2 = vector.load %arg2[%c0_2, %c0_3, %c0_4] : memref<9x8x8xbf16, #tpu.memory_space<vmem>>, vector<1x8x8xbf16>
    %3 = vector.shape_cast %2 : vector<1x8x8xbf16> to vector<8x8xbf16>
    %cst = arith.constant dense<0.000000e+00> : vector<8x24xf32>
    %4 = tpu.matmul %3, %1, %cst {dimension_numbers = #tpu.dot_dimension_numbers<[1], [0], [0], [1], [0, 0, 1, 1], [], []>} : vector<8x8xbf16>, vector<8x24xbf16>, vector<8x24xf32> -> vector<8x24xf32>
    %c0_5 = arith.constant 0 : index
    %c0_6 = arith.constant 0 : index
    %c1 = arith.constant 1 : index
    %5 = vector.load %arg1[%c0_5, %c0_6, %c1] : memref<1x8x38xbf16, #tpu.memory_space<vmem>>, vector<1x8x24xbf16>
    %6 = vector.shape_cast %5 : vector<1x8x24xbf16> to vector<8x24xbf16>
    %c1_7 = arith.constant 1 : index
    %c0_8 = arith.constant 0 : index
    %c0_9 = arith.constant 0 : index
    %7 = vector.load %arg2[%c1_7, %c0_8, %c0_9] : memref<9x8x8xbf16, #tpu.memory_space<vmem>>, vector<1x8x8xbf16>
    %8 = vector.shape_cast %7 : vector<1x8x8xbf16> to vector<8x8xbf16>
    %cst_10 = arith.constant dense<0.000000e+00> : vector<8x24xf32>
    %9 = tpu.matmul %8, %6, %cst_10 {dimension_numbers = #tpu.dot_dimension_numbers<[1], [0], [0], [1], [0, 0, 1, 1], [], []>} : vector<8x8xbf16>, vector<8x24xbf16>, vector<8x24xf32> -> vector<8x24xf32>
    %10 = arith.addf %4, %9 : vector<8x24xf32>
    %c0_11 = arith.constant 0 : index
    %c0_12 = arith.constant 0 : index
    %c2 = arith.constant 2 : index
    %11 = vector.load %arg1[%c0_11, %c0_12, %c2] : memref<1x8x38xbf16, #tpu.memory_space<vmem>>, vector<1x8x24xbf16>
    %12 = vector.shape_cast %11 : vector<1x8x24xbf16> to vector<8x24xbf16>
    %c2_13 = arith.constant 2 : index
    %c0_14 = arith.constant 0 : index
    %c0_15 = arith.constant 0 : index
    %13 = vector.load %arg2[%c2_13, %c0_14, %c0_15] : memref<9x8x8xbf16, #tpu.memory_space<vmem>>, vector<1x8x8xbf16>
    %14 = vector.shape_cast %13 : vector<1x8x8xbf16> to vector<8x8xbf16>
    %cst_16 = arith.constant dense<0.000000e+00> : vector<8x24xf32>
    %15 = tpu.matmul %14, %12, %cst_16 {dimension_numbers = #tpu.dot_dimension_numbers<[1], [0], [0], [1], [0, 0, 1, 1], [], []>} : vector<8x8xbf16>, vector<8x24xbf16>, vector<8x24xf32> -> vector<8x24xf32>
    %16 = arith.addf %10, %15 : vector<8x24xf32>
    %c0_17 = arith.constant 0 : index
    %c0_18 = arith.constant 0 : index
    %c6 = arith.constant 6 : index
    %17 = vector.load %arg1[%c0_17, %c0_18, %c6] : memref<1x8x38xbf16, #tpu.memory_space<vmem>>, vector<1x8x24xbf16>
    %18 = vector.shape_cast %17 : vector<1x8x24xbf16> to vector<8x24xbf16>
    %c3 = arith.constant 3 : index
    %c0_19 = arith.constant 0 : index
    %c0_20 = arith.constant 0 : index
    %19 = vector.load %arg2[%c3, %c0_19, %c0_20] : memref<9x8x8xbf16, #tpu.memory_space<vmem>>, vector<1x8x8xbf16>
    %20 = vector.shape_cast %19 : vector<1x8x8xbf16> to vector<8x8xbf16>
    %cst_21 = arith.constant dense<0.000000e+00> : vector<8x24xf32>
    %21 = tpu.matmul %20, %18, %cst_21 {dimension_numbers = #tpu.dot_dimension_numbers<[1], [0], [0], [1], [0, 0, 1, 1], [], []>} : vector<8x8xbf16>, vector<8x24xbf16>, vector<8x24xf32> -> vector<8x24xf32>
    %22 = arith.addf %16, %21 : vector<8x24xf32>
    %c0_22 = arith.constant 0 : index
    %c0_23 = arith.constant 0 : index
    %c7 = arith.constant 7 : index
    %23 = vector.load %arg1[%c0_22, %c0_23, %c7] : memref<1x8x38xbf16, #tpu.memory_space<vmem>>, vector<1x8x24xbf16>
    %24 = vector.shape_cast %23 : vector<1x8x24xbf16> to vector<8x24xbf16>
    %c4 = arith.constant 4 : index
    %c0_24 = arith.constant 0 : index
    %c0_25 = arith.constant 0 : index
    %25 = vector.load %arg2[%c4, %c0_24, %c0_25] : memref<9x8x8xbf16, #tpu.memory_space<vmem>>, vector<1x8x8xbf16>
    %26 = vector.shape_cast %25 : vector<1x8x8xbf16> to vector<8x8xbf16>
    %cst_26 = arith.constant dense<0.000000e+00> : vector<8x24xf32>
    %27 = tpu.matmul %26, %24, %cst_26 {dimension_numbers = #tpu.dot_dimension_numbers<[1], [0], [0], [1], [0, 0, 1, 1], [], []>} : vector<8x8xbf16>, vector<8x24xbf16>, vector<8x24xf32> -> vector<8x24xf32>
    %28 = arith.addf %22, %27 : vector<8x24xf32>
    %c0_27 = arith.constant 0 : index
    %c0_28 = arith.constant 0 : index
    %c8 = arith.constant 8 : index
    %29 = vector.load %arg1[%c0_27, %c0_28, %c8] : memref<1x8x38xbf16, #tpu.memory_space<vmem>>, vector<1x8x24xbf16>
    %30 = vector.shape_cast %29 : vector<1x8x24xbf16> to vector<8x24xbf16>
    %c5 = arith.constant 5 : index
    %c0_29 = arith.constant 0 : index
    %c0_30 = arith.constant 0 : index
    %31 = vector.load %arg2[%c5, %c0_29, %c0_30] : memref<9x8x8xbf16, #tpu.memory_space<vmem>>, vector<1x8x8xbf16>
    %32 = vector.shape_cast %31 : vector<1x8x8xbf16> to vector<8x8xbf16>
    %cst_31 = arith.constant dense<0.000000e+00> : vector<8x24xf32>
    %33 = tpu.matmul %32, %30, %cst_31 {dimension_numbers = #tpu.dot_dimension_numbers<[1], [0], [0], [1], [0, 0, 1, 1], [], []>} : vector<8x8xbf16>, vector<8x24xbf16>, vector<8x24xf32> -> vector<8x24xf32>
    %34 = arith.addf %28, %33 : vector<8x24xf32>
    %c0_32 = arith.constant 0 : index
    %c0_33 = arith.constant 0 : index
    %c12 = arith.constant 12 : index
    %35 = vector.load %arg1[%c0_32, %c0_33, %c12] : memref<1x8x38xbf16, #tpu.memory_space<vmem>>, vector<1x8x24xbf16>
    %36 = vector.shape_cast %35 : vector<1x8x24xbf16> to vector<8x24xbf16>
    %c6_34 = arith.constant 6 : index
    %c0_35 = arith.constant 0 : index
    %c0_36 = arith.constant 0 : index
    %37 = vector.load %arg2[%c6_34, %c0_35, %c0_36] : memref<9x8x8xbf16, #tpu.memory_space<vmem>>, vector<1x8x8xbf16>
    %38 = vector.shape_cast %37 : vector<1x8x8xbf16> to vector<8x8xbf16>
    %cst_37 = arith.constant dense<0.000000e+00> : vector<8x24xf32>
    %39 = tpu.matmul %38, %36, %cst_37 {dimension_numbers = #tpu.dot_dimension_numbers<[1], [0], [0], [1], [0, 0, 1, 1], [], []>} : vector<8x8xbf16>, vector<8x24xbf16>, vector<8x24xf32> -> vector<8x24xf32>
    %40 = arith.addf %34, %39 : vector<8x24xf32>
    %c0_38 = arith.constant 0 : index
    %c0_39 = arith.constant 0 : index
    %c13 = arith.constant 13 : index
    %41 = vector.load %arg1[%c0_38, %c0_39, %c13] : memref<1x8x38xbf16, #tpu.memory_space<vmem>>, vector<1x8x24xbf16>
    %42 = vector.shape_cast %41 : vector<1x8x24xbf16> to vector<8x24xbf16>
    %c7_40 = arith.constant 7 : index
    %c0_41 = arith.constant 0 : index
    %c0_42 = arith.constant 0 : index
    %43 = vector.load %arg2[%c7_40, %c0_41, %c0_42] : memref<9x8x8xbf16, #tpu.memory_space<vmem>>, vector<1x8x8xbf16>
    %44 = vector.shape_cast %43 : vector<1x8x8xbf16> to vector<8x8xbf16>
    %cst_43 = arith.constant dense<0.000000e+00> : vector<8x24xf32>
    %45 = tpu.matmul %44, %42, %cst_43 {dimension_numbers = #tpu.dot_dimension_numbers<[1], [0], [0], [1], [0, 0, 1, 1], [], []>} : vector<8x8xbf16>, vector<8x24xbf16>, vector<8x24xf32> -> vector<8x24xf32>
    %46 = arith.addf %40, %45 : vector<8x24xf32>
    %c0_44 = arith.constant 0 : index
    %c0_45 = arith.constant 0 : index
    %c14 = arith.constant 14 : index
    %47 = vector.load %arg1[%c0_44, %c0_45, %c14] : memref<1x8x38xbf16, #tpu.memory_space<vmem>>, vector<1x8x24xbf16>
    %48 = vector.shape_cast %47 : vector<1x8x24xbf16> to vector<8x24xbf16>
    %c8_46 = arith.constant 8 : index
    %c0_47 = arith.constant 0 : index
    %c0_48 = arith.constant 0 : index
    %49 = vector.load %arg2[%c8_46, %c0_47, %c0_48] : memref<9x8x8xbf16, #tpu.memory_space<vmem>>, vector<1x8x8xbf16>
    %50 = vector.shape_cast %49 : vector<1x8x8xbf16> to vector<8x8xbf16>
    %cst_49 = arith.constant dense<0.000000e+00> : vector<8x24xf32>
    %51 = tpu.matmul %50, %48, %cst_49 {dimension_numbers = #tpu.dot_dimension_numbers<[1], [0], [0], [1], [0, 0, 1, 1], [], []>} : vector<8x8xbf16>, vector<8x24xbf16>, vector<8x24xf32> -> vector<8x24xf32>
    %52 = arith.addf %46, %51 : vector<8x24xf32>
    %c0_50 = arith.constant 0 : index
    %c0_51 = arith.constant 0 : index
    %53 = vector.load %arg3[%c0_50, %c0_51] : memref<8x1xf32, #tpu.memory_space<vmem>>, vector<8x1xf32>
    %54 = vector.broadcast %53 : vector<8x1xf32> to vector<8x24xf32>
    %55 = arith.addf %52, %54 : vector<8x24xf32>
    %c0_52 = arith.constant 0 : index
    %c0_53 = arith.constant 0 : index
    %56 = vector.load %arg4[%c0_52, %c0_53] : memref<1x24xf32, #tpu.memory_space<vmem>>, vector<1x24xf32>
    %57 = vector.broadcast %56 : vector<1x24xf32> to vector<8x24xf32>
    %58 = arith.mulf %55, %57 : vector<8x24xf32>
    %cst_54 = arith.constant dense<0.000000e+00> : vector<8xf32>
    %59 = vector.multi_reduction <add>, %58, %cst_54 [1] : vector<8x24xf32> to vector<8xf32>
    %60 = vector.shape_cast %59 : vector<8xf32> to vector<8x1xf32>
    %cst_55 = arith.constant 6.250000e-02 : f32
    %61 = vector.broadcast %cst_55 : f32 to vector<8x1xf32>
    %62 = arith.mulf %60, %61 : vector<8x1xf32>
    %63 = vector.broadcast %62 : vector<8x1xf32> to vector<8x24xf32>
    %64 = arith.subf %55, %63 : vector<8x24xf32>
    %65 = arith.mulf %64, %64 : vector<8x24xf32>
    %66 = vector.broadcast %56 : vector<1x24xf32> to vector<8x24xf32>
    %67 = arith.mulf %65, %66 : vector<8x24xf32>
    %cst_56 = arith.constant dense<0.000000e+00> : vector<8xf32>
    %68 = vector.multi_reduction <add>, %67, %cst_56 [1] : vector<8x24xf32> to vector<8xf32>
    %69 = vector.shape_cast %68 : vector<8xf32> to vector<8x1xf32>
    %cst_57 = arith.constant 6.250000e-02 : f32
    %70 = vector.broadcast %cst_57 : f32 to vector<8x1xf32>
    %71 = arith.mulf %69, %70 : vector<8x1xf32>
    %cst_58 = arith.constant 9.99999974E-6 : f32
    %72 = vector.broadcast %cst_58 : f32 to vector<8x1xf32>
    %73 = arith.addf %71, %72 : vector<8x1xf32>
    %74 = math.rsqrt %73 : vector<8x1xf32>
    %75 = vector.broadcast %74 : vector<8x1xf32> to vector<8x24xf32>
    %76 = arith.mulf %64, %75 : vector<8x24xf32>
    %c0_59 = arith.constant 0 : index
    %77 = memref.load %arg5[%c0_59] : memref<1xf32, #tpu.memory_space<smem>>
    %cst_60 = arith.constant 0.000000e+00 : f32
    %78 = vector.broadcast %cst_60 : f32 to vector<8x24xf32>
    %79 = arith.cmpf oge, %76, %78 : vector<8x24xf32>
    %80 = vector.broadcast %77 : f32 to vector<8x24xf32>
    %81 = arith.mulf %80, %76 : vector<8x24xf32>
    %82 = arith.select %79, %76, %81 : vector<8x24xi1>, vector<8x24xf32>
    %c0_61 = arith.constant 0 : index
    %c0_62 = arith.constant 0 : index
    %c0_63 = arith.constant 0 : index
    %83 = vector.load %arg6[%c0_61, %c0_62, %c0_63] : memref<1x8x24xf32, #tpu.memory_space<vmem>>, vector<1x8x24xf32>
    %84 = vector.shape_cast %83 : vector<1x8x24xf32> to vector<8x24xf32>
    %85 = vector.shape_cast %82 : vector<8x24xf32> to vector<1x8x24xf32>
    tpu.vector_store %arg6[%c0_61, %c0_62, %c0_63], %85 {strides = array<i32>} : memref<1x8x24xf32, #tpu.memory_space<vmem>>, vector<1x8x24xf32>,
    return
  }
  func.func @transform_0(%arg0: i32) -> (i32, i32, i32) {
    %c0_i32 = arith.constant 0 : i32
    %c0_i32_0 = arith.constant 0 : i32
    %c0_i32_1 = arith.constant 0 : i32
    return %arg0, %c0_i32, %c0_i32_0 : i32, i32, i32
  }
  func.func @transform_1(%arg0: i32) -> (i32, i32, i32) {
    %c0_i32 = arith.constant 0 : i32
    %c0_i32_0 = arith.constant 0 : i32
    %c0_i32_1 = arith.constant 0 : i32
    %c0_i32_2 = arith.constant 0 : i32
    return %c0_i32, %c0_i32_0, %c0_i32_1 : i32, i32, i32
  }
  func.func @transform_2(%arg0: i32) -> (i32, i32) {
    %c0_i32 = arith.constant 0 : i32
    %c0_i32_0 = arith.constant 0 : i32
    %c0_i32_1 = arith.constant 0 : i32
    return %c0_i32, %c0_i32_0 : i32, i32
  }
  func.func @transform_3(%arg0: i32) -> (i32, i32) {
    %c0_i32 = arith.constant 0 : i32
    %c0_i32_0 = arith.constant 0 : i32
    %c0_i32_1 = arith.constant 0 : i32
    return %c0_i32, %c0_i32_0 : i32, i32
  }
  func.func @transform_4(%arg0: i32) -> i32 {
    %c0_i32 = arith.constant 0 : i32
    %c0_i32_0 = arith.constant 0 : i32
    return %c0_i32 : i32
  }
  func.func @transform_5(%arg0: i32) -> (i32, i32, i32) {
    %c0_i32 = arith.constant 0 : i32
    %c0_i32_0 = arith.constant 0 : i32
    %c0_i32_1 = arith.constant 0 : i32
    return %arg0, %c0_i32, %c0_i32_0 : i32, i32, i32
  }
}

module attributes {stable_mosaic.version = 11 : i64} {
  func.func @kernel(%arg0: i32, %arg1: memref<1x16x102xbf16, #tpu.memory_space<vmem>>, %arg2: memref<9x8x16xbf16, #tpu.memory_space<vmem>>, %arg3: memref<8x1xf32, #tpu.memory_space<vmem>>, %arg4: memref<1x80xf32, #tpu.memory_space<vmem>>, %arg5: memref<1xf32, #tpu.memory_space<smem>>, %arg6: memref<1x8x80xf32, #tpu.memory_space<vmem>>) attributes {dimension_semantics = [#tpu.dimension_semantics<parallel>], iteration_bounds = array<i64: 2>, scalar_prefetch = 0 : i64, scratch_operands = 0 : i64, tpu.core_type = #tpu.core_type<tc>, window_params = [{transform_indices = @transform_0, window_bounds = array<i64: 1, 16, 102>}, {pipeline_mode = #tpu.pipeline_mode<synchronous>, transform_indices = @transform_1, window_bounds = array<i64: 9, 8, 16>}, {pipeline_mode = #tpu.pipeline_mode<synchronous>, transform_indices = @transform_2, window_bounds = array<i64: 8, 1>}, {pipeline_mode = #tpu.pipeline_mode<synchronous>, transform_indices = @transform_3, window_bounds = array<i64: 1, 80>}, {transform_indices = @transform_4, window_bounds = array<i64: 1>}, {transform_indices = @transform_5, window_bounds = array<i64: 1, 8, 80>}]} {
    %c0 = arith.constant 0 : index
    %c0_0 = arith.constant 0 : index
    %c0_1 = arith.constant 0 : index
    %0 = vector.load %arg1[%c0, %c0_0, %c0_1] : memref<1x16x102xbf16, #tpu.memory_space<vmem>>, vector<1x16x80xbf16>
    %1 = vector.shape_cast %0 : vector<1x16x80xbf16> to vector<16x80xbf16>
    %c0_2 = arith.constant 0 : index
    %c0_3 = arith.constant 0 : index
    %c0_4 = arith.constant 0 : index
    %2 = vector.load %arg2[%c0_2, %c0_3, %c0_4] : memref<9x8x16xbf16, #tpu.memory_space<vmem>>, vector<1x8x16xbf16>
    %3 = vector.shape_cast %2 : vector<1x8x16xbf16> to vector<8x16xbf16>
    %cst = arith.constant dense<0.000000e+00> : vector<8x80xf32>
    %4 = tpu.matmul %3, %1, %cst {dimension_numbers = #tpu.dot_dimension_numbers<[1], [0], [0], [1], [0, 0, 1, 1], [], []>} : vector<8x16xbf16>, vector<16x80xbf16>, vector<8x80xf32> -> vector<8x80xf32>
    %c0_5 = arith.constant 0 : index
    %c0_6 = arith.constant 0 : index
    %c1 = arith.constant 1 : index
    %5 = vector.load %arg1[%c0_5, %c0_6, %c1] : memref<1x16x102xbf16, #tpu.memory_space<vmem>>, vector<1x16x80xbf16>
    %6 = vector.shape_cast %5 : vector<1x16x80xbf16> to vector<16x80xbf16>
    %c1_7 = arith.constant 1 : index
    %c0_8 = arith.constant 0 : index
    %c0_9 = arith.constant 0 : index
    %7 = vector.load %arg2[%c1_7, %c0_8, %c0_9] : memref<9x8x16xbf16, #tpu.memory_space<vmem>>, vector<1x8x16xbf16>
    %8 = vector.shape_cast %7 : vector<1x8x16xbf16> to vector<8x16xbf16>
    %cst_10 = arith.constant dense<0.000000e+00> : vector<8x80xf32>
    %9 = tpu.matmul %8, %6, %cst_10 {dimension_numbers = #tpu.dot_dimension_numbers<[1], [0], [0], [1], [0, 0, 1, 1], [], []>} : vector<8x16xbf16>, vector<16x80xbf16>, vector<8x80xf32> -> vector<8x80xf32>
    %10 = arith.addf %4, %9 : vector<8x80xf32>
    %c0_11 = arith.constant 0 : index
    %c0_12 = arith.constant 0 : index
    %c2 = arith.constant 2 : index
    %11 = vector.load %arg1[%c0_11, %c0_12, %c2] : memref<1x16x102xbf16, #tpu.memory_space<vmem>>, vector<1x16x80xbf16>
    %12 = vector.shape_cast %11 : vector<1x16x80xbf16> to vector<16x80xbf16>
    %c2_13 = arith.constant 2 : index
    %c0_14 = arith.constant 0 : index
    %c0_15 = arith.constant 0 : index
    %13 = vector.load %arg2[%c2_13, %c0_14, %c0_15] : memref<9x8x16xbf16, #tpu.memory_space<vmem>>, vector<1x8x16xbf16>
    %14 = vector.shape_cast %13 : vector<1x8x16xbf16> to vector<8x16xbf16>
    %cst_16 = arith.constant dense<0.000000e+00> : vector<8x80xf32>
    %15 = tpu.matmul %14, %12, %cst_16 {dimension_numbers = #tpu.dot_dimension_numbers<[1], [0], [0], [1], [0, 0, 1, 1], [], []>} : vector<8x16xbf16>, vector<16x80xbf16>, vector<8x80xf32> -> vector<8x80xf32>
    %16 = arith.addf %10, %15 : vector<8x80xf32>
    %c0_17 = arith.constant 0 : index
    %c0_18 = arith.constant 0 : index
    %c10 = arith.constant 10 : index
    %17 = vector.load %arg1[%c0_17, %c0_18, %c10] : memref<1x16x102xbf16, #tpu.memory_space<vmem>>, vector<1x16x80xbf16>
    %18 = vector.shape_cast %17 : vector<1x16x80xbf16> to vector<16x80xbf16>
    %c3 = arith.constant 3 : index
    %c0_19 = arith.constant 0 : index
    %c0_20 = arith.constant 0 : index
    %19 = vector.load %arg2[%c3, %c0_19, %c0_20] : memref<9x8x16xbf16, #tpu.memory_space<vmem>>, vector<1x8x16xbf16>
    %20 = vector.shape_cast %19 : vector<1x8x16xbf16> to vector<8x16xbf16>
    %cst_21 = arith.constant dense<0.000000e+00> : vector<8x80xf32>
    %21 = tpu.matmul %20, %18, %cst_21 {dimension_numbers = #tpu.dot_dimension_numbers<[1], [0], [0], [1], [0, 0, 1, 1], [], []>} : vector<8x16xbf16>, vector<16x80xbf16>, vector<8x80xf32> -> vector<8x80xf32>
    %22 = arith.addf %16, %21 : vector<8x80xf32>
    %c0_22 = arith.constant 0 : index
    %c0_23 = arith.constant 0 : index
    %c11 = arith.constant 11 : index
    %23 = vector.load %arg1[%c0_22, %c0_23, %c11] : memref<1x16x102xbf16, #tpu.memory_space<vmem>>, vector<1x16x80xbf16>
    %24 = vector.shape_cast %23 : vector<1x16x80xbf16> to vector<16x80xbf16>
    %c4 = arith.constant 4 : index
    %c0_24 = arith.constant 0 : index
    %c0_25 = arith.constant 0 : index
    %25 = vector.load %arg2[%c4, %c0_24, %c0_25] : memref<9x8x16xbf16, #tpu.memory_space<vmem>>, vector<1x8x16xbf16>
    %26 = vector.shape_cast %25 : vector<1x8x16xbf16> to vector<8x16xbf16>
    %cst_26 = arith.constant dense<0.000000e+00> : vector<8x80xf32>
    %27 = tpu.matmul %26, %24, %cst_26 {dimension_numbers = #tpu.dot_dimension_numbers<[1], [0], [0], [1], [0, 0, 1, 1], [], []>} : vector<8x16xbf16>, vector<16x80xbf16>, vector<8x80xf32> -> vector<8x80xf32>
    %28 = arith.addf %22, %27 : vector<8x80xf32>
    %c0_27 = arith.constant 0 : index
    %c0_28 = arith.constant 0 : index
    %c12 = arith.constant 12 : index
    %29 = vector.load %arg1[%c0_27, %c0_28, %c12] : memref<1x16x102xbf16, #tpu.memory_space<vmem>>, vector<1x16x80xbf16>
    %30 = vector.shape_cast %29 : vector<1x16x80xbf16> to vector<16x80xbf16>
    %c5 = arith.constant 5 : index
    %c0_29 = arith.constant 0 : index
    %c0_30 = arith.constant 0 : index
    %31 = vector.load %arg2[%c5, %c0_29, %c0_30] : memref<9x8x16xbf16, #tpu.memory_space<vmem>>, vector<1x8x16xbf16>
    %32 = vector.shape_cast %31 : vector<1x8x16xbf16> to vector<8x16xbf16>
    %cst_31 = arith.constant dense<0.000000e+00> : vector<8x80xf32>
    %33 = tpu.matmul %32, %30, %cst_31 {dimension_numbers = #tpu.dot_dimension_numbers<[1], [0], [0], [1], [0, 0, 1, 1], [], []>} : vector<8x16xbf16>, vector<16x80xbf16>, vector<8x80xf32> -> vector<8x80xf32>
    %34 = arith.addf %28, %33 : vector<8x80xf32>
    %c0_32 = arith.constant 0 : index
    %c0_33 = arith.constant 0 : index
    %c20 = arith.constant 20 : index
    %35 = vector.load %arg1[%c0_32, %c0_33, %c20] : memref<1x16x102xbf16, #tpu.memory_space<vmem>>, vector<1x16x80xbf16>
    %36 = vector.shape_cast %35 : vector<1x16x80xbf16> to vector<16x80xbf16>
    %c6 = arith.constant 6 : index
    %c0_34 = arith.constant 0 : index
    %c0_35 = arith.constant 0 : index
    %37 = vector.load %arg2[%c6, %c0_34, %c0_35] : memref<9x8x16xbf16, #tpu.memory_space<vmem>>, vector<1x8x16xbf16>
    %38 = vector.shape_cast %37 : vector<1x8x16xbf16> to vector<8x16xbf16>
    %cst_36 = arith.constant dense<0.000000e+00> : vector<8x80xf32>
    %39 = tpu.matmul %38, %36, %cst_36 {dimension_numbers = #tpu.dot_dimension_numbers<[1], [0], [0], [1], [0, 0, 1, 1], [], []>} : vector<8x16xbf16>, vector<16x80xbf16>, vector<8x80xf32> -> vector<8x80xf32>
    %40 = arith.addf %34, %39 : vector<8x80xf32>
    %c0_37 = arith.constant 0 : index
    %c0_38 = arith.constant 0 : index
    %c21 = arith.constant 21 : index
    %41 = vector.load %arg1[%c0_37, %c0_38, %c21] : memref<1x16x102xbf16, #tpu.memory_space<vmem>>, vector<1x16x80xbf16>
    %42 = vector.shape_cast %41 : vector<1x16x80xbf16> to vector<16x80xbf16>
    %c7 = arith.constant 7 : index
    %c0_39 = arith.constant 0 : index
    %c0_40 = arith.constant 0 : index
    %43 = vector.load %arg2[%c7, %c0_39, %c0_40] : memref<9x8x16xbf16, #tpu.memory_space<vmem>>, vector<1x8x16xbf16>
    %44 = vector.shape_cast %43 : vector<1x8x16xbf16> to vector<8x16xbf16>
    %cst_41 = arith.constant dense<0.000000e+00> : vector<8x80xf32>
    %45 = tpu.matmul %44, %42, %cst_41 {dimension_numbers = #tpu.dot_dimension_numbers<[1], [0], [0], [1], [0, 0, 1, 1], [], []>} : vector<8x16xbf16>, vector<16x80xbf16>, vector<8x80xf32> -> vector<8x80xf32>
    %46 = arith.addf %40, %45 : vector<8x80xf32>
    %c0_42 = arith.constant 0 : index
    %c0_43 = arith.constant 0 : index
    %c22 = arith.constant 22 : index
    %47 = vector.load %arg1[%c0_42, %c0_43, %c22] : memref<1x16x102xbf16, #tpu.memory_space<vmem>>, vector<1x16x80xbf16>
    %48 = vector.shape_cast %47 : vector<1x16x80xbf16> to vector<16x80xbf16>
    %c8 = arith.constant 8 : index
    %c0_44 = arith.constant 0 : index
    %c0_45 = arith.constant 0 : index
    %49 = vector.load %arg2[%c8, %c0_44, %c0_45] : memref<9x8x16xbf16, #tpu.memory_space<vmem>>, vector<1x8x16xbf16>
    %50 = vector.shape_cast %49 : vector<1x8x16xbf16> to vector<8x16xbf16>
    %cst_46 = arith.constant dense<0.000000e+00> : vector<8x80xf32>
    %51 = tpu.matmul %50, %48, %cst_46 {dimension_numbers = #tpu.dot_dimension_numbers<[1], [0], [0], [1], [0, 0, 1, 1], [], []>} : vector<8x16xbf16>, vector<16x80xbf16>, vector<8x80xf32> -> vector<8x80xf32>
    %52 = arith.addf %46, %51 : vector<8x80xf32>
    %c0_47 = arith.constant 0 : index
    %c0_48 = arith.constant 0 : index
    %53 = vector.load %arg3[%c0_47, %c0_48] : memref<8x1xf32, #tpu.memory_space<vmem>>, vector<8x1xf32>
    %54 = vector.broadcast %53 : vector<8x1xf32> to vector<8x80xf32>
    %55 = arith.addf %52, %54 : vector<8x80xf32>
    %c0_49 = arith.constant 0 : index
    %c0_50 = arith.constant 0 : index
    %56 = vector.load %arg4[%c0_49, %c0_50] : memref<1x80xf32, #tpu.memory_space<vmem>>, vector<1x80xf32>
    %57 = vector.broadcast %56 : vector<1x80xf32> to vector<8x80xf32>
    %58 = arith.mulf %55, %57 : vector<8x80xf32>
    %cst_51 = arith.constant dense<0.000000e+00> : vector<8xf32>
    %59 = vector.multi_reduction <add>, %58, %cst_51 [1] : vector<8x80xf32> to vector<8xf32>
    %60 = vector.shape_cast %59 : vector<8xf32> to vector<8x1xf32>
    %cst_52 = arith.constant 1.562500e-02 : f32
    %61 = vector.broadcast %cst_52 : f32 to vector<8x1xf32>
    %62 = arith.mulf %60, %61 : vector<8x1xf32>
    %63 = vector.broadcast %62 : vector<8x1xf32> to vector<8x80xf32>
    %64 = arith.subf %55, %63 : vector<8x80xf32>
    %65 = arith.mulf %64, %64 : vector<8x80xf32>
    %66 = vector.broadcast %56 : vector<1x80xf32> to vector<8x80xf32>
    %67 = arith.mulf %65, %66 : vector<8x80xf32>
    %cst_53 = arith.constant dense<0.000000e+00> : vector<8xf32>
    %68 = vector.multi_reduction <add>, %67, %cst_53 [1] : vector<8x80xf32> to vector<8xf32>
    %69 = vector.shape_cast %68 : vector<8xf32> to vector<8x1xf32>
    %cst_54 = arith.constant 1.562500e-02 : f32
    %70 = vector.broadcast %cst_54 : f32 to vector<8x1xf32>
    %71 = arith.mulf %69, %70 : vector<8x1xf32>
    %cst_55 = arith.constant 9.99999974E-6 : f32
    %72 = vector.broadcast %cst_55 : f32 to vector<8x1xf32>
    %73 = arith.addf %71, %72 : vector<8x1xf32>
    %74 = math.rsqrt %73 : vector<8x1xf32>
    %75 = vector.broadcast %74 : vector<8x1xf32> to vector<8x80xf32>
    %76 = arith.mulf %64, %75 : vector<8x80xf32>
    %c0_56 = arith.constant 0 : index
    %77 = memref.load %arg5[%c0_56] : memref<1xf32, #tpu.memory_space<smem>>
    %cst_57 = arith.constant 0.000000e+00 : f32
    %78 = vector.broadcast %cst_57 : f32 to vector<8x80xf32>
    %79 = arith.cmpf oge, %76, %78 : vector<8x80xf32>
    %80 = vector.broadcast %77 : f32 to vector<8x80xf32>
    %81 = arith.mulf %80, %76 : vector<8x80xf32>
    %82 = arith.select %79, %76, %81 : vector<8x80xi1>, vector<8x80xf32>
    %c0_58 = arith.constant 0 : index
    %c0_59 = arith.constant 0 : index
    %c0_60 = arith.constant 0 : index
    %83 = vector.load %arg6[%c0_58, %c0_59, %c0_60] : memref<1x8x80xf32, #tpu.memory_space<vmem>>, vector<1x8x80xf32>
    %84 = vector.shape_cast %83 : vector<1x8x80xf32> to vector<8x80xf32>
    %85 = vector.shape_cast %82 : vector<8x80xf32> to vector<1x8x80xf32>
    tpu.vector_store %arg6[%c0_58, %c0_59, %c0_60], %85 {strides = array<i32>} : memref<1x8x80xf32, #tpu.memory_space<vmem>>, vector<1x8x80xf32>,
    return
  }
  func.func @transform_0(%arg0: i32) -> (i32, i32, i32) {
    %c0_i32 = arith.constant 0 : i32
    %c0_i32_0 = arith.constant 0 : i32
    %c0_i32_1 = arith.constant 0 : i32
    return %arg0, %c0_i32, %c0_i32_0 : i32, i32, i32
  }
  func.func @transform_1(%arg0: i32) -> (i32, i32, i32) {
    %c0_i32 = arith.constant 0 : i32
    %c0_i32_0 = arith.constant 0 : i32
    %c0_i32_1 = arith.constant 0 : i32
    %c0_i32_2 = arith.constant 0 : i32
    return %c0_i32, %c0_i32_0, %c0_i32_1 : i32, i32, i32
  }
  func.func @transform_2(%arg0: i32) -> (i32, i32) {
    %c0_i32 = arith.constant 0 : i32
    %c0_i32_0 = arith.constant 0 : i32
    %c0_i32_1 = arith.constant 0 : i32
    return %c0_i32, %c0_i32_0 : i32, i32
  }
  func.func @transform_3(%arg0: i32) -> (i32, i32) {
    %c0_i32 = arith.constant 0 : i32
    %c0_i32_0 = arith.constant 0 : i32
    %c0_i32_1 = arith.constant 0 : i32
    return %c0_i32, %c0_i32_0 : i32, i32
  }
  func.func @transform_4(%arg0: i32) -> i32 {
    %c0_i32 = arith.constant 0 : i32
    %c0_i32_0 = arith.constant 0 : i32
    return %c0_i32 : i32
  }
  func.func @transform_5(%arg0: i32) -> (i32, i32, i32) {
    %c0_i32 = arith.constant 0 : i32
    %c0_i32_0 = arith.constant 0 : i32
    %c0_i32_1 = arith.constant 0 : i32
    return %arg0, %c0_i32, %c0_i32_0 : i32, i32, i32
  }
}

module attributes {stable_mosaic.version = 11 : i64} {
  func.func @kernel(%arg0: i32, %arg1: memref<1x16x326xbf16, #tpu.memory_space<vmem>>, %arg2: memref<9x4x16xbf16, #tpu.memory_space<vmem>>, %arg3: memref<4x1xf32, #tpu.memory_space<vmem>>, %arg4: memref<1x288xf32, #tpu.memory_space<vmem>>, %arg5: memref<1xf32, #tpu.memory_space<smem>>, %arg6: memref<1x4x288xf32, #tpu.memory_space<vmem>>) attributes {dimension_semantics = [#tpu.dimension_semantics<parallel>], iteration_bounds = array<i64: 2>, scalar_prefetch = 0 : i64, scratch_operands = 0 : i64, tpu.core_type = #tpu.core_type<tc>, window_params = [{transform_indices = @transform_0, window_bounds = array<i64: 1, 16, 326>}, {pipeline_mode = #tpu.pipeline_mode<synchronous>, transform_indices = @transform_1, window_bounds = array<i64: 9, 4, 16>}, {pipeline_mode = #tpu.pipeline_mode<synchronous>, transform_indices = @transform_2, window_bounds = array<i64: 4, 1>}, {pipeline_mode = #tpu.pipeline_mode<synchronous>, transform_indices = @transform_3, window_bounds = array<i64: 1, 288>}, {transform_indices = @transform_4, window_bounds = array<i64: 1>}, {transform_indices = @transform_5, window_bounds = array<i64: 1, 4, 288>}]} {
    %c0 = arith.constant 0 : index
    %c0_0 = arith.constant 0 : index
    %c0_1 = arith.constant 0 : index
    %0 = vector.load %arg1[%c0, %c0_0, %c0_1] : memref<1x16x326xbf16, #tpu.memory_space<vmem>>, vector<1x16x288xbf16>
    %1 = vector.shape_cast %0 : vector<1x16x288xbf16> to vector<16x288xbf16>
    %c0_2 = arith.constant 0 : index
    %c0_3 = arith.constant 0 : index
    %c0_4 = arith.constant 0 : index
    %2 = vector.load %arg2[%c0_2, %c0_3, %c0_4] : memref<9x4x16xbf16, #tpu.memory_space<vmem>>, vector<1x4x16xbf16>
    %3 = vector.shape_cast %2 : vector<1x4x16xbf16> to vector<4x16xbf16>
    %cst = arith.constant dense<0.000000e+00> : vector<4x288xf32>
    %4 = tpu.matmul %3, %1, %cst {dimension_numbers = #tpu.dot_dimension_numbers<[1], [0], [0], [1], [0, 0, 1, 1], [], []>} : vector<4x16xbf16>, vector<16x288xbf16>, vector<4x288xf32> -> vector<4x288xf32>
    %c0_5 = arith.constant 0 : index
    %c0_6 = arith.constant 0 : index
    %c1 = arith.constant 1 : index
    %5 = vector.load %arg1[%c0_5, %c0_6, %c1] : memref<1x16x326xbf16, #tpu.memory_space<vmem>>, vector<1x16x288xbf16>
    %6 = vector.shape_cast %5 : vector<1x16x288xbf16> to vector<16x288xbf16>
    %c1_7 = arith.constant 1 : index
    %c0_8 = arith.constant 0 : index
    %c0_9 = arith.constant 0 : index
    %7 = vector.load %arg2[%c1_7, %c0_8, %c0_9] : memref<9x4x16xbf16, #tpu.memory_space<vmem>>, vector<1x4x16xbf16>
    %8 = vector.shape_cast %7 : vector<1x4x16xbf16> to vector<4x16xbf16>
    %cst_10 = arith.constant dense<0.000000e+00> : vector<4x288xf32>
    %9 = tpu.matmul %8, %6, %cst_10 {dimension_numbers = #tpu.dot_dimension_numbers<[1], [0], [0], [1], [0, 0, 1, 1], [], []>} : vector<4x16xbf16>, vector<16x288xbf16>, vector<4x288xf32> -> vector<4x288xf32>
    %10 = arith.addf %4, %9 : vector<4x288xf32>
    %c0_11 = arith.constant 0 : index
    %c0_12 = arith.constant 0 : index
    %c2 = arith.constant 2 : index
    %11 = vector.load %arg1[%c0_11, %c0_12, %c2] : memref<1x16x326xbf16, #tpu.memory_space<vmem>>, vector<1x16x288xbf16>
    %12 = vector.shape_cast %11 : vector<1x16x288xbf16> to vector<16x288xbf16>
    %c2_13 = arith.constant 2 : index
    %c0_14 = arith.constant 0 : index
    %c0_15 = arith.constant 0 : index
    %13 = vector.load %arg2[%c2_13, %c0_14, %c0_15] : memref<9x4x16xbf16, #tpu.memory_space<vmem>>, vector<1x4x16xbf16>
    %14 = vector.shape_cast %13 : vector<1x4x16xbf16> to vector<4x16xbf16>
    %cst_16 = arith.constant dense<0.000000e+00> : vector<4x288xf32>
    %15 = tpu.matmul %14, %12, %cst_16 {dimension_numbers = #tpu.dot_dimension_numbers<[1], [0], [0], [1], [0, 0, 1, 1], [], []>} : vector<4x16xbf16>, vector<16x288xbf16>, vector<4x288xf32> -> vector<4x288xf32>
    %16 = arith.addf %10, %15 : vector<4x288xf32>
    %c0_17 = arith.constant 0 : index
    %c0_18 = arith.constant 0 : index
    %c18 = arith.constant 18 : index
    %17 = vector.load %arg1[%c0_17, %c0_18, %c18] : memref<1x16x326xbf16, #tpu.memory_space<vmem>>, vector<1x16x288xbf16>
    %18 = vector.shape_cast %17 : vector<1x16x288xbf16> to vector<16x288xbf16>
    %c3 = arith.constant 3 : index
    %c0_19 = arith.constant 0 : index
    %c0_20 = arith.constant 0 : index
    %19 = vector.load %arg2[%c3, %c0_19, %c0_20] : memref<9x4x16xbf16, #tpu.memory_space<vmem>>, vector<1x4x16xbf16>
    %20 = vector.shape_cast %19 : vector<1x4x16xbf16> to vector<4x16xbf16>
    %cst_21 = arith.constant dense<0.000000e+00> : vector<4x288xf32>
    %21 = tpu.matmul %20, %18, %cst_21 {dimension_numbers = #tpu.dot_dimension_numbers<[1], [0], [0], [1], [0, 0, 1, 1], [], []>} : vector<4x16xbf16>, vector<16x288xbf16>, vector<4x288xf32> -> vector<4x288xf32>
    %22 = arith.addf %16, %21 : vector<4x288xf32>
    %c0_22 = arith.constant 0 : index
    %c0_23 = arith.constant 0 : index
    %c19 = arith.constant 19 : index
    %23 = vector.load %arg1[%c0_22, %c0_23, %c19] : memref<1x16x326xbf16, #tpu.memory_space<vmem>>, vector<1x16x288xbf16>
    %24 = vector.shape_cast %23 : vector<1x16x288xbf16> to vector<16x288xbf16>
    %c4 = arith.constant 4 : index
    %c0_24 = arith.constant 0 : index
    %c0_25 = arith.constant 0 : index
    %25 = vector.load %arg2[%c4, %c0_24, %c0_25] : memref<9x4x16xbf16, #tpu.memory_space<vmem>>, vector<1x4x16xbf16>
    %26 = vector.shape_cast %25 : vector<1x4x16xbf16> to vector<4x16xbf16>
    %cst_26 = arith.constant dense<0.000000e+00> : vector<4x288xf32>
    %27 = tpu.matmul %26, %24, %cst_26 {dimension_numbers = #tpu.dot_dimension_numbers<[1], [0], [0], [1], [0, 0, 1, 1], [], []>} : vector<4x16xbf16>, vector<16x288xbf16>, vector<4x288xf32> -> vector<4x288xf32>
    %28 = arith.addf %22, %27 : vector<4x288xf32>
    %c0_27 = arith.constant 0 : index
    %c0_28 = arith.constant 0 : index
    %c20 = arith.constant 20 : index
    %29 = vector.load %arg1[%c0_27, %c0_28, %c20] : memref<1x16x326xbf16, #tpu.memory_space<vmem>>, vector<1x16x288xbf16>
    %30 = vector.shape_cast %29 : vector<1x16x288xbf16> to vector<16x288xbf16>
    %c5 = arith.constant 5 : index
    %c0_29 = arith.constant 0 : index
    %c0_30 = arith.constant 0 : index
    %31 = vector.load %arg2[%c5, %c0_29, %c0_30] : memref<9x4x16xbf16, #tpu.memory_space<vmem>>, vector<1x4x16xbf16>
    %32 = vector.shape_cast %31 : vector<1x4x16xbf16> to vector<4x16xbf16>
    %cst_31 = arith.constant dense<0.000000e+00> : vector<4x288xf32>
    %33 = tpu.matmul %32, %30, %cst_31 {dimension_numbers = #tpu.dot_dimension_numbers<[1], [0], [0], [1], [0, 0, 1, 1], [], []>} : vector<4x16xbf16>, vector<16x288xbf16>, vector<4x288xf32> -> vector<4x288xf32>
    %34 = arith.addf %28, %33 : vector<4x288xf32>
    %c0_32 = arith.constant 0 : index
    %c0_33 = arith.constant 0 : index
    %c36 = arith.constant 36 : index
    %35 = vector.load %arg1[%c0_32, %c0_33, %c36] : memref<1x16x326xbf16, #tpu.memory_space<vmem>>, vector<1x16x288xbf16>
    %36 = vector.shape_cast %35 : vector<1x16x288xbf16> to vector<16x288xbf16>
    %c6 = arith.constant 6 : index
    %c0_34 = arith.constant 0 : index
    %c0_35 = arith.constant 0 : index
    %37 = vector.load %arg2[%c6, %c0_34, %c0_35] : memref<9x4x16xbf16, #tpu.memory_space<vmem>>, vector<1x4x16xbf16>
    %38 = vector.shape_cast %37 : vector<1x4x16xbf16> to vector<4x16xbf16>
    %cst_36 = arith.constant dense<0.000000e+00> : vector<4x288xf32>
    %39 = tpu.matmul %38, %36, %cst_36 {dimension_numbers = #tpu.dot_dimension_numbers<[1], [0], [0], [1], [0, 0, 1, 1], [], []>} : vector<4x16xbf16>, vector<16x288xbf16>, vector<4x288xf32> -> vector<4x288xf32>
    %40 = arith.addf %34, %39 : vector<4x288xf32>
    %c0_37 = arith.constant 0 : index
    %c0_38 = arith.constant 0 : index
    %c37 = arith.constant 37 : index
    %41 = vector.load %arg1[%c0_37, %c0_38, %c37] : memref<1x16x326xbf16, #tpu.memory_space<vmem>>, vector<1x16x288xbf16>
    %42 = vector.shape_cast %41 : vector<1x16x288xbf16> to vector<16x288xbf16>
    %c7 = arith.constant 7 : index
    %c0_39 = arith.constant 0 : index
    %c0_40 = arith.constant 0 : index
    %43 = vector.load %arg2[%c7, %c0_39, %c0_40] : memref<9x4x16xbf16, #tpu.memory_space<vmem>>, vector<1x4x16xbf16>
    %44 = vector.shape_cast %43 : vector<1x4x16xbf16> to vector<4x16xbf16>
    %cst_41 = arith.constant dense<0.000000e+00> : vector<4x288xf32>
    %45 = tpu.matmul %44, %42, %cst_41 {dimension_numbers = #tpu.dot_dimension_numbers<[1], [0], [0], [1], [0, 0, 1, 1], [], []>} : vector<4x16xbf16>, vector<16x288xbf16>, vector<4x288xf32> -> vector<4x288xf32>
    %46 = arith.addf %40, %45 : vector<4x288xf32>
    %c0_42 = arith.constant 0 : index
    %c0_43 = arith.constant 0 : index
    %c38 = arith.constant 38 : index
    %47 = vector.load %arg1[%c0_42, %c0_43, %c38] : memref<1x16x326xbf16, #tpu.memory_space<vmem>>, vector<1x16x288xbf16>
    %48 = vector.shape_cast %47 : vector<1x16x288xbf16> to vector<16x288xbf16>
    %c8 = arith.constant 8 : index
    %c0_44 = arith.constant 0 : index
    %c0_45 = arith.constant 0 : index
    %49 = vector.load %arg2[%c8, %c0_44, %c0_45] : memref<9x4x16xbf16, #tpu.memory_space<vmem>>, vector<1x4x16xbf16>
    %50 = vector.shape_cast %49 : vector<1x4x16xbf16> to vector<4x16xbf16>
    %cst_46 = arith.constant dense<0.000000e+00> : vector<4x288xf32>
    %51 = tpu.matmul %50, %48, %cst_46 {dimension_numbers = #tpu.dot_dimension_numbers<[1], [0], [0], [1], [0, 0, 1, 1], [], []>} : vector<4x16xbf16>, vector<16x288xbf16>, vector<4x288xf32> -> vector<4x288xf32>
    %52 = arith.addf %46, %51 : vector<4x288xf32>
    %c0_47 = arith.constant 0 : index
    %c0_48 = arith.constant 0 : index
    %53 = vector.load %arg3[%c0_47, %c0_48] : memref<4x1xf32, #tpu.memory_space<vmem>>, vector<4x1xf32>
    %54 = vector.broadcast %53 : vector<4x1xf32> to vector<4x288xf32>
    %55 = arith.addf %52, %54 : vector<4x288xf32>
    %c0_49 = arith.constant 0 : index
    %c0_50 = arith.constant 0 : index
    %56 = vector.load %arg4[%c0_49, %c0_50] : memref<1x288xf32, #tpu.memory_space<vmem>>, vector<1x288xf32>
    %57 = vector.broadcast %56 : vector<1x288xf32> to vector<4x288xf32>
    %58 = arith.mulf %55, %57 : vector<4x288xf32>
    %cst_51 = arith.constant dense<0.000000e+00> : vector<4xf32>
    %59 = vector.multi_reduction <add>, %58, %cst_51 [1] : vector<4x288xf32> to vector<4xf32>
    %60 = vector.shape_cast %59 : vector<4xf32> to vector<4x1xf32>
    %cst_52 = arith.constant 3.906250e-03 : f32
    %61 = vector.broadcast %cst_52 : f32 to vector<4x1xf32>
    %62 = arith.mulf %60, %61 : vector<4x1xf32>
    %63 = vector.broadcast %62 : vector<4x1xf32> to vector<4x288xf32>
    %64 = arith.subf %55, %63 : vector<4x288xf32>
    %65 = arith.mulf %64, %64 : vector<4x288xf32>
    %66 = vector.broadcast %56 : vector<1x288xf32> to vector<4x288xf32>
    %67 = arith.mulf %65, %66 : vector<4x288xf32>
    %cst_53 = arith.constant dense<0.000000e+00> : vector<4xf32>
    %68 = vector.multi_reduction <add>, %67, %cst_53 [1] : vector<4x288xf32> to vector<4xf32>
    %69 = vector.shape_cast %68 : vector<4xf32> to vector<4x1xf32>
    %cst_54 = arith.constant 3.906250e-03 : f32
    %70 = vector.broadcast %cst_54 : f32 to vector<4x1xf32>
    %71 = arith.mulf %69, %70 : vector<4x1xf32>
    %cst_55 = arith.constant 9.99999974E-6 : f32
    %72 = vector.broadcast %cst_55 : f32 to vector<4x1xf32>
    %73 = arith.addf %71, %72 : vector<4x1xf32>
    %74 = math.rsqrt %73 : vector<4x1xf32>
    %75 = vector.broadcast %74 : vector<4x1xf32> to vector<4x288xf32>
    %76 = arith.mulf %64, %75 : vector<4x288xf32>
    %c0_56 = arith.constant 0 : index
    %77 = memref.load %arg5[%c0_56] : memref<1xf32, #tpu.memory_space<smem>>
    %cst_57 = arith.constant 0.000000e+00 : f32
    %78 = vector.broadcast %cst_57 : f32 to vector<4x288xf32>
    %79 = arith.cmpf oge, %76, %78 : vector<4x288xf32>
    %80 = vector.broadcast %77 : f32 to vector<4x288xf32>
    %81 = arith.mulf %80, %76 : vector<4x288xf32>
    %82 = arith.select %79, %76, %81 : vector<4x288xi1>, vector<4x288xf32>
    %c0_58 = arith.constant 0 : index
    %c0_59 = arith.constant 0 : index
    %c0_60 = arith.constant 0 : index
    %83 = vector.load %arg6[%c0_58, %c0_59, %c0_60] : memref<1x4x288xf32, #tpu.memory_space<vmem>>, vector<1x4x288xf32>
    %84 = vector.shape_cast %83 : vector<1x4x288xf32> to vector<4x288xf32>
    %85 = vector.shape_cast %82 : vector<4x288xf32> to vector<1x4x288xf32>
    tpu.vector_store %arg6[%c0_58, %c0_59, %c0_60], %85 {strides = array<i32>} : memref<1x4x288xf32, #tpu.memory_space<vmem>>, vector<1x4x288xf32>,
    return
  }
  func.func @transform_0(%arg0: i32) -> (i32, i32, i32) {
    %c0_i32 = arith.constant 0 : i32
    %c0_i32_0 = arith.constant 0 : i32
    %c0_i32_1 = arith.constant 0 : i32
    return %arg0, %c0_i32, %c0_i32_0 : i32, i32, i32
  }
  func.func @transform_1(%arg0: i32) -> (i32, i32, i32) {
    %c0_i32 = arith.constant 0 : i32
    %c0_i32_0 = arith.constant 0 : i32
    %c0_i32_1 = arith.constant 0 : i32
    %c0_i32_2 = arith.constant 0 : i32
    return %c0_i32, %c0_i32_0, %c0_i32_1 : i32, i32, i32
  }
  func.func @transform_2(%arg0: i32) -> (i32, i32) {
    %c0_i32 = arith.constant 0 : i32
    %c0_i32_0 = arith.constant 0 : i32
    %c0_i32_1 = arith.constant 0 : i32
    return %c0_i32, %c0_i32_0 : i32, i32
  }
  func.func @transform_3(%arg0: i32) -> (i32, i32) {
    %c0_i32 = arith.constant 0 : i32
    %c0_i32_0 = arith.constant 0 : i32
    %c0_i32_1 = arith.constant 0 : i32
    return %c0_i32, %c0_i32_0 : i32, i32
  }
  func.func @transform_4(%arg0: i32) -> i32 {
    %c0_i32 = arith.constant 0 : i32
    %c0_i32_0 = arith.constant 0 : i32
    return %c0_i32 : i32
  }
  func.func @transform_5(%arg0: i32) -> (i32, i32, i32) {
    %c0_i32 = arith.constant 0 : i32
    %c0_i32_0 = arith.constant 0 : i32
    %c0_i32_1 = arith.constant 0 : i32
    return %arg0, %c0_i32, %c0_i32_0 : i32, i32, i32
  }
}

module attributes {stable_mosaic.version = 11 : i64} {
  func.func @kernel(%arg0: i32, %arg1: memref<1x4x326xbf16, #tpu.memory_space<vmem>>, %arg2: memref<9x4x4xbf16, #tpu.memory_space<vmem>>, %arg3: memref<4x1xf32, #tpu.memory_space<vmem>>, %arg4: memref<1x4x288xf32, #tpu.memory_space<vmem>>, %arg5: memref<1x4x288xf32, #tpu.memory_space<vmem>>) attributes {dimension_semantics = [#tpu.dimension_semantics<parallel>], iteration_bounds = array<i64: 2>, scalar_prefetch = 0 : i64, scratch_operands = 0 : i64, tpu.core_type = #tpu.core_type<tc>, window_params = [{transform_indices = @transform_0, window_bounds = array<i64: 1, 4, 326>}, {pipeline_mode = #tpu.pipeline_mode<synchronous>, transform_indices = @transform_1, window_bounds = array<i64: 9, 4, 4>}, {pipeline_mode = #tpu.pipeline_mode<synchronous>, transform_indices = @transform_2, window_bounds = array<i64: 4, 1>}, {transform_indices = @transform_3, window_bounds = array<i64: 1, 4, 288>}, {transform_indices = @transform_4, window_bounds = array<i64: 1, 4, 288>}]} {
    %c0 = arith.constant 0 : index
    %c0_0 = arith.constant 0 : index
    %c0_1 = arith.constant 0 : index
    %0 = vector.load %arg1[%c0, %c0_0, %c0_1] : memref<1x4x326xbf16, #tpu.memory_space<vmem>>, vector<1x4x288xbf16>
    %1 = vector.shape_cast %0 : vector<1x4x288xbf16> to vector<4x288xbf16>
    %c0_2 = arith.constant 0 : index
    %c0_3 = arith.constant 0 : index
    %c0_4 = arith.constant 0 : index
    %2 = vector.load %arg2[%c0_2, %c0_3, %c0_4] : memref<9x4x4xbf16, #tpu.memory_space<vmem>>, vector<1x4x4xbf16>
    %3 = vector.shape_cast %2 : vector<1x4x4xbf16> to vector<4x4xbf16>
    %cst = arith.constant dense<0.000000e+00> : vector<4x288xf32>
    %4 = tpu.matmul %3, %1, %cst {dimension_numbers = #tpu.dot_dimension_numbers<[1], [0], [0], [1], [0, 0, 1, 1], [], []>} : vector<4x4xbf16>, vector<4x288xbf16>, vector<4x288xf32> -> vector<4x288xf32>
    %c0_5 = arith.constant 0 : index
    %c0_6 = arith.constant 0 : index
    %c1 = arith.constant 1 : index
    %5 = vector.load %arg1[%c0_5, %c0_6, %c1] : memref<1x4x326xbf16, #tpu.memory_space<vmem>>, vector<1x4x288xbf16>
    %6 = vector.shape_cast %5 : vector<1x4x288xbf16> to vector<4x288xbf16>
    %c1_7 = arith.constant 1 : index
    %c0_8 = arith.constant 0 : index
    %c0_9 = arith.constant 0 : index
    %7 = vector.load %arg2[%c1_7, %c0_8, %c0_9] : memref<9x4x4xbf16, #tpu.memory_space<vmem>>, vector<1x4x4xbf16>
    %8 = vector.shape_cast %7 : vector<1x4x4xbf16> to vector<4x4xbf16>
    %cst_10 = arith.constant dense<0.000000e+00> : vector<4x288xf32>
    %9 = tpu.matmul %8, %6, %cst_10 {dimension_numbers = #tpu.dot_dimension_numbers<[1], [0], [0], [1], [0, 0, 1, 1], [], []>} : vector<4x4xbf16>, vector<4x288xbf16>, vector<4x288xf32> -> vector<4x288xf32>
    %10 = arith.addf %4, %9 : vector<4x288xf32>
    %c0_11 = arith.constant 0 : index
    %c0_12 = arith.constant 0 : index
    %c2 = arith.constant 2 : index
    %11 = vector.load %arg1[%c0_11, %c0_12, %c2] : memref<1x4x326xbf16, #tpu.memory_space<vmem>>, vector<1x4x288xbf16>
    %12 = vector.shape_cast %11 : vector<1x4x288xbf16> to vector<4x288xbf16>
    %c2_13 = arith.constant 2 : index
    %c0_14 = arith.constant 0 : index
    %c0_15 = arith.constant 0 : index
    %13 = vector.load %arg2[%c2_13, %c0_14, %c0_15] : memref<9x4x4xbf16, #tpu.memory_space<vmem>>, vector<1x4x4xbf16>
    %14 = vector.shape_cast %13 : vector<1x4x4xbf16> to vector<4x4xbf16>
    %cst_16 = arith.constant dense<0.000000e+00> : vector<4x288xf32>
    %15 = tpu.matmul %14, %12, %cst_16 {dimension_numbers = #tpu.dot_dimension_numbers<[1], [0], [0], [1], [0, 0, 1, 1], [], []>} : vector<4x4xbf16>, vector<4x288xbf16>, vector<4x288xf32> -> vector<4x288xf32>
    %16 = arith.addf %10, %15 : vector<4x288xf32>
    %c0_17 = arith.constant 0 : index
    %c0_18 = arith.constant 0 : index
    %c18 = arith.constant 18 : index
    %17 = vector.load %arg1[%c0_17, %c0_18, %c18] : memref<1x4x326xbf16, #tpu.memory_space<vmem>>, vector<1x4x288xbf16>
    %18 = vector.shape_cast %17 : vector<1x4x288xbf16> to vector<4x288xbf16>
    %c3 = arith.constant 3 : index
    %c0_19 = arith.constant 0 : index
    %c0_20 = arith.constant 0 : index
    %19 = vector.load %arg2[%c3, %c0_19, %c0_20] : memref<9x4x4xbf16, #tpu.memory_space<vmem>>, vector<1x4x4xbf16>
    %20 = vector.shape_cast %19 : vector<1x4x4xbf16> to vector<4x4xbf16>
    %cst_21 = arith.constant dense<0.000000e+00> : vector<4x288xf32>
    %21 = tpu.matmul %20, %18, %cst_21 {dimension_numbers = #tpu.dot_dimension_numbers<[1], [0], [0], [1], [0, 0, 1, 1], [], []>} : vector<4x4xbf16>, vector<4x288xbf16>, vector<4x288xf32> -> vector<4x288xf32>
    %22 = arith.addf %16, %21 : vector<4x288xf32>
    %c0_22 = arith.constant 0 : index
    %c0_23 = arith.constant 0 : index
    %c19 = arith.constant 19 : index
    %23 = vector.load %arg1[%c0_22, %c0_23, %c19] : memref<1x4x326xbf16, #tpu.memory_space<vmem>>, vector<1x4x288xbf16>
    %24 = vector.shape_cast %23 : vector<1x4x288xbf16> to vector<4x288xbf16>
    %c4 = arith.constant 4 : index
    %c0_24 = arith.constant 0 : index
    %c0_25 = arith.constant 0 : index
    %25 = vector.load %arg2[%c4, %c0_24, %c0_25] : memref<9x4x4xbf16, #tpu.memory_space<vmem>>, vector<1x4x4xbf16>
    %26 = vector.shape_cast %25 : vector<1x4x4xbf16> to vector<4x4xbf16>
    %cst_26 = arith.constant dense<0.000000e+00> : vector<4x288xf32>
    %27 = tpu.matmul %26, %24, %cst_26 {dimension_numbers = #tpu.dot_dimension_numbers<[1], [0], [0], [1], [0, 0, 1, 1], [], []>} : vector<4x4xbf16>, vector<4x288xbf16>, vector<4x288xf32> -> vector<4x288xf32>
    %28 = arith.addf %22, %27 : vector<4x288xf32>
    %c0_27 = arith.constant 0 : index
    %c0_28 = arith.constant 0 : index
    %c20 = arith.constant 20 : index
    %29 = vector.load %arg1[%c0_27, %c0_28, %c20] : memref<1x4x326xbf16, #tpu.memory_space<vmem>>, vector<1x4x288xbf16>
    %30 = vector.shape_cast %29 : vector<1x4x288xbf16> to vector<4x288xbf16>
    %c5 = arith.constant 5 : index
    %c0_29 = arith.constant 0 : index
    %c0_30 = arith.constant 0 : index
    %31 = vector.load %arg2[%c5, %c0_29, %c0_30] : memref<9x4x4xbf16, #tpu.memory_space<vmem>>, vector<1x4x4xbf16>
    %32 = vector.shape_cast %31 : vector<1x4x4xbf16> to vector<4x4xbf16>
    %cst_31 = arith.constant dense<0.000000e+00> : vector<4x288xf32>
    %33 = tpu.matmul %32, %30, %cst_31 {dimension_numbers = #tpu.dot_dimension_numbers<[1], [0], [0], [1], [0, 0, 1, 1], [], []>} : vector<4x4xbf16>, vector<4x288xbf16>, vector<4x288xf32> -> vector<4x288xf32>
    %34 = arith.addf %28, %33 : vector<4x288xf32>
    %c0_32 = arith.constant 0 : index
    %c0_33 = arith.constant 0 : index
    %c36 = arith.constant 36 : index
    %35 = vector.load %arg1[%c0_32, %c0_33, %c36] : memref<1x4x326xbf16, #tpu.memory_space<vmem>>, vector<1x4x288xbf16>
    %36 = vector.shape_cast %35 : vector<1x4x288xbf16> to vector<4x288xbf16>
    %c6 = arith.constant 6 : index
    %c0_34 = arith.constant 0 : index
    %c0_35 = arith.constant 0 : index
    %37 = vector.load %arg2[%c6, %c0_34, %c0_35] : memref<9x4x4xbf16, #tpu.memory_space<vmem>>, vector<1x4x4xbf16>
    %38 = vector.shape_cast %37 : vector<1x4x4xbf16> to vector<4x4xbf16>
    %cst_36 = arith.constant dense<0.000000e+00> : vector<4x288xf32>
    %39 = tpu.matmul %38, %36, %cst_36 {dimension_numbers = #tpu.dot_dimension_numbers<[1], [0], [0], [1], [0, 0, 1, 1], [], []>} : vector<4x4xbf16>, vector<4x288xbf16>, vector<4x288xf32> -> vector<4x288xf32>
    %40 = arith.addf %34, %39 : vector<4x288xf32>
    %c0_37 = arith.constant 0 : index
    %c0_38 = arith.constant 0 : index
    %c37 = arith.constant 37 : index
    %41 = vector.load %arg1[%c0_37, %c0_38, %c37] : memref<1x4x326xbf16, #tpu.memory_space<vmem>>, vector<1x4x288xbf16>
    %42 = vector.shape_cast %41 : vector<1x4x288xbf16> to vector<4x288xbf16>
    %c7 = arith.constant 7 : index
    %c0_39 = arith.constant 0 : index
    %c0_40 = arith.constant 0 : index
    %43 = vector.load %arg2[%c7, %c0_39, %c0_40] : memref<9x4x4xbf16, #tpu.memory_space<vmem>>, vector<1x4x4xbf16>
    %44 = vector.shape_cast %43 : vector<1x4x4xbf16> to vector<4x4xbf16>
    %cst_41 = arith.constant dense<0.000000e+00> : vector<4x288xf32>
    %45 = tpu.matmul %44, %42, %cst_41 {dimension_numbers = #tpu.dot_dimension_numbers<[1], [0], [0], [1], [0, 0, 1, 1], [], []>} : vector<4x4xbf16>, vector<4x288xbf16>, vector<4x288xf32> -> vector<4x288xf32>
    %46 = arith.addf %40, %45 : vector<4x288xf32>
    %c0_42 = arith.constant 0 : index
    %c0_43 = arith.constant 0 : index
    %c38 = arith.constant 38 : index
    %47 = vector.load %arg1[%c0_42, %c0_43, %c38] : memref<1x4x326xbf16, #tpu.memory_space<vmem>>, vector<1x4x288xbf16>
    %48 = vector.shape_cast %47 : vector<1x4x288xbf16> to vector<4x288xbf16>
    %c8 = arith.constant 8 : index
    %c0_44 = arith.constant 0 : index
    %c0_45 = arith.constant 0 : index
    %49 = vector.load %arg2[%c8, %c0_44, %c0_45] : memref<9x4x4xbf16, #tpu.memory_space<vmem>>, vector<1x4x4xbf16>
    %50 = vector.shape_cast %49 : vector<1x4x4xbf16> to vector<4x4xbf16>
    %cst_46 = arith.constant dense<0.000000e+00> : vector<4x288xf32>
    %51 = tpu.matmul %50, %48, %cst_46 {dimension_numbers = #tpu.dot_dimension_numbers<[1], [0], [0], [1], [0, 0, 1, 1], [], []>} : vector<4x4xbf16>, vector<4x288xbf16>, vector<4x288xf32> -> vector<4x288xf32>
    %52 = arith.addf %46, %51 : vector<4x288xf32>
    %c0_47 = arith.constant 0 : index
    %c0_48 = arith.constant 0 : index
    %53 = vector.load %arg3[%c0_47, %c0_48] : memref<4x1xf32, #tpu.memory_space<vmem>>, vector<4x1xf32>
    %54 = vector.broadcast %53 : vector<4x1xf32> to vector<4x288xf32>
    %55 = arith.addf %52, %54 : vector<4x288xf32>
    %c0_49 = arith.constant 0 : index
    %c0_50 = arith.constant 0 : index
    %c0_51 = arith.constant 0 : index
    %56 = vector.load %arg4[%c0_49, %c0_50, %c0_51] : memref<1x4x288xf32, #tpu.memory_space<vmem>>, vector<1x4x288xf32>
    %57 = vector.shape_cast %56 : vector<1x4x288xf32> to vector<4x288xf32>
    %58 = arith.addf %55, %57 : vector<4x288xf32>
    %c0_52 = arith.constant 0 : index
    %c0_53 = arith.constant 0 : index
    %c0_54 = arith.constant 0 : index
    %59 = vector.load %arg5[%c0_52, %c0_53, %c0_54] : memref<1x4x288xf32, #tpu.memory_space<vmem>>, vector<1x4x288xf32>
    %60 = vector.shape_cast %59 : vector<1x4x288xf32> to vector<4x288xf32>
    %61 = vector.shape_cast %58 : vector<4x288xf32> to vector<1x4x288xf32>
    tpu.vector_store %arg5[%c0_52, %c0_53, %c0_54], %61 {strides = array<i32>} : memref<1x4x288xf32, #tpu.memory_space<vmem>>, vector<1x4x288xf32>,
    return
  }
  func.func @transform_0(%arg0: i32) -> (i32, i32, i32) {
    %c0_i32 = arith.constant 0 : i32
    %c0_i32_0 = arith.constant 0 : i32
    %c0_i32_1 = arith.constant 0 : i32
    return %arg0, %c0_i32, %c0_i32_0 : i32, i32, i32
  }
  func.func @transform_1(%arg0: i32) -> (i32, i32, i32) {
    %c0_i32 = arith.constant 0 : i32
    %c0_i32_0 = arith.constant 0 : i32
    %c0_i32_1 = arith.constant 0 : i32
    %c0_i32_2 = arith.constant 0 : i32
    return %c0_i32, %c0_i32_0, %c0_i32_1 : i32, i32, i32
  }
  func.func @transform_2(%arg0: i32) -> (i32, i32) {
    %c0_i32 = arith.constant 0 : i32
    %c0_i32_0 = arith.constant 0 : i32
    %c0_i32_1 = arith.constant 0 : i32
    return %c0_i32, %c0_i32_0 : i32, i32
  }
  func.func @transform_3(%arg0: i32) -> (i32, i32, i32) {
    %c0_i32 = arith.constant 0 : i32
    %c0_i32_0 = arith.constant 0 : i32
    %c0_i32_1 = arith.constant 0 : i32
    return %arg0, %c0_i32, %c0_i32_0 : i32, i32, i32
  }
  func.func @transform_4(%arg0: i32) -> (i32, i32, i32) {
    %c0_i32 = arith.constant 0 : i32
    %c0_i32_0 = arith.constant 0 : i32
    %c0_i32_1 = arith.constant 0 : i32
    return %arg0, %c0_i32, %c0_i32_0 : i32, i32, i32
  }
}

module attributes {stable_mosaic.version = 11 : i64} {
  func.func @kernel(%arg0: i32, %arg1: memref<1x5x68xbf16, #tpu.memory_space<vmem>>, %arg2: memref<25x8x5xbf16, #tpu.memory_space<vmem>>, %arg3: memref<8x1xf32, #tpu.memory_space<vmem>>, %arg4: memref<1xf32, #tpu.memory_space<smem>>, %arg5: memref<1x8x32xf32, #tpu.memory_space<vmem>>) attributes {dimension_semantics = [#tpu.dimension_semantics<parallel>], iteration_bounds = array<i64: 2>, scalar_prefetch = 0 : i64, scratch_operands = 0 : i64, tpu.core_type = #tpu.core_type<tc>, window_params = [{transform_indices = @transform_0, window_bounds = array<i64: 1, 5, 68>}, {pipeline_mode = #tpu.pipeline_mode<synchronous>, transform_indices = @transform_1, window_bounds = array<i64: 25, 8, 5>}, {pipeline_mode = #tpu.pipeline_mode<synchronous>, transform_indices = @transform_2, window_bounds = array<i64: 8, 1>}, {transform_indices = @transform_3, window_bounds = array<i64: 1>}, {transform_indices = @transform_4, window_bounds = array<i64: 1, 8, 32>}]} {
    %c0 = arith.constant 0 : index
    %c0_0 = arith.constant 0 : index
    %c0_1 = arith.constant 0 : index
    %0 = vector.load %arg1[%c0, %c0_0, %c0_1] : memref<1x5x68xbf16, #tpu.memory_space<vmem>>, vector<1x5x32xbf16>
    %1 = vector.shape_cast %0 : vector<1x5x32xbf16> to vector<5x32xbf16>
    %c0_2 = arith.constant 0 : index
    %c0_3 = arith.constant 0 : index
    %c0_4 = arith.constant 0 : index
    %2 = vector.load %arg2[%c0_2, %c0_3, %c0_4] : memref<25x8x5xbf16, #tpu.memory_space<vmem>>, vector<1x8x5xbf16>
    %3 = vector.shape_cast %2 : vector<1x8x5xbf16> to vector<8x5xbf16>
    %cst = arith.constant dense<0.000000e+00> : vector<8x32xf32>
    %4 = tpu.matmul %3, %1, %cst {dimension_numbers = #tpu.dot_dimension_numbers<[1], [0], [0], [1], [0, 0, 1, 1], [], []>} : vector<8x5xbf16>, vector<5x32xbf16>, vector<8x32xf32> -> vector<8x32xf32>
    %c0_5 = arith.constant 0 : index
    %c0_6 = arith.constant 0 : index
    %c1 = arith.constant 1 : index
    %5 = vector.load %arg1[%c0_5, %c0_6, %c1] : memref<1x5x68xbf16, #tpu.memory_space<vmem>>, vector<1x5x32xbf16>
    %6 = vector.shape_cast %5 : vector<1x5x32xbf16> to vector<5x32xbf16>
    %c1_7 = arith.constant 1 : index
    %c0_8 = arith.constant 0 : index
    %c0_9 = arith.constant 0 : index
    %7 = vector.load %arg2[%c1_7, %c0_8, %c0_9] : memref<25x8x5xbf16, #tpu.memory_space<vmem>>, vector<1x8x5xbf16>
    %8 = vector.shape_cast %7 : vector<1x8x5xbf16> to vector<8x5xbf16>
    %cst_10 = arith.constant dense<0.000000e+00> : vector<8x32xf32>
    %9 = tpu.matmul %8, %6, %cst_10 {dimension_numbers = #tpu.dot_dimension_numbers<[1], [0], [0], [1], [0, 0, 1, 1], [], []>} : vector<8x5xbf16>, vector<5x32xbf16>, vector<8x32xf32> -> vector<8x32xf32>
    %10 = arith.addf %4, %9 : vector<8x32xf32>
    %c0_11 = arith.constant 0 : index
    %c0_12 = arith.constant 0 : index
    %c2 = arith.constant 2 : index
    %11 = vector.load %arg1[%c0_11, %c0_12, %c2] : memref<1x5x68xbf16, #tpu.memory_space<vmem>>, vector<1x5x32xbf16>
    %12 = vector.shape_cast %11 : vector<1x5x32xbf16> to vector<5x32xbf16>
    %c2_13 = arith.constant 2 : index
    %c0_14 = arith.constant 0 : index
    %c0_15 = arith.constant 0 : index
    %13 = vector.load %arg2[%c2_13, %c0_14, %c0_15] : memref<25x8x5xbf16, #tpu.memory_space<vmem>>, vector<1x8x5xbf16>
    %14 = vector.shape_cast %13 : vector<1x8x5xbf16> to vector<8x5xbf16>
    %cst_16 = arith.constant dense<0.000000e+00> : vector<8x32xf32>
    %15 = tpu.matmul %14, %12, %cst_16 {dimension_numbers = #tpu.dot_dimension_numbers<[1], [0], [0], [1], [0, 0, 1, 1], [], []>} : vector<8x5xbf16>, vector<5x32xbf16>, vector<8x32xf32> -> vector<8x32xf32>
    %16 = arith.addf %10, %15 : vector<8x32xf32>
    %c0_17 = arith.constant 0 : index
    %c0_18 = arith.constant 0 : index
    %c3 = arith.constant 3 : index
    %17 = vector.load %arg1[%c0_17, %c0_18, %c3] : memref<1x5x68xbf16, #tpu.memory_space<vmem>>, vector<1x5x32xbf16>
    %18 = vector.shape_cast %17 : vector<1x5x32xbf16> to vector<5x32xbf16>
    %c3_19 = arith.constant 3 : index
    %c0_20 = arith.constant 0 : index
    %c0_21 = arith.constant 0 : index
    %19 = vector.load %arg2[%c3_19, %c0_20, %c0_21] : memref<25x8x5xbf16, #tpu.memory_space<vmem>>, vector<1x8x5xbf16>
    %20 = vector.shape_cast %19 : vector<1x8x5xbf16> to vector<8x5xbf16>
    %cst_22 = arith.constant dense<0.000000e+00> : vector<8x32xf32>
    %21 = tpu.matmul %20, %18, %cst_22 {dimension_numbers = #tpu.dot_dimension_numbers<[1], [0], [0], [1], [0, 0, 1, 1], [], []>} : vector<8x5xbf16>, vector<5x32xbf16>, vector<8x32xf32> -> vector<8x32xf32>
    %22 = arith.addf %16, %21 : vector<8x32xf32>
    %c0_23 = arith.constant 0 : index
    %c0_24 = arith.constant 0 : index
    %c4 = arith.constant 4 : index
    %23 = vector.load %arg1[%c0_23, %c0_24, %c4] : memref<1x5x68xbf16, #tpu.memory_space<vmem>>, vector<1x5x32xbf16>
    %24 = vector.shape_cast %23 : vector<1x5x32xbf16> to vector<5x32xbf16>
    %c4_25 = arith.constant 4 : index
    %c0_26 = arith.constant 0 : index
    %c0_27 = arith.constant 0 : index
    %25 = vector.load %arg2[%c4_25, %c0_26, %c0_27] : memref<25x8x5xbf16, #tpu.memory_space<vmem>>, vector<1x8x5xbf16>
    %26 = vector.shape_cast %25 : vector<1x8x5xbf16> to vector<8x5xbf16>
    %cst_28 = arith.constant dense<0.000000e+00> : vector<8x32xf32>
    %27 = tpu.matmul %26, %24, %cst_28 {dimension_numbers = #tpu.dot_dimension_numbers<[1], [0], [0], [1], [0, 0, 1, 1], [], []>} : vector<8x5xbf16>, vector<5x32xbf16>, vector<8x32xf32> -> vector<8x32xf32>
    %28 = arith.addf %22, %27 : vector<8x32xf32>
    %c0_29 = arith.constant 0 : index
    %c0_30 = arith.constant 0 : index
    %c8 = arith.constant 8 : index
    %29 = vector.load %arg1[%c0_29, %c0_30, %c8] : memref<1x5x68xbf16, #tpu.memory_space<vmem>>, vector<1x5x32xbf16>
    %30 = vector.shape_cast %29 : vector<1x5x32xbf16> to vector<5x32xbf16>
    %c5 = arith.constant 5 : index
    %c0_31 = arith.constant 0 : index
    %c0_32 = arith.constant 0 : index
    %31 = vector.load %arg2[%c5, %c0_31, %c0_32] : memref<25x8x5xbf16, #tpu.memory_space<vmem>>, vector<1x8x5xbf16>
    %32 = vector.shape_cast %31 : vector<1x8x5xbf16> to vector<8x5xbf16>
    %cst_33 = arith.constant dense<0.000000e+00> : vector<8x32xf32>
    %33 = tpu.matmul %32, %30, %cst_33 {dimension_numbers = #tpu.dot_dimension_numbers<[1], [0], [0], [1], [0, 0, 1, 1], [], []>} : vector<8x5xbf16>, vector<5x32xbf16>, vector<8x32xf32> -> vector<8x32xf32>
    %34 = arith.addf %28, %33 : vector<8x32xf32>
    %c0_34 = arith.constant 0 : index
    %c0_35 = arith.constant 0 : index
    %c9 = arith.constant 9 : index
    %35 = vector.load %arg1[%c0_34, %c0_35, %c9] : memref<1x5x68xbf16, #tpu.memory_space<vmem>>, vector<1x5x32xbf16>
    %36 = vector.shape_cast %35 : vector<1x5x32xbf16> to vector<5x32xbf16>
    %c6 = arith.constant 6 : index
    %c0_36 = arith.constant 0 : index
    %c0_37 = arith.constant 0 : index
    %37 = vector.load %arg2[%c6, %c0_36, %c0_37] : memref<25x8x5xbf16, #tpu.memory_space<vmem>>, vector<1x8x5xbf16>
    %38 = vector.shape_cast %37 : vector<1x8x5xbf16> to vector<8x5xbf16>
    %cst_38 = arith.constant dense<0.000000e+00> : vector<8x32xf32>
    %39 = tpu.matmul %38, %36, %cst_38 {dimension_numbers = #tpu.dot_dimension_numbers<[1], [0], [0], [1], [0, 0, 1, 1], [], []>} : vector<8x5xbf16>, vector<5x32xbf16>, vector<8x32xf32> -> vector<8x32xf32>
    %40 = arith.addf %34, %39 : vector<8x32xf32>
    %c0_39 = arith.constant 0 : index
    %c0_40 = arith.constant 0 : index
    %c10 = arith.constant 10 : index
    %41 = vector.load %arg1[%c0_39, %c0_40, %c10] : memref<1x5x68xbf16, #tpu.memory_space<vmem>>, vector<1x5x32xbf16>
    %42 = vector.shape_cast %41 : vector<1x5x32xbf16> to vector<5x32xbf16>
    %c7 = arith.constant 7 : index
    %c0_41 = arith.constant 0 : index
    %c0_42 = arith.constant 0 : index
    %43 = vector.load %arg2[%c7, %c0_41, %c0_42] : memref<25x8x5xbf16, #tpu.memory_space<vmem>>, vector<1x8x5xbf16>
    %44 = vector.shape_cast %43 : vector<1x8x5xbf16> to vector<8x5xbf16>
    %cst_43 = arith.constant dense<0.000000e+00> : vector<8x32xf32>
    %45 = tpu.matmul %44, %42, %cst_43 {dimension_numbers = #tpu.dot_dimension_numbers<[1], [0], [0], [1], [0, 0, 1, 1], [], []>} : vector<8x5xbf16>, vector<5x32xbf16>, vector<8x32xf32> -> vector<8x32xf32>
    %46 = arith.addf %40, %45 : vector<8x32xf32>
    %c0_44 = arith.constant 0 : index
    %c0_45 = arith.constant 0 : index
    %c11 = arith.constant 11 : index
    %47 = vector.load %arg1[%c0_44, %c0_45, %c11] : memref<1x5x68xbf16, #tpu.memory_space<vmem>>, vector<1x5x32xbf16>
    %48 = vector.shape_cast %47 : vector<1x5x32xbf16> to vector<5x32xbf16>
    %c8_46 = arith.constant 8 : index
    %c0_47 = arith.constant 0 : index
    %c0_48 = arith.constant 0 : index
    %49 = vector.load %arg2[%c8_46, %c0_47, %c0_48] : memref<25x8x5xbf16, #tpu.memory_space<vmem>>, vector<1x8x5xbf16>
    %50 = vector.shape_cast %49 : vector<1x8x5xbf16> to vector<8x5xbf16>
    %cst_49 = arith.constant dense<0.000000e+00> : vector<8x32xf32>
    %51 = tpu.matmul %50, %48, %cst_49 {dimension_numbers = #tpu.dot_dimension_numbers<[1], [0], [0], [1], [0, 0, 1, 1], [], []>} : vector<8x5xbf16>, vector<5x32xbf16>, vector<8x32xf32> -> vector<8x32xf32>
    %52 = arith.addf %46, %51 : vector<8x32xf32>
    %c0_50 = arith.constant 0 : index
    %c0_51 = arith.constant 0 : index
    %c12 = arith.constant 12 : index
    %53 = vector.load %arg1[%c0_50, %c0_51, %c12] : memref<1x5x68xbf16, #tpu.memory_space<vmem>>, vector<1x5x32xbf16>
    %54 = vector.shape_cast %53 : vector<1x5x32xbf16> to vector<5x32xbf16>
    %c9_52 = arith.constant 9 : index
    %c0_53 = arith.constant 0 : index
    %c0_54 = arith.constant 0 : index
    %55 = vector.load %arg2[%c9_52, %c0_53, %c0_54] : memref<25x8x5xbf16, #tpu.memory_space<vmem>>, vector<1x8x5xbf16>
    %56 = vector.shape_cast %55 : vector<1x8x5xbf16> to vector<8x5xbf16>
    %cst_55 = arith.constant dense<0.000000e+00> : vector<8x32xf32>
    %57 = tpu.matmul %56, %54, %cst_55 {dimension_numbers = #tpu.dot_dimension_numbers<[1], [0], [0], [1], [0, 0, 1, 1], [], []>} : vector<8x5xbf16>, vector<5x32xbf16>, vector<8x32xf32> -> vector<8x32xf32>
    %58 = arith.addf %52, %57 : vector<8x32xf32>
    %c0_56 = arith.constant 0 : index
    %c0_57 = arith.constant 0 : index
    %c16 = arith.constant 16 : index
    %59 = vector.load %arg1[%c0_56, %c0_57, %c16] : memref<1x5x68xbf16, #tpu.memory_space<vmem>>, vector<1x5x32xbf16>
    %60 = vector.shape_cast %59 : vector<1x5x32xbf16> to vector<5x32xbf16>
    %c10_58 = arith.constant 10 : index
    %c0_59 = arith.constant 0 : index
    %c0_60 = arith.constant 0 : index
    %61 = vector.load %arg2[%c10_58, %c0_59, %c0_60] : memref<25x8x5xbf16, #tpu.memory_space<vmem>>, vector<1x8x5xbf16>
    %62 = vector.shape_cast %61 : vector<1x8x5xbf16> to vector<8x5xbf16>
    %cst_61 = arith.constant dense<0.000000e+00> : vector<8x32xf32>
    %63 = tpu.matmul %62, %60, %cst_61 {dimension_numbers = #tpu.dot_dimension_numbers<[1], [0], [0], [1], [0, 0, 1, 1], [], []>} : vector<8x5xbf16>, vector<5x32xbf16>, vector<8x32xf32> -> vector<8x32xf32>
    %64 = arith.addf %58, %63 : vector<8x32xf32>
    %c0_62 = arith.constant 0 : index
    %c0_63 = arith.constant 0 : index
    %c17 = arith.constant 17 : index
    %65 = vector.load %arg1[%c0_62, %c0_63, %c17] : memref<1x5x68xbf16, #tpu.memory_space<vmem>>, vector<1x5x32xbf16>
    %66 = vector.shape_cast %65 : vector<1x5x32xbf16> to vector<5x32xbf16>
    %c11_64 = arith.constant 11 : index
    %c0_65 = arith.constant 0 : index
    %c0_66 = arith.constant 0 : index
    %67 = vector.load %arg2[%c11_64, %c0_65, %c0_66] : memref<25x8x5xbf16, #tpu.memory_space<vmem>>, vector<1x8x5xbf16>
    %68 = vector.shape_cast %67 : vector<1x8x5xbf16> to vector<8x5xbf16>
    %cst_67 = arith.constant dense<0.000000e+00> : vector<8x32xf32>
    %69 = tpu.matmul %68, %66, %cst_67 {dimension_numbers = #tpu.dot_dimension_numbers<[1], [0], [0], [1], [0, 0, 1, 1], [], []>} : vector<8x5xbf16>, vector<5x32xbf16>, vector<8x32xf32> -> vector<8x32xf32>
    %70 = arith.addf %64, %69 : vector<8x32xf32>
    %c0_68 = arith.constant 0 : index
    %c0_69 = arith.constant 0 : index
    %c18 = arith.constant 18 : index
    %71 = vector.load %arg1[%c0_68, %c0_69, %c18] : memref<1x5x68xbf16, #tpu.memory_space<vmem>>, vector<1x5x32xbf16>
    %72 = vector.shape_cast %71 : vector<1x5x32xbf16> to vector<5x32xbf16>
    %c12_70 = arith.constant 12 : index
    %c0_71 = arith.constant 0 : index
    %c0_72 = arith.constant 0 : index
    %73 = vector.load %arg2[%c12_70, %c0_71, %c0_72] : memref<25x8x5xbf16, #tpu.memory_space<vmem>>, vector<1x8x5xbf16>
    %74 = vector.shape_cast %73 : vector<1x8x5xbf16> to vector<8x5xbf16>
    %cst_73 = arith.constant dense<0.000000e+00> : vector<8x32xf32>
    %75 = tpu.matmul %74, %72, %cst_73 {dimension_numbers = #tpu.dot_dimension_numbers<[1], [0], [0], [1], [0, 0, 1, 1], [], []>} : vector<8x5xbf16>, vector<5x32xbf16>, vector<8x32xf32> -> vector<8x32xf32>
    %76 = arith.addf %70, %75 : vector<8x32xf32>
    %c0_74 = arith.constant 0 : index
    %c0_75 = arith.constant 0 : index
    %c19 = arith.constant 19 : index
    %77 = vector.load %arg1[%c0_74, %c0_75, %c19] : memref<1x5x68xbf16, #tpu.memory_space<vmem>>, vector<1x5x32xbf16>
    %78 = vector.shape_cast %77 : vector<1x5x32xbf16> to vector<5x32xbf16>
    %c13 = arith.constant 13 : index
    %c0_76 = arith.constant 0 : index
    %c0_77 = arith.constant 0 : index
    %79 = vector.load %arg2[%c13, %c0_76, %c0_77] : memref<25x8x5xbf16, #tpu.memory_space<vmem>>, vector<1x8x5xbf16>
    %80 = vector.shape_cast %79 : vector<1x8x5xbf16> to vector<8x5xbf16>
    %cst_78 = arith.constant dense<0.000000e+00> : vector<8x32xf32>
    %81 = tpu.matmul %80, %78, %cst_78 {dimension_numbers = #tpu.dot_dimension_numbers<[1], [0], [0], [1], [0, 0, 1, 1], [], []>} : vector<8x5xbf16>, vector<5x32xbf16>, vector<8x32xf32> -> vector<8x32xf32>
    %82 = arith.addf %76, %81 : vector<8x32xf32>
    %c0_79 = arith.constant 0 : index
    %c0_80 = arith.constant 0 : index
    %c20 = arith.constant 20 : index
    %83 = vector.load %arg1[%c0_79, %c0_80, %c20] : memref<1x5x68xbf16, #tpu.memory_space<vmem>>, vector<1x5x32xbf16>
    %84 = vector.shape_cast %83 : vector<1x5x32xbf16> to vector<5x32xbf16>
    %c14 = arith.constant 14 : index
    %c0_81 = arith.constant 0 : index
    %c0_82 = arith.constant 0 : index
    %85 = vector.load %arg2[%c14, %c0_81, %c0_82] : memref<25x8x5xbf16, #tpu.memory_space<vmem>>, vector<1x8x5xbf16>
    %86 = vector.shape_cast %85 : vector<1x8x5xbf16> to vector<8x5xbf16>
    %cst_83 = arith.constant dense<0.000000e+00> : vector<8x32xf32>
    %87 = tpu.matmul %86, %84, %cst_83 {dimension_numbers = #tpu.dot_dimension_numbers<[1], [0], [0], [1], [0, 0, 1, 1], [], []>} : vector<8x5xbf16>, vector<5x32xbf16>, vector<8x32xf32> -> vector<8x32xf32>
    %88 = arith.addf %82, %87 : vector<8x32xf32>
    %c0_84 = arith.constant 0 : index
    %c0_85 = arith.constant 0 : index
    %c24 = arith.constant 24 : index
    %89 = vector.load %arg1[%c0_84, %c0_85, %c24] : memref<1x5x68xbf16, #tpu.memory_space<vmem>>, vector<1x5x32xbf16>
    %90 = vector.shape_cast %89 : vector<1x5x32xbf16> to vector<5x32xbf16>
    %c15 = arith.constant 15 : index
    %c0_86 = arith.constant 0 : index
    %c0_87 = arith.constant 0 : index
    %91 = vector.load %arg2[%c15, %c0_86, %c0_87] : memref<25x8x5xbf16, #tpu.memory_space<vmem>>, vector<1x8x5xbf16>
    %92 = vector.shape_cast %91 : vector<1x8x5xbf16> to vector<8x5xbf16>
    %cst_88 = arith.constant dense<0.000000e+00> : vector<8x32xf32>
    %93 = tpu.matmul %92, %90, %cst_88 {dimension_numbers = #tpu.dot_dimension_numbers<[1], [0], [0], [1], [0, 0, 1, 1], [], []>} : vector<8x5xbf16>, vector<5x32xbf16>, vector<8x32xf32> -> vector<8x32xf32>
    %94 = arith.addf %88, %93 : vector<8x32xf32>
    %c0_89 = arith.constant 0 : index
    %c0_90 = arith.constant 0 : index
    %c25 = arith.constant 25 : index
    %95 = vector.load %arg1[%c0_89, %c0_90, %c25] : memref<1x5x68xbf16, #tpu.memory_space<vmem>>, vector<1x5x32xbf16>
    %96 = vector.shape_cast %95 : vector<1x5x32xbf16> to vector<5x32xbf16>
    %c16_91 = arith.constant 16 : index
    %c0_92 = arith.constant 0 : index
    %c0_93 = arith.constant 0 : index
    %97 = vector.load %arg2[%c16_91, %c0_92, %c0_93] : memref<25x8x5xbf16, #tpu.memory_space<vmem>>, vector<1x8x5xbf16>
    %98 = vector.shape_cast %97 : vector<1x8x5xbf16> to vector<8x5xbf16>
    %cst_94 = arith.constant dense<0.000000e+00> : vector<8x32xf32>
    %99 = tpu.matmul %98, %96, %cst_94 {dimension_numbers = #tpu.dot_dimension_numbers<[1], [0], [0], [1], [0, 0, 1, 1], [], []>} : vector<8x5xbf16>, vector<5x32xbf16>, vector<8x32xf32> -> vector<8x32xf32>
    %100 = arith.addf %94, %99 : vector<8x32xf32>
    %c0_95 = arith.constant 0 : index
    %c0_96 = arith.constant 0 : index
    %c26 = arith.constant 26 : index
    %101 = vector.load %arg1[%c0_95, %c0_96, %c26] : memref<1x5x68xbf16, #tpu.memory_space<vmem>>, vector<1x5x32xbf16>
    %102 = vector.shape_cast %101 : vector<1x5x32xbf16> to vector<5x32xbf16>
    %c17_97 = arith.constant 17 : index
    %c0_98 = arith.constant 0 : index
    %c0_99 = arith.constant 0 : index
    %103 = vector.load %arg2[%c17_97, %c0_98, %c0_99] : memref<25x8x5xbf16, #tpu.memory_space<vmem>>, vector<1x8x5xbf16>
    %104 = vector.shape_cast %103 : vector<1x8x5xbf16> to vector<8x5xbf16>
    %cst_100 = arith.constant dense<0.000000e+00> : vector<8x32xf32>
    %105 = tpu.matmul %104, %102, %cst_100 {dimension_numbers = #tpu.dot_dimension_numbers<[1], [0], [0], [1], [0, 0, 1, 1], [], []>} : vector<8x5xbf16>, vector<5x32xbf16>, vector<8x32xf32> -> vector<8x32xf32>
    %106 = arith.addf %100, %105 : vector<8x32xf32>
    %c0_101 = arith.constant 0 : index
    %c0_102 = arith.constant 0 : index
    %c27 = arith.constant 27 : index
    %107 = vector.load %arg1[%c0_101, %c0_102, %c27] : memref<1x5x68xbf16, #tpu.memory_space<vmem>>, vector<1x5x32xbf16>
    %108 = vector.shape_cast %107 : vector<1x5x32xbf16> to vector<5x32xbf16>
    %c18_103 = arith.constant 18 : index
    %c0_104 = arith.constant 0 : index
    %c0_105 = arith.constant 0 : index
    %109 = vector.load %arg2[%c18_103, %c0_104, %c0_105] : memref<25x8x5xbf16, #tpu.memory_space<vmem>>, vector<1x8x5xbf16>
    %110 = vector.shape_cast %109 : vector<1x8x5xbf16> to vector<8x5xbf16>
    %cst_106 = arith.constant dense<0.000000e+00> : vector<8x32xf32>
    %111 = tpu.matmul %110, %108, %cst_106 {dimension_numbers = #tpu.dot_dimension_numbers<[1], [0], [0], [1], [0, 0, 1, 1], [], []>} : vector<8x5xbf16>, vector<5x32xbf16>, vector<8x32xf32> -> vector<8x32xf32>
    %112 = arith.addf %106, %111 : vector<8x32xf32>
    %c0_107 = arith.constant 0 : index
    %c0_108 = arith.constant 0 : index
    %c28 = arith.constant 28 : index
    %113 = vector.load %arg1[%c0_107, %c0_108, %c28] : memref<1x5x68xbf16, #tpu.memory_space<vmem>>, vector<1x5x32xbf16>
    %114 = vector.shape_cast %113 : vector<1x5x32xbf16> to vector<5x32xbf16>
    %c19_109 = arith.constant 19 : index
    %c0_110 = arith.constant 0 : index
    %c0_111 = arith.constant 0 : index
    %115 = vector.load %arg2[%c19_109, %c0_110, %c0_111] : memref<25x8x5xbf16, #tpu.memory_space<vmem>>, vector<1x8x5xbf16>
    %116 = vector.shape_cast %115 : vector<1x8x5xbf16> to vector<8x5xbf16>
    %cst_112 = arith.constant dense<0.000000e+00> : vector<8x32xf32>
    %117 = tpu.matmul %116, %114, %cst_112 {dimension_numbers = #tpu.dot_dimension_numbers<[1], [0], [0], [1], [0, 0, 1, 1], [], []>} : vector<8x5xbf16>, vector<5x32xbf16>, vector<8x32xf32> -> vector<8x32xf32>
    %118 = arith.addf %112, %117 : vector<8x32xf32>
    %c0_113 = arith.constant 0 : index
    %c0_114 = arith.constant 0 : index
    %c32 = arith.constant 32 : index
    %119 = vector.load %arg1[%c0_113, %c0_114, %c32] : memref<1x5x68xbf16, #tpu.memory_space<vmem>>, vector<1x5x32xbf16>
    %120 = vector.shape_cast %119 : vector<1x5x32xbf16> to vector<5x32xbf16>
    %c20_115 = arith.constant 20 : index
    %c0_116 = arith.constant 0 : index
    %c0_117 = arith.constant 0 : index
    %121 = vector.load %arg2[%c20_115, %c0_116, %c0_117] : memref<25x8x5xbf16, #tpu.memory_space<vmem>>, vector<1x8x5xbf16>
    %122 = vector.shape_cast %121 : vector<1x8x5xbf16> to vector<8x5xbf16>
    %cst_118 = arith.constant dense<0.000000e+00> : vector<8x32xf32>
    %123 = tpu.matmul %122, %120, %cst_118 {dimension_numbers = #tpu.dot_dimension_numbers<[1], [0], [0], [1], [0, 0, 1, 1], [], []>} : vector<8x5xbf16>, vector<5x32xbf16>, vector<8x32xf32> -> vector<8x32xf32>
    %124 = arith.addf %118, %123 : vector<8x32xf32>
    %c0_119 = arith.constant 0 : index
    %c0_120 = arith.constant 0 : index
    %c33 = arith.constant 33 : index
    %125 = vector.load %arg1[%c0_119, %c0_120, %c33] : memref<1x5x68xbf16, #tpu.memory_space<vmem>>, vector<1x5x32xbf16>
    %126 = vector.shape_cast %125 : vector<1x5x32xbf16> to vector<5x32xbf16>
    %c21 = arith.constant 21 : index
    %c0_121 = arith.constant 0 : index
    %c0_122 = arith.constant 0 : index
    %127 = vector.load %arg2[%c21, %c0_121, %c0_122] : memref<25x8x5xbf16, #tpu.memory_space<vmem>>, vector<1x8x5xbf16>
    %128 = vector.shape_cast %127 : vector<1x8x5xbf16> to vector<8x5xbf16>
    %cst_123 = arith.constant dense<0.000000e+00> : vector<8x32xf32>
    %129 = tpu.matmul %128, %126, %cst_123 {dimension_numbers = #tpu.dot_dimension_numbers<[1], [0], [0], [1], [0, 0, 1, 1], [], []>} : vector<8x5xbf16>, vector<5x32xbf16>, vector<8x32xf32> -> vector<8x32xf32>
    %130 = arith.addf %124, %129 : vector<8x32xf32>
    %c0_124 = arith.constant 0 : index
    %c0_125 = arith.constant 0 : index
    %c34 = arith.constant 34 : index
    %131 = vector.load %arg1[%c0_124, %c0_125, %c34] : memref<1x5x68xbf16, #tpu.memory_space<vmem>>, vector<1x5x32xbf16>
    %132 = vector.shape_cast %131 : vector<1x5x32xbf16> to vector<5x32xbf16>
    %c22 = arith.constant 22 : index
    %c0_126 = arith.constant 0 : index
    %c0_127 = arith.constant 0 : index
    %133 = vector.load %arg2[%c22, %c0_126, %c0_127] : memref<25x8x5xbf16, #tpu.memory_space<vmem>>, vector<1x8x5xbf16>
    %134 = vector.shape_cast %133 : vector<1x8x5xbf16> to vector<8x5xbf16>
    %cst_128 = arith.constant dense<0.000000e+00> : vector<8x32xf32>
    %135 = tpu.matmul %134, %132, %cst_128 {dimension_numbers = #tpu.dot_dimension_numbers<[1], [0], [0], [1], [0, 0, 1, 1], [], []>} : vector<8x5xbf16>, vector<5x32xbf16>, vector<8x32xf32> -> vector<8x32xf32>
    %136 = arith.addf %130, %135 : vector<8x32xf32>
    %c0_129 = arith.constant 0 : index
    %c0_130 = arith.constant 0 : index
    %c35 = arith.constant 35 : index
    %137 = vector.load %arg1[%c0_129, %c0_130, %c35] : memref<1x5x68xbf16, #tpu.memory_space<vmem>>, vector<1x5x32xbf16>
    %138 = vector.shape_cast %137 : vector<1x5x32xbf16> to vector<5x32xbf16>
    %c23 = arith.constant 23 : index
    %c0_131 = arith.constant 0 : index
    %c0_132 = arith.constant 0 : index
    %139 = vector.load %arg2[%c23, %c0_131, %c0_132] : memref<25x8x5xbf16, #tpu.memory_space<vmem>>, vector<1x8x5xbf16>
    %140 = vector.shape_cast %139 : vector<1x8x5xbf16> to vector<8x5xbf16>
    %cst_133 = arith.constant dense<0.000000e+00> : vector<8x32xf32>
    %141 = tpu.matmul %140, %138, %cst_133 {dimension_numbers = #tpu.dot_dimension_numbers<[1], [0], [0], [1], [0, 0, 1, 1], [], []>} : vector<8x5xbf16>, vector<5x32xbf16>, vector<8x32xf32> -> vector<8x32xf32>
    %142 = arith.addf %136, %141 : vector<8x32xf32>
    %c0_134 = arith.constant 0 : index
    %c0_135 = arith.constant 0 : index
    %c36 = arith.constant 36 : index
    %143 = vector.load %arg1[%c0_134, %c0_135, %c36] : memref<1x5x68xbf16, #tpu.memory_space<vmem>>, vector<1x5x32xbf16>
    %144 = vector.shape_cast %143 : vector<1x5x32xbf16> to vector<5x32xbf16>
    %c24_136 = arith.constant 24 : index
    %c0_137 = arith.constant 0 : index
    %c0_138 = arith.constant 0 : index
    %145 = vector.load %arg2[%c24_136, %c0_137, %c0_138] : memref<25x8x5xbf16, #tpu.memory_space<vmem>>, vector<1x8x5xbf16>
    %146 = vector.shape_cast %145 : vector<1x8x5xbf16> to vector<8x5xbf16>
    %cst_139 = arith.constant dense<0.000000e+00> : vector<8x32xf32>
    %147 = tpu.matmul %146, %144, %cst_139 {dimension_numbers = #tpu.dot_dimension_numbers<[1], [0], [0], [1], [0, 0, 1, 1], [], []>} : vector<8x5xbf16>, vector<5x32xbf16>, vector<8x32xf32> -> vector<8x32xf32>
    %148 = arith.addf %142, %147 : vector<8x32xf32>
    %c0_140 = arith.constant 0 : index
    %c0_141 = arith.constant 0 : index
    %149 = vector.load %arg3[%c0_140, %c0_141] : memref<8x1xf32, #tpu.memory_space<vmem>>, vector<8x1xf32>
    %150 = vector.broadcast %149 : vector<8x1xf32> to vector<8x32xf32>
    %151 = arith.addf %148, %150 : vector<8x32xf32>
    %c0_142 = arith.constant 0 : index
    %152 = memref.load %arg4[%c0_142] : memref<1xf32, #tpu.memory_space<smem>>
    %cst_143 = arith.constant 0.000000e+00 : f32
    %153 = vector.broadcast %cst_143 : f32 to vector<8x32xf32>
    %154 = arith.cmpf oge, %151, %153 : vector<8x32xf32>
    %155 = vector.broadcast %152 : f32 to vector<8x32xf32>
    %156 = arith.mulf %155, %151 : vector<8x32xf32>
    %157 = arith.select %154, %151, %156 : vector<8x32xi1>, vector<8x32xf32>
    %c0_144 = arith.constant 0 : index
    %c0_145 = arith.constant 0 : index
    %c0_146 = arith.constant 0 : index
    %158 = vector.load %arg5[%c0_144, %c0_145, %c0_146] : memref<1x8x32xf32, #tpu.memory_space<vmem>>, vector<1x8x32xf32>
    %159 = vector.shape_cast %158 : vector<1x8x32xf32> to vector<8x32xf32>
    %160 = vector.shape_cast %157 : vector<8x32xf32> to vector<1x8x32xf32>
    tpu.vector_store %arg5[%c0_144, %c0_145, %c0_146], %160 {strides = array<i32>} : memref<1x8x32xf32, #tpu.memory_space<vmem>>, vector<1x8x32xf32>,
    return
  }
  func.func @transform_0(%arg0: i32) -> (i32, i32, i32) {
    %c0_i32 = arith.constant 0 : i32
    %c0_i32_0 = arith.constant 0 : i32
    %c0_i32_1 = arith.constant 0 : i32
    return %arg0, %c0_i32, %c0_i32_0 : i32, i32, i32
  }
  func.func @transform_1(%arg0: i32) -> (i32, i32, i32) {
    %c0_i32 = arith.constant 0 : i32
    %c0_i32_0 = arith.constant 0 : i32
    %c0_i32_1 = arith.constant 0 : i32
    %c0_i32_2 = arith.constant 0 : i32
    return %c0_i32, %c0_i32_0, %c0_i32_1 : i32, i32, i32
  }
  func.func @transform_2(%arg0: i32) -> (i32, i32) {
    %c0_i32 = arith.constant 0 : i32
    %c0_i32_0 = arith.constant 0 : i32
    %c0_i32_1 = arith.constant 0 : i32
    return %c0_i32, %c0_i32_0 : i32, i32
  }
  func.func @transform_3(%arg0: i32) -> i32 {
    %c0_i32 = arith.constant 0 : i32
    %c0_i32_0 = arith.constant 0 : i32
    return %c0_i32 : i32
  }
  func.func @transform_4(%arg0: i32) -> (i32, i32, i32) {
    %c0_i32 = arith.constant 0 : i32
    %c0_i32_0 = arith.constant 0 : i32
    %c0_i32_1 = arith.constant 0 : i32
    return %arg0, %c0_i32, %c0_i32_0 : i32, i32, i32
  }
}

module attributes {stable_mosaic.version = 11 : i64} {
  func.func @kernel(%arg0: i32, %arg1: memref<1x4x4x4xf32, #tpu.memory_space<vmem>>, %arg2: memref<4x16xf32, #tpu.memory_space<vmem>>, %arg3: memref<16x4xf32, #tpu.memory_space<vmem>>, %arg4: memref<1x4x16x16xf32, #tpu.memory_space<vmem>>, %arg5: memref<1x4x16x16xf32, #tpu.memory_space<vmem>>) attributes {dimension_semantics = [#tpu.dimension_semantics<parallel>], iteration_bounds = array<i64: 2>, scalar_prefetch = 0 : i64, scratch_operands = 0 : i64, tpu.core_type = #tpu.core_type<tc>, window_params = [{transform_indices = @transform_0, window_bounds = array<i64: 1, 4, 4, 4>}, {pipeline_mode = #tpu.pipeline_mode<synchronous>, transform_indices = @transform_1, window_bounds = array<i64: 4, 16>}, {pipeline_mode = #tpu.pipeline_mode<synchronous>, transform_indices = @transform_2, window_bounds = array<i64: 16, 4>}, {transform_indices = @transform_3, window_bounds = array<i64: 1, 4, 16, 16>}, {transform_indices = @transform_4, window_bounds = array<i64: 1, 4, 16, 16>}]} {
    %c0 = arith.constant 0 : index
    %c0_0 = arith.constant 0 : index
    %0 = vector.load %arg2[%c0, %c0_0] : memref<4x16xf32, #tpu.memory_space<vmem>>, vector<4x16xf32>
    %c0_1 = arith.constant 0 : index
    %c0_2 = arith.constant 0 : index
    %1 = vector.load %arg3[%c0_1, %c0_2] : memref<16x4xf32, #tpu.memory_space<vmem>>, vector<16x4xf32>
    %c0_3 = arith.constant 0 : index
    %c0_4 = arith.constant 0 : index
    %c0_5 = arith.constant 0 : index
    %c0_6 = arith.constant 0 : index
    %2 = vector.load %arg1[%c0_3, %c0_4, %c0_5, %c0_6] : memref<1x4x4x4xf32, #tpu.memory_space<vmem>>, vector<1x1x4x4xf32>
    %3 = vector.shape_cast %2 : vector<1x1x4x4xf32> to vector<4x4xf32>
    %cst = arith.constant dense<0.000000e+00> : vector<4x16xf32>
    %4 = tpu.matmul %3, %0, %cst {dimension_numbers = #tpu.dot_dimension_numbers<[1], [0], [0], [1], [0, 0, 1, 1], [], []>} : vector<4x4xf32>, vector<4x16xf32>, vector<4x16xf32> -> vector<4x16xf32>
    %cst_7 = arith.constant dense<0.000000e+00> : vector<16x16xf32>
    %5 = tpu.matmul %1, %4, %cst_7 {dimension_numbers = #tpu.dot_dimension_numbers<[1], [0], [0], [1], [0, 0, 1, 1], [], []>} : vector<16x4xf32>, vector<4x16xf32>, vector<16x16xf32> -> vector<16x16xf32>
    %c0_8 = arith.constant 0 : index
    %c0_9 = arith.constant 0 : index
    %c0_10 = arith.constant 0 : index
    %c0_11 = arith.constant 0 : index
    %6 = vector.load %arg4[%c0_8, %c0_9, %c0_10, %c0_11] : memref<1x4x16x16xf32, #tpu.memory_space<vmem>>, vector<1x1x16x16xf32>
    %7 = vector.shape_cast %6 : vector<1x1x16x16xf32> to vector<16x16xf32>
    %8 = arith.addf %5, %7 : vector<16x16xf32>
    %c0_12 = arith.constant 0 : index
    %c0_13 = arith.constant 0 : index
    %c0_14 = arith.constant 0 : index
    %c0_15 = arith.constant 0 : index
    %9 = vector.load %arg5[%c0_12, %c0_13, %c0_14, %c0_15] : memref<1x4x16x16xf32, #tpu.memory_space<vmem>>, vector<1x1x16x16xf32>
    %10 = vector.shape_cast %9 : vector<1x1x16x16xf32> to vector<16x16xf32>
    %11 = vector.shape_cast %8 : vector<16x16xf32> to vector<1x1x16x16xf32>
    tpu.vector_store %arg5[%c0_12, %c0_13, %c0_14, %c0_15], %11 {strides = array<i32>} : memref<1x4x16x16xf32, #tpu.memory_space<vmem>>, vector<1x1x16x16xf32>,
    %c0_16 = arith.constant 0 : index
    %c1 = arith.constant 1 : index
    %c0_17 = arith.constant 0 : index
    %c0_18 = arith.constant 0 : index
    %12 = vector.load %arg1[%c0_16, %c1, %c0_17, %c0_18] : memref<1x4x4x4xf32, #tpu.memory_space<vmem>>, vector<1x1x4x4xf32>
    %13 = vector.shape_cast %12 : vector<1x1x4x4xf32> to vector<4x4xf32>
    %cst_19 = arith.constant dense<0.000000e+00> : vector<4x16xf32>
    %14 = tpu.matmul %13, %0, %cst_19 {dimension_numbers = #tpu.dot_dimension_numbers<[1], [0], [0], [1], [0, 0, 1, 1], [], []>} : vector<4x4xf32>, vector<4x16xf32>, vector<4x16xf32> -> vector<4x16xf32>
    %cst_20 = arith.constant dense<0.000000e+00> : vector<16x16xf32>
    %15 = tpu.matmul %1, %14, %cst_20 {dimension_numbers = #tpu.dot_dimension_numbers<[1], [0], [0], [1], [0, 0, 1, 1], [], []>} : vector<16x4xf32>, vector<4x16xf32>, vector<16x16xf32> -> vector<16x16xf32>
    %c0_21 = arith.constant 0 : index
    %c1_22 = arith.constant 1 : index
    %c0_23 = arith.constant 0 : index
    %c0_24 = arith.constant 0 : index
    %16 = vector.load %arg4[%c0_21, %c1_22, %c0_23, %c0_24] : memref<1x4x16x16xf32, #tpu.memory_space<vmem>>, vector<1x1x16x16xf32>
    %17 = vector.shape_cast %16 : vector<1x1x16x16xf32> to vector<16x16xf32>
    %18 = arith.addf %15, %17 : vector<16x16xf32>
    %c0_25 = arith.constant 0 : index
    %c1_26 = arith.constant 1 : index
    %c0_27 = arith.constant 0 : index
    %c0_28 = arith.constant 0 : index
    %19 = vector.load %arg5[%c0_25, %c1_26, %c0_27, %c0_28] : memref<1x4x16x16xf32, #tpu.memory_space<vmem>>, vector<1x1x16x16xf32>
    %20 = vector.shape_cast %19 : vector<1x1x16x16xf32> to vector<16x16xf32>
    %21 = vector.shape_cast %18 : vector<16x16xf32> to vector<1x1x16x16xf32>
    tpu.vector_store %arg5[%c0_25, %c1_26, %c0_27, %c0_28], %21 {strides = array<i32>} : memref<1x4x16x16xf32, #tpu.memory_space<vmem>>, vector<1x1x16x16xf32>,
    %c0_29 = arith.constant 0 : index
    %c2 = arith.constant 2 : index
    %c0_30 = arith.constant 0 : index
    %c0_31 = arith.constant 0 : index
    %22 = vector.load %arg1[%c0_29, %c2, %c0_30, %c0_31] : memref<1x4x4x4xf32, #tpu.memory_space<vmem>>, vector<1x1x4x4xf32>
    %23 = vector.shape_cast %22 : vector<1x1x4x4xf32> to vector<4x4xf32>
    %cst_32 = arith.constant dense<0.000000e+00> : vector<4x16xf32>
    %24 = tpu.matmul %23, %0, %cst_32 {dimension_numbers = #tpu.dot_dimension_numbers<[1], [0], [0], [1], [0, 0, 1, 1], [], []>} : vector<4x4xf32>, vector<4x16xf32>, vector<4x16xf32> -> vector<4x16xf32>
    %cst_33 = arith.constant dense<0.000000e+00> : vector<16x16xf32>
    %25 = tpu.matmul %1, %24, %cst_33 {dimension_numbers = #tpu.dot_dimension_numbers<[1], [0], [0], [1], [0, 0, 1, 1], [], []>} : vector<16x4xf32>, vector<4x16xf32>, vector<16x16xf32> -> vector<16x16xf32>
    %c0_34 = arith.constant 0 : index
    %c2_35 = arith.constant 2 : index
    %c0_36 = arith.constant 0 : index
    %c0_37 = arith.constant 0 : index
    %26 = vector.load %arg4[%c0_34, %c2_35, %c0_36, %c0_37] : memref<1x4x16x16xf32, #tpu.memory_space<vmem>>, vector<1x1x16x16xf32>
    %27 = vector.shape_cast %26 : vector<1x1x16x16xf32> to vector<16x16xf32>
    %28 = arith.addf %25, %27 : vector<16x16xf32>
    %c0_38 = arith.constant 0 : index
    %c2_39 = arith.constant 2 : index
    %c0_40 = arith.constant 0 : index
    %c0_41 = arith.constant 0 : index
    %29 = vector.load %arg5[%c0_38, %c2_39, %c0_40, %c0_41] : memref<1x4x16x16xf32, #tpu.memory_space<vmem>>, vector<1x1x16x16xf32>
    %30 = vector.shape_cast %29 : vector<1x1x16x16xf32> to vector<16x16xf32>
    %31 = vector.shape_cast %28 : vector<16x16xf32> to vector<1x1x16x16xf32>
    tpu.vector_store %arg5[%c0_38, %c2_39, %c0_40, %c0_41], %31 {strides = array<i32>} : memref<1x4x16x16xf32, #tpu.memory_space<vmem>>, vector<1x1x16x16xf32>,
    %c0_42 = arith.constant 0 : index
    %c3 = arith.constant 3 : index
    %c0_43 = arith.constant 0 : index
    %c0_44 = arith.constant 0 : index
    %32 = vector.load %arg1[%c0_42, %c3, %c0_43, %c0_44] : memref<1x4x4x4xf32, #tpu.memory_space<vmem>>, vector<1x1x4x4xf32>
    %33 = vector.shape_cast %32 : vector<1x1x4x4xf32> to vector<4x4xf32>
    %cst_45 = arith.constant dense<0.000000e+00> : vector<4x16xf32>
    %34 = tpu.matmul %33, %0, %cst_45 {dimension_numbers = #tpu.dot_dimension_numbers<[1], [0], [0], [1], [0, 0, 1, 1], [], []>} : vector<4x4xf32>, vector<4x16xf32>, vector<4x16xf32> -> vector<4x16xf32>
    %cst_46 = arith.constant dense<0.000000e+00> : vector<16x16xf32>
    %35 = tpu.matmul %1, %34, %cst_46 {dimension_numbers = #tpu.dot_dimension_numbers<[1], [0], [0], [1], [0, 0, 1, 1], [], []>} : vector<16x4xf32>, vector<4x16xf32>, vector<16x16xf32> -> vector<16x16xf32>
    %c0_47 = arith.constant 0 : index
    %c3_48 = arith.constant 3 : index
    %c0_49 = arith.constant 0 : index
    %c0_50 = arith.constant 0 : index
    %36 = vector.load %arg4[%c0_47, %c3_48, %c0_49, %c0_50] : memref<1x4x16x16xf32, #tpu.memory_space<vmem>>, vector<1x1x16x16xf32>
    %37 = vector.shape_cast %36 : vector<1x1x16x16xf32> to vector<16x16xf32>
    %38 = arith.addf %35, %37 : vector<16x16xf32>
    %c0_51 = arith.constant 0 : index
    %c3_52 = arith.constant 3 : index
    %c0_53 = arith.constant 0 : index
    %c0_54 = arith.constant 0 : index
    %39 = vector.load %arg5[%c0_51, %c3_52, %c0_53, %c0_54] : memref<1x4x16x16xf32, #tpu.memory_space<vmem>>, vector<1x1x16x16xf32>
    %40 = vector.shape_cast %39 : vector<1x1x16x16xf32> to vector<16x16xf32>
    %41 = vector.shape_cast %38 : vector<16x16xf32> to vector<1x1x16x16xf32>
    tpu.vector_store %arg5[%c0_51, %c3_52, %c0_53, %c0_54], %41 {strides = array<i32>} : memref<1x4x16x16xf32, #tpu.memory_space<vmem>>, vector<1x1x16x16xf32>,
    return
  }
  func.func @transform_0(%arg0: i32) -> (i32, i32, i32, i32) {
    %c0_i32 = arith.constant 0 : i32
    %c0_i32_0 = arith.constant 0 : i32
    %c0_i32_1 = arith.constant 0 : i32
    %c0_i32_2 = arith.constant 0 : i32
    return %arg0, %c0_i32, %c0_i32_0, %c0_i32_1 : i32, i32, i32, i32
  }
  func.func @transform_1(%arg0: i32) -> (i32, i32) {
    %c0_i32 = arith.constant 0 : i32
    %c0_i32_0 = arith.constant 0 : i32
    %c0_i32_1 = arith.constant 0 : i32
    return %c0_i32, %c0_i32_0 : i32, i32
  }
  func.func @transform_2(%arg0: i32) -> (i32, i32) {
    %c0_i32 = arith.constant 0 : i32
    %c0_i32_0 = arith.constant 0 : i32
    %c0_i32_1 = arith.constant 0 : i32
    return %c0_i32, %c0_i32_0 : i32, i32
  }
  func.func @transform_3(%arg0: i32) -> (i32, i32, i32, i32) {
    %c0_i32 = arith.constant 0 : i32
    %c0_i32_0 = arith.constant 0 : i32
    %c0_i32_1 = arith.constant 0 : i32
    %c0_i32_2 = arith.constant 0 : i32
    return %arg0, %c0_i32, %c0_i32_0, %c0_i32_1 : i32, i32, i32, i32
  }
  func.func @transform_4(%arg0: i32) -> (i32, i32, i32, i32) {
    %c0_i32 = arith.constant 0 : i32
    %c0_i32_0 = arith.constant 0 : i32
    %c0_i32_1 = arith.constant 0 : i32
    %c0_i32_2 = arith.constant 0 : i32
    return %arg0, %c0_i32, %c0_i32_0, %c0_i32_1 : i32, i32, i32, i32
  }
}

module attributes {stable_mosaic.version = 11 : i64} {
  func.func @kernel(%arg0: i32, %arg1: memref<1x8x68xbf16, #tpu.memory_space<vmem>>, %arg2: memref<25x8x8xbf16, #tpu.memory_space<vmem>>, %arg3: memref<8x1xf32, #tpu.memory_space<vmem>>, %arg4: memref<1xf32, #tpu.memory_space<smem>>, %arg5: memref<1x8x32xf32, #tpu.memory_space<vmem>>) attributes {dimension_semantics = [#tpu.dimension_semantics<parallel>], iteration_bounds = array<i64: 2>, scalar_prefetch = 0 : i64, scratch_operands = 0 : i64, tpu.core_type = #tpu.core_type<tc>, window_params = [{transform_indices = @transform_0, window_bounds = array<i64: 1, 8, 68>}, {pipeline_mode = #tpu.pipeline_mode<synchronous>, transform_indices = @transform_1, window_bounds = array<i64: 25, 8, 8>}, {pipeline_mode = #tpu.pipeline_mode<synchronous>, transform_indices = @transform_2, window_bounds = array<i64: 8, 1>}, {transform_indices = @transform_3, window_bounds = array<i64: 1>}, {transform_indices = @transform_4, window_bounds = array<i64: 1, 8, 32>}]} {
    %c0 = arith.constant 0 : index
    %c0_0 = arith.constant 0 : index
    %c0_1 = arith.constant 0 : index
    %0 = vector.load %arg1[%c0, %c0_0, %c0_1] : memref<1x8x68xbf16, #tpu.memory_space<vmem>>, vector<1x8x32xbf16>
    %1 = vector.shape_cast %0 : vector<1x8x32xbf16> to vector<8x32xbf16>
    %c0_2 = arith.constant 0 : index
    %c0_3 = arith.constant 0 : index
    %c0_4 = arith.constant 0 : index
    %2 = vector.load %arg2[%c0_2, %c0_3, %c0_4] : memref<25x8x8xbf16, #tpu.memory_space<vmem>>, vector<1x8x8xbf16>
    %3 = vector.shape_cast %2 : vector<1x8x8xbf16> to vector<8x8xbf16>
    %cst = arith.constant dense<0.000000e+00> : vector<8x32xf32>
    %4 = tpu.matmul %3, %1, %cst {dimension_numbers = #tpu.dot_dimension_numbers<[1], [0], [0], [1], [0, 0, 1, 1], [], []>} : vector<8x8xbf16>, vector<8x32xbf16>, vector<8x32xf32> -> vector<8x32xf32>
    %c0_5 = arith.constant 0 : index
    %c0_6 = arith.constant 0 : index
    %c1 = arith.constant 1 : index
    %5 = vector.load %arg1[%c0_5, %c0_6, %c1] : memref<1x8x68xbf16, #tpu.memory_space<vmem>>, vector<1x8x32xbf16>
    %6 = vector.shape_cast %5 : vector<1x8x32xbf16> to vector<8x32xbf16>
    %c1_7 = arith.constant 1 : index
    %c0_8 = arith.constant 0 : index
    %c0_9 = arith.constant 0 : index
    %7 = vector.load %arg2[%c1_7, %c0_8, %c0_9] : memref<25x8x8xbf16, #tpu.memory_space<vmem>>, vector<1x8x8xbf16>
    %8 = vector.shape_cast %7 : vector<1x8x8xbf16> to vector<8x8xbf16>
    %cst_10 = arith.constant dense<0.000000e+00> : vector<8x32xf32>
    %9 = tpu.matmul %8, %6, %cst_10 {dimension_numbers = #tpu.dot_dimension_numbers<[1], [0], [0], [1], [0, 0, 1, 1], [], []>} : vector<8x8xbf16>, vector<8x32xbf16>, vector<8x32xf32> -> vector<8x32xf32>
    %10 = arith.addf %4, %9 : vector<8x32xf32>
    %c0_11 = arith.constant 0 : index
    %c0_12 = arith.constant 0 : index
    %c2 = arith.constant 2 : index
    %11 = vector.load %arg1[%c0_11, %c0_12, %c2] : memref<1x8x68xbf16, #tpu.memory_space<vmem>>, vector<1x8x32xbf16>
    %12 = vector.shape_cast %11 : vector<1x8x32xbf16> to vector<8x32xbf16>
    %c2_13 = arith.constant 2 : index
    %c0_14 = arith.constant 0 : index
    %c0_15 = arith.constant 0 : index
    %13 = vector.load %arg2[%c2_13, %c0_14, %c0_15] : memref<25x8x8xbf16, #tpu.memory_space<vmem>>, vector<1x8x8xbf16>
    %14 = vector.shape_cast %13 : vector<1x8x8xbf16> to vector<8x8xbf16>
    %cst_16 = arith.constant dense<0.000000e+00> : vector<8x32xf32>
    %15 = tpu.matmul %14, %12, %cst_16 {dimension_numbers = #tpu.dot_dimension_numbers<[1], [0], [0], [1], [0, 0, 1, 1], [], []>} : vector<8x8xbf16>, vector<8x32xbf16>, vector<8x32xf32> -> vector<8x32xf32>
    %16 = arith.addf %10, %15 : vector<8x32xf32>
    %c0_17 = arith.constant 0 : index
    %c0_18 = arith.constant 0 : index
    %c3 = arith.constant 3 : index
    %17 = vector.load %arg1[%c0_17, %c0_18, %c3] : memref<1x8x68xbf16, #tpu.memory_space<vmem>>, vector<1x8x32xbf16>
    %18 = vector.shape_cast %17 : vector<1x8x32xbf16> to vector<8x32xbf16>
    %c3_19 = arith.constant 3 : index
    %c0_20 = arith.constant 0 : index
    %c0_21 = arith.constant 0 : index
    %19 = vector.load %arg2[%c3_19, %c0_20, %c0_21] : memref<25x8x8xbf16, #tpu.memory_space<vmem>>, vector<1x8x8xbf16>
    %20 = vector.shape_cast %19 : vector<1x8x8xbf16> to vector<8x8xbf16>
    %cst_22 = arith.constant dense<0.000000e+00> : vector<8x32xf32>
    %21 = tpu.matmul %20, %18, %cst_22 {dimension_numbers = #tpu.dot_dimension_numbers<[1], [0], [0], [1], [0, 0, 1, 1], [], []>} : vector<8x8xbf16>, vector<8x32xbf16>, vector<8x32xf32> -> vector<8x32xf32>
    %22 = arith.addf %16, %21 : vector<8x32xf32>
    %c0_23 = arith.constant 0 : index
    %c0_24 = arith.constant 0 : index
    %c4 = arith.constant 4 : index
    %23 = vector.load %arg1[%c0_23, %c0_24, %c4] : memref<1x8x68xbf16, #tpu.memory_space<vmem>>, vector<1x8x32xbf16>
    %24 = vector.shape_cast %23 : vector<1x8x32xbf16> to vector<8x32xbf16>
    %c4_25 = arith.constant 4 : index
    %c0_26 = arith.constant 0 : index
    %c0_27 = arith.constant 0 : index
    %25 = vector.load %arg2[%c4_25, %c0_26, %c0_27] : memref<25x8x8xbf16, #tpu.memory_space<vmem>>, vector<1x8x8xbf16>
    %26 = vector.shape_cast %25 : vector<1x8x8xbf16> to vector<8x8xbf16>
    %cst_28 = arith.constant dense<0.000000e+00> : vector<8x32xf32>
    %27 = tpu.matmul %26, %24, %cst_28 {dimension_numbers = #tpu.dot_dimension_numbers<[1], [0], [0], [1], [0, 0, 1, 1], [], []>} : vector<8x8xbf16>, vector<8x32xbf16>, vector<8x32xf32> -> vector<8x32xf32>
    %28 = arith.addf %22, %27 : vector<8x32xf32>
    %c0_29 = arith.constant 0 : index
    %c0_30 = arith.constant 0 : index
    %c8 = arith.constant 8 : index
    %29 = vector.load %arg1[%c0_29, %c0_30, %c8] : memref<1x8x68xbf16, #tpu.memory_space<vmem>>, vector<1x8x32xbf16>
    %30 = vector.shape_cast %29 : vector<1x8x32xbf16> to vector<8x32xbf16>
    %c5 = arith.constant 5 : index
    %c0_31 = arith.constant 0 : index
    %c0_32 = arith.constant 0 : index
    %31 = vector.load %arg2[%c5, %c0_31, %c0_32] : memref<25x8x8xbf16, #tpu.memory_space<vmem>>, vector<1x8x8xbf16>
    %32 = vector.shape_cast %31 : vector<1x8x8xbf16> to vector<8x8xbf16>
    %cst_33 = arith.constant dense<0.000000e+00> : vector<8x32xf32>
    %33 = tpu.matmul %32, %30, %cst_33 {dimension_numbers = #tpu.dot_dimension_numbers<[1], [0], [0], [1], [0, 0, 1, 1], [], []>} : vector<8x8xbf16>, vector<8x32xbf16>, vector<8x32xf32> -> vector<8x32xf32>
    %34 = arith.addf %28, %33 : vector<8x32xf32>
    %c0_34 = arith.constant 0 : index
    %c0_35 = arith.constant 0 : index
    %c9 = arith.constant 9 : index
    %35 = vector.load %arg1[%c0_34, %c0_35, %c9] : memref<1x8x68xbf16, #tpu.memory_space<vmem>>, vector<1x8x32xbf16>
    %36 = vector.shape_cast %35 : vector<1x8x32xbf16> to vector<8x32xbf16>
    %c6 = arith.constant 6 : index
    %c0_36 = arith.constant 0 : index
    %c0_37 = arith.constant 0 : index
    %37 = vector.load %arg2[%c6, %c0_36, %c0_37] : memref<25x8x8xbf16, #tpu.memory_space<vmem>>, vector<1x8x8xbf16>
    %38 = vector.shape_cast %37 : vector<1x8x8xbf16> to vector<8x8xbf16>
    %cst_38 = arith.constant dense<0.000000e+00> : vector<8x32xf32>
    %39 = tpu.matmul %38, %36, %cst_38 {dimension_numbers = #tpu.dot_dimension_numbers<[1], [0], [0], [1], [0, 0, 1, 1], [], []>} : vector<8x8xbf16>, vector<8x32xbf16>, vector<8x32xf32> -> vector<8x32xf32>
    %40 = arith.addf %34, %39 : vector<8x32xf32>
    %c0_39 = arith.constant 0 : index
    %c0_40 = arith.constant 0 : index
    %c10 = arith.constant 10 : index
    %41 = vector.load %arg1[%c0_39, %c0_40, %c10] : memref<1x8x68xbf16, #tpu.memory_space<vmem>>, vector<1x8x32xbf16>
    %42 = vector.shape_cast %41 : vector<1x8x32xbf16> to vector<8x32xbf16>
    %c7 = arith.constant 7 : index
    %c0_41 = arith.constant 0 : index
    %c0_42 = arith.constant 0 : index
    %43 = vector.load %arg2[%c7, %c0_41, %c0_42] : memref<25x8x8xbf16, #tpu.memory_space<vmem>>, vector<1x8x8xbf16>
    %44 = vector.shape_cast %43 : vector<1x8x8xbf16> to vector<8x8xbf16>
    %cst_43 = arith.constant dense<0.000000e+00> : vector<8x32xf32>
    %45 = tpu.matmul %44, %42, %cst_43 {dimension_numbers = #tpu.dot_dimension_numbers<[1], [0], [0], [1], [0, 0, 1, 1], [], []>} : vector<8x8xbf16>, vector<8x32xbf16>, vector<8x32xf32> -> vector<8x32xf32>
    %46 = arith.addf %40, %45 : vector<8x32xf32>
    %c0_44 = arith.constant 0 : index
    %c0_45 = arith.constant 0 : index
    %c11 = arith.constant 11 : index
    %47 = vector.load %arg1[%c0_44, %c0_45, %c11] : memref<1x8x68xbf16, #tpu.memory_space<vmem>>, vector<1x8x32xbf16>
    %48 = vector.shape_cast %47 : vector<1x8x32xbf16> to vector<8x32xbf16>
    %c8_46 = arith.constant 8 : index
    %c0_47 = arith.constant 0 : index
    %c0_48 = arith.constant 0 : index
    %49 = vector.load %arg2[%c8_46, %c0_47, %c0_48] : memref<25x8x8xbf16, #tpu.memory_space<vmem>>, vector<1x8x8xbf16>
    %50 = vector.shape_cast %49 : vector<1x8x8xbf16> to vector<8x8xbf16>
    %cst_49 = arith.constant dense<0.000000e+00> : vector<8x32xf32>
    %51 = tpu.matmul %50, %48, %cst_49 {dimension_numbers = #tpu.dot_dimension_numbers<[1], [0], [0], [1], [0, 0, 1, 1], [], []>} : vector<8x8xbf16>, vector<8x32xbf16>, vector<8x32xf32> -> vector<8x32xf32>
    %52 = arith.addf %46, %51 : vector<8x32xf32>
    %c0_50 = arith.constant 0 : index
    %c0_51 = arith.constant 0 : index
    %c12 = arith.constant 12 : index
    %53 = vector.load %arg1[%c0_50, %c0_51, %c12] : memref<1x8x68xbf16, #tpu.memory_space<vmem>>, vector<1x8x32xbf16>
    %54 = vector.shape_cast %53 : vector<1x8x32xbf16> to vector<8x32xbf16>
    %c9_52 = arith.constant 9 : index
    %c0_53 = arith.constant 0 : index
    %c0_54 = arith.constant 0 : index
    %55 = vector.load %arg2[%c9_52, %c0_53, %c0_54] : memref<25x8x8xbf16, #tpu.memory_space<vmem>>, vector<1x8x8xbf16>
    %56 = vector.shape_cast %55 : vector<1x8x8xbf16> to vector<8x8xbf16>
    %cst_55 = arith.constant dense<0.000000e+00> : vector<8x32xf32>
    %57 = tpu.matmul %56, %54, %cst_55 {dimension_numbers = #tpu.dot_dimension_numbers<[1], [0], [0], [1], [0, 0, 1, 1], [], []>} : vector<8x8xbf16>, vector<8x32xbf16>, vector<8x32xf32> -> vector<8x32xf32>
    %58 = arith.addf %52, %57 : vector<8x32xf32>
    %c0_56 = arith.constant 0 : index
    %c0_57 = arith.constant 0 : index
    %c16 = arith.constant 16 : index
    %59 = vector.load %arg1[%c0_56, %c0_57, %c16] : memref<1x8x68xbf16, #tpu.memory_space<vmem>>, vector<1x8x32xbf16>
    %60 = vector.shape_cast %59 : vector<1x8x32xbf16> to vector<8x32xbf16>
    %c10_58 = arith.constant 10 : index
    %c0_59 = arith.constant 0 : index
    %c0_60 = arith.constant 0 : index
    %61 = vector.load %arg2[%c10_58, %c0_59, %c0_60] : memref<25x8x8xbf16, #tpu.memory_space<vmem>>, vector<1x8x8xbf16>
    %62 = vector.shape_cast %61 : vector<1x8x8xbf16> to vector<8x8xbf16>
    %cst_61 = arith.constant dense<0.000000e+00> : vector<8x32xf32>
    %63 = tpu.matmul %62, %60, %cst_61 {dimension_numbers = #tpu.dot_dimension_numbers<[1], [0], [0], [1], [0, 0, 1, 1], [], []>} : vector<8x8xbf16>, vector<8x32xbf16>, vector<8x32xf32> -> vector<8x32xf32>
    %64 = arith.addf %58, %63 : vector<8x32xf32>
    %c0_62 = arith.constant 0 : index
    %c0_63 = arith.constant 0 : index
    %c17 = arith.constant 17 : index
    %65 = vector.load %arg1[%c0_62, %c0_63, %c17] : memref<1x8x68xbf16, #tpu.memory_space<vmem>>, vector<1x8x32xbf16>
    %66 = vector.shape_cast %65 : vector<1x8x32xbf16> to vector<8x32xbf16>
    %c11_64 = arith.constant 11 : index
    %c0_65 = arith.constant 0 : index
    %c0_66 = arith.constant 0 : index
    %67 = vector.load %arg2[%c11_64, %c0_65, %c0_66] : memref<25x8x8xbf16, #tpu.memory_space<vmem>>, vector<1x8x8xbf16>
    %68 = vector.shape_cast %67 : vector<1x8x8xbf16> to vector<8x8xbf16>
    %cst_67 = arith.constant dense<0.000000e+00> : vector<8x32xf32>
    %69 = tpu.matmul %68, %66, %cst_67 {dimension_numbers = #tpu.dot_dimension_numbers<[1], [0], [0], [1], [0, 0, 1, 1], [], []>} : vector<8x8xbf16>, vector<8x32xbf16>, vector<8x32xf32> -> vector<8x32xf32>
    %70 = arith.addf %64, %69 : vector<8x32xf32>
    %c0_68 = arith.constant 0 : index
    %c0_69 = arith.constant 0 : index
    %c18 = arith.constant 18 : index
    %71 = vector.load %arg1[%c0_68, %c0_69, %c18] : memref<1x8x68xbf16, #tpu.memory_space<vmem>>, vector<1x8x32xbf16>
    %72 = vector.shape_cast %71 : vector<1x8x32xbf16> to vector<8x32xbf16>
    %c12_70 = arith.constant 12 : index
    %c0_71 = arith.constant 0 : index
    %c0_72 = arith.constant 0 : index
    %73 = vector.load %arg2[%c12_70, %c0_71, %c0_72] : memref<25x8x8xbf16, #tpu.memory_space<vmem>>, vector<1x8x8xbf16>
    %74 = vector.shape_cast %73 : vector<1x8x8xbf16> to vector<8x8xbf16>
    %cst_73 = arith.constant dense<0.000000e+00> : vector<8x32xf32>
    %75 = tpu.matmul %74, %72, %cst_73 {dimension_numbers = #tpu.dot_dimension_numbers<[1], [0], [0], [1], [0, 0, 1, 1], [], []>} : vector<8x8xbf16>, vector<8x32xbf16>, vector<8x32xf32> -> vector<8x32xf32>
    %76 = arith.addf %70, %75 : vector<8x32xf32>
    %c0_74 = arith.constant 0 : index
    %c0_75 = arith.constant 0 : index
    %c19 = arith.constant 19 : index
    %77 = vector.load %arg1[%c0_74, %c0_75, %c19] : memref<1x8x68xbf16, #tpu.memory_space<vmem>>, vector<1x8x32xbf16>
    %78 = vector.shape_cast %77 : vector<1x8x32xbf16> to vector<8x32xbf16>
    %c13 = arith.constant 13 : index
    %c0_76 = arith.constant 0 : index
    %c0_77 = arith.constant 0 : index
    %79 = vector.load %arg2[%c13, %c0_76, %c0_77] : memref<25x8x8xbf16, #tpu.memory_space<vmem>>, vector<1x8x8xbf16>
    %80 = vector.shape_cast %79 : vector<1x8x8xbf16> to vector<8x8xbf16>
    %cst_78 = arith.constant dense<0.000000e+00> : vector<8x32xf32>
    %81 = tpu.matmul %80, %78, %cst_78 {dimension_numbers = #tpu.dot_dimension_numbers<[1], [0], [0], [1], [0, 0, 1, 1], [], []>} : vector<8x8xbf16>, vector<8x32xbf16>, vector<8x32xf32> -> vector<8x32xf32>
    %82 = arith.addf %76, %81 : vector<8x32xf32>
    %c0_79 = arith.constant 0 : index
    %c0_80 = arith.constant 0 : index
    %c20 = arith.constant 20 : index
    %83 = vector.load %arg1[%c0_79, %c0_80, %c20] : memref<1x8x68xbf16, #tpu.memory_space<vmem>>, vector<1x8x32xbf16>
    %84 = vector.shape_cast %83 : vector<1x8x32xbf16> to vector<8x32xbf16>
    %c14 = arith.constant 14 : index
    %c0_81 = arith.constant 0 : index
    %c0_82 = arith.constant 0 : index
    %85 = vector.load %arg2[%c14, %c0_81, %c0_82] : memref<25x8x8xbf16, #tpu.memory_space<vmem>>, vector<1x8x8xbf16>
    %86 = vector.shape_cast %85 : vector<1x8x8xbf16> to vector<8x8xbf16>
    %cst_83 = arith.constant dense<0.000000e+00> : vector<8x32xf32>
    %87 = tpu.matmul %86, %84, %cst_83 {dimension_numbers = #tpu.dot_dimension_numbers<[1], [0], [0], [1], [0, 0, 1, 1], [], []>} : vector<8x8xbf16>, vector<8x32xbf16>, vector<8x32xf32> -> vector<8x32xf32>
    %88 = arith.addf %82, %87 : vector<8x32xf32>
    %c0_84 = arith.constant 0 : index
    %c0_85 = arith.constant 0 : index
    %c24 = arith.constant 24 : index
    %89 = vector.load %arg1[%c0_84, %c0_85, %c24] : memref<1x8x68xbf16, #tpu.memory_space<vmem>>, vector<1x8x32xbf16>
    %90 = vector.shape_cast %89 : vector<1x8x32xbf16> to vector<8x32xbf16>
    %c15 = arith.constant 15 : index
    %c0_86 = arith.constant 0 : index
    %c0_87 = arith.constant 0 : index
    %91 = vector.load %arg2[%c15, %c0_86, %c0_87] : memref<25x8x8xbf16, #tpu.memory_space<vmem>>, vector<1x8x8xbf16>
    %92 = vector.shape_cast %91 : vector<1x8x8xbf16> to vector<8x8xbf16>
    %cst_88 = arith.constant dense<0.000000e+00> : vector<8x32xf32>
    %93 = tpu.matmul %92, %90, %cst_88 {dimension_numbers = #tpu.dot_dimension_numbers<[1], [0], [0], [1], [0, 0, 1, 1], [], []>} : vector<8x8xbf16>, vector<8x32xbf16>, vector<8x32xf32> -> vector<8x32xf32>
    %94 = arith.addf %88, %93 : vector<8x32xf32>
    %c0_89 = arith.constant 0 : index
    %c0_90 = arith.constant 0 : index
    %c25 = arith.constant 25 : index
    %95 = vector.load %arg1[%c0_89, %c0_90, %c25] : memref<1x8x68xbf16, #tpu.memory_space<vmem>>, vector<1x8x32xbf16>
    %96 = vector.shape_cast %95 : vector<1x8x32xbf16> to vector<8x32xbf16>
    %c16_91 = arith.constant 16 : index
    %c0_92 = arith.constant 0 : index
    %c0_93 = arith.constant 0 : index
    %97 = vector.load %arg2[%c16_91, %c0_92, %c0_93] : memref<25x8x8xbf16, #tpu.memory_space<vmem>>, vector<1x8x8xbf16>
    %98 = vector.shape_cast %97 : vector<1x8x8xbf16> to vector<8x8xbf16>
    %cst_94 = arith.constant dense<0.000000e+00> : vector<8x32xf32>
    %99 = tpu.matmul %98, %96, %cst_94 {dimension_numbers = #tpu.dot_dimension_numbers<[1], [0], [0], [1], [0, 0, 1, 1], [], []>} : vector<8x8xbf16>, vector<8x32xbf16>, vector<8x32xf32> -> vector<8x32xf32>
    %100 = arith.addf %94, %99 : vector<8x32xf32>
    %c0_95 = arith.constant 0 : index
    %c0_96 = arith.constant 0 : index
    %c26 = arith.constant 26 : index
    %101 = vector.load %arg1[%c0_95, %c0_96, %c26] : memref<1x8x68xbf16, #tpu.memory_space<vmem>>, vector<1x8x32xbf16>
    %102 = vector.shape_cast %101 : vector<1x8x32xbf16> to vector<8x32xbf16>
    %c17_97 = arith.constant 17 : index
    %c0_98 = arith.constant 0 : index
    %c0_99 = arith.constant 0 : index
    %103 = vector.load %arg2[%c17_97, %c0_98, %c0_99] : memref<25x8x8xbf16, #tpu.memory_space<vmem>>, vector<1x8x8xbf16>
    %104 = vector.shape_cast %103 : vector<1x8x8xbf16> to vector<8x8xbf16>
    %cst_100 = arith.constant dense<0.000000e+00> : vector<8x32xf32>
    %105 = tpu.matmul %104, %102, %cst_100 {dimension_numbers = #tpu.dot_dimension_numbers<[1], [0], [0], [1], [0, 0, 1, 1], [], []>} : vector<8x8xbf16>, vector<8x32xbf16>, vector<8x32xf32> -> vector<8x32xf32>
    %106 = arith.addf %100, %105 : vector<8x32xf32>
    %c0_101 = arith.constant 0 : index
    %c0_102 = arith.constant 0 : index
    %c27 = arith.constant 27 : index
    %107 = vector.load %arg1[%c0_101, %c0_102, %c27] : memref<1x8x68xbf16, #tpu.memory_space<vmem>>, vector<1x8x32xbf16>
    %108 = vector.shape_cast %107 : vector<1x8x32xbf16> to vector<8x32xbf16>
    %c18_103 = arith.constant 18 : index
    %c0_104 = arith.constant 0 : index
    %c0_105 = arith.constant 0 : index
    %109 = vector.load %arg2[%c18_103, %c0_104, %c0_105] : memref<25x8x8xbf16, #tpu.memory_space<vmem>>, vector<1x8x8xbf16>
    %110 = vector.shape_cast %109 : vector<1x8x8xbf16> to vector<8x8xbf16>
    %cst_106 = arith.constant dense<0.000000e+00> : vector<8x32xf32>
    %111 = tpu.matmul %110, %108, %cst_106 {dimension_numbers = #tpu.dot_dimension_numbers<[1], [0], [0], [1], [0, 0, 1, 1], [], []>} : vector<8x8xbf16>, vector<8x32xbf16>, vector<8x32xf32> -> vector<8x32xf32>
    %112 = arith.addf %106, %111 : vector<8x32xf32>
    %c0_107 = arith.constant 0 : index
    %c0_108 = arith.constant 0 : index
    %c28 = arith.constant 28 : index
    %113 = vector.load %arg1[%c0_107, %c0_108, %c28] : memref<1x8x68xbf16, #tpu.memory_space<vmem>>, vector<1x8x32xbf16>
    %114 = vector.shape_cast %113 : vector<1x8x32xbf16> to vector<8x32xbf16>
    %c19_109 = arith.constant 19 : index
    %c0_110 = arith.constant 0 : index
    %c0_111 = arith.constant 0 : index
    %115 = vector.load %arg2[%c19_109, %c0_110, %c0_111] : memref<25x8x8xbf16, #tpu.memory_space<vmem>>, vector<1x8x8xbf16>
    %116 = vector.shape_cast %115 : vector<1x8x8xbf16> to vector<8x8xbf16>
    %cst_112 = arith.constant dense<0.000000e+00> : vector<8x32xf32>
    %117 = tpu.matmul %116, %114, %cst_112 {dimension_numbers = #tpu.dot_dimension_numbers<[1], [0], [0], [1], [0, 0, 1, 1], [], []>} : vector<8x8xbf16>, vector<8x32xbf16>, vector<8x32xf32> -> vector<8x32xf32>
    %118 = arith.addf %112, %117 : vector<8x32xf32>
    %c0_113 = arith.constant 0 : index
    %c0_114 = arith.constant 0 : index
    %c32 = arith.constant 32 : index
    %119 = vector.load %arg1[%c0_113, %c0_114, %c32] : memref<1x8x68xbf16, #tpu.memory_space<vmem>>, vector<1x8x32xbf16>
    %120 = vector.shape_cast %119 : vector<1x8x32xbf16> to vector<8x32xbf16>
    %c20_115 = arith.constant 20 : index
    %c0_116 = arith.constant 0 : index
    %c0_117 = arith.constant 0 : index
    %121 = vector.load %arg2[%c20_115, %c0_116, %c0_117] : memref<25x8x8xbf16, #tpu.memory_space<vmem>>, vector<1x8x8xbf16>
    %122 = vector.shape_cast %121 : vector<1x8x8xbf16> to vector<8x8xbf16>
    %cst_118 = arith.constant dense<0.000000e+00> : vector<8x32xf32>
    %123 = tpu.matmul %122, %120, %cst_118 {dimension_numbers = #tpu.dot_dimension_numbers<[1], [0], [0], [1], [0, 0, 1, 1], [], []>} : vector<8x8xbf16>, vector<8x32xbf16>, vector<8x32xf32> -> vector<8x32xf32>
    %124 = arith.addf %118, %123 : vector<8x32xf32>
    %c0_119 = arith.constant 0 : index
    %c0_120 = arith.constant 0 : index
    %c33 = arith.constant 33 : index
    %125 = vector.load %arg1[%c0_119, %c0_120, %c33] : memref<1x8x68xbf16, #tpu.memory_space<vmem>>, vector<1x8x32xbf16>
    %126 = vector.shape_cast %125 : vector<1x8x32xbf16> to vector<8x32xbf16>
    %c21 = arith.constant 21 : index
    %c0_121 = arith.constant 0 : index
    %c0_122 = arith.constant 0 : index
    %127 = vector.load %arg2[%c21, %c0_121, %c0_122] : memref<25x8x8xbf16, #tpu.memory_space<vmem>>, vector<1x8x8xbf16>
    %128 = vector.shape_cast %127 : vector<1x8x8xbf16> to vector<8x8xbf16>
    %cst_123 = arith.constant dense<0.000000e+00> : vector<8x32xf32>
    %129 = tpu.matmul %128, %126, %cst_123 {dimension_numbers = #tpu.dot_dimension_numbers<[1], [0], [0], [1], [0, 0, 1, 1], [], []>} : vector<8x8xbf16>, vector<8x32xbf16>, vector<8x32xf32> -> vector<8x32xf32>
    %130 = arith.addf %124, %129 : vector<8x32xf32>
    %c0_124 = arith.constant 0 : index
    %c0_125 = arith.constant 0 : index
    %c34 = arith.constant 34 : index
    %131 = vector.load %arg1[%c0_124, %c0_125, %c34] : memref<1x8x68xbf16, #tpu.memory_space<vmem>>, vector<1x8x32xbf16>
    %132 = vector.shape_cast %131 : vector<1x8x32xbf16> to vector<8x32xbf16>
    %c22 = arith.constant 22 : index
    %c0_126 = arith.constant 0 : index
    %c0_127 = arith.constant 0 : index
    %133 = vector.load %arg2[%c22, %c0_126, %c0_127] : memref<25x8x8xbf16, #tpu.memory_space<vmem>>, vector<1x8x8xbf16>
    %134 = vector.shape_cast %133 : vector<1x8x8xbf16> to vector<8x8xbf16>
    %cst_128 = arith.constant dense<0.000000e+00> : vector<8x32xf32>
    %135 = tpu.matmul %134, %132, %cst_128 {dimension_numbers = #tpu.dot_dimension_numbers<[1], [0], [0], [1], [0, 0, 1, 1], [], []>} : vector<8x8xbf16>, vector<8x32xbf16>, vector<8x32xf32> -> vector<8x32xf32>
    %136 = arith.addf %130, %135 : vector<8x32xf32>
    %c0_129 = arith.constant 0 : index
    %c0_130 = arith.constant 0 : index
    %c35 = arith.constant 35 : index
    %137 = vector.load %arg1[%c0_129, %c0_130, %c35] : memref<1x8x68xbf16, #tpu.memory_space<vmem>>, vector<1x8x32xbf16>
    %138 = vector.shape_cast %137 : vector<1x8x32xbf16> to vector<8x32xbf16>
    %c23 = arith.constant 23 : index
    %c0_131 = arith.constant 0 : index
    %c0_132 = arith.constant 0 : index
    %139 = vector.load %arg2[%c23, %c0_131, %c0_132] : memref<25x8x8xbf16, #tpu.memory_space<vmem>>, vector<1x8x8xbf16>
    %140 = vector.shape_cast %139 : vector<1x8x8xbf16> to vector<8x8xbf16>
    %cst_133 = arith.constant dense<0.000000e+00> : vector<8x32xf32>
    %141 = tpu.matmul %140, %138, %cst_133 {dimension_numbers = #tpu.dot_dimension_numbers<[1], [0], [0], [1], [0, 0, 1, 1], [], []>} : vector<8x8xbf16>, vector<8x32xbf16>, vector<8x32xf32> -> vector<8x32xf32>
    %142 = arith.addf %136, %141 : vector<8x32xf32>
    %c0_134 = arith.constant 0 : index
    %c0_135 = arith.constant 0 : index
    %c36 = arith.constant 36 : index
    %143 = vector.load %arg1[%c0_134, %c0_135, %c36] : memref<1x8x68xbf16, #tpu.memory_space<vmem>>, vector<1x8x32xbf16>
    %144 = vector.shape_cast %143 : vector<1x8x32xbf16> to vector<8x32xbf16>
    %c24_136 = arith.constant 24 : index
    %c0_137 = arith.constant 0 : index
    %c0_138 = arith.constant 0 : index
    %145 = vector.load %arg2[%c24_136, %c0_137, %c0_138] : memref<25x8x8xbf16, #tpu.memory_space<vmem>>, vector<1x8x8xbf16>
    %146 = vector.shape_cast %145 : vector<1x8x8xbf16> to vector<8x8xbf16>
    %cst_139 = arith.constant dense<0.000000e+00> : vector<8x32xf32>
    %147 = tpu.matmul %146, %144, %cst_139 {dimension_numbers = #tpu.dot_dimension_numbers<[1], [0], [0], [1], [0, 0, 1, 1], [], []>} : vector<8x8xbf16>, vector<8x32xbf16>, vector<8x32xf32> -> vector<8x32xf32>
    %148 = arith.addf %142, %147 : vector<8x32xf32>
    %c0_140 = arith.constant 0 : index
    %c0_141 = arith.constant 0 : index
    %149 = vector.load %arg3[%c0_140, %c0_141] : memref<8x1xf32, #tpu.memory_space<vmem>>, vector<8x1xf32>
    %150 = vector.broadcast %149 : vector<8x1xf32> to vector<8x32xf32>
    %151 = arith.addf %148, %150 : vector<8x32xf32>
    %c0_142 = arith.constant 0 : index
    %152 = memref.load %arg4[%c0_142] : memref<1xf32, #tpu.memory_space<smem>>
    %cst_143 = arith.constant 0.000000e+00 : f32
    %153 = vector.broadcast %cst_143 : f32 to vector<8x32xf32>
    %154 = arith.cmpf oge, %151, %153 : vector<8x32xf32>
    %155 = vector.broadcast %152 : f32 to vector<8x32xf32>
    %156 = arith.mulf %155, %151 : vector<8x32xf32>
    %157 = arith.select %154, %151, %156 : vector<8x32xi1>, vector<8x32xf32>
    %c0_144 = arith.constant 0 : index
    %c0_145 = arith.constant 0 : index
    %c0_146 = arith.constant 0 : index
    %158 = vector.load %arg5[%c0_144, %c0_145, %c0_146] : memref<1x8x32xf32, #tpu.memory_space<vmem>>, vector<1x8x32xf32>
    %159 = vector.shape_cast %158 : vector<1x8x32xf32> to vector<8x32xf32>
    %160 = vector.shape_cast %157 : vector<8x32xf32> to vector<1x8x32xf32>
    tpu.vector_store %arg5[%c0_144, %c0_145, %c0_146], %160 {strides = array<i32>} : memref<1x8x32xf32, #tpu.memory_space<vmem>>, vector<1x8x32xf32>,
    return
  }
  func.func @transform_0(%arg0: i32) -> (i32, i32, i32) {
    %c0_i32 = arith.constant 0 : i32
    %c0_i32_0 = arith.constant 0 : i32
    %c0_i32_1 = arith.constant 0 : i32
    return %arg0, %c0_i32, %c0_i32_0 : i32, i32, i32
  }
  func.func @transform_1(%arg0: i32) -> (i32, i32, i32) {
    %c0_i32 = arith.constant 0 : i32
    %c0_i32_0 = arith.constant 0 : i32
    %c0_i32_1 = arith.constant 0 : i32
    %c0_i32_2 = arith.constant 0 : i32
    return %c0_i32, %c0_i32_0, %c0_i32_1 : i32, i32, i32
  }
  func.func @transform_2(%arg0: i32) -> (i32, i32) {
    %c0_i32 = arith.constant 0 : i32
    %c0_i32_0 = arith.constant 0 : i32
    %c0_i32_1 = arith.constant 0 : i32
    return %c0_i32, %c0_i32_0 : i32, i32
  }
  func.func @transform_3(%arg0: i32) -> i32 {
    %c0_i32 = arith.constant 0 : i32
    %c0_i32_0 = arith.constant 0 : i32
    return %c0_i32 : i32
  }
  func.func @transform_4(%arg0: i32) -> (i32, i32, i32) {
    %c0_i32 = arith.constant 0 : i32
    %c0_i32_0 = arith.constant 0 : i32
    %c0_i32_1 = arith.constant 0 : i32
    return %arg0, %c0_i32, %c0_i32_0 : i32, i32, i32
  }
}

module attributes {stable_mosaic.version = 11 : i64} {
  func.func @kernel(%arg0: i32, %arg1: memref<1x8x68xbf16, #tpu.memory_space<vmem>>, %arg2: memref<25x4x8xbf16, #tpu.memory_space<vmem>>, %arg3: memref<4x1xf32, #tpu.memory_space<vmem>>, %arg4: memref<1x4x32xf32, #tpu.memory_space<vmem>>) attributes {dimension_semantics = [#tpu.dimension_semantics<parallel>], iteration_bounds = array<i64: 2>, scalar_prefetch = 0 : i64, scratch_operands = 0 : i64, tpu.core_type = #tpu.core_type<tc>, window_params = [{transform_indices = @transform_0, window_bounds = array<i64: 1, 8, 68>}, {pipeline_mode = #tpu.pipeline_mode<synchronous>, transform_indices = @transform_1, window_bounds = array<i64: 25, 4, 8>}, {pipeline_mode = #tpu.pipeline_mode<synchronous>, transform_indices = @transform_2, window_bounds = array<i64: 4, 1>}, {transform_indices = @transform_3, window_bounds = array<i64: 1, 4, 32>}]} {
    %c0 = arith.constant 0 : index
    %c0_0 = arith.constant 0 : index
    %c0_1 = arith.constant 0 : index
    %0 = vector.load %arg1[%c0, %c0_0, %c0_1] : memref<1x8x68xbf16, #tpu.memory_space<vmem>>, vector<1x8x32xbf16>
    %1 = vector.shape_cast %0 : vector<1x8x32xbf16> to vector<8x32xbf16>
    %c0_2 = arith.constant 0 : index
    %c0_3 = arith.constant 0 : index
    %c0_4 = arith.constant 0 : index
    %2 = vector.load %arg2[%c0_2, %c0_3, %c0_4] : memref<25x4x8xbf16, #tpu.memory_space<vmem>>, vector<1x4x8xbf16>
    %3 = vector.shape_cast %2 : vector<1x4x8xbf16> to vector<4x8xbf16>
    %cst = arith.constant dense<0.000000e+00> : vector<4x32xf32>
    %4 = tpu.matmul %3, %1, %cst {dimension_numbers = #tpu.dot_dimension_numbers<[1], [0], [0], [1], [0, 0, 1, 1], [], []>} : vector<4x8xbf16>, vector<8x32xbf16>, vector<4x32xf32> -> vector<4x32xf32>
    %c0_5 = arith.constant 0 : index
    %c0_6 = arith.constant 0 : index
    %c1 = arith.constant 1 : index
    %5 = vector.load %arg1[%c0_5, %c0_6, %c1] : memref<1x8x68xbf16, #tpu.memory_space<vmem>>, vector<1x8x32xbf16>
    %6 = vector.shape_cast %5 : vector<1x8x32xbf16> to vector<8x32xbf16>
    %c1_7 = arith.constant 1 : index
    %c0_8 = arith.constant 0 : index
    %c0_9 = arith.constant 0 : index
    %7 = vector.load %arg2[%c1_7, %c0_8, %c0_9] : memref<25x4x8xbf16, #tpu.memory_space<vmem>>, vector<1x4x8xbf16>
    %8 = vector.shape_cast %7 : vector<1x4x8xbf16> to vector<4x8xbf16>
    %cst_10 = arith.constant dense<0.000000e+00> : vector<4x32xf32>
    %9 = tpu.matmul %8, %6, %cst_10 {dimension_numbers = #tpu.dot_dimension_numbers<[1], [0], [0], [1], [0, 0, 1, 1], [], []>} : vector<4x8xbf16>, vector<8x32xbf16>, vector<4x32xf32> -> vector<4x32xf32>
    %10 = arith.addf %4, %9 : vector<4x32xf32>
    %c0_11 = arith.constant 0 : index
    %c0_12 = arith.constant 0 : index
    %c2 = arith.constant 2 : index
    %11 = vector.load %arg1[%c0_11, %c0_12, %c2] : memref<1x8x68xbf16, #tpu.memory_space<vmem>>, vector<1x8x32xbf16>
    %12 = vector.shape_cast %11 : vector<1x8x32xbf16> to vector<8x32xbf16>
    %c2_13 = arith.constant 2 : index
    %c0_14 = arith.constant 0 : index
    %c0_15 = arith.constant 0 : index
    %13 = vector.load %arg2[%c2_13, %c0_14, %c0_15] : memref<25x4x8xbf16, #tpu.memory_space<vmem>>, vector<1x4x8xbf16>
    %14 = vector.shape_cast %13 : vector<1x4x8xbf16> to vector<4x8xbf16>
    %cst_16 = arith.constant dense<0.000000e+00> : vector<4x32xf32>
    %15 = tpu.matmul %14, %12, %cst_16 {dimension_numbers = #tpu.dot_dimension_numbers<[1], [0], [0], [1], [0, 0, 1, 1], [], []>} : vector<4x8xbf16>, vector<8x32xbf16>, vector<4x32xf32> -> vector<4x32xf32>
    %16 = arith.addf %10, %15 : vector<4x32xf32>
    %c0_17 = arith.constant 0 : index
    %c0_18 = arith.constant 0 : index
    %c3 = arith.constant 3 : index
    %17 = vector.load %arg1[%c0_17, %c0_18, %c3] : memref<1x8x68xbf16, #tpu.memory_space<vmem>>, vector<1x8x32xbf16>
    %18 = vector.shape_cast %17 : vector<1x8x32xbf16> to vector<8x32xbf16>
    %c3_19 = arith.constant 3 : index
    %c0_20 = arith.constant 0 : index
    %c0_21 = arith.constant 0 : index
    %19 = vector.load %arg2[%c3_19, %c0_20, %c0_21] : memref<25x4x8xbf16, #tpu.memory_space<vmem>>, vector<1x4x8xbf16>
    %20 = vector.shape_cast %19 : vector<1x4x8xbf16> to vector<4x8xbf16>
    %cst_22 = arith.constant dense<0.000000e+00> : vector<4x32xf32>
    %21 = tpu.matmul %20, %18, %cst_22 {dimension_numbers = #tpu.dot_dimension_numbers<[1], [0], [0], [1], [0, 0, 1, 1], [], []>} : vector<4x8xbf16>, vector<8x32xbf16>, vector<4x32xf32> -> vector<4x32xf32>
    %22 = arith.addf %16, %21 : vector<4x32xf32>
    %c0_23 = arith.constant 0 : index
    %c0_24 = arith.constant 0 : index
    %c4 = arith.constant 4 : index
    %23 = vector.load %arg1[%c0_23, %c0_24, %c4] : memref<1x8x68xbf16, #tpu.memory_space<vmem>>, vector<1x8x32xbf16>
    %24 = vector.shape_cast %23 : vector<1x8x32xbf16> to vector<8x32xbf16>
    %c4_25 = arith.constant 4 : index
    %c0_26 = arith.constant 0 : index
    %c0_27 = arith.constant 0 : index
    %25 = vector.load %arg2[%c4_25, %c0_26, %c0_27] : memref<25x4x8xbf16, #tpu.memory_space<vmem>>, vector<1x4x8xbf16>
    %26 = vector.shape_cast %25 : vector<1x4x8xbf16> to vector<4x8xbf16>
    %cst_28 = arith.constant dense<0.000000e+00> : vector<4x32xf32>
    %27 = tpu.matmul %26, %24, %cst_28 {dimension_numbers = #tpu.dot_dimension_numbers<[1], [0], [0], [1], [0, 0, 1, 1], [], []>} : vector<4x8xbf16>, vector<8x32xbf16>, vector<4x32xf32> -> vector<4x32xf32>
    %28 = arith.addf %22, %27 : vector<4x32xf32>
    %c0_29 = arith.constant 0 : index
    %c0_30 = arith.constant 0 : index
    %c8 = arith.constant 8 : index
    %29 = vector.load %arg1[%c0_29, %c0_30, %c8] : memref<1x8x68xbf16, #tpu.memory_space<vmem>>, vector<1x8x32xbf16>
    %30 = vector.shape_cast %29 : vector<1x8x32xbf16> to vector<8x32xbf16>
    %c5 = arith.constant 5 : index
    %c0_31 = arith.constant 0 : index
    %c0_32 = arith.constant 0 : index
    %31 = vector.load %arg2[%c5, %c0_31, %c0_32] : memref<25x4x8xbf16, #tpu.memory_space<vmem>>, vector<1x4x8xbf16>
    %32 = vector.shape_cast %31 : vector<1x4x8xbf16> to vector<4x8xbf16>
    %cst_33 = arith.constant dense<0.000000e+00> : vector<4x32xf32>
    %33 = tpu.matmul %32, %30, %cst_33 {dimension_numbers = #tpu.dot_dimension_numbers<[1], [0], [0], [1], [0, 0, 1, 1], [], []>} : vector<4x8xbf16>, vector<8x32xbf16>, vector<4x32xf32> -> vector<4x32xf32>
    %34 = arith.addf %28, %33 : vector<4x32xf32>
    %c0_34 = arith.constant 0 : index
    %c0_35 = arith.constant 0 : index
    %c9 = arith.constant 9 : index
    %35 = vector.load %arg1[%c0_34, %c0_35, %c9] : memref<1x8x68xbf16, #tpu.memory_space<vmem>>, vector<1x8x32xbf16>
    %36 = vector.shape_cast %35 : vector<1x8x32xbf16> to vector<8x32xbf16>
    %c6 = arith.constant 6 : index
    %c0_36 = arith.constant 0 : index
    %c0_37 = arith.constant 0 : index
    %37 = vector.load %arg2[%c6, %c0_36, %c0_37] : memref<25x4x8xbf16, #tpu.memory_space<vmem>>, vector<1x4x8xbf16>
    %38 = vector.shape_cast %37 : vector<1x4x8xbf16> to vector<4x8xbf16>
    %cst_38 = arith.constant dense<0.000000e+00> : vector<4x32xf32>
    %39 = tpu.matmul %38, %36, %cst_38 {dimension_numbers = #tpu.dot_dimension_numbers<[1], [0], [0], [1], [0, 0, 1, 1], [], []>} : vector<4x8xbf16>, vector<8x32xbf16>, vector<4x32xf32> -> vector<4x32xf32>
    %40 = arith.addf %34, %39 : vector<4x32xf32>
    %c0_39 = arith.constant 0 : index
    %c0_40 = arith.constant 0 : index
    %c10 = arith.constant 10 : index
    %41 = vector.load %arg1[%c0_39, %c0_40, %c10] : memref<1x8x68xbf16, #tpu.memory_space<vmem>>, vector<1x8x32xbf16>
    %42 = vector.shape_cast %41 : vector<1x8x32xbf16> to vector<8x32xbf16>
    %c7 = arith.constant 7 : index
    %c0_41 = arith.constant 0 : index
    %c0_42 = arith.constant 0 : index
    %43 = vector.load %arg2[%c7, %c0_41, %c0_42] : memref<25x4x8xbf16, #tpu.memory_space<vmem>>, vector<1x4x8xbf16>
    %44 = vector.shape_cast %43 : vector<1x4x8xbf16> to vector<4x8xbf16>
    %cst_43 = arith.constant dense<0.000000e+00> : vector<4x32xf32>
    %45 = tpu.matmul %44, %42, %cst_43 {dimension_numbers = #tpu.dot_dimension_numbers<[1], [0], [0], [1], [0, 0, 1, 1], [], []>} : vector<4x8xbf16>, vector<8x32xbf16>, vector<4x32xf32> -> vector<4x32xf32>
    %46 = arith.addf %40, %45 : vector<4x32xf32>
    %c0_44 = arith.constant 0 : index
    %c0_45 = arith.constant 0 : index
    %c11 = arith.constant 11 : index
    %47 = vector.load %arg1[%c0_44, %c0_45, %c11] : memref<1x8x68xbf16, #tpu.memory_space<vmem>>, vector<1x8x32xbf16>
    %48 = vector.shape_cast %47 : vector<1x8x32xbf16> to vector<8x32xbf16>
    %c8_46 = arith.constant 8 : index
    %c0_47 = arith.constant 0 : index
    %c0_48 = arith.constant 0 : index
    %49 = vector.load %arg2[%c8_46, %c0_47, %c0_48] : memref<25x4x8xbf16, #tpu.memory_space<vmem>>, vector<1x4x8xbf16>
    %50 = vector.shape_cast %49 : vector<1x4x8xbf16> to vector<4x8xbf16>
    %cst_49 = arith.constant dense<0.000000e+00> : vector<4x32xf32>
    %51 = tpu.matmul %50, %48, %cst_49 {dimension_numbers = #tpu.dot_dimension_numbers<[1], [0], [0], [1], [0, 0, 1, 1], [], []>} : vector<4x8xbf16>, vector<8x32xbf16>, vector<4x32xf32> -> vector<4x32xf32>
    %52 = arith.addf %46, %51 : vector<4x32xf32>
    %c0_50 = arith.constant 0 : index
    %c0_51 = arith.constant 0 : index
    %c12 = arith.constant 12 : index
    %53 = vector.load %arg1[%c0_50, %c0_51, %c12] : memref<1x8x68xbf16, #tpu.memory_space<vmem>>, vector<1x8x32xbf16>
    %54 = vector.shape_cast %53 : vector<1x8x32xbf16> to vector<8x32xbf16>
    %c9_52 = arith.constant 9 : index
    %c0_53 = arith.constant 0 : index
    %c0_54 = arith.constant 0 : index
    %55 = vector.load %arg2[%c9_52, %c0_53, %c0_54] : memref<25x4x8xbf16, #tpu.memory_space<vmem>>, vector<1x4x8xbf16>
    %56 = vector.shape_cast %55 : vector<1x4x8xbf16> to vector<4x8xbf16>
    %cst_55 = arith.constant dense<0.000000e+00> : vector<4x32xf32>
    %57 = tpu.matmul %56, %54, %cst_55 {dimension_numbers = #tpu.dot_dimension_numbers<[1], [0], [0], [1], [0, 0, 1, 1], [], []>} : vector<4x8xbf16>, vector<8x32xbf16>, vector<4x32xf32> -> vector<4x32xf32>
    %58 = arith.addf %52, %57 : vector<4x32xf32>
    %c0_56 = arith.constant 0 : index
    %c0_57 = arith.constant 0 : index
    %c16 = arith.constant 16 : index
    %59 = vector.load %arg1[%c0_56, %c0_57, %c16] : memref<1x8x68xbf16, #tpu.memory_space<vmem>>, vector<1x8x32xbf16>
    %60 = vector.shape_cast %59 : vector<1x8x32xbf16> to vector<8x32xbf16>
    %c10_58 = arith.constant 10 : index
    %c0_59 = arith.constant 0 : index
    %c0_60 = arith.constant 0 : index
    %61 = vector.load %arg2[%c10_58, %c0_59, %c0_60] : memref<25x4x8xbf16, #tpu.memory_space<vmem>>, vector<1x4x8xbf16>
    %62 = vector.shape_cast %61 : vector<1x4x8xbf16> to vector<4x8xbf16>
    %cst_61 = arith.constant dense<0.000000e+00> : vector<4x32xf32>
    %63 = tpu.matmul %62, %60, %cst_61 {dimension_numbers = #tpu.dot_dimension_numbers<[1], [0], [0], [1], [0, 0, 1, 1], [], []>} : vector<4x8xbf16>, vector<8x32xbf16>, vector<4x32xf32> -> vector<4x32xf32>
    %64 = arith.addf %58, %63 : vector<4x32xf32>
    %c0_62 = arith.constant 0 : index
    %c0_63 = arith.constant 0 : index
    %c17 = arith.constant 17 : index
    %65 = vector.load %arg1[%c0_62, %c0_63, %c17] : memref<1x8x68xbf16, #tpu.memory_space<vmem>>, vector<1x8x32xbf16>
    %66 = vector.shape_cast %65 : vector<1x8x32xbf16> to vector<8x32xbf16>
    %c11_64 = arith.constant 11 : index
    %c0_65 = arith.constant 0 : index
    %c0_66 = arith.constant 0 : index
    %67 = vector.load %arg2[%c11_64, %c0_65, %c0_66] : memref<25x4x8xbf16, #tpu.memory_space<vmem>>, vector<1x4x8xbf16>
    %68 = vector.shape_cast %67 : vector<1x4x8xbf16> to vector<4x8xbf16>
    %cst_67 = arith.constant dense<0.000000e+00> : vector<4x32xf32>
    %69 = tpu.matmul %68, %66, %cst_67 {dimension_numbers = #tpu.dot_dimension_numbers<[1], [0], [0], [1], [0, 0, 1, 1], [], []>} : vector<4x8xbf16>, vector<8x32xbf16>, vector<4x32xf32> -> vector<4x32xf32>
    %70 = arith.addf %64, %69 : vector<4x32xf32>
    %c0_68 = arith.constant 0 : index
    %c0_69 = arith.constant 0 : index
    %c18 = arith.constant 18 : index
    %71 = vector.load %arg1[%c0_68, %c0_69, %c18] : memref<1x8x68xbf16, #tpu.memory_space<vmem>>, vector<1x8x32xbf16>
    %72 = vector.shape_cast %71 : vector<1x8x32xbf16> to vector<8x32xbf16>
    %c12_70 = arith.constant 12 : index
    %c0_71 = arith.constant 0 : index
    %c0_72 = arith.constant 0 : index
    %73 = vector.load %arg2[%c12_70, %c0_71, %c0_72] : memref<25x4x8xbf16, #tpu.memory_space<vmem>>, vector<1x4x8xbf16>
    %74 = vector.shape_cast %73 : vector<1x4x8xbf16> to vector<4x8xbf16>
    %cst_73 = arith.constant dense<0.000000e+00> : vector<4x32xf32>
    %75 = tpu.matmul %74, %72, %cst_73 {dimension_numbers = #tpu.dot_dimension_numbers<[1], [0], [0], [1], [0, 0, 1, 1], [], []>} : vector<4x8xbf16>, vector<8x32xbf16>, vector<4x32xf32> -> vector<4x32xf32>
    %76 = arith.addf %70, %75 : vector<4x32xf32>
    %c0_74 = arith.constant 0 : index
    %c0_75 = arith.constant 0 : index
    %c19 = arith.constant 19 : index
    %77 = vector.load %arg1[%c0_74, %c0_75, %c19] : memref<1x8x68xbf16, #tpu.memory_space<vmem>>, vector<1x8x32xbf16>
    %78 = vector.shape_cast %77 : vector<1x8x32xbf16> to vector<8x32xbf16>
    %c13 = arith.constant 13 : index
    %c0_76 = arith.constant 0 : index
    %c0_77 = arith.constant 0 : index
    %79 = vector.load %arg2[%c13, %c0_76, %c0_77] : memref<25x4x8xbf16, #tpu.memory_space<vmem>>, vector<1x4x8xbf16>
    %80 = vector.shape_cast %79 : vector<1x4x8xbf16> to vector<4x8xbf16>
    %cst_78 = arith.constant dense<0.000000e+00> : vector<4x32xf32>
    %81 = tpu.matmul %80, %78, %cst_78 {dimension_numbers = #tpu.dot_dimension_numbers<[1], [0], [0], [1], [0, 0, 1, 1], [], []>} : vector<4x8xbf16>, vector<8x32xbf16>, vector<4x32xf32> -> vector<4x32xf32>
    %82 = arith.addf %76, %81 : vector<4x32xf32>
    %c0_79 = arith.constant 0 : index
    %c0_80 = arith.constant 0 : index
    %c20 = arith.constant 20 : index
    %83 = vector.load %arg1[%c0_79, %c0_80, %c20] : memref<1x8x68xbf16, #tpu.memory_space<vmem>>, vector<1x8x32xbf16>
    %84 = vector.shape_cast %83 : vector<1x8x32xbf16> to vector<8x32xbf16>
    %c14 = arith.constant 14 : index
    %c0_81 = arith.constant 0 : index
    %c0_82 = arith.constant 0 : index
    %85 = vector.load %arg2[%c14, %c0_81, %c0_82] : memref<25x4x8xbf16, #tpu.memory_space<vmem>>, vector<1x4x8xbf16>
    %86 = vector.shape_cast %85 : vector<1x4x8xbf16> to vector<4x8xbf16>
    %cst_83 = arith.constant dense<0.000000e+00> : vector<4x32xf32>
    %87 = tpu.matmul %86, %84, %cst_83 {dimension_numbers = #tpu.dot_dimension_numbers<[1], [0], [0], [1], [0, 0, 1, 1], [], []>} : vector<4x8xbf16>, vector<8x32xbf16>, vector<4x32xf32> -> vector<4x32xf32>
    %88 = arith.addf %82, %87 : vector<4x32xf32>
    %c0_84 = arith.constant 0 : index
    %c0_85 = arith.constant 0 : index
    %c24 = arith.constant 24 : index
    %89 = vector.load %arg1[%c0_84, %c0_85, %c24] : memref<1x8x68xbf16, #tpu.memory_space<vmem>>, vector<1x8x32xbf16>
    %90 = vector.shape_cast %89 : vector<1x8x32xbf16> to vector<8x32xbf16>
    %c15 = arith.constant 15 : index
    %c0_86 = arith.constant 0 : index
    %c0_87 = arith.constant 0 : index
    %91 = vector.load %arg2[%c15, %c0_86, %c0_87] : memref<25x4x8xbf16, #tpu.memory_space<vmem>>, vector<1x4x8xbf16>
    %92 = vector.shape_cast %91 : vector<1x4x8xbf16> to vector<4x8xbf16>
    %cst_88 = arith.constant dense<0.000000e+00> : vector<4x32xf32>
    %93 = tpu.matmul %92, %90, %cst_88 {dimension_numbers = #tpu.dot_dimension_numbers<[1], [0], [0], [1], [0, 0, 1, 1], [], []>} : vector<4x8xbf16>, vector<8x32xbf16>, vector<4x32xf32> -> vector<4x32xf32>
    %94 = arith.addf %88, %93 : vector<4x32xf32>
    %c0_89 = arith.constant 0 : index
    %c0_90 = arith.constant 0 : index
    %c25 = arith.constant 25 : index
    %95 = vector.load %arg1[%c0_89, %c0_90, %c25] : memref<1x8x68xbf16, #tpu.memory_space<vmem>>, vector<1x8x32xbf16>
    %96 = vector.shape_cast %95 : vector<1x8x32xbf16> to vector<8x32xbf16>
    %c16_91 = arith.constant 16 : index
    %c0_92 = arith.constant 0 : index
    %c0_93 = arith.constant 0 : index
    %97 = vector.load %arg2[%c16_91, %c0_92, %c0_93] : memref<25x4x8xbf16, #tpu.memory_space<vmem>>, vector<1x4x8xbf16>
    %98 = vector.shape_cast %97 : vector<1x4x8xbf16> to vector<4x8xbf16>
    %cst_94 = arith.constant dense<0.000000e+00> : vector<4x32xf32>
    %99 = tpu.matmul %98, %96, %cst_94 {dimension_numbers = #tpu.dot_dimension_numbers<[1], [0], [0], [1], [0, 0, 1, 1], [], []>} : vector<4x8xbf16>, vector<8x32xbf16>, vector<4x32xf32> -> vector<4x32xf32>
    %100 = arith.addf %94, %99 : vector<4x32xf32>
    %c0_95 = arith.constant 0 : index
    %c0_96 = arith.constant 0 : index
    %c26 = arith.constant 26 : index
    %101 = vector.load %arg1[%c0_95, %c0_96, %c26] : memref<1x8x68xbf16, #tpu.memory_space<vmem>>, vector<1x8x32xbf16>
    %102 = vector.shape_cast %101 : vector<1x8x32xbf16> to vector<8x32xbf16>
    %c17_97 = arith.constant 17 : index
    %c0_98 = arith.constant 0 : index
    %c0_99 = arith.constant 0 : index
    %103 = vector.load %arg2[%c17_97, %c0_98, %c0_99] : memref<25x4x8xbf16, #tpu.memory_space<vmem>>, vector<1x4x8xbf16>
    %104 = vector.shape_cast %103 : vector<1x4x8xbf16> to vector<4x8xbf16>
    %cst_100 = arith.constant dense<0.000000e+00> : vector<4x32xf32>
    %105 = tpu.matmul %104, %102, %cst_100 {dimension_numbers = #tpu.dot_dimension_numbers<[1], [0], [0], [1], [0, 0, 1, 1], [], []>} : vector<4x8xbf16>, vector<8x32xbf16>, vector<4x32xf32> -> vector<4x32xf32>
    %106 = arith.addf %100, %105 : vector<4x32xf32>
    %c0_101 = arith.constant 0 : index
    %c0_102 = arith.constant 0 : index
    %c27 = arith.constant 27 : index
    %107 = vector.load %arg1[%c0_101, %c0_102, %c27] : memref<1x8x68xbf16, #tpu.memory_space<vmem>>, vector<1x8x32xbf16>
    %108 = vector.shape_cast %107 : vector<1x8x32xbf16> to vector<8x32xbf16>
    %c18_103 = arith.constant 18 : index
    %c0_104 = arith.constant 0 : index
    %c0_105 = arith.constant 0 : index
    %109 = vector.load %arg2[%c18_103, %c0_104, %c0_105] : memref<25x4x8xbf16, #tpu.memory_space<vmem>>, vector<1x4x8xbf16>
    %110 = vector.shape_cast %109 : vector<1x4x8xbf16> to vector<4x8xbf16>
    %cst_106 = arith.constant dense<0.000000e+00> : vector<4x32xf32>
    %111 = tpu.matmul %110, %108, %cst_106 {dimension_numbers = #tpu.dot_dimension_numbers<[1], [0], [0], [1], [0, 0, 1, 1], [], []>} : vector<4x8xbf16>, vector<8x32xbf16>, vector<4x32xf32> -> vector<4x32xf32>
    %112 = arith.addf %106, %111 : vector<4x32xf32>
    %c0_107 = arith.constant 0 : index
    %c0_108 = arith.constant 0 : index
    %c28 = arith.constant 28 : index
    %113 = vector.load %arg1[%c0_107, %c0_108, %c28] : memref<1x8x68xbf16, #tpu.memory_space<vmem>>, vector<1x8x32xbf16>
    %114 = vector.shape_cast %113 : vector<1x8x32xbf16> to vector<8x32xbf16>
    %c19_109 = arith.constant 19 : index
    %c0_110 = arith.constant 0 : index
    %c0_111 = arith.constant 0 : index
    %115 = vector.load %arg2[%c19_109, %c0_110, %c0_111] : memref<25x4x8xbf16, #tpu.memory_space<vmem>>, vector<1x4x8xbf16>
    %116 = vector.shape_cast %115 : vector<1x4x8xbf16> to vector<4x8xbf16>
    %cst_112 = arith.constant dense<0.000000e+00> : vector<4x32xf32>
    %117 = tpu.matmul %116, %114, %cst_112 {dimension_numbers = #tpu.dot_dimension_numbers<[1], [0], [0], [1], [0, 0, 1, 1], [], []>} : vector<4x8xbf16>, vector<8x32xbf16>, vector<4x32xf32> -> vector<4x32xf32>
    %118 = arith.addf %112, %117 : vector<4x32xf32>
    %c0_113 = arith.constant 0 : index
    %c0_114 = arith.constant 0 : index
    %c32 = arith.constant 32 : index
    %119 = vector.load %arg1[%c0_113, %c0_114, %c32] : memref<1x8x68xbf16, #tpu.memory_space<vmem>>, vector<1x8x32xbf16>
    %120 = vector.shape_cast %119 : vector<1x8x32xbf16> to vector<8x32xbf16>
    %c20_115 = arith.constant 20 : index
    %c0_116 = arith.constant 0 : index
    %c0_117 = arith.constant 0 : index
    %121 = vector.load %arg2[%c20_115, %c0_116, %c0_117] : memref<25x4x8xbf16, #tpu.memory_space<vmem>>, vector<1x4x8xbf16>
    %122 = vector.shape_cast %121 : vector<1x4x8xbf16> to vector<4x8xbf16>
    %cst_118 = arith.constant dense<0.000000e+00> : vector<4x32xf32>
    %123 = tpu.matmul %122, %120, %cst_118 {dimension_numbers = #tpu.dot_dimension_numbers<[1], [0], [0], [1], [0, 0, 1, 1], [], []>} : vector<4x8xbf16>, vector<8x32xbf16>, vector<4x32xf32> -> vector<4x32xf32>
    %124 = arith.addf %118, %123 : vector<4x32xf32>
    %c0_119 = arith.constant 0 : index
    %c0_120 = arith.constant 0 : index
    %c33 = arith.constant 33 : index
    %125 = vector.load %arg1[%c0_119, %c0_120, %c33] : memref<1x8x68xbf16, #tpu.memory_space<vmem>>, vector<1x8x32xbf16>
    %126 = vector.shape_cast %125 : vector<1x8x32xbf16> to vector<8x32xbf16>
    %c21 = arith.constant 21 : index
    %c0_121 = arith.constant 0 : index
    %c0_122 = arith.constant 0 : index
    %127 = vector.load %arg2[%c21, %c0_121, %c0_122] : memref<25x4x8xbf16, #tpu.memory_space<vmem>>, vector<1x4x8xbf16>
    %128 = vector.shape_cast %127 : vector<1x4x8xbf16> to vector<4x8xbf16>
    %cst_123 = arith.constant dense<0.000000e+00> : vector<4x32xf32>
    %129 = tpu.matmul %128, %126, %cst_123 {dimension_numbers = #tpu.dot_dimension_numbers<[1], [0], [0], [1], [0, 0, 1, 1], [], []>} : vector<4x8xbf16>, vector<8x32xbf16>, vector<4x32xf32> -> vector<4x32xf32>
    %130 = arith.addf %124, %129 : vector<4x32xf32>
    %c0_124 = arith.constant 0 : index
    %c0_125 = arith.constant 0 : index
    %c34 = arith.constant 34 : index
    %131 = vector.load %arg1[%c0_124, %c0_125, %c34] : memref<1x8x68xbf16, #tpu.memory_space<vmem>>, vector<1x8x32xbf16>
    %132 = vector.shape_cast %131 : vector<1x8x32xbf16> to vector<8x32xbf16>
    %c22 = arith.constant 22 : index
    %c0_126 = arith.constant 0 : index
    %c0_127 = arith.constant 0 : index
    %133 = vector.load %arg2[%c22, %c0_126, %c0_127] : memref<25x4x8xbf16, #tpu.memory_space<vmem>>, vector<1x4x8xbf16>
    %134 = vector.shape_cast %133 : vector<1x4x8xbf16> to vector<4x8xbf16>
    %cst_128 = arith.constant dense<0.000000e+00> : vector<4x32xf32>
    %135 = tpu.matmul %134, %132, %cst_128 {dimension_numbers = #tpu.dot_dimension_numbers<[1], [0], [0], [1], [0, 0, 1, 1], [], []>} : vector<4x8xbf16>, vector<8x32xbf16>, vector<4x32xf32> -> vector<4x32xf32>
    %136 = arith.addf %130, %135 : vector<4x32xf32>
    %c0_129 = arith.constant 0 : index
    %c0_130 = arith.constant 0 : index
    %c35 = arith.constant 35 : index
    %137 = vector.load %arg1[%c0_129, %c0_130, %c35] : memref<1x8x68xbf16, #tpu.memory_space<vmem>>, vector<1x8x32xbf16>
    %138 = vector.shape_cast %137 : vector<1x8x32xbf16> to vector<8x32xbf16>
    %c23 = arith.constant 23 : index
    %c0_131 = arith.constant 0 : index
    %c0_132 = arith.constant 0 : index
    %139 = vector.load %arg2[%c23, %c0_131, %c0_132] : memref<25x4x8xbf16, #tpu.memory_space<vmem>>, vector<1x4x8xbf16>
    %140 = vector.shape_cast %139 : vector<1x4x8xbf16> to vector<4x8xbf16>
    %cst_133 = arith.constant dense<0.000000e+00> : vector<4x32xf32>
    %141 = tpu.matmul %140, %138, %cst_133 {dimension_numbers = #tpu.dot_dimension_numbers<[1], [0], [0], [1], [0, 0, 1, 1], [], []>} : vector<4x8xbf16>, vector<8x32xbf16>, vector<4x32xf32> -> vector<4x32xf32>
    %142 = arith.addf %136, %141 : vector<4x32xf32>
    %c0_134 = arith.constant 0 : index
    %c0_135 = arith.constant 0 : index
    %c36 = arith.constant 36 : index
    %143 = vector.load %arg1[%c0_134, %c0_135, %c36] : memref<1x8x68xbf16, #tpu.memory_space<vmem>>, vector<1x8x32xbf16>
    %144 = vector.shape_cast %143 : vector<1x8x32xbf16> to vector<8x32xbf16>
    %c24_136 = arith.constant 24 : index
    %c0_137 = arith.constant 0 : index
    %c0_138 = arith.constant 0 : index
    %145 = vector.load %arg2[%c24_136, %c0_137, %c0_138] : memref<25x4x8xbf16, #tpu.memory_space<vmem>>, vector<1x4x8xbf16>
    %146 = vector.shape_cast %145 : vector<1x4x8xbf16> to vector<4x8xbf16>
    %cst_139 = arith.constant dense<0.000000e+00> : vector<4x32xf32>
    %147 = tpu.matmul %146, %144, %cst_139 {dimension_numbers = #tpu.dot_dimension_numbers<[1], [0], [0], [1], [0, 0, 1, 1], [], []>} : vector<4x8xbf16>, vector<8x32xbf16>, vector<4x32xf32> -> vector<4x32xf32>
    %148 = arith.addf %142, %147 : vector<4x32xf32>
    %c0_140 = arith.constant 0 : index
    %c0_141 = arith.constant 0 : index
    %149 = vector.load %arg3[%c0_140, %c0_141] : memref<4x1xf32, #tpu.memory_space<vmem>>, vector<4x1xf32>
    %150 = vector.broadcast %149 : vector<4x1xf32> to vector<4x32xf32>
    %151 = arith.addf %148, %150 : vector<4x32xf32>
    %c0_142 = arith.constant 0 : index
    %c0_143 = arith.constant 0 : index
    %c0_144 = arith.constant 0 : index
    %152 = vector.load %arg4[%c0_142, %c0_143, %c0_144] : memref<1x4x32xf32, #tpu.memory_space<vmem>>, vector<1x4x32xf32>
    %153 = vector.shape_cast %152 : vector<1x4x32xf32> to vector<4x32xf32>
    %154 = vector.shape_cast %151 : vector<4x32xf32> to vector<1x4x32xf32>
    tpu.vector_store %arg4[%c0_142, %c0_143, %c0_144], %154 {strides = array<i32>} : memref<1x4x32xf32, #tpu.memory_space<vmem>>, vector<1x4x32xf32>,
    return
  }
  func.func @transform_0(%arg0: i32) -> (i32, i32, i32) {
    %c0_i32 = arith.constant 0 : i32
    %c0_i32_0 = arith.constant 0 : i32
    %c0_i32_1 = arith.constant 0 : i32
    return %arg0, %c0_i32, %c0_i32_0 : i32, i32, i32
  }
  func.func @transform_1(%arg0: i32) -> (i32, i32, i32) {
    %c0_i32 = arith.constant 0 : i32
    %c0_i32_0 = arith.constant 0 : i32
    %c0_i32_1 = arith.constant 0 : i32
    %c0_i32_2 = arith.constant 0 : i32
    return %c0_i32, %c0_i32_0, %c0_i32_1 : i32, i32, i32
  }
  func.func @transform_2(%arg0: i32) -> (i32, i32) {
    %c0_i32 = arith.constant 0 : i32
    %c0_i32_0 = arith.constant 0 : i32
    %c0_i32_1 = arith.constant 0 : i32
    return %c0_i32, %c0_i32_0 : i32, i32
  }
  func.func @transform_3(%arg0: i32) -> (i32, i32, i32) {
    %c0_i32 = arith.constant 0 : i32
    %c0_i32_0 = arith.constant 0 : i32
    %c0_i32_1 = arith.constant 0 : i32
    return %arg0, %c0_i32, %c0_i32_0 : i32, i32, i32
  }
}

</mosaic_0001>

<bundles_post_ra>
// kernel: forward.17
= control target key start
LH: loop header
LB: loop body
LE: loop exit
PB: predicated region body
PF: predicated region fallthrough
CT: control target
= control target key end

     0   :  { %s357_s12 = smov 0   ;;  %s380_s0 = inlined_call_operand.vmem [shape: bf16[2,9,64], index: 0, kind: input, shape index: {}]   ;;  %s381_s1 = inlined_call_operand.vmem [shape: bf16[1,8,9], index: 1, kind: input, shape index: {}]   ;;  %s382_s2 = inlined_call_operand.vmem [shape: f32[8,1], index: 2, kind: input, shape index: {}]   ;;  %s383_s3 = inlined_call_operand.vmem [shape: f32[2,8,64], index: 3, kind: output, shape index: {}]  }
   0x1 LB: > { %s290_s13 = sadd.s32 4294967295, %s331_s12   ;;  %p294_p0 = scmp.ge.s32.totalorder %s331_s12, 1  ;;  %s331_s12 = sphi %s357_s12, %s13_s12  }
   0x2   : > { %p137_p1 = scmp.lt.s32.totalorder %s331_s12, 3 }
   0x4   : > { %p138_p2 = pnand %p294_p0, %p137_p1 }
   0x5   : > { %p160_p3 = scmp.lt.s32.totalorder (!%p138_p2), %s290_s13, 1  ;;  %vm188_vm0 = vcmask (!%p138_p2), 1043456   ;;  %v173_v0 = vld [vmem:[%s382_s2] sm:$0xff] (!%p138_p2)  ;;  %v333_v1 = vmov (!%p138_p2), 0.0   ;;  %vm189_vm1 = vcmask (!%p138_p2), 1044480   ;;  %v334_v2 = vmov (!%p138_p2), 65535  }
   0x6   : > { %141 = sbr.rel (%p138_p2) target bundleno = 237 (0xed), region = 32  ;;  %305 = vmatprep.subr.bf16.mxu0 (!%p138_p2), %v333_v1  ;;  %v190_v3 = vsel (!%p138_p2), %vm188_vm0, 4294967295, %v334_v2  ;;  %vm335_vm2 = vmmov (!%p138_p2), 0   ;;  %v336_v4 = vmov (!%p138_p2), 0   ;;  %v172_v8 = vld [vmem:[%s381_s1] sm:$0xf] (!%p138_p2) }
   0x7   : > { %307 = vmatprep.mubr.msk.bf16.mxu0 (!%p138_p2), %vm335_vm2, %v333_v1  ;;  %323 = vset.pattern.permute.xlu0 (!%p138_p2), %v336_v4  ;;  %v191_v5 = vsel (!%p138_p2), %vm189_vm1, %v190_v3, 0  ;;  %vm184_vm3 = vcmask (!%p138_p2), 72704   ;;  %vm235_vm4 = vcmask (!%p138_p2), 523264  }
   0x8   : > { %176 = vperm.xlu0 (!%p138_p2), %323, %v173_v0  }
   0xd   : > { %s385_s13 = smov (!%p160_p3, %s290_s13), 1 }
   0xe   : > { %s302_s16 = sshll.u32 %s385_s13, 3 }
   0xf   : > { %s164_s19 = scalar_lea.vmem %s380_s0, %s302_s16  ;;  %s168_s24 = scalar_lea.vmem %s383_s3, %s302_s16 }
  0x10   : > { %v324_v6 = vld [vmem:[%s164_s19] sm:$0x1f]  }
  0x11   : > { %v193_v7 = vand.u32 %v324_v6, %v191_v5 }
  0x13   : > { %306 = vmatpush3.bf16.msra.mxu0 %v193_v7 }
  0x16   : > { %308 = vmatmul.mubr.msk.bf16.vlgmr.msra.gmra.mrb[0].mxu0 %vm184_vm3, %v172_v8 }
  0x87   : > { %v177_v9 = vpop.permute.xlu0 %176 }
  0xe9   : > { %v229_v10 = vpop.f32.mrb[0].mxu0 }
  0xea   : > { %v230_v11 = vadd.f32 %v229_v10, %v177_v9  ;;  %v309_v12 = vpop.f32.mrb[1].mxu0 }
  0xeb   : > { %v232_v13 = vpop.f32.mrb[2].mxu0 }
  0xec   : > { %236 = vst.msk [vmem:[%s168_s24] sm:$0xff] %vm235_vm4, %v230_v11  ;;  %v310_v14 = vpop.f32.mrb[3].mxu0 }
  0xed PF: > { %s13_s12 = sadd.s32 1, %s331_s12  }
  0xee   : > { %p10_p4 = scmp.ge.s32.totalorder %s13_s12, 4  }
  0xf0   :  { %12 = sbr.rel (!%p10_p4) target bundleno = 1 (0x1), region = 62 }

// kernel: forward.18
= control target key start
LH: loop header
LB: loop body
LE: loop exit
PB: predicated region body
PF: predicated region fallthrough
CT: control target
= control target key end

     0   :  { %s413_s17 = smov 0   ;;  %s446_s0 = inlined_call_operand.vmem [shape: bf16[2,9,64], index: 0, kind: input, shape index: {}]   ;;  %s447_s1 = inlined_call_operand.vmem [shape: bf16[1,8,9], index: 1, kind: input, shape index: {}]   ;;  %s448_s2 = inlined_call_operand.vmem [shape: f32[8,1], index: 2, kind: input, shape index: {}]   ;;  %s449_s3 = inlined_call_operand.<no memory space> [shape: f32[1], index: 3, kind: input, shape index: {}]   ;;  %s450_s4 = inlined_call_operand.vmem [shape: f32[2,8,64], index: 4, kind: output, shape index: {}]  }
   0x1   :  { %9 = sst [smem:[#allocation2]] %s449_s3 }
   0x2 LB: > { %s336_s18 = sadd.s32 4294967295, %s379_s17   ;;  %p340_p0 = scmp.ge.s32.totalorder %s379_s17, 1  ;;  %s379_s17 = sphi %s413_s17, %s15_s17  }
   0x3   : > { %p163_p1 = scmp.lt.s32.totalorder %s379_s17, 3 }
   0x5   : > { %p164_p2 = pnand %p340_p0, %p163_p1 }
   0x6   : > { %p188_p3 = scmp.lt.s32.totalorder (!%p164_p2), %s336_s18, 1  ;;  %vm216_vm0 = vcmask (!%p164_p2), 1043456   ;;  %v201_v0 = vld [vmem:[%s448_s2] sm:$0xff] (!%p164_p2)  ;;  %v381_v1 = vmov (!%p164_p2), 0.0   ;;  %vm217_vm1 = vcmask (!%p164_p2), 1044480   ;;  %v382_v2 = vmov (!%p164_p2), 65535  }
   0x7   : > { %167 = sbr.rel (%p164_p2) target bundleno = 550 (0x226), region = 36  ;;  %351 = vmatprep.subr.bf16.mxu0 (!%p164_p2), %v381_v1  ;;  %v218_v3 = vsel (!%p164_p2), %vm216_vm0, 4294967295, %v382_v2  ;;  %vm383_vm2 = vmmov (!%p164_p2), 0   ;;  %v384_v4 = vmov (!%p164_p2), 0   ;;  %v200_v8 = vld [vmem:[%s447_s1] sm:$0xf] (!%p164_p2) }
   0x8   : > { %353 = vmatprep.mubr.msk.bf16.mxu0 (!%p164_p2), %vm383_vm2, %v381_v1  ;;  %369 = vset.pattern.permute.xlu0 (!%p164_p2), %v384_v4  ;;  %v219_v5 = vsel (!%p164_p2), %vm217_vm1, %v218_v3, 0  ;;  %vm212_vm3 = vcmask (!%p164_p2), 72704   ;;  %vm263_vm4 = vcmask (!%p164_p2), 523264   ;;  %s277_s26 = sld [smem:[#allocation2]] (!%p164_p2) }
   0x9   : > { %204 = vperm.xlu0 (!%p164_p2), %369, %v201_v0  }
   0xe   : > { %s452_s18 = smov (!%p188_p3, %s336_s18), 1  ;;  %v279_v25 = vstv %s277_s26 }
   0xf   : > { %s348_s3 = sshll.u32 %s452_s18, 3 }
  0x10   : > { %s192_s23 = scalar_lea.vmem %s446_s0, %s348_s3  ;;  %s196_s29 = scalar_lea.vmem %s450_s4, %s348_s3 }
  0x11   : > { %v370_v6 = vld [vmem:[%s192_s23] sm:$0x1f]  }
  0x12   : > { %v221_v7 = vand.u32 %v370_v6, %v219_v5 }
  0x14   : > { %352 = vmatpush3.bf16.msra.mxu0 %v221_v7 }
  0x17   : > { %354 = vmatmul.mubr.msk.bf16.vlgmr.msra.gmra.mrb[0].mxu0 %vm212_vm3, %v200_v8 }
  0x88   : > { %v205_v9 = vpop.permute.xlu0 %204 }
  0xea   : > { %v257_v10 = vpop.f32.mrb[0].mxu0 }
  0xeb   : > { %v258_v11 = vadd.f32 %v257_v10, %v205_v9  ;;  %v355_v12 = vpop.f32.mrb[1].mxu0 }
  0xec   : > { %v260_v13 = vpop.f32.mrb[2].mxu0 }
  0xed   : > { %v356_v14 = vpop.f32.mrb[3].mxu0  ;;  %v264_v15 = vsel %vm263_vm4, %v258_v11, 0.0 }
  0xee   : > { %265 = vadd.xlane.f32.xlu0 %v264_v15 }
 0x17b   : > { %v266_v16 = vpop.xlane.xlu0 %265 }
 0x17c   : > { %v267_v17 = vmul.f32 0.015625, %v266_v16 }
 0x17e   : > { %v268_v18 = vsub.f32 %v258_v11, %v267_v17 }
 0x180   : > { %v269_v19 = vmul.f32 %v268_v18, %v268_v18 }
 0x182   : > { %v270_v20 = vsel %vm263_vm4, %v269_v19, 0.0 }
 0x183   : > { %271 = vadd.xlane.f32.xlu1 %v270_v20 }
 0x210   : > { %v272_v21 = vpop.xlane.xlu1 %271 }
 0x211   : > { %v273_v22 = vmul.f32 0.015625, %v272_v21 }
 0x213   : > { %v274_v23 = vadd.f32 1e-05, %v273_v22 }
 0x215   : > { %371 = vrsqrt.f32 %v274_v23 }
 0x21f   : > { %v372_v24 = vpop.eup %371 }
 0x220   : > { %v276_v26 = vmul.f32 %v372_v24, %v268_v18 }
 0x222   : > { %vm278_vm5 = vcmp.ge.f32.partialorder %v276_v26, 0.0  ;;  %v280_v27 = vmul.f32 %v279_v25, %v276_v26 }
 0x224   : > { %v281_v28 = vsel %vm278_vm5, %v276_v26, %v280_v27 }
 0x225   : > { %282 = vst.msk [vmem:[%s196_s29] sm:$0xff] %vm263_vm4, %v281_v28 }
 0x226 PF: > { %s15_s17 = sadd.s32 1, %s379_s17  }
 0x227   : > { %p12_p4 = scmp.ge.s32.totalorder %s15_s17, 4  }
 0x229   :  { %14 = sbr.rel (!%p12_p4) target bundleno = 2 (0x2), region = 66 }

// kernel: forward.19
= control target key start
LH: loop header
LB: loop body
LE: loop exit
PB: predicated region body
PF: predicated region fallthrough
CT: control target
= control target key end

     0   :  { %s1010_s23 = smov 0   ;;  %s1115_s0 = inlined_call_operand.vmem [shape: bf16[2,8,102], index: 0, kind: input, shape index: {}]   ;;  %s1116_s1 = inlined_call_operand.vmem [shape: bf16[9,8,8], index: 1, kind: input, shape index: {}]   ;;  %s1117_s2 = inlined_call_operand.vmem [shape: f32[8,1], index: 2, kind: input, shape index: {}]   ;;  %s1118_s3 = inlined_call_operand.vmem [shape: f32[1,80], index: 3, kind: input, shape index: {}]   ;;  %s1119_s4 = inlined_call_operand.<no memory space> [shape: f32[1], index: 4, kind: input, shape index: {}]   ;;  %s1120_s5 = inlined_call_operand.vmem [shape: f32[2,8,80], index: 5, kind: input, shape index: {}]   ;;  %s1121_s6 = inlined_call_operand.vmem [shape: f32[2,8,80], index: 6, kind: output, shape index: {}]  }
   0x1   :  { %11 = sst [smem:[#allocation2]] %s1119_s4 }
   0x2 LB: > { %s829_s24 = sadd.s32 4294967295, %s959_s23   ;;  %p833_p0 = scmp.ge.s32.totalorder %s959_s23, 1  ;;  %s959_s23 = sphi %s1010_s23, %s17_s23  }
   0x3   : > { %p221_p1 = scmp.lt.s32.totalorder %s959_s23, 3 }
   0x5   : > { %p222_p2 = pnand %p833_p0, %p221_p1 }
   0x6   : > { %p253_p3 = scmp.lt.s32.totalorder (!%p222_p2), %s829_s24, 1  ;;  %v961_v0 = vmov (!%p222_p2), 0.0   ;;  %vm962_vm0 = vmmov (!%p222_p2), 0   ;;  %vm279_vm1 = vcmask (!%p222_p2), 1043456   ;;  %vm275_vm2 = vcmask (!%p222_p2), 64512   ;;  %s963_s30 = smov (!%p222_p2), 127  }
   0x7   : > { %225 = sbr.rel (%p222_p2) target bundleno = 706 (0x2c2), region = 44  ;;  %876 = vmatprep.subr.bf16.mxu0 (!%p222_p2), %v961_v0  ;;  %882 = vmatprep.subr.bf16.mxu1 (!%p222_p2), %v961_v0  ;;  %v267_v4 = vld [vmem:[%s1116_s1] sm:$0xf] (!%p222_p2)  ;;  %s964_s7 = smov (!%p222_p2), 118   ;;  %v971_v6 = vmov (!%p222_p2), 0   ;;  %vm741_vm3 = vcmask (!%p222_p2), 654336  }
   0x8   : > { %878 = vmatprep.mubr.msk.bf16.mxu0 (!%p222_p2), %vm962_vm0, %v961_v0  ;;  %884 = vmatprep.mubr.msk.bf16.mxu1 (!%p222_p2), %vm962_vm0, %v961_v0  ;;  %s965_s8 = smov (!%p222_p2), 126   ;;  %s966_s9 = smov (!%p222_p2), 117   ;;  %v726_v5 = vld [vmem:[%s1117_s2] sm:$0xff] (!%p222_p2)  ;;  %v843_v12 = vld [vmem:[%s1116_s1 + $0xc] sm:$0xf] (!%p222_p2) }
   0x9   : > { %s967_s10 = smov (!%p222_p2), 116   ;;  %s968_s11 = smov (!%p222_p2), 108   ;;  %949 = vset.pattern.permute.xlu0 (!%p222_p2), %v971_v6  ;;  %v837_v11 = vld [vmem:[%s1116_s1 + $0x4] sm:$0xf] (!%p222_p2)  ;;  %v841_v18 = vld [vmem:[%s1116_s1 + $0x8] sm:$0xf] (!%p222_p2) }
   0xa   : > { %s969_s12 = smov (!%p222_p2), 107   ;;  %s970_s13 = smov (!%p222_p2), 106   ;;  %v847_v19 = vld [vmem:[%s1116_s1 + $0x14] sm:$0xf] (!%p222_p2)  ;;  %v845_v24 = vld [vmem:[%s1116_s1 + $0x10] sm:$0xf] (!%p222_p2) }
   0xb   : > { %v851_v25 = vld [vmem:[%s1116_s1 + $0x1c] sm:$0xf] (!%p222_p2)  ;;  %v849_v28 = vld [vmem:[%s1116_s1 + $0x18] sm:$0xf] (!%p222_p2)  ;;  %v853_v30 = vld [vmem:[%s1116_s1 + $0x20] sm:$0xf] (!%p222_p2) }
   0xe   : > { %s1123_s24 = smov (!%p253_p3, %s829_s24), 1 }
   0xf   : > { %s834_s4 = sshll.u32 %s1123_s24, 2 }
  0x10   : > { %s256_s27 = scalar_lea.vmem %s1115_s0, %s834_s4 }
  0x11   : > { %v266_v1 = vld [vmem:[%s256_s27] sm:$0xf] }
  0x12   : > { %v838_v2 = vcombine.low %v266_v1, %v266_v1  ;;  %v327_v3 = vsel %vm279_vm1, %v266_v1, 0 }
  0x13   : > { %883 = vmatpush3.bf16.msra.mxu1 %v327_v3 }
  0x14   : > { %273 = vrot.lane.b32.xlu0 %v838_v2, %s963_s30  ;;  %422 = vrot.lane.b32.xlu1 %v838_v2, %s964_s7 }
  0x15   : > { %894 = vmatprep.subr.bf16.mxu1 %v961_v0 }
  0x16   : > { %885 = vmatmul.mubr.msk.bf16.vlgmr.msra.gmra.mrb[0].mxu1 %vm275_vm2, %v267_v4 }
  0x17   : > { %896 = vmatprep.mubr.msk.bf16.mxu1 %vm962_vm0, %v961_v0 }
  0x18   : > { %371 = vrot.lane.b32.xlu0 %v838_v2, %s965_s8  ;;  %473 = vrot.lane.b32.xlu1 %v838_v2, %s966_s9 }
  0x1c   : > { %524 = vrot.lane.b32.xlu0 %v838_v2, %s967_s10  ;;  %575 = vrot.lane.b32.xlu1 %v838_v2, %s968_s11  ;;  %s756_s11 = sld [smem:[#allocation2]] }
  0x20   : > { %626 = vrot.lane.b32.xlu0 %v838_v2, %s969_s12  ;;  %677 = vrot.lane.b32.xlu1 %v838_v2, %s970_s13  ;;  %s835_s12 = sshll.u32 %s1123_s24, 3 }
  0x21   : > { %s260_s15 = scalar_lea.vmem %s1120_s5, %s835_s12  ;;  %s264_s18 = scalar_lea.vmem %s1121_s6, %s835_s12 }
  0x24   : > { %729 = vperm.xlu0 %949, %v726_v5  }
  0x86   : > { %v274_v7 = vpop.permute.xlu0 %273  ;;  %v423_v8 = vpop.permute.xlu1 %422 }
  0x87   : > { %v281_v9 = vsel %vm279_vm1, %v274_v7, 0  ;;  %v428_v10 = vsel %vm279_vm1, %v423_v8, 0 }
  0x88   : > { %877 = vmatpush3.bf16.msra.mxu0 %v281_v9  ;;  %895 = vmatpush3.bf16.msra.mxu1 %v428_v10 }
  0x89   : > { %888 = vmatprep.subr.bf16.mxu0 %v961_v0  ;;  %906 = vmatprep.subr.bf16.mxu1 %v961_v0 }
  0x8a   : > { %v372_v13 = vpop.permute.xlu0 %371  ;;  %v474_v15 = vpop.permute.xlu1 %473 }
  0x8b   : > { %v377_v14 = vsel %vm279_vm1, %v372_v13, 0  ;;  %879 = vmatmul.mubr.msk.bf16.vlgmr.msra.gmra.mrb[0].mxu0 %vm275_vm2, %v837_v11  ;;  %897 = vmatmul.mubr.msk.bf16.vlgmr.msra.gmra.mrb[4].mxu1 %vm275_vm2, %v843_v12  ;;  %v479_v20 = vsel %vm279_vm1, %v474_v15, 0  ;;  %v855_v11 = vld [vmem:[%s1118_s3] ss:$0 sm:$0xff] }
  0x8c   : > { %889 = vmatpush3.bf16.msra.mxu0 %v377_v14  ;;  %890 = vmatprep.mubr.msk.bf16.mxu0 %vm962_vm0, %v961_v0 }
  0x8d   : > { %900 = vmatprep.subr.bf16.mxu0 %v961_v0  ;;  %908 = vmatprep.mubr.msk.bf16.mxu1 %vm962_vm0, %v961_v0 }
  0x8e   : > { %v525_v16 = vpop.permute.xlu0 %524  ;;  %v576_v23 = vpop.permute.xlu1 %575 }
  0x8f   : > { %v530_v17 = vsel %vm279_vm1, %v525_v16, 0  ;;  %v581_v26 = vsel %vm279_vm1, %v576_v23, 0 }
  0x90   : > { %907 = vmatpush3.bf16.msra.mxu1 %v530_v17 }
  0x91   : > { %918 = vmatprep.subr.bf16.mxu1 %v961_v0 }
  0x92   : > { %v627_v21 = vpop.permute.xlu0 %626  ;;  %v678_v27 = vpop.permute.xlu1 %677 }
  0x93   : > { %891 = vmatmul.mubr.msk.bf16.vlgmr.msra.gmra.mrb[4].mxu0 %vm275_vm2, %v841_v18  ;;  %909 = vmatmul.mubr.msk.bf16.vlgmr.msra.gmra.mrb[8].mxu1 %vm275_vm2, %v847_v19  ;;  %v632_v22 = vsel %vm279_vm1, %v627_v21, 0  ;;  %v683_v29 = vsel %vm279_vm1, %v678_v27, 0 }
  0x94   : > { %901 = vmatpush3.bf16.msra.mxu0 %v479_v20  ;;  %902 = vmatprep.mubr.msk.bf16.mxu0 %vm962_vm0, %v961_v0 }
  0x95   : > { %912 = vmatprep.subr.bf16.mxu0 %v961_v0  ;;  %919 = vmatpush3.bf16.msra.mxu1 %v632_v22 }
  0x96   : > { %920 = vmatprep.mubr.msk.bf16.mxu1 %vm962_vm0, %v961_v0 }
  0x9b   : > { %903 = vmatmul.mubr.msk.bf16.vlgmr.msra.gmra.mrb[8].mxu0 %vm275_vm2, %v845_v24  ;;  %921 = vmatmul.mubr.msk.bf16.vlgmr.msra.gmra.mrb[12].mxu1 %vm275_vm2, %v851_v25 }
  0x9c   : > { %913 = vmatpush3.bf16.msra.mxu0 %v581_v26  ;;  %914 = vmatprep.mubr.msk.bf16.mxu0 %vm962_vm0, %v961_v0  ;;  %v758_v26 = vstv %s756_s11 }
  0x9d   : > { %924 = vmatprep.subr.bf16.mxu0 %v961_v0 }
  0xa3   : > { %915 = vmatmul.mubr.msk.bf16.vlgmr.msra.gmra.mrb[12].mxu0 %vm275_vm2, %v849_v28  ;;  %v730_v7 = vpop.permute.xlu0 %729  ;;  %v761_v28 = vld [vmem:[%s260_s15] sm:$0xff] }
  0xa4   : > { %925 = vmatpush3.bf16.msra.mxu0 %v683_v29  ;;  %926 = vmatprep.mubr.msk.bf16.mxu0 %vm962_vm0, %v961_v0 }
  0xab   : > { %927 = vmatmul.mubr.msk.bf16.vlgmr.msra.gmra.mrb[16].mxu0 %vm275_vm2, %v853_v30 }
  0xe9   : > { %v363_v31 = vpop.f32.mrb[0].mxu1 }
  0xea   : > { %v886_v32 = vpop.f32.mrb[1].mxu1 }
  0xeb   : > { %v366_v33 = vpop.f32.mrb[2].mxu1 }
  0xec   : > { %v887_v34 = vpop.f32.mrb[3].mxu1 }
 0x15e   : > { %v317_v35 = vpop.f32.mrb[0].mxu0  ;;  %v464_v36 = vpop.f32.mrb[4].mxu1 }
 0x15f   : > { %v880_v37 = vpop.f32.mrb[1].mxu0  ;;  %v364_v38 = vadd.f32 %v363_v31, %v317_v35  ;;  %v898_v39 = vpop.f32.mrb[5].mxu1 }
 0x160   : > { %v320_v40 = vpop.f32.mrb[2].mxu0  ;;  %v467_v41 = vpop.f32.mrb[6].mxu1 }
 0x161   : > { %v881_v42 = vpop.f32.mrb[3].mxu0  ;;  %v899_v43 = vpop.f32.mrb[7].mxu1 }
 0x166   : > { %v413_v44 = vpop.f32.mrb[4].mxu0  ;;  %v566_v45 = vpop.f32.mrb[8].mxu1 }
 0x167   : > { %v419_v46 = vadd.f32 %v413_v44, %v364_v38  ;;  %v892_v47 = vpop.f32.mrb[5].mxu0  ;;  %v910_v48 = vpop.f32.mrb[9].mxu1 }
 0x168   : > { %v416_v49 = vpop.f32.mrb[6].mxu0  ;;  %v569_v50 = vpop.f32.mrb[10].mxu1 }
 0x169   : > { %v470_v51 = vadd.f32 %v464_v36, %v419_v46  ;;  %v893_v52 = vpop.f32.mrb[7].mxu0  ;;  %v911_v53 = vpop.f32.mrb[11].mxu1 }
 0x16e   : > { %v515_v54 = vpop.f32.mrb[8].mxu0  ;;  %v668_v55 = vpop.f32.mrb[12].mxu1 }
 0x16f   : > { %v521_v56 = vadd.f32 %v515_v54, %v470_v51  ;;  %v904_v57 = vpop.f32.mrb[9].mxu0  ;;  %v922_v58 = vpop.f32.mrb[13].mxu1 }
 0x170   : > { %v518_v59 = vpop.f32.mrb[10].mxu0  ;;  %v671_v60 = vpop.f32.mrb[14].mxu1 }
 0x171   : > { %v572_v61 = vadd.f32 %v566_v45, %v521_v56  ;;  %v905_v62 = vpop.f32.mrb[11].mxu0  ;;  %v923_v63 = vpop.f32.mrb[15].mxu1 }
 0x176   : > { %v617_v0 = vpop.f32.mrb[12].mxu0 }
 0x177   : > { %v623_v1 = vadd.f32 %v617_v0, %v572_v61  ;;  %v916_v2 = vpop.f32.mrb[13].mxu0 }
 0x178   : > { %v620_v3 = vpop.f32.mrb[14].mxu0 }
 0x179   : > { %v674_v4 = vadd.f32 %v668_v55, %v623_v1  ;;  %v917_v5 = vpop.f32.mrb[15].mxu0 }
 0x17e   : > { %v719_v6 = vpop.f32.mrb[16].mxu0 }
 0x17f   : > { %v725_v8 = vadd.f32 %v719_v6, %v674_v4  ;;  %v928_v9 = vpop.f32.mrb[17].mxu0 }
 0x180   : > { %v722_v10 = vpop.f32.mrb[18].mxu0 }
 0x181   : > { %v732_v12 = vadd.f32 %v730_v7, %v725_v8  ;;  %v929_v13 = vpop.f32.mrb[19].mxu0 }
 0x183   : > { %v740_v14 = vmul.f32 %v855_v11, %v732_v12 }
 0x185   : > { %v742_v15 = vsel %vm741_vm3, %v740_v14, 0.0 }
 0x186   : > { %743 = vadd.xlane.f32.xlu1 %v742_v15 }
 0x213   : > { %v744_v16 = vpop.xlane.xlu1 %743 }
 0x214   : > { %v745_v17 = vmul.f32 0.015625, %v744_v16 }
 0x216   : > { %v746_v18 = vsub.f32 %v732_v12, %v745_v17 }
 0x218   : > { %v747_v19 = vmul.f32 %v746_v18, %v746_v18 }
 0x21a   : > { %v748_v20 = vmul.f32 %v855_v11, %v747_v19 }
 0x21c   : > { %v749_v21 = vsel %vm741_vm3, %v748_v20, 0.0 }
 0x21d   : > { %750 = vadd.xlane.f32.xlu0 %v749_v21 }
 0x2aa   : > { %v751_v22 = vpop.xlane.xlu0 %750 }
 0x2ab   : > { %v752_v23 = vmul.f32 0.015625, %v751_v22 }
 0x2ad   : > { %v753_v24 = vadd.f32 1e-05, %v752_v23 }
 0x2af   : > { %951 = vrsqrt.f32 %v753_v24 }
 0x2b9   : > { %v952_v25 = vpop.eup %951 }
 0x2ba   : > { %v755_v27 = vmul.f32 %v952_v25, %v746_v18 }
 0x2bc   : > { %vm757_vm4 = vcmp.ge.f32.partialorder %v755_v27, 0.0  ;;  %v759_v29 = vmul.f32 %v758_v26, %v755_v27 }
 0x2be   : > { %v760_v30 = vsel %vm757_vm4, %v755_v27, %v759_v29 }
 0x2bf   : > { %v762_v31 = vadd.f32 %v761_v28, %v760_v30 }
 0x2c1   : > { %763 = vst.msk [vmem:[%s264_s18] sm:$0xff] %vm741_vm3, %v762_v31 }
 0x2c2 PF: > { %s17_s23 = sadd.s32 1, %s959_s23  }
 0x2c3   : > { %p14_p4 = scmp.ge.s32.totalorder %s17_s23, 4  }
 0x2c5   :  { %16 = sbr.rel (!%p14_p4) target bundleno = 2 (0x2), region = 85 }

// kernel: forward.21
= control target key start
LH: loop header
LB: loop body
LE: loop exit
PB: predicated region body
PF: predicated region fallthrough
CT: control target
= control target key end

     0   :  { %s456_s17 = smov 0   ;;  %s486_s0 = inlined_call_operand.vmem [shape: bf16[2,72,16], index: 0, kind: input, shape index: {}]   ;;  %s487_s1 = inlined_call_operand.vmem [shape: bf16[1,8,72], index: 1, kind: input, shape index: {}]   ;;  %s488_s2 = inlined_call_operand.vmem [shape: f32[8,1], index: 2, kind: input, shape index: {}]   ;;  %s489_s3 = inlined_call_operand.<no memory space> [shape: f32[1], index: 3, kind: input, shape index: {}]   ;;  %s490_s4 = inlined_call_operand.vmem [shape: f32[2,8,16], index: 4, kind: output, shape index: {}]  }
   0x1   :  { %9 = sst [smem:[#allocation2]] %s489_s3 }
   0x2 LB: > { %s362_s18 = sadd.s32 4294967295, %s423_s17   ;;  %p366_p0 = scmp.ge.s32.totalorder %s423_s17, 1  ;;  %s423_s17 = sphi %s456_s17, %s15_s17  }
   0x3   : > { %p163_p1 = scmp.lt.s32.totalorder %s423_s17, 3 }
   0x5   : > { %p164_p2 = pnand %p366_p0, %p163_p1 }
   0x6   : > { %p188_p3 = scmp.lt.s32.totalorder (!%p164_p2), %s362_s18, 1  ;;  %v425_v0 = vmov (!%p164_p2), 0.0   ;;  %vm426_vm0 = vmmov (!%p164_p2), 0   ;;  %v208_v1 = vld [vmem:[%s488_s2] sm:$0xff] (!%p164_p2)  ;;  %v427_v2 = vmov (!%p164_p2), 0   ;;  %vm245_vm1 = vcmask (!%p164_p2), 1043456  }
   0x7   : > { %167 = sbr.rel (%p164_p2) target bundleno = 565 (0x235), region = 36  ;;  %383 = vmatprep.subr.bf16.mxu0 (!%p164_p2), %v425_v0  ;;  %393 = vmatprep.mubr.msk.bf16.mxu0 (!%p164_p2), %vm426_vm0, %v425_v0  ;;  %v207_v9 = vld [vmem:[%s487_s1] sm:$0xf] (!%p164_p2)  ;;  %vm241_vm2 = vcmask (!%p164_p2), 588800   ;;  %vm289_vm3 = vcmask (!%p164_p2), 130048   ;;  %s303_s26 = sld [smem:[#allocation2]] (!%p164_p2) }
   0x8   : > { %409 = vset.pattern.permute.xlu0 (!%p164_p2), %v427_v2 }
   0x9   : > { %211 = vperm.xlu0 (!%p164_p2), %409, %v208_v1  }
   0xd   : > { %v305_v26 = vstv (!%p164_p2), %s303_s26 }
   0xe   : > { %s492_s18 = smov (!%p188_p3, %s362_s18), 1 }
   0xf   : > { %s397_s20 = smul.u32 36, %s492_s18  ;;  %s368_s27 = sshll.u32 %s492_s18, 3 }
  0x10   : > { %s196_s30 = scalar_lea.vmem %s490_s4, %s368_s27 }
  0x11   : > { %s192_s23 = scalar_lea.vmem %s486_s0, %s397_s20 }
  0x12   : > { %v410_v3 = vld [vmem:[%s192_s23] sm:$0xff]   ;;  %v411_v4 = vld [vmem:[%s192_s23 + $0x8] sm:$0xff]   ;;  %v412_v5 = vld [vmem:[%s192_s23 + $0x10] sm:$0xff]  }
  0x13   : > { %384 = vmatpush3.bf16.msra.mxu0 %v410_v3  ;;  %v413_v6 = vld [vmem:[%s192_s23 + $0x18] sm:$0xff]   ;;  %v414_v7 = vld [vmem:[%s192_s23 + $0x20] ss:$0 sps:$4 sm:$0xff]  }
  0x14   : > { %385 = vmatprep.subr.bf16.mxu0 %v425_v0  ;;  %v247_v8 = vsel %vm245_vm1, %v414_v7, 0 }
  0x17   : > { %386 = vmatpush3.bf16.msra.mxu0 %v411_v4 }
  0x18   : > { %387 = vmatprep.subr.bf16.mxu0 %v425_v0 }
  0x1b   : > { %388 = vmatpush3.bf16.msra.mxu0 %v412_v5 }
  0x1c   : > { %389 = vmatprep.subr.bf16.mxu0 %v425_v0 }
  0x1f   : > { %390 = vmatpush3.bf16.msra.mxu0 %v413_v6 }
  0x20   : > { %391 = vmatprep.subr.bf16.mxu0 %v425_v0 }
  0x23   : > { %392 = vmatpush3.bf16.msra.mxu0 %v247_v8 }
  0x26   : > { %394 = vmatmul.mubr.msk.bf16.vlgmr.msra.gmra.mrb[0].mxu0 %vm241_vm2, %v207_v9 }
  0x88   : > { %v212_v10 = vpop.permute.xlu0 %211 }
  0xf9   : > { %v283_v11 = vpop.f32.mrb[0].mxu0 }
  0xfa   : > { %v284_v12 = vadd.f32 %v283_v11, %v212_v10  ;;  %v395_v13 = vpop.f32.mrb[1].mxu0 }
  0xfb   : > { %v286_v14 = vpop.f32.mrb[2].mxu0 }
  0xfc   : > { %v396_v15 = vpop.f32.mrb[3].mxu0  ;;  %v290_v16 = vsel %vm289_vm3, %v284_v12, 0.0 }
  0xfd   : > { %291 = vadd.xlane.f32.xlu0 %v290_v16 }
 0x18a   : > { %v292_v17 = vpop.xlane.xlu0 %291 }
 0x18b   : > { %v293_v18 = vmul.f32 0.0625, %v292_v17 }
 0x18d   : > { %v294_v19 = vsub.f32 %v284_v12, %v293_v18 }
 0x18f   : > { %v295_v20 = vmul.f32 %v294_v19, %v294_v19 }
 0x191   : > { %v296_v21 = vsel %vm289_vm3, %v295_v20, 0.0 }
 0x192   : > { %297 = vadd.xlane.f32.xlu1 %v296_v21 }
 0x21f   : > { %v298_v22 = vpop.xlane.xlu1 %297 }
 0x220   : > { %v299_v23 = vmul.f32 0.0625, %v298_v22 }
 0x222   : > { %v300_v24 = vadd.f32 1e-05, %v299_v23 }
 0x224   : > { %415 = vrsqrt.f32 %v300_v24 }
 0x22e   : > { %v416_v25 = vpop.eup %415 }
 0x22f   : > { %v302_v27 = vmul.f32 %v416_v25, %v294_v19 }
 0x231   : > { %vm304_vm4 = vcmp.ge.f32.partialorder %v302_v27, 0.0  ;;  %v306_v28 = vmul.f32 %v305_v26, %v302_v27 }
 0x233   : > { %v307_v29 = vsel %vm304_vm4, %v302_v27, %v306_v28 }
 0x234   : > { %308 = vst.msk [vmem:[%s196_s30] sm:$0xff] %vm289_vm3, %v307_v29 }
 0x235 PF: > { %s15_s17 = sadd.s32 1, %s423_s17  }
 0x236   : > { %p12_p4 = scmp.ge.s32.totalorder %s15_s17, 4  }
 0x238   :  { %14 = sbr.rel (!%p12_p4) target bundleno = 2 (0x2), region = 66 }

// kernel: forward.20
= control target key start
LH: loop header
LB: loop body
LE: loop exit
PB: predicated region body
PF: predicated region fallthrough
CT: control target
= control target key end

     0   :  { %s400_s12 = smov 0   ;;  %s423_s0 = inlined_call_operand.vmem [shape: bf16[2,72,16], index: 0, kind: input, shape index: {}]   ;;  %s424_s1 = inlined_call_operand.vmem [shape: bf16[1,8,72], index: 1, kind: input, shape index: {}]   ;;  %s425_s2 = inlined_call_operand.vmem [shape: f32[8,1], index: 2, kind: input, shape index: {}]   ;;  %s426_s3 = inlined_call_operand.vmem [shape: f32[2,8,16], index: 3, kind: output, shape index: {}]  }
   0x1 LB: > { %s316_s13 = sadd.s32 4294967295, %s375_s12   ;;  %p320_p0 = scmp.ge.s32.totalorder %s375_s12, 1  ;;  %s375_s12 = sphi %s400_s12, %s13_s12  }
   0x2   : > { %p137_p1 = scmp.lt.s32.totalorder %s375_s12, 3 }
   0x4   : > { %p138_p2 = pnand %p320_p0, %p137_p1 }
   0x5   : > { %p160_p3 = scmp.lt.s32.totalorder (!%p138_p2), %s316_s13, 1  ;;  %v377_v0 = vmov (!%p138_p2), 0.0   ;;  %vm378_vm0 = vmmov (!%p138_p2), 0   ;;  %v180_v1 = vld [vmem:[%s425_s2] sm:$0xff] (!%p138_p2)  ;;  %v379_v2 = vmov (!%p138_p2), 0   ;;  %vm217_vm1 = vcmask (!%p138_p2), 1043456  }
   0x6   : > { %141 = sbr.rel (%p138_p2) target bundleno = 252 (0xfc), region = 32  ;;  %337 = vmatprep.subr.bf16.mxu0 (!%p138_p2), %v377_v0  ;;  %347 = vmatprep.mubr.msk.bf16.mxu0 (!%p138_p2), %vm378_vm0, %v377_v0  ;;  %v179_v9 = vld [vmem:[%s424_s1] sm:$0xf] (!%p138_p2)  ;;  %vm213_vm2 = vcmask (!%p138_p2), 588800   ;;  %vm261_vm3 = vcmask (!%p138_p2), 130048  }
   0x7   : > { %363 = vset.pattern.permute.xlu0 (!%p138_p2), %v379_v2 }
   0x8   : > { %183 = vperm.xlu0 (!%p138_p2), %363, %v180_v1  }
   0xd   : > { %s428_s13 = smov (!%p160_p3, %s316_s13), 1 }
   0xe   : > { %s351_s16 = smul.u32 36, %s428_s13  ;;  %s322_s22 = sshll.u32 %s428_s13, 3 }
   0xf   : > { %s168_s25 = scalar_lea.vmem %s426_s3, %s322_s22 }
  0x10   : > { %s164_s19 = scalar_lea.vmem %s423_s0, %s351_s16 }
  0x11   : > { %v364_v3 = vld [vmem:[%s164_s19] sm:$0xff]   ;;  %v365_v4 = vld [vmem:[%s164_s19 + $0x8] sm:$0xff]   ;;  %v366_v5 = vld [vmem:[%s164_s19 + $0x10] sm:$0xff]  }
  0x12   : > { %338 = vmatpush3.bf16.msra.mxu0 %v364_v3  ;;  %v367_v6 = vld [vmem:[%s164_s19 + $0x18] sm:$0xff]   ;;  %v368_v7 = vld [vmem:[%s164_s19 + $0x20] ss:$0 sps:$4 sm:$0xff]  }
  0x13   : > { %339 = vmatprep.subr.bf16.mxu0 %v377_v0  ;;  %v219_v8 = vsel %vm217_vm1, %v368_v7, 0 }
  0x16   : > { %340 = vmatpush3.bf16.msra.mxu0 %v365_v4 }
  0x17   : > { %341 = vmatprep.subr.bf16.mxu0 %v377_v0 }
  0x1a   : > { %342 = vmatpush3.bf16.msra.mxu0 %v366_v5 }
  0x1b   : > { %343 = vmatprep.subr.bf16.mxu0 %v377_v0 }
  0x1e   : > { %344 = vmatpush3.bf16.msra.mxu0 %v367_v6 }
  0x1f   : > { %345 = vmatprep.subr.bf16.mxu0 %v377_v0 }
  0x22   : > { %346 = vmatpush3.bf16.msra.mxu0 %v219_v8 }
  0x25   : > { %348 = vmatmul.mubr.msk.bf16.vlgmr.msra.gmra.mrb[0].mxu0 %vm213_vm2, %v179_v9 }
  0x87   : > { %v184_v10 = vpop.permute.xlu0 %183 }
  0xf8   : > { %v255_v11 = vpop.f32.mrb[0].mxu0 }
  0xf9   : > { %v256_v12 = vadd.f32 %v255_v11, %v184_v10  ;;  %v349_v13 = vpop.f32.mrb[1].mxu0 }
  0xfa   : > { %v258_v14 = vpop.f32.mrb[2].mxu0 }
  0xfb   : > { %262 = vst.msk [vmem:[%s168_s25] sm:$0xff] %vm261_vm3, %v256_v12  ;;  %v350_v15 = vpop.f32.mrb[3].mxu0 }
  0xfc PF: > { %s13_s12 = sadd.s32 1, %s375_s12  }
  0xfd   : > { %p10_p4 = scmp.ge.s32.totalorder %s13_s12, 4  }
  0xff   :  { %12 = sbr.rel (!%p10_p4) target bundleno = 1 (0x1), region = 62 }

// kernel: forward.22
= control target key start
LH: loop header
LB: loop body
LE: loop exit
PB: predicated region body
PF: predicated region fallthrough
CT: control target
= control target key end

     0   :  { %s1010_s23 = smov 0   ;;  %s1115_s0 = inlined_call_operand.vmem [shape: bf16[2,8,38], index: 0, kind: input, shape index: {}]   ;;  %s1116_s1 = inlined_call_operand.vmem [shape: bf16[9,8,8], index: 1, kind: input, shape index: {}]   ;;  %s1117_s2 = inlined_call_operand.vmem [shape: f32[8,1], index: 2, kind: input, shape index: {}]   ;;  %s1118_s3 = inlined_call_operand.vmem [shape: f32[1,24], index: 3, kind: input, shape index: {}]   ;;  %s1119_s4 = inlined_call_operand.<no memory space> [shape: f32[1], index: 4, kind: input, shape index: {}]   ;;  %s1120_s5 = inlined_call_operand.vmem [shape: f32[2,8,24], index: 5, kind: input, shape index: {}]   ;;  %s1121_s6 = inlined_call_operand.vmem [shape: f32[2,8,24], index: 6, kind: output, shape index: {}]  }
   0x1   :  { %11 = sst [smem:[#allocation2]] %s1119_s4 }
   0x2 LB: > { %s829_s24 = sadd.s32 4294967295, %s959_s23   ;;  %p833_p0 = scmp.ge.s32.totalorder %s959_s23, 1  ;;  %s959_s23 = sphi %s1010_s23, %s17_s23  }
   0x3   : > { %p221_p1 = scmp.lt.s32.totalorder %s959_s23, 3 }
   0x5   : > { %p222_p2 = pnand %p833_p0, %p221_p1 }
   0x6   : > { %p253_p3 = scmp.lt.s32.totalorder (!%p222_p2), %s829_s24, 1  ;;  %v961_v0 = vmov (!%p222_p2), 0.0   ;;  %vm962_vm0 = vmmov (!%p222_p2), 0   ;;  %vm279_vm1 = vcmask (!%p222_p2), 1043456   ;;  %vm275_vm2 = vcmask (!%p222_p2), 64512   ;;  %s963_s30 = smov (!%p222_p2), 127  }
   0x7   : > { %225 = sbr.rel (%p222_p2) target bundleno = 706 (0x2c2), region = 44  ;;  %876 = vmatprep.subr.bf16.mxu0 (!%p222_p2), %v961_v0  ;;  %882 = vmatprep.subr.bf16.mxu1 (!%p222_p2), %v961_v0  ;;  %v267_v4 = vld [vmem:[%s1116_s1] sm:$0xf] (!%p222_p2)  ;;  %s964_s7 = smov (!%p222_p2), 122   ;;  %v971_v6 = vmov (!%p222_p2), 0   ;;  %vm741_vm3 = vcmask (!%p222_p2), 195584  }
   0x8   : > { %878 = vmatprep.mubr.msk.bf16.mxu0 (!%p222_p2), %vm962_vm0, %v961_v0  ;;  %884 = vmatprep.mubr.msk.bf16.mxu1 (!%p222_p2), %vm962_vm0, %v961_v0  ;;  %s965_s8 = smov (!%p222_p2), 126   ;;  %s966_s9 = smov (!%p222_p2), 121   ;;  %v726_v5 = vld [vmem:[%s1117_s2] sm:$0xff] (!%p222_p2)  ;;  %v843_v12 = vld [vmem:[%s1116_s1 + $0xc] sm:$0xf] (!%p222_p2) }
   0x9   : > { %s967_s10 = smov (!%p222_p2), 120   ;;  %s968_s11 = smov (!%p222_p2), 116   ;;  %949 = vset.pattern.permute.xlu0 (!%p222_p2), %v971_v6  ;;  %v837_v11 = vld [vmem:[%s1116_s1 + $0x4] sm:$0xf] (!%p222_p2)  ;;  %v841_v18 = vld [vmem:[%s1116_s1 + $0x8] sm:$0xf] (!%p222_p2) }
   0xa   : > { %s969_s12 = smov (!%p222_p2), 115   ;;  %s970_s13 = smov (!%p222_p2), 114   ;;  %v847_v19 = vld [vmem:[%s1116_s1 + $0x14] sm:$0xf] (!%p222_p2)  ;;  %v845_v24 = vld [vmem:[%s1116_s1 + $0x10] sm:$0xf] (!%p222_p2) }
   0xb   : > { %v851_v25 = vld [vmem:[%s1116_s1 + $0x1c] sm:$0xf] (!%p222_p2)  ;;  %v849_v28 = vld [vmem:[%s1116_s1 + $0x18] sm:$0xf] (!%p222_p2)  ;;  %v853_v30 = vld [vmem:[%s1116_s1 + $0x20] sm:$0xf] (!%p222_p2) }
   0xe   : > { %s1123_s24 = smov (!%p253_p3, %s829_s24), 1 }
   0xf   : > { %s834_s4 = sshll.u32 %s1123_s24, 2 }
  0x10   : > { %s256_s27 = scalar_lea.vmem %s1115_s0, %s834_s4 }
  0x11   : > { %v266_v1 = vld [vmem:[%s256_s27] sm:$0xf] }
  0x12   : > { %v838_v2 = vcombine.low %v266_v1, %v266_v1  ;;  %v327_v3 = vsel %vm279_vm1, %v266_v1, 0 }
  0x13   : > { %883 = vmatpush3.bf16.msra.mxu1 %v327_v3 }
  0x14   : > { %273 = vrot.lane.b32.xlu0 %v838_v2, %s963_s30  ;;  %422 = vrot.lane.b32.xlu1 %v838_v2, %s964_s7 }
  0x15   : > { %894 = vmatprep.subr.bf16.mxu1 %v961_v0 }
  0x16   : > { %885 = vmatmul.mubr.msk.bf16.vlgmr.msra.gmra.mrb[0].mxu1 %vm275_vm2, %v267_v4 }
  0x17   : > { %896 = vmatprep.mubr.msk.bf16.mxu1 %vm962_vm0, %v961_v0 }
  0x18   : > { %371 = vrot.lane.b32.xlu0 %v838_v2, %s965_s8  ;;  %473 = vrot.lane.b32.xlu1 %v838_v2, %s966_s9 }
  0x1c   : > { %524 = vrot.lane.b32.xlu0 %v838_v2, %s967_s10  ;;  %575 = vrot.lane.b32.xlu1 %v838_v2, %s968_s11  ;;  %s756_s11 = sld [smem:[#allocation2]] }
  0x20   : > { %626 = vrot.lane.b32.xlu0 %v838_v2, %s969_s12  ;;  %677 = vrot.lane.b32.xlu1 %v838_v2, %s970_s13  ;;  %s835_s12 = sshll.u32 %s1123_s24, 3 }
  0x21   : > { %s260_s15 = scalar_lea.vmem %s1120_s5, %s835_s12  ;;  %s264_s18 = scalar_lea.vmem %s1121_s6, %s835_s12 }
  0x24   : > { %729 = vperm.xlu0 %949, %v726_v5  }
  0x86   : > { %v274_v7 = vpop.permute.xlu0 %273  ;;  %v423_v8 = vpop.permute.xlu1 %422 }
  0x87   : > { %v281_v9 = vsel %vm279_vm1, %v274_v7, 0  ;;  %v428_v10 = vsel %vm279_vm1, %v423_v8, 0 }
  0x88   : > { %877 = vmatpush3.bf16.msra.mxu0 %v281_v9  ;;  %895 = vmatpush3.bf16.msra.mxu1 %v428_v10 }
  0x89   : > { %888 = vmatprep.subr.bf16.mxu0 %v961_v0  ;;  %906 = vmatprep.subr.bf16.mxu1 %v961_v0 }
  0x8a   : > { %v372_v13 = vpop.permute.xlu0 %371  ;;  %v474_v15 = vpop.permute.xlu1 %473 }
  0x8b   : > { %v377_v14 = vsel %vm279_vm1, %v372_v13, 0  ;;  %879 = vmatmul.mubr.msk.bf16.vlgmr.msra.gmra.mrb[0].mxu0 %vm275_vm2, %v837_v11  ;;  %897 = vmatmul.mubr.msk.bf16.vlgmr.msra.gmra.mrb[4].mxu1 %vm275_vm2, %v843_v12  ;;  %v479_v20 = vsel %vm279_vm1, %v474_v15, 0  ;;  %v855_v11 = vld [vmem:[%s1118_s3] ss:$0 sm:$0xff] }
  0x8c   : > { %889 = vmatpush3.bf16.msra.mxu0 %v377_v14  ;;  %890 = vmatprep.mubr.msk.bf16.mxu0 %vm962_vm0, %v961_v0 }
  0x8d   : > { %900 = vmatprep.subr.bf16.mxu0 %v961_v0  ;;  %908 = vmatprep.mubr.msk.bf16.mxu1 %vm962_vm0, %v961_v0 }
  0x8e   : > { %v525_v16 = vpop.permute.xlu0 %524  ;;  %v576_v23 = vpop.permute.xlu1 %575 }
  0x8f   : > { %v530_v17 = vsel %vm279_vm1, %v525_v16, 0  ;;  %v581_v26 = vsel %vm279_vm1, %v576_v23, 0 }
  0x90   : > { %907 = vmatpush3.bf16.msra.mxu1 %v530_v17 }
  0x91   : > { %918 = vmatprep.subr.bf16.mxu1 %v961_v0 }
  0x92   : > { %v627_v21 = vpop.permute.xlu0 %626  ;;  %v678_v27 = vpop.permute.xlu1 %677 }
  0x93   : > { %891 = vmatmul.mubr.msk.bf16.vlgmr.msra.gmra.mrb[4].mxu0 %vm275_vm2, %v841_v18  ;;  %909 = vmatmul.mubr.msk.bf16.vlgmr.msra.gmra.mrb[8].mxu1 %vm275_vm2, %v847_v19  ;;  %v632_v22 = vsel %vm279_vm1, %v627_v21, 0  ;;  %v683_v29 = vsel %vm279_vm1, %v678_v27, 0 }
  0x94   : > { %901 = vmatpush3.bf16.msra.mxu0 %v479_v20  ;;  %902 = vmatprep.mubr.msk.bf16.mxu0 %vm962_vm0, %v961_v0 }
  0x95   : > { %912 = vmatprep.subr.bf16.mxu0 %v961_v0  ;;  %919 = vmatpush3.bf16.msra.mxu1 %v632_v22 }
  0x96   : > { %920 = vmatprep.mubr.msk.bf16.mxu1 %vm962_vm0, %v961_v0 }
  0x9b   : > { %903 = vmatmul.mubr.msk.bf16.vlgmr.msra.gmra.mrb[8].mxu0 %vm275_vm2, %v845_v24  ;;  %921 = vmatmul.mubr.msk.bf16.vlgmr.msra.gmra.mrb[12].mxu1 %vm275_vm2, %v851_v25 }
  0x9c   : > { %913 = vmatpush3.bf16.msra.mxu0 %v581_v26  ;;  %914 = vmatprep.mubr.msk.bf16.mxu0 %vm962_vm0, %v961_v0  ;;  %v758_v26 = vstv %s756_s11 }
  0x9d   : > { %924 = vmatprep.subr.bf16.mxu0 %v961_v0 }
  0xa3   : > { %915 = vmatmul.mubr.msk.bf16.vlgmr.msra.gmra.mrb[12].mxu0 %vm275_vm2, %v849_v28  ;;  %v730_v7 = vpop.permute.xlu0 %729  ;;  %v761_v28 = vld [vmem:[%s260_s15] sm:$0xff] }
  0xa4   : > { %925 = vmatpush3.bf16.msra.mxu0 %v683_v29  ;;  %926 = vmatprep.mubr.msk.bf16.mxu0 %vm962_vm0, %v961_v0 }
  0xab   : > { %927 = vmatmul.mubr.msk.bf16.vlgmr.msra.gmra.mrb[16].mxu0 %vm275_vm2, %v853_v30 }
  0xe9   : > { %v363_v31 = vpop.f32.mrb[0].mxu1 }
  0xea   : > { %v886_v32 = vpop.f32.mrb[1].mxu1 }
  0xeb   : > { %v366_v33 = vpop.f32.mrb[2].mxu1 }
  0xec   : > { %v887_v34 = vpop.f32.mrb[3].mxu1 }
 0x15e   : > { %v317_v35 = vpop.f32.mrb[0].mxu0  ;;  %v464_v36 = vpop.f32.mrb[4].mxu1 }
 0x15f   : > { %v880_v37 = vpop.f32.mrb[1].mxu0  ;;  %v364_v38 = vadd.f32 %v363_v31, %v317_v35  ;;  %v898_v39 = vpop.f32.mrb[5].mxu1 }
 0x160   : > { %v320_v40 = vpop.f32.mrb[2].mxu0  ;;  %v467_v41 = vpop.f32.mrb[6].mxu1 }
 0x161   : > { %v881_v42 = vpop.f32.mrb[3].mxu0  ;;  %v899_v43 = vpop.f32.mrb[7].mxu1 }
 0x166   : > { %v413_v44 = vpop.f32.mrb[4].mxu0  ;;  %v566_v45 = vpop.f32.mrb[8].mxu1 }
 0x167   : > { %v419_v46 = vadd.f32 %v413_v44, %v364_v38  ;;  %v892_v47 = vpop.f32.mrb[5].mxu0  ;;  %v910_v48 = vpop.f32.mrb[9].mxu1 }
 0x168   : > { %v416_v49 = vpop.f32.mrb[6].mxu0  ;;  %v569_v50 = vpop.f32.mrb[10].mxu1 }
 0x169   : > { %v470_v51 = vadd.f32 %v464_v36, %v419_v46  ;;  %v893_v52 = vpop.f32.mrb[7].mxu0  ;;  %v911_v53 = vpop.f32.mrb[11].mxu1 }
 0x16e   : > { %v515_v54 = vpop.f32.mrb[8].mxu0  ;;  %v668_v55 = vpop.f32.mrb[12].mxu1 }
 0x16f   : > { %v521_v56 = vadd.f32 %v515_v54, %v470_v51  ;;  %v904_v57 = vpop.f32.mrb[9].mxu0  ;;  %v922_v58 = vpop.f32.mrb[13].mxu1 }
 0x170   : > { %v518_v59 = vpop.f32.mrb[10].mxu0  ;;  %v671_v60 = vpop.f32.mrb[14].mxu1 }
 0x171   : > { %v572_v61 = vadd.f32 %v566_v45, %v521_v56  ;;  %v905_v62 = vpop.f32.mrb[11].mxu0  ;;  %v923_v63 = vpop.f32.mrb[15].mxu1 }
 0x176   : > { %v617_v0 = vpop.f32.mrb[12].mxu0 }
 0x177   : > { %v623_v1 = vadd.f32 %v617_v0, %v572_v61  ;;  %v916_v2 = vpop.f32.mrb[13].mxu0 }
 0x178   : > { %v620_v3 = vpop.f32.mrb[14].mxu0 }
 0x179   : > { %v674_v4 = vadd.f32 %v668_v55, %v623_v1  ;;  %v917_v5 = vpop.f32.mrb[15].mxu0 }
 0x17e   : > { %v719_v6 = vpop.f32.mrb[16].mxu0 }
 0x17f   : > { %v725_v8 = vadd.f32 %v719_v6, %v674_v4  ;;  %v928_v9 = vpop.f32.mrb[17].mxu0 }
 0x180   : > { %v722_v10 = vpop.f32.mrb[18].mxu0 }
 0x181   : > { %v732_v12 = vadd.f32 %v730_v7, %v725_v8  ;;  %v929_v13 = vpop.f32.mrb[19].mxu0 }
 0x183   : > { %v740_v14 = vmul.f32 %v855_v11, %v732_v12 }
 0x185   : > { %v742_v15 = vsel %vm741_vm3, %v740_v14, 0.0 }
 0x186   : > { %743 = vadd.xlane.f32.xlu1 %v742_v15 }
 0x213   : > { %v744_v16 = vpop.xlane.xlu1 %743 }
 0x214   : > { %v745_v17 = vmul.f32 0.0625, %v744_v16 }
 0x216   : > { %v746_v18 = vsub.f32 %v732_v12, %v745_v17 }
 0x218   : > { %v747_v19 = vmul.f32 %v746_v18, %v746_v18 }
 0x21a   : > { %v748_v20 = vmul.f32 %v855_v11, %v747_v19 }
 0x21c   : > { %v749_v21 = vsel %vm741_vm3, %v748_v20, 0.0 }
 0x21d   : > { %750 = vadd.xlane.f32.xlu0 %v749_v21 }
 0x2aa   : > { %v751_v22 = vpop.xlane.xlu0 %750 }
 0x2ab   : > { %v752_v23 = vmul.f32 0.0625, %v751_v22 }
 0x2ad   : > { %v753_v24 = vadd.f32 1e-05, %v752_v23 }
 0x2af   : > { %951 = vrsqrt.f32 %v753_v24 }
 0x2b9   : > { %v952_v25 = vpop.eup %951 }
 0x2ba   : > { %v755_v27 = vmul.f32 %v952_v25, %v746_v18 }
 0x2bc   : > { %vm757_vm4 = vcmp.ge.f32.partialorder %v755_v27, 0.0  ;;  %v759_v29 = vmul.f32 %v758_v26, %v755_v27 }
 0x2be   : > { %v760_v30 = vsel %vm757_vm4, %v755_v27, %v759_v29 }
 0x2bf   : > { %v762_v31 = vadd.f32 %v761_v28, %v760_v30 }
 0x2c1   : > { %763 = vst.msk [vmem:[%s264_s18] sm:$0xff] %vm741_vm3, %v762_v31 }
 0x2c2 PF: > { %s17_s23 = sadd.s32 1, %s959_s23  }
 0x2c3   : > { %p14_p4 = scmp.ge.s32.totalorder %s17_s23, 4  }
 0x2c5   :  { %16 = sbr.rel (!%p14_p4) target bundleno = 2 (0x2), region = 85 }

// kernel: forward.23
= control target key start
LH: loop header
LB: loop body
LE: loop exit
PB: predicated region body
PF: predicated region fallthrough
CT: control target
= control target key end

     0   :  { %s946_s20 = smov 0   ;;  %s1048_s0 = inlined_call_operand.vmem [shape: bf16[2,8,38], index: 0, kind: input, shape index: {}]   ;;  %s1049_s1 = inlined_call_operand.vmem [shape: bf16[9,8,8], index: 1, kind: input, shape index: {}]   ;;  %s1050_s2 = inlined_call_operand.vmem [shape: f32[8,1], index: 2, kind: input, shape index: {}]   ;;  %s1051_s3 = inlined_call_operand.vmem [shape: f32[1,24], index: 3, kind: input, shape index: {}]   ;;  %s1052_s4 = inlined_call_operand.<no memory space> [shape: f32[1], index: 4, kind: input, shape index: {}]   ;;  %s1053_s5 = inlined_call_operand.vmem [shape: f32[2,8,24], index: 5, kind: output, shape index: {}]  }
   0x1   :  { %10 = sst [smem:[#allocation2]] %s1052_s4 }
   0x2 LB: > { %s771_s21 = sadd.s32 4294967295, %s900_s20   ;;  %p775_p0 = scmp.ge.s32.totalorder %s900_s20, 1  ;;  %s900_s20 = sphi %s946_s20, %s16_s20  }
   0x3   : > { %p187_p1 = scmp.lt.s32.totalorder %s900_s20, 3 }
   0x5   : > { %p188_p2 = pnand %p775_p0, %p187_p1 }
   0x6   : > { %p213_p3 = scmp.lt.s32.totalorder (!%p188_p2), %s771_s21, 1  ;;  %v902_v0 = vmov (!%p188_p2), 0.0   ;;  %vm903_vm0 = vmmov (!%p188_p2), 0   ;;  %vm235_vm1 = vcmask (!%p188_p2), 1043456   ;;  %vm231_vm2 = vcmask (!%p188_p2), 64512   ;;  %s904_s27 = smov (!%p188_p2), 127  }
   0x7   : > { %191 = sbr.rel (%p188_p2) target bundleno = 704 (0x2c0), region = 40  ;;  %817 = vmatprep.subr.bf16.mxu0 (!%p188_p2), %v902_v0  ;;  %823 = vmatprep.subr.bf16.mxu1 (!%p188_p2), %v902_v0  ;;  %v223_v4 = vld [vmem:[%s1049_s1] sm:$0xf] (!%p188_p2)  ;;  %s905_s28 = smov (!%p188_p2), 122   ;;  %v912_v6 = vmov (!%p188_p2), 0   ;;  %vm697_vm3 = vcmask (!%p188_p2), 195584  }
   0x8   : > { %819 = vmatprep.mubr.msk.bf16.mxu0 (!%p188_p2), %vm903_vm0, %v902_v0  ;;  %825 = vmatprep.mubr.msk.bf16.mxu1 (!%p188_p2), %vm903_vm0, %v902_v0  ;;  %s906_s29 = smov (!%p188_p2), 126   ;;  %s907_s30 = smov (!%p188_p2), 121   ;;  %v682_v5 = vld [vmem:[%s1050_s2] sm:$0xff] (!%p188_p2)  ;;  %v784_v12 = vld [vmem:[%s1049_s1 + $0xc] sm:$0xf] (!%p188_p2) }
   0x9   : > { %s908_s6 = smov (!%p188_p2), 120   ;;  %s909_s7 = smov (!%p188_p2), 116   ;;  %890 = vset.pattern.permute.xlu0 (!%p188_p2), %v912_v6  ;;  %v778_v11 = vld [vmem:[%s1049_s1 + $0x4] sm:$0xf] (!%p188_p2)  ;;  %v782_v18 = vld [vmem:[%s1049_s1 + $0x8] sm:$0xf] (!%p188_p2) }
   0xa   : > { %s910_s8 = smov (!%p188_p2), 115   ;;  %s911_s9 = smov (!%p188_p2), 114   ;;  %v788_v19 = vld [vmem:[%s1049_s1 + $0x14] sm:$0xf] (!%p188_p2)  ;;  %v786_v24 = vld [vmem:[%s1049_s1 + $0x10] sm:$0xf] (!%p188_p2) }
   0xb   : > { %v792_v25 = vld [vmem:[%s1049_s1 + $0x1c] sm:$0xf] (!%p188_p2)  ;;  %v790_v28 = vld [vmem:[%s1049_s1 + $0x18] sm:$0xf] (!%p188_p2)  ;;  %v794_v30 = vld [vmem:[%s1049_s1 + $0x20] sm:$0xf] (!%p188_p2) }
   0xe   : > { %s1055_s21 = smov (!%p213_p3, %s771_s21), 1 }
   0xf   : > { %s776_s4 = sshll.u32 %s1055_s21, 2 }
  0x10   : > { %s216_s24 = scalar_lea.vmem %s1048_s0, %s776_s4 }
  0x11   : > { %v222_v1 = vld [vmem:[%s216_s24] sm:$0xf] }
  0x12   : > { %v779_v2 = vcombine.low %v222_v1, %v222_v1  ;;  %v283_v3 = vsel %vm235_vm1, %v222_v1, 0 }
  0x13   : > { %824 = vmatpush3.bf16.msra.mxu1 %v283_v3 }
  0x14   : > { %229 = vrot.lane.b32.xlu0 %v779_v2, %s904_s27  ;;  %378 = vrot.lane.b32.xlu1 %v779_v2, %s905_s28 }
  0x15   : > { %835 = vmatprep.subr.bf16.mxu1 %v902_v0 }
  0x16   : > { %826 = vmatmul.mubr.msk.bf16.vlgmr.msra.gmra.mrb[0].mxu1 %vm231_vm2, %v223_v4 }
  0x17   : > { %837 = vmatprep.mubr.msk.bf16.mxu1 %vm903_vm0, %v902_v0 }
  0x18   : > { %327 = vrot.lane.b32.xlu0 %v779_v2, %s906_s29  ;;  %429 = vrot.lane.b32.xlu1 %v779_v2, %s907_s30 }
  0x1c   : > { %480 = vrot.lane.b32.xlu0 %v779_v2, %s908_s6  ;;  %531 = vrot.lane.b32.xlu1 %v779_v2, %s909_s7  ;;  %s712_s6 = sld [smem:[#allocation2]]  ;;  %s777_s7 = sshll.u32 %s1055_s21, 3 }
  0x1d   : > { %s220_s10 = scalar_lea.vmem %s1053_s5, %s777_s7 }
  0x20   : > { %582 = vrot.lane.b32.xlu0 %v779_v2, %s910_s8  ;;  %633 = vrot.lane.b32.xlu1 %v779_v2, %s911_s9 }
  0x24   : > { %685 = vperm.xlu0 %890, %v682_v5  }
  0x86   : > { %v230_v7 = vpop.permute.xlu0 %229  ;;  %v379_v8 = vpop.permute.xlu1 %378 }
  0x87   : > { %v237_v9 = vsel %vm235_vm1, %v230_v7, 0  ;;  %v384_v10 = vsel %vm235_vm1, %v379_v8, 0 }
  0x88   : > { %818 = vmatpush3.bf16.msra.mxu0 %v237_v9  ;;  %836 = vmatpush3.bf16.msra.mxu1 %v384_v10 }
  0x89   : > { %829 = vmatprep.subr.bf16.mxu0 %v902_v0  ;;  %847 = vmatprep.subr.bf16.mxu1 %v902_v0 }
  0x8a   : > { %v328_v13 = vpop.permute.xlu0 %327  ;;  %v430_v15 = vpop.permute.xlu1 %429 }
  0x8b   : > { %v333_v14 = vsel %vm235_vm1, %v328_v13, 0  ;;  %820 = vmatmul.mubr.msk.bf16.vlgmr.msra.gmra.mrb[0].mxu0 %vm231_vm2, %v778_v11  ;;  %838 = vmatmul.mubr.msk.bf16.vlgmr.msra.gmra.mrb[4].mxu1 %vm231_vm2, %v784_v12  ;;  %v435_v20 = vsel %vm235_vm1, %v430_v15, 0  ;;  %v796_v11 = vld [vmem:[%s1051_s3] ss:$0 sm:$0xff] }
  0x8c   : > { %830 = vmatpush3.bf16.msra.mxu0 %v333_v14  ;;  %831 = vmatprep.mubr.msk.bf16.mxu0 %vm903_vm0, %v902_v0 }
  0x8d   : > { %841 = vmatprep.subr.bf16.mxu0 %v902_v0  ;;  %849 = vmatprep.mubr.msk.bf16.mxu1 %vm903_vm0, %v902_v0 }
  0x8e   : > { %v481_v16 = vpop.permute.xlu0 %480  ;;  %v532_v23 = vpop.permute.xlu1 %531 }
  0x8f   : > { %v486_v17 = vsel %vm235_vm1, %v481_v16, 0  ;;  %v537_v26 = vsel %vm235_vm1, %v532_v23, 0 }
  0x90   : > { %848 = vmatpush3.bf16.msra.mxu1 %v486_v17 }
  0x91   : > { %859 = vmatprep.subr.bf16.mxu1 %v902_v0 }
  0x92   : > { %v583_v21 = vpop.permute.xlu0 %582  ;;  %v634_v27 = vpop.permute.xlu1 %633 }
  0x93   : > { %832 = vmatmul.mubr.msk.bf16.vlgmr.msra.gmra.mrb[4].mxu0 %vm231_vm2, %v782_v18  ;;  %850 = vmatmul.mubr.msk.bf16.vlgmr.msra.gmra.mrb[8].mxu1 %vm231_vm2, %v788_v19  ;;  %v588_v22 = vsel %vm235_vm1, %v583_v21, 0  ;;  %v639_v29 = vsel %vm235_vm1, %v634_v27, 0 }
  0x94   : > { %842 = vmatpush3.bf16.msra.mxu0 %v435_v20  ;;  %843 = vmatprep.mubr.msk.bf16.mxu0 %vm903_vm0, %v902_v0 }
  0x95   : > { %853 = vmatprep.subr.bf16.mxu0 %v902_v0  ;;  %860 = vmatpush3.bf16.msra.mxu1 %v588_v22 }
  0x96   : > { %861 = vmatprep.mubr.msk.bf16.mxu1 %vm903_vm0, %v902_v0 }
  0x9b   : > { %844 = vmatmul.mubr.msk.bf16.vlgmr.msra.gmra.mrb[8].mxu0 %vm231_vm2, %v786_v24  ;;  %862 = vmatmul.mubr.msk.bf16.vlgmr.msra.gmra.mrb[12].mxu1 %vm231_vm2, %v792_v25 }
  0x9c   : > { %854 = vmatpush3.bf16.msra.mxu0 %v537_v26  ;;  %855 = vmatprep.mubr.msk.bf16.mxu0 %vm903_vm0, %v902_v0  ;;  %v714_v26 = vstv %s712_s6 }
  0x9d   : > { %865 = vmatprep.subr.bf16.mxu0 %v902_v0 }
  0xa3   : > { %856 = vmatmul.mubr.msk.bf16.vlgmr.msra.gmra.mrb[12].mxu0 %vm231_vm2, %v790_v28  ;;  %v686_v7 = vpop.permute.xlu0 %685 }
  0xa4   : > { %866 = vmatpush3.bf16.msra.mxu0 %v639_v29  ;;  %867 = vmatprep.mubr.msk.bf16.mxu0 %vm903_vm0, %v902_v0 }
  0xab   : > { %868 = vmatmul.mubr.msk.bf16.vlgmr.msra.gmra.mrb[16].mxu0 %vm231_vm2, %v794_v30 }
  0xe9   : > { %v319_v31 = vpop.f32.mrb[0].mxu1 }
  0xea   : > { %v827_v32 = vpop.f32.mrb[1].mxu1 }
  0xeb   : > { %v322_v33 = vpop.f32.mrb[2].mxu1 }
  0xec   : > { %v828_v34 = vpop.f32.mrb[3].mxu1 }
 0x15e   : > { %v273_v35 = vpop.f32.mrb[0].mxu0  ;;  %v420_v36 = vpop.f32.mrb[4].mxu1 }
 0x15f   : > { %v821_v37 = vpop.f32.mrb[1].mxu0  ;;  %v320_v38 = vadd.f32 %v319_v31, %v273_v35  ;;  %v839_v39 = vpop.f32.mrb[5].mxu1 }
 0x160   : > { %v276_v40 = vpop.f32.mrb[2].mxu0  ;;  %v423_v41 = vpop.f32.mrb[6].mxu1 }
 0x161   : > { %v822_v42 = vpop.f32.mrb[3].mxu0  ;;  %v840_v43 = vpop.f32.mrb[7].mxu1 }
 0x166   : > { %v369_v44 = vpop.f32.mrb[4].mxu0  ;;  %v522_v45 = vpop.f32.mrb[8].mxu1 }
 0x167   : > { %v375_v46 = vadd.f32 %v369_v44, %v320_v38  ;;  %v833_v47 = vpop.f32.mrb[5].mxu0  ;;  %v851_v48 = vpop.f32.mrb[9].mxu1 }
 0x168   : > { %v372_v49 = vpop.f32.mrb[6].mxu0  ;;  %v525_v50 = vpop.f32.mrb[10].mxu1 }
 0x169   : > { %v426_v51 = vadd.f32 %v420_v36, %v375_v46  ;;  %v834_v52 = vpop.f32.mrb[7].mxu0  ;;  %v852_v53 = vpop.f32.mrb[11].mxu1 }
 0x16e   : > { %v471_v54 = vpop.f32.mrb[8].mxu0  ;;  %v624_v55 = vpop.f32.mrb[12].mxu1 }
 0x16f   : > { %v477_v56 = vadd.f32 %v471_v54, %v426_v51  ;;  %v845_v57 = vpop.f32.mrb[9].mxu0  ;;  %v863_v58 = vpop.f32.mrb[13].mxu1 }
 0x170   : > { %v474_v59 = vpop.f32.mrb[10].mxu0  ;;  %v627_v60 = vpop.f32.mrb[14].mxu1 }
 0x171   : > { %v528_v61 = vadd.f32 %v522_v45, %v477_v56  ;;  %v846_v62 = vpop.f32.mrb[11].mxu0  ;;  %v864_v63 = vpop.f32.mrb[15].mxu1 }
 0x176   : > { %v573_v0 = vpop.f32.mrb[12].mxu0 }
 0x177   : > { %v579_v1 = vadd.f32 %v573_v0, %v528_v61  ;;  %v857_v2 = vpop.f32.mrb[13].mxu0 }
 0x178   : > { %v576_v3 = vpop.f32.mrb[14].mxu0 }
 0x179   : > { %v630_v4 = vadd.f32 %v624_v55, %v579_v1  ;;  %v858_v5 = vpop.f32.mrb[15].mxu0 }
 0x17e   : > { %v675_v6 = vpop.f32.mrb[16].mxu0 }
 0x17f   : > { %v681_v8 = vadd.f32 %v675_v6, %v630_v4  ;;  %v869_v9 = vpop.f32.mrb[17].mxu0 }
 0x180   : > { %v678_v10 = vpop.f32.mrb[18].mxu0 }
 0x181   : > { %v688_v12 = vadd.f32 %v686_v7, %v681_v8  ;;  %v870_v13 = vpop.f32.mrb[19].mxu0 }
 0x183   : > { %v696_v14 = vmul.f32 %v796_v11, %v688_v12 }
 0x185   : > { %v698_v15 = vsel %vm697_vm3, %v696_v14, 0.0 }
 0x186   : > { %699 = vadd.xlane.f32.xlu1 %v698_v15 }
 0x213   : > { %v700_v16 = vpop.xlane.xlu1 %699 }
 0x214   : > { %v701_v17 = vmul.f32 0.0625, %v700_v16 }
 0x216   : > { %v702_v18 = vsub.f32 %v688_v12, %v701_v17 }
 0x218   : > { %v703_v19 = vmul.f32 %v702_v18, %v702_v18 }
 0x21a   : > { %v704_v20 = vmul.f32 %v796_v11, %v703_v19 }
 0x21c   : > { %v705_v21 = vsel %vm697_vm3, %v704_v20, 0.0 }
 0x21d   : > { %706 = vadd.xlane.f32.xlu0 %v705_v21 }
 0x2aa   : > { %v707_v22 = vpop.xlane.xlu0 %706 }
 0x2ab   : > { %v708_v23 = vmul.f32 0.0625, %v707_v22 }
 0x2ad   : > { %v709_v24 = vadd.f32 1e-05, %v708_v23 }
 0x2af   : > { %892 = vrsqrt.f32 %v709_v24 }
 0x2b9   : > { %v893_v25 = vpop.eup %892 }
 0x2ba   : > { %v711_v27 = vmul.f32 %v893_v25, %v702_v18 }
 0x2bc   : > { %vm713_vm4 = vcmp.ge.f32.partialorder %v711_v27, 0.0  ;;  %v715_v28 = vmul.f32 %v714_v26, %v711_v27 }
 0x2be   : > { %v716_v29 = vsel %vm713_vm4, %v711_v27, %v715_v28 }
 0x2bf   : > { %717 = vst.msk [vmem:[%s220_s10] sm:$0xff] %vm697_vm3, %v716_v29 }
 0x2c0 PF: > { %s16_s20 = sadd.s32 1, %s900_s20  }
 0x2c1   : > { %p13_p4 = scmp.ge.s32.totalorder %s16_s20, 4  }
 0x2c3   :  { %15 = sbr.rel (!%p13_p4) target bundleno = 2 (0x2), region = 78 }

// kernel: forward.25
= control target key start
LH: loop header
LB: loop body
LE: loop exit
PB: predicated region body
PF: predicated region fallthrough
CT: control target
= control target key end

     0   :  { %s935_s20 = smov 0   ;;  %s1031_s0 = inlined_call_operand.vmem [shape: bf16[2,16,102], index: 0, kind: input, shape index: {}]   ;;  %s1032_s1 = inlined_call_operand.vmem [shape: bf16[9,8,16], index: 1, kind: input, shape index: {}]   ;;  %s1033_s2 = inlined_call_operand.vmem [shape: f32[8,1], index: 2, kind: input, shape index: {}]   ;;  %s1034_s3 = inlined_call_operand.vmem [shape: f32[1,80], index: 3, kind: input, shape index: {}]   ;;  %s1035_s4 = inlined_call_operand.<no memory space> [shape: f32[1], index: 4, kind: input, shape index: {}]   ;;  %s1036_s5 = inlined_call_operand.vmem [shape: f32[2,8,80], index: 5, kind: output, shape index: {}]  }
   0x1   :  { %10 = sst [smem:[#allocation2]] %s1035_s4 }
   0x2 LB: > { %s758_s21 = sadd.s32 4294967295, %s889_s20   ;;  %p762_p0 = scmp.ge.s32.totalorder %s889_s20, 1  ;;  %s889_s20 = sphi %s935_s20, %s16_s20  }
   0x3   : > { %p188_p1 = scmp.lt.s32.totalorder %s889_s20, 3 }
   0x5   : > { %p189_p2 = pnand %p762_p0, %p188_p1 }
   0x6   : > { %p215_p3 = scmp.lt.s32.totalorder (!%p189_p2), %s758_s21, 1  ;;  %v891_v0 = vmov (!%p189_p2), 0.0   ;;  %vm892_vm0 = vmmov (!%p189_p2), 0   ;;  %s893_s25 = smov (!%p189_p2), 127   ;;  %vm238_vm1 = vcmask (!%p189_p2), 130048   ;;  %v669_v3 = vld [vmem:[%s1033_s2] sm:$0xff] (!%p189_p2) }
   0x7   : > { %192 = sbr.rel (%p189_p2) target bundleno = 701 (0x2bd), region = 40  ;;  %806 = vmatprep.subr.bf16.mxu0 (!%p189_p2), %v891_v0  ;;  %812 = vmatprep.subr.bf16.mxu1 (!%p189_p2), %v891_v0  ;;  %s894_s26 = smov (!%p189_p2), 118   ;;  %v227_v2 = vld [vmem:[%s1032_s1] sm:$0xf] (!%p189_p2)  ;;  %v901_v4 = vmov (!%p189_p2), 0   ;;  %vm684_vm2 = vcmask (!%p189_p2), 654336  }
   0x8   : > { %808 = vmatprep.mubr.msk.bf16.mxu0 (!%p189_p2), %vm892_vm0, %v891_v0  ;;  %814 = vmatprep.mubr.msk.bf16.mxu1 (!%p189_p2), %vm892_vm0, %v891_v0  ;;  %s895_s29 = smov (!%p189_p2), 126   ;;  %s896_s30 = smov (!%p189_p2), 117   ;;  %v766_v7 = vld [vmem:[%s1032_s1 + $0x4] sm:$0xf] (!%p189_p2)  ;;  %v772_v8 = vld [vmem:[%s1032_s1 + $0xc] sm:$0xf] (!%p189_p2) }
   0x9   : > { %s897_s6 = smov (!%p189_p2), 116   ;;  %s898_s7 = smov (!%p189_p2), 108   ;;  %879 = vset.pattern.permute.xlu0 (!%p189_p2), %v901_v4  ;;  %v770_v11 = vld [vmem:[%s1032_s1 + $0x8] sm:$0xf] (!%p189_p2)  ;;  %v776_v12 = vld [vmem:[%s1032_s1 + $0x14] sm:$0xf] (!%p189_p2) }
   0xa   : > { %s899_s8 = smov (!%p189_p2), 107   ;;  %s900_s9 = smov (!%p189_p2), 106   ;;  %v774_v15 = vld [vmem:[%s1032_s1 + $0x10] sm:$0xf] (!%p189_p2)  ;;  %v780_v16 = vld [vmem:[%s1032_s1 + $0x1c] sm:$0xf] (!%p189_p2) }
   0xb   : > { %v778_v18 = vld [vmem:[%s1032_s1 + $0x18] sm:$0xf] (!%p189_p2)  ;;  %v782_v20 = vld [vmem:[%s1032_s1 + $0x20] sm:$0xf] (!%p189_p2) }
   0xe   : > { %s1038_s21 = smov (!%p215_p3, %s758_s21), 1 }
   0xf   : > { %s787_s4 = sshll.u32 %s1038_s21, 3 }
  0x10   : > { %s219_s24 = scalar_lea.vmem %s1031_s0, %s787_s4  ;;  %s223_s10 = scalar_lea.vmem %s1036_s5, %s787_s4 }
  0x11   : > { %v880_v1 = vld [vmem:[%s219_s24] sm:$0xff]  }
  0x12   : > { %235 = vrot.lane.b32.xlu0 %v880_v1, %s893_s25  ;;  %377 = vrot.lane.b32.xlu1 %v880_v1, %s894_s26 }
  0x13   : > { %813 = vmatpush3.bf16.msra.mxu1 %v880_v1 }
  0x14   : > { %824 = vmatprep.subr.bf16.mxu1 %v891_v0 }
  0x16   : > { %328 = vrot.lane.b32.xlu0 %v880_v1, %s895_s29  ;;  %426 = vrot.lane.b32.xlu1 %v880_v1, %s896_s30 }
  0x17   : > { %815 = vmatmul.mubr.msk.bf16.vlgmr.msra.gmra.mrb[0].mxu1 %vm238_vm1, %v227_v2 }
  0x18   : > { %826 = vmatprep.mubr.msk.bf16.mxu1 %vm892_vm0, %v891_v0 }
  0x1a   : > { %475 = vrot.lane.b32.xlu0 %v880_v1, %s897_s6  ;;  %524 = vrot.lane.b32.xlu1 %v880_v1, %s898_s7  ;;  %s699_s7 = sld [smem:[#allocation2]] }
  0x1e   : > { %573 = vrot.lane.b32.xlu0 %v880_v1, %s899_s8  ;;  %622 = vrot.lane.b32.xlu1 %v880_v1, %s900_s9  ;;  %v784_v1 = vld [vmem:[%s1034_s3] ss:$0 sm:$0xff] }
  0x22   : > { %672 = vperm.xlu0 %879, %v669_v3  }
  0x84   : > { %v236_v5 = vpop.permute.xlu0 %235  ;;  %v378_v6 = vpop.permute.xlu1 %377 }
  0x85   : > { %807 = vmatpush3.bf16.msra.mxu0 %v236_v5  ;;  %825 = vmatpush3.bf16.msra.mxu1 %v378_v6 }
  0x86   : > { %818 = vmatprep.subr.bf16.mxu0 %v891_v0  ;;  %836 = vmatprep.subr.bf16.mxu1 %v891_v0 }
  0x88   : > { %809 = vmatmul.mubr.msk.bf16.vlgmr.msra.gmra.mrb[0].mxu0 %vm238_vm1, %v766_v7  ;;  %v329_v9 = vpop.permute.xlu0 %328  ;;  %827 = vmatmul.mubr.msk.bf16.vlgmr.msra.gmra.mrb[4].mxu1 %vm238_vm1, %v772_v8  ;;  %v427_v13 = vpop.permute.xlu1 %426 }
  0x89   : > { %819 = vmatpush3.bf16.msra.mxu0 %v329_v9  ;;  %820 = vmatprep.mubr.msk.bf16.mxu0 %vm892_vm0, %v891_v0 }
  0x8a   : > { %830 = vmatprep.subr.bf16.mxu0 %v891_v0  ;;  %838 = vmatprep.mubr.msk.bf16.mxu1 %vm892_vm0, %v891_v0 }
  0x8c   : > { %v476_v10 = vpop.permute.xlu0 %475  ;;  %v525_v17 = vpop.permute.xlu1 %524 }
  0x8d   : > { %837 = vmatpush3.bf16.msra.mxu1 %v476_v10 }
  0x8e   : > { %848 = vmatprep.subr.bf16.mxu1 %v891_v0 }
  0x90   : > { %821 = vmatmul.mubr.msk.bf16.vlgmr.msra.gmra.mrb[4].mxu0 %vm238_vm1, %v770_v11  ;;  %839 = vmatmul.mubr.msk.bf16.vlgmr.msra.gmra.mrb[8].mxu1 %vm238_vm1, %v776_v12  ;;  %v574_v14 = vpop.permute.xlu0 %573  ;;  %v623_v19 = vpop.permute.xlu1 %622 }
  0x91   : > { %831 = vmatpush3.bf16.msra.mxu0 %v427_v13  ;;  %832 = vmatprep.mubr.msk.bf16.mxu0 %vm892_vm0, %v891_v0 }
  0x92   : > { %842 = vmatprep.subr.bf16.mxu0 %v891_v0  ;;  %849 = vmatpush3.bf16.msra.mxu1 %v574_v14 }
  0x93   : > { %850 = vmatprep.mubr.msk.bf16.mxu1 %vm892_vm0, %v891_v0 }
  0x98   : > { %833 = vmatmul.mubr.msk.bf16.vlgmr.msra.gmra.mrb[8].mxu0 %vm238_vm1, %v774_v15  ;;  %851 = vmatmul.mubr.msk.bf16.vlgmr.msra.gmra.mrb[12].mxu1 %vm238_vm1, %v780_v16  ;;  %v701_v16 = vstv %s699_s7 }
  0x99   : > { %843 = vmatpush3.bf16.msra.mxu0 %v525_v17  ;;  %844 = vmatprep.mubr.msk.bf16.mxu0 %vm892_vm0, %v891_v0 }
  0x9a   : > { %854 = vmatprep.subr.bf16.mxu0 %v891_v0 }
  0xa0   : > { %845 = vmatmul.mubr.msk.bf16.vlgmr.msra.gmra.mrb[12].mxu0 %vm238_vm1, %v778_v18 }
  0xa1   : > { %855 = vmatpush3.bf16.msra.mxu0 %v623_v19  ;;  %856 = vmatprep.mubr.msk.bf16.mxu0 %vm892_vm0, %v891_v0  ;;  %v673_v61 = vpop.permute.xlu0 %672 }
  0xa8   : > { %857 = vmatmul.mubr.msk.bf16.vlgmr.msra.gmra.mrb[16].mxu0 %vm238_vm1, %v782_v20 }
  0xea   : > { %v320_v21 = vpop.f32.mrb[0].mxu1 }
  0xeb   : > { %v816_v22 = vpop.f32.mrb[1].mxu1 }
  0xec   : > { %v323_v23 = vpop.f32.mrb[2].mxu1 }
  0xed   : > { %v817_v24 = vpop.f32.mrb[3].mxu1 }
 0x15b   : > { %v276_v25 = vpop.f32.mrb[0].mxu0  ;;  %v417_v26 = vpop.f32.mrb[4].mxu1 }
 0x15c   : > { %v810_v27 = vpop.f32.mrb[1].mxu0  ;;  %v321_v28 = vadd.f32 %v320_v21, %v276_v25  ;;  %v828_v29 = vpop.f32.mrb[5].mxu1 }
 0x15d   : > { %v279_v30 = vpop.f32.mrb[2].mxu0  ;;  %v420_v31 = vpop.f32.mrb[6].mxu1 }
 0x15e   : > { %v811_v32 = vpop.f32.mrb[3].mxu0  ;;  %v829_v33 = vpop.f32.mrb[7].mxu1 }
 0x163   : > { %v368_v34 = vpop.f32.mrb[4].mxu0  ;;  %v515_v35 = vpop.f32.mrb[8].mxu1 }
 0x164   : > { %v374_v36 = vadd.f32 %v368_v34, %v321_v28  ;;  %v822_v37 = vpop.f32.mrb[5].mxu0  ;;  %v840_v38 = vpop.f32.mrb[9].mxu1 }
 0x165   : > { %v371_v39 = vpop.f32.mrb[6].mxu0  ;;  %v518_v40 = vpop.f32.mrb[10].mxu1 }
 0x166   : > { %v423_v41 = vadd.f32 %v417_v26, %v374_v36  ;;  %v823_v42 = vpop.f32.mrb[7].mxu0  ;;  %v841_v43 = vpop.f32.mrb[11].mxu1 }
 0x16b   : > { %v466_v44 = vpop.f32.mrb[8].mxu0  ;;  %v613_v45 = vpop.f32.mrb[12].mxu1 }
 0x16c   : > { %v472_v46 = vadd.f32 %v466_v44, %v423_v41  ;;  %v834_v47 = vpop.f32.mrb[9].mxu0  ;;  %v852_v48 = vpop.f32.mrb[13].mxu1 }
 0x16d   : > { %v469_v49 = vpop.f32.mrb[10].mxu0  ;;  %v616_v50 = vpop.f32.mrb[14].mxu1 }
 0x16e   : > { %v521_v51 = vadd.f32 %v515_v35, %v472_v46  ;;  %v835_v52 = vpop.f32.mrb[11].mxu0  ;;  %v853_v53 = vpop.f32.mrb[15].mxu1 }
 0x173   : > { %v564_v54 = vpop.f32.mrb[12].mxu0 }
 0x174   : > { %v570_v55 = vadd.f32 %v564_v54, %v521_v51  ;;  %v846_v56 = vpop.f32.mrb[13].mxu0 }
 0x175   : > { %v567_v57 = vpop.f32.mrb[14].mxu0 }
 0x176   : > { %v619_v58 = vadd.f32 %v613_v45, %v570_v55  ;;  %v847_v59 = vpop.f32.mrb[15].mxu0 }
 0x17b   : > { %v662_v60 = vpop.f32.mrb[16].mxu0 }
 0x17c   : > { %v668_v62 = vadd.f32 %v662_v60, %v619_v58  ;;  %v858_v63 = vpop.f32.mrb[17].mxu0 }
 0x17d   : > { %v665_v0 = vpop.f32.mrb[18].mxu0 }
 0x17e   : > { %v675_v2 = vadd.f32 %v673_v61, %v668_v62  ;;  %v859_v3 = vpop.f32.mrb[19].mxu0 }
 0x180   : > { %v683_v4 = vmul.f32 %v784_v1, %v675_v2 }
 0x182   : > { %v685_v5 = vsel %vm684_vm2, %v683_v4, 0.0 }
 0x183   : > { %686 = vadd.xlane.f32.xlu1 %v685_v5 }
 0x210   : > { %v687_v6 = vpop.xlane.xlu1 %686 }
 0x211   : > { %v688_v7 = vmul.f32 0.015625, %v687_v6 }
 0x213   : > { %v689_v8 = vsub.f32 %v675_v2, %v688_v7 }
 0x215   : > { %v690_v9 = vmul.f32 %v689_v8, %v689_v8 }
 0x217   : > { %v691_v10 = vmul.f32 %v784_v1, %v690_v9 }
 0x219   : > { %v692_v11 = vsel %vm684_vm2, %v691_v10, 0.0 }
 0x21a   : > { %693 = vadd.xlane.f32.xlu0 %v692_v11 }
 0x2a7   : > { %v694_v12 = vpop.xlane.xlu0 %693 }
 0x2a8   : > { %v695_v13 = vmul.f32 0.015625, %v694_v12 }
 0x2aa   : > { %v696_v14 = vadd.f32 1e-05, %v695_v13 }
 0x2ac   : > { %881 = vrsqrt.f32 %v696_v14 }
 0x2b6   : > { %v882_v15 = vpop.eup %881 }
 0x2b7   : > { %v698_v17 = vmul.f32 %v882_v15, %v689_v8 }
 0x2b9   : > { %vm700_vm3 = vcmp.ge.f32.partialorder %v698_v17, 0.0  ;;  %v702_v18 = vmul.f32 %v701_v16, %v698_v17 }
 0x2bb   : > { %v703_v19 = vsel %vm700_vm3, %v698_v17, %v702_v18 }
 0x2bc   : > { %704 = vst.msk [vmem:[%s223_s10] sm:$0xff] %vm684_vm2, %v703_v19 }
 0x2bd PF: > { %s16_s20 = sadd.s32 1, %s889_s20  }
 0x2be   : > { %p13_p4 = scmp.ge.s32.totalorder %s16_s20, 4  }
 0x2c0   :  { %15 = sbr.rel (!%p13_p4) target bundleno = 2 (0x2), region = 78 }

// kernel: forward.28
= control target key start
LH: loop header
LB: loop body
LE: loop exit
PB: predicated region body
PF: predicated region fallthrough
CT: control target
= control target key end

     0   :  { %s1597_s15 = smov 0   ;;  %s1777_s0 = inlined_call_operand.vmem [shape: bf16[2,4,326], index: 0, kind: input, shape index: {}]   ;;  %s1778_s1 = inlined_call_operand.vmem [shape: bf16[9,4,4], index: 1, kind: input, shape index: {}]   ;;  %s1779_s2 = inlined_call_operand.vmem [shape: f32[4,1], index: 2, kind: input, shape index: {}]   ;;  %s1780_s3 = inlined_call_operand.vmem [shape: f32[2,4,288], index: 3, kind: input, shape index: {}]   ;;  %s1781_s4 = inlined_call_operand.vmem [shape: f32[2,4,288], index: 4, kind: output, shape index: {}]  }
   0x1 LB: > { %s1403_s16 = sadd.s32 4294967295, %s1558_s15   ;;  %p1407_p0 = scmp.ge.s32.totalorder %s1558_s15, 1  ;;  %s1558_s15 = sphi %s1597_s15, %s14_s15  }
   0x2   : > { %p172_p1 = scmp.lt.s32.totalorder %s1558_s15, 3 }
   0x4   : > { %p173_p2 = pnand %p1407_p0, %p172_p1 }
   0x5   : > { %p203_p3 = scmp.lt.s32.totalorder (!%p173_p2), %s1403_s16, 1  ;;  %v228_v0 = vlaneseq (!%p173_p2)  ;;  %v1560_v1 = vmov (!%p173_p2), 1983009808   ;;  %v1561_v3 = vmov (!%p173_p2), 0.0   ;;  %vm1562_vm0 = vmmov (!%p173_p2), 0   ;;  %s1564_s21 = smov (!%p173_p2), 127  }
   0x6   : > { %176 = sbr.rel (%p173_p2) target bundleno = 430 (0x1ae), region = 36  ;;  %v226_v2 = vunpack.c.l.s4 (!%p173_p2), %v1560_v1  ;;  %1466 = vmatprep.subr.bf16.mxu1 (!%p173_p2), %v1561_v3  ;;  %1468 = vmatprep.mubr.msk.bf16.mxu1 (!%p173_p2), %vm1562_vm0, %v1561_v3  ;;  %v1563_v6 = vmov (!%p173_p2), 0   ;;  %s1565_s22 = smov (!%p173_p2), 126   ;;  %v1312_v48 = vld [vmem:[%s1779_s2] sm:$0xf] (!%p173_p2)  ;;  %vm253_vm1 = vcmask (!%p173_p2), 1041408  }
   0x7   : > { %v229_v4 = vshrl.u32 (!%p173_p2), %v228_v0, 7  ;;  %295 = vmatprep.mubr.bf16.mxu0 (!%p173_p2), %v1563_v6  ;;  %1542 = vset.pattern.permute.xlu0 (!%p173_p2), %v1563_v6  ;;  %s1566_s23 = smov (!%p173_p2), 110   ;;  %s1567_s24 = smov (!%p173_p2), 109   ;;  %vm246_vm2 = vcmask (!%p173_p2), 1039360   ;;  %v1411_v53 = vld [vmem:[%s1778_s1 + $0x2] sm:$0x3] (!%p173_p2) }
   0x8   : > { %v227_v5 = vunpack.c.0.s8 (!%p173_p2), %v226_v2  ;;  %s1568_s25 = smov (!%p173_p2), 108   ;;  %s1569_s26 = smov (!%p173_p2), 92   ;;  %vm249_vm3 = vcmask (!%p173_p2), 31744   ;;  %vm463_vm4 = vcmask (!%p173_p2), 1031168   ;;  %v220_v63 = vld [vmem:[%s1778_s1] sm:$0x3] (!%p173_p2) }
   0x9   : > { %s1570_s27 = smov (!%p173_p2), 91   ;;  %s1571_s28 = smov (!%p173_p2), 90   ;;  %vm588_vm5 = vcmask (!%p173_p2), 900096   ;;  %vm713_vm6 = vcmask (!%p173_p2), 891904   ;;  %vm838_vm7 = vcmask (!%p173_p2), 883712   ;;  %vm963_vm8 = vcmask (!%p173_p2), 752640  }
   0xa   : > { %v1613_v7 = vsub.s32 (!%p173_p2), %v227_v5, %v229_v4  ;;  %vm1088_vm9 = vcmask (!%p173_p2), 744448   ;;  %vm1213_vm10 = vcmask (!%p173_p2), 736256   ;;  %vm1334_vm11 = vcmask (!%p173_p2), 257024  }
   0xd   : > { %s1783_s16 = smov (!%p203_p3, %s1403_s16), 1 }
   0xe   : > { %s1520_s17 = smul.u32 6, %s1783_s16 }
  0x10   : > { %s1618_s20 = scalar_lea.vmem %s1777_s0, %s1520_s17 }
  0x11   : > { %v219_v8 = vld [vmem:[%s1618_s20] sm:$0x3f] }
  0x12   : > { %v1622_v9 = vrot.slane %v219_v8, %v1613_v7  ;;  %v224_v10 = vcombine.high %v219_v8, %v219_v8  ;;  %v437_v11 = vld [vmem:[%s1618_s20] sm:$0x3f] }
  0x13   : > { %v448_v14 = vrot.slane %v437_v11, %v1613_v7  ;;  %v441_v15 = vcombine.high %v437_v11, %v437_v11  ;;  %v562_v17 = vld [vmem:[%s1618_s20] sm:$0x3f] }
  0x14   : > { %240 = vrot.lane.b32.xlu0 %v1622_v9, %s1564_s21  ;;  %v1627_v12 = vrot.slane %v224_v10, %v1613_v7  ;;  %v1631_v13 = vcombine.high %v1622_v9, %v1622_v9  ;;  %v573_v19 = vrot.slane %v562_v17, %v1613_v7  ;;  %v566_v20 = vcombine.high %v562_v17, %v562_v17  ;;  %v687_v22 = vld [vmem:[%s1618_s20] sm:$0x3f] }
  0x15   : > { %v456_v16 = vcombine.high %v448_v14, %v448_v14  ;;  %v455_v18 = vrot.slane %v441_v15, %v1613_v7  ;;  %v698_v24 = vrot.slane %v687_v22, %v1613_v7  ;;  %v691_v25 = vcombine.high %v687_v22, %v687_v22  ;;  %v812_v27 = vld [vmem:[%s1618_s20] sm:$0x3f] }
  0x16   : > { %244 = vrot.lane.b32.xlu1 %v1627_v12, %s1564_s21  ;;  %v581_v21 = vcombine.high %v573_v19, %v573_v19  ;;  %v580_v23 = vrot.slane %v566_v20, %v1613_v7  ;;  %v823_v29 = vrot.slane %v812_v27, %v1613_v7  ;;  %v816_v30 = vcombine.high %v812_v27, %v812_v27  ;;  %v937_v32 = vld [vmem:[%s1618_s20] sm:$0x3f]  ;;  %v1426_v27 = vld [vmem:[%s1778_s1 + $0x8] sm:$0x3] }
  0x17   : > { %v706_v26 = vcombine.high %v698_v24, %v698_v24  ;;  %v705_v28 = vrot.slane %v691_v25, %v1613_v7  ;;  %v948_v34 = vrot.slane %v937_v32, %v1613_v7  ;;  %v941_v35 = vcombine.high %v937_v32, %v937_v32  ;;  %v1062_v37 = vld [vmem:[%s1618_s20] sm:$0x3f] }
  0x18   : > { %242 = vrot.lane.b32.xlu0 %v1631_v13, %s1564_s21  ;;  %v831_v31 = vcombine.high %v823_v29, %v823_v29  ;;  %v830_v33 = vrot.slane %v816_v30, %v1613_v7  ;;  %v1073_v39 = vrot.slane %v1062_v37, %v1613_v7  ;;  %v1066_v40 = vcombine.high %v1062_v37, %v1062_v37  ;;  %v1187_v42 = vld [vmem:[%s1618_s20] sm:$0x3f] }
  0x19   : > { %v956_v36 = vcombine.high %v948_v34, %v948_v34  ;;  %v955_v38 = vrot.slane %v941_v35, %v1613_v7  ;;  %v1198_v44 = vrot.slane %v1187_v42, %v1613_v7  ;;  %v1191_v45 = vcombine.high %v1187_v42, %v1187_v42  ;;  %v1418_v10 = vld [vmem:[%s1778_s1 + $0x4] sm:$0x3]  ;;  %v1430_v35 = vld [vmem:[%s1778_s1 + $0xa] sm:$0x3]  ;;  %v1434_v42 = vld [vmem:[%s1778_s1 + $0xc] sm:$0x3] }
  0x1a   : > { %457 = vrot.lane.b32.xlu1 %v448_v14, %s1565_s22  ;;  %v1081_v41 = vcombine.high %v1073_v39, %v1073_v39  ;;  %v1080_v43 = vrot.slane %v1066_v40, %v1613_v7  ;;  %v354_v56 = vsel %vm253_vm1, %v1627_v12, 0  ;;  %v348_v59 = vsel %vm253_vm1, %v1622_v9, 0 }
  0x1b   : > { %v1206_v46 = vcombine.high %v1198_v44, %v1198_v44  ;;  %v1205_v47 = vrot.slane %v1191_v45, %v1613_v7 }
  0x1c   : > { %459 = vrot.lane.b32.xlu0 %v456_v16, %s1565_s22 }
  0x1e   : > { %461 = vrot.lane.b32.xlu1 %v455_v18, %s1565_s22 }
  0x20   : > { %582 = vrot.lane.b32.xlu0 %v573_v19, %s1566_s23  ;;  %v1422_v19 = vld [vmem:[%s1778_s1 + $0x6] sm:$0x3] }
  0x22   : > { %584 = vrot.lane.b32.xlu1 %v581_v21, %s1566_s23 }
  0x24   : > { %586 = vrot.lane.b32.xlu0 %v580_v23, %s1566_s23 }
  0x26   : > { %707 = vrot.lane.b32.xlu1 %v698_v24, %s1567_s24 }
  0x28   : > { %709 = vrot.lane.b32.xlu0 %v706_v26, %s1567_s24 }
  0x2a   : > { %711 = vrot.lane.b32.xlu1 %v705_v28, %s1567_s24 }
  0x2c   : > { %832 = vrot.lane.b32.xlu0 %v823_v29, %s1568_s25 }
  0x2e   : > { %834 = vrot.lane.b32.xlu1 %v831_v31, %s1568_s25 }
  0x30   : > { %836 = vrot.lane.b32.xlu0 %v830_v33, %s1568_s25  ;;  %s1521_s25 = smul.u32 12, %s1783_s16 }
  0x32   : > { %957 = vrot.lane.b32.xlu1 %v948_v34, %s1569_s26  ;;  %s217_s30 = scalar_lea.vmem %s1781_s4, %s1521_s25 }
  0x34   : > { %959 = vrot.lane.b32.xlu0 %v956_v36, %s1569_s26 }
  0x36   : > { %961 = vrot.lane.b32.xlu1 %v955_v38, %s1569_s26 }
  0x38   : > { %1082 = vrot.lane.b32.xlu0 %v1073_v39, %s1570_s27 }
  0x3a   : > { %1084 = vrot.lane.b32.xlu1 %v1081_v41, %s1570_s27 }
  0x3c   : > { %1086 = vrot.lane.b32.xlu0 %v1080_v43, %s1570_s27 }
  0x3e   : > { %1207 = vrot.lane.b32.xlu1 %v1198_v44, %s1571_s28 }
  0x40   : > { %1209 = vrot.lane.b32.xlu0 %v1206_v46, %s1571_s28 }
  0x42   : > { %1211 = vrot.lane.b32.xlu1 %v1205_v47, %s1571_s28  ;;  %s212_s28 = scalar_lea.vmem %s1780_s3, %s1521_s25 }
  0x44   : > { %1315 = vperm.xlu0 %1542, %v1312_v48  }
  0x86   : > { %v241_v49 = vpop.permute.xlu0 %240 }
  0x88   : > { %v245_v50 = vpop.permute.xlu1 %244 }
  0x89   : > { %v261_v51 = vsel %vm253_vm1, %v245_v50, 0 }
  0x8a   : > { %v243_v52 = vpop.permute.xlu0 %242  ;;  %1467 = vmatpush3.bf16.msra.mxu1 %v261_v51 }
  0x8b   : > { %v248_v54 = vsel %vm246_vm2, %v243_v52, %v245_v50  ;;  %v247_v55 = vsel %vm246_vm2, %v241_v49, %v243_v52  ;;  %1472 = vmatprep.subr.bf16.mxu1 %v1561_v3  ;;  %v1438_v49 = vld [vmem:[%s1778_s1 + $0xe] sm:$0x3] }
  0x8c   : > { %1412 = vmatprep.subr.msk.bf16.mxu0 %vm253_vm1, %v248_v54  ;;  %v255_v57 = vsel %vm253_vm1, %v247_v55, 0  ;;  %v458_v58 = vpop.permute.xlu1 %457 }
  0x8d   : > { %264 = vmatpush1.bf16.msra.mxu0 %v255_v57  ;;  %1469 = vmatmul.mubr.msk.bf16.vlgmr.msra.gmra.mrb[0].mxu1 %vm249_vm3, %v1411_v53 }
  0x8e   : > { %1415 = vmatprep.subr.msk.bf16.mxu0 %vm253_vm1, %v1631_v13  ;;  %v460_v60 = vpop.permute.xlu0 %459  ;;  %1473 = vmatpush3.bf16.msra.mxu1 %v354_v56 }
  0x8f   : > { %1474 = vmatprep.mubr.msk.bf16.mxu1 %vm1562_vm0, %v1561_v3  ;;  %1478 = vmatprep.subr.bf16.mxu1 %v1561_v3  ;;  %v464_v1 = vsel %vm463_vm4, %v458_v58, %v460_v60 }
  0x90   : > { %1413 = vmatmul.mubr.msk.bf16.vlgmr.msra.gmra.mrb[0].mxu0 %vm249_vm3, %v1411_v53  ;;  %v462_v61 = vpop.permute.xlu1 %461  ;;  %v470_v5 = vsel %vm253_vm1, %v464_v1, 0  ;;  %v1442_v53 = vld [vmem:[%s1778_s1 + $0x10] sm:$0x3] }
  0x91   : > { %357 = vmatpush1.bf16.msra.mxu0 %v348_v59  ;;  %v465_v62 = vsel %vm463_vm4, %v460_v60, %v462_v61  ;;  %388 = vmatprep.mubr.bf16.mxu0 %v1563_v6  ;;  %v476_v2 = vsel %vm253_vm1, %v462_v61, 0 }
  0x92   : > { %1419 = vmatprep.subr.msk.bf16.mxu0 %vm253_vm1, %v465_v62  ;;  %v583_v0 = vpop.permute.xlu0 %582 }
  0x94   : > { %v585_v4 = vpop.permute.xlu1 %584 }
  0x95   : > { %1475 = vmatmul.mubr.msk.bf16.vlgmr.msra.gmra.mrb[4].mxu1 %vm249_vm3, %v220_v63  ;;  %v589_v12 = vsel %vm588_vm5, %v583_v0, %v585_v4 }
  0x96   : > { %1479 = vmatpush3.bf16.msra.mxu1 %v476_v2  ;;  %1480 = vmatprep.mubr.msk.bf16.mxu1 %vm1562_vm0, %v1561_v3  ;;  %v587_v7 = vpop.permute.xlu0 %586  ;;  %v595_v15 = vsel %vm253_vm1, %v589_v12, 0 }
  0x97   : > { %v590_v8 = vsel %vm588_vm5, %v585_v4, %v587_v7  ;;  %1484 = vmatprep.subr.bf16.mxu1 %v1561_v3  ;;  %v601_v13 = vsel %vm253_vm1, %v587_v7, 0 }
  0x98   : > { %1416 = vmatmul.mubr.msk.bf16.vlgmr.msra.gmra.mrb[4].mxu0 %vm249_vm3, %v220_v63  ;;  %v708_v9 = vpop.permute.xlu1 %707 }
  0x99   : > { %479 = vmatpush1.bf16.msra.mxu0 %v470_v5  ;;  %510 = vmatprep.mubr.bf16.mxu0 %v1563_v6 }
  0x9a   : > { %1423 = vmatprep.subr.msk.bf16.mxu0 %vm253_vm1, %v590_v8  ;;  %v710_v11 = vpop.permute.xlu0 %709 }
  0x9b   : > { %v714_v20 = vsel %vm713_vm6, %v708_v9, %v710_v11 }
  0x9c   : > { %v712_v14 = vpop.permute.xlu1 %711  ;;  %v720_v23 = vsel %vm253_vm1, %v714_v20, 0 }
  0x9d   : > { %1481 = vmatmul.mubr.msk.bf16.vlgmr.msra.gmra.mrb[8].mxu1 %vm249_vm3, %v1418_v10  ;;  %v715_v17 = vsel %vm713_vm6, %v710_v11, %v712_v14  ;;  %v726_v21 = vsel %vm253_vm1, %v712_v14, 0 }
  0x9e   : > { %1485 = vmatpush3.bf16.msra.mxu1 %v601_v13  ;;  %1486 = vmatprep.mubr.msk.bf16.mxu1 %vm1562_vm0, %v1561_v3  ;;  %v833_v16 = vpop.permute.xlu0 %832 }
  0x9f   : > { %1490 = vmatprep.subr.bf16.mxu1 %v1561_v3 }
  0xa0   : > { %1420 = vmatmul.mubr.msk.bf16.vlgmr.msra.gmra.mrb[8].mxu0 %vm249_vm3, %v1418_v10  ;;  %v835_v18 = vpop.permute.xlu1 %834 }
  0xa1   : > { %604 = vmatpush1.bf16.msra.mxu0 %v595_v15  ;;  %635 = vmatprep.mubr.bf16.mxu0 %v1563_v6  ;;  %v839_v28 = vsel %vm838_vm7, %v833_v16, %v835_v18 }
  0xa2   : > { %1427 = vmatprep.subr.msk.bf16.mxu0 %vm253_vm1, %v715_v17  ;;  %v837_v22 = vpop.permute.xlu0 %836  ;;  %v845_v31 = vsel %vm253_vm1, %v839_v28, 0 }
  0xa3   : > { %v840_v25 = vsel %vm838_vm7, %v835_v18, %v837_v22  ;;  %v851_v29 = vsel %vm253_vm1, %v837_v22, 0 }
  0xa4   : > { %v958_v24 = vpop.permute.xlu1 %957 }
  0xa5   : > { %1487 = vmatmul.mubr.msk.bf16.vlgmr.msra.gmra.mrb[12].mxu1 %vm249_vm3, %v1422_v19 }
  0xa6   : > { %1491 = vmatpush3.bf16.msra.mxu1 %v726_v21  ;;  %1492 = vmatprep.mubr.msk.bf16.mxu1 %vm1562_vm0, %v1561_v3  ;;  %v960_v26 = vpop.permute.xlu0 %959 }
  0xa7   : > { %1496 = vmatprep.subr.bf16.mxu1 %v1561_v3  ;;  %v964_v36 = vsel %vm963_vm8, %v958_v24, %v960_v26 }
  0xa8   : > { %1424 = vmatmul.mubr.msk.bf16.vlgmr.msra.gmra.mrb[12].mxu0 %vm249_vm3, %v1422_v19  ;;  %v962_v30 = vpop.permute.xlu1 %961  ;;  %v970_v39 = vsel %vm253_vm1, %v964_v36, 0 }
  0xa9   : > { %729 = vmatpush1.bf16.msra.mxu0 %v720_v23  ;;  %760 = vmatprep.mubr.bf16.mxu0 %v1563_v6  ;;  %v965_v33 = vsel %vm963_vm8, %v960_v26, %v962_v30  ;;  %v976_v37 = vsel %vm253_vm1, %v962_v30, 0 }
  0xaa   : > { %1431 = vmatprep.subr.msk.bf16.mxu0 %vm253_vm1, %v840_v25  ;;  %v1083_v32 = vpop.permute.xlu0 %1082 }
  0xac   : > { %v1085_v34 = vpop.permute.xlu1 %1084 }
  0xad   : > { %1493 = vmatmul.mubr.msk.bf16.vlgmr.msra.gmra.mrb[16].mxu1 %vm249_vm3, %v1426_v27  ;;  %v1089_v43 = vsel %vm1088_vm9, %v1083_v32, %v1085_v34 }
  0xae   : > { %1497 = vmatpush3.bf16.msra.mxu1 %v851_v29  ;;  %1498 = vmatprep.mubr.msk.bf16.mxu1 %vm1562_vm0, %v1561_v3  ;;  %v1087_v38 = vpop.permute.xlu0 %1086  ;;  %v1095_v47 = vsel %vm253_vm1, %v1089_v43, 0 }
  0xaf   : > { %1502 = vmatprep.subr.bf16.mxu1 %v1561_v3  ;;  %v1090_v41 = vsel %vm1088_vm9, %v1085_v34, %v1087_v38  ;;  %v1101_v44 = vsel %vm253_vm1, %v1087_v38, 0 }
  0xb0   : > { %1428 = vmatmul.mubr.msk.bf16.vlgmr.msra.gmra.mrb[16].mxu0 %vm249_vm3, %v1426_v27  ;;  %v1208_v40 = vpop.permute.xlu1 %1207 }
  0xb1   : > { %854 = vmatpush1.bf16.msra.mxu0 %v845_v31  ;;  %885 = vmatprep.mubr.bf16.mxu0 %v1563_v6 }
  0xb2   : > { %1435 = vmatprep.subr.msk.bf16.mxu0 %vm253_vm1, %v965_v33  ;;  %v1210_v45 = vpop.permute.xlu0 %1209 }
  0xb3   : > { %v1214_v50 = vsel %vm1213_vm10, %v1208_v40, %v1210_v45 }
  0xb4   : > { %v1212_v46 = vpop.permute.xlu1 %1211  ;;  %v1220_v52 = vsel %vm253_vm1, %v1214_v50, 0 }
  0xb5   : > { %1499 = vmatmul.mubr.msk.bf16.vlgmr.msra.gmra.mrb[20].mxu1 %vm249_vm3, %v1430_v35  ;;  %v1215_v48 = vsel %vm1213_vm10, %v1210_v45, %v1212_v46  ;;  %v1226_v51 = vsel %vm253_vm1, %v1212_v46, 0 }
  0xb6   : > { %1503 = vmatpush3.bf16.msra.mxu1 %v976_v37  ;;  %1504 = vmatprep.mubr.msk.bf16.mxu1 %vm1562_vm0, %v1561_v3 }
  0xb7   : > { %1508 = vmatprep.subr.bf16.mxu1 %v1561_v3 }
  0xb8   : > { %1432 = vmatmul.mubr.msk.bf16.vlgmr.msra.gmra.mrb[20].mxu0 %vm249_vm3, %v1430_v35 }
  0xb9   : > { %979 = vmatpush1.bf16.msra.mxu0 %v970_v39  ;;  %1010 = vmatprep.mubr.bf16.mxu0 %v1563_v6 }
  0xba   : > { %1439 = vmatprep.subr.msk.bf16.mxu0 %vm253_vm1, %v1090_v41 }
  0xbd   : > { %1505 = vmatmul.mubr.msk.bf16.vlgmr.msra.gmra.mrb[24].mxu1 %vm249_vm3, %v1434_v42 }
  0xbe   : > { %1509 = vmatpush3.bf16.msra.mxu1 %v1101_v44  ;;  %1510 = vmatprep.mubr.msk.bf16.mxu1 %vm1562_vm0, %v1561_v3 }
  0xbf   : > { %1514 = vmatprep.subr.bf16.mxu1 %v1561_v3 }
  0xc0   : > { %1436 = vmatmul.mubr.msk.bf16.vlgmr.msra.gmra.mrb[24].mxu0 %vm249_vm3, %v1434_v42 }
  0xc1   : > { %1104 = vmatpush1.bf16.msra.mxu0 %v1095_v47  ;;  %1135 = vmatprep.mubr.bf16.mxu0 %v1563_v6 }
  0xc2   : > { %1443 = vmatprep.subr.msk.bf16.mxu0 %vm253_vm1, %v1215_v48 }
  0xc5   : > { %1511 = vmatmul.mubr.msk.bf16.vlgmr.msra.gmra.mrb[28].mxu1 %vm249_vm3, %v1438_v49 }
  0xc6   : > { %1515 = vmatpush3.bf16.msra.mxu1 %v1226_v51  ;;  %1516 = vmatprep.mubr.msk.bf16.mxu1 %vm1562_vm0, %v1561_v3 }
  0xc8   : > { %1440 = vmatmul.mubr.msk.bf16.vlgmr.msra.gmra.mrb[28].mxu0 %vm249_vm3, %v1438_v49 }
  0xc9   : > { %1229 = vmatpush1.bf16.msra.mxu0 %v1220_v52  ;;  %1260 = vmatprep.mubr.bf16.mxu0 %v1563_v6 }
  0xcd   : > { %1517 = vmatmul.mubr.msk.bf16.vlgmr.msra.gmra.mrb[32].mxu1 %vm249_vm3, %v1442_v53 }
  0xd0   : > { %1444 = vmatmul.mubr.msk.bf16.vlgmr.msra.gmra.mrb[32].mxu0 %vm249_vm3, %v1442_v53 }
 0x160   : > { %v338_v54 = vpop.f32.mrb[0].mxu1 }
 0x161   : > { %v1470_v55 = vpop.f32.mrb[1].mxu1 }
 0x162   : > { %v341_v56 = vpop.f32.mrb[2].mxu1 }
 0x163   : > { %v297_v57 = vpop.f32.mrb[0].mxu0  ;;  %v1471_v58 = vpop.f32.mrb[3].mxu1 }
 0x164   : > { %v299_v59 = vpop.f32.mrb[1].mxu0 }
 0x165   : > { %v301_v3 = vpop.f32.mrb[2].mxu0 }
 0x166   : > { %v302_v60 = vpop.f32.mrb[3].mxu0 }
 0x168   : > { %v431_v61 = vpop.f32.mrb[4].mxu1 }
 0x169   : > { %v432_v62 = vadd.f32 %v431_v61, %v338_v54  ;;  %v1476_v63 = vpop.f32.mrb[5].mxu1 }
 0x16a   : > { %v434_v6 = vpop.f32.mrb[6].mxu1 }
 0x16b   : > { %v390_v0 = vpop.f32.mrb[4].mxu0  ;;  %v1477_v1 = vpop.f32.mrb[7].mxu1 }
 0x16c   : > { %v391_v2 = vadd.f32 %v390_v0, %v297_v57  ;;  %v392_v4 = vpop.f32.mrb[5].mxu0 }
 0x16d   : > { %v393_v5 = vadd.f32 %v392_v4, %v299_v59  ;;  %v394_v7 = vpop.f32.mrb[6].mxu0 }
 0x16e   : > { %v395_v8 = vpop.f32.mrb[7].mxu0 }
 0x170   : > { %v553_v9 = vpop.f32.mrb[8].mxu1 }
 0x171   : > { %v561_v10 = vadd.f32 %v553_v9, %v432_v62  ;;  %v1482_v11 = vpop.f32.mrb[9].mxu1 }
 0x172   : > { %v556_v12 = vpop.f32.mrb[10].mxu1 }
 0x173   : > { %v512_v13 = vpop.f32.mrb[8].mxu0  ;;  %v1483_v14 = vpop.f32.mrb[11].mxu1 }
 0x174   : > { %v559_v15 = vadd.f32 %v512_v13, %v391_v2  ;;  %v514_v16 = vpop.f32.mrb[9].mxu0  ;;  %v1316_v12 = vpop.permute.xlu0 %1315 }
 0x175   : > { %v560_v17 = vadd.f32 %v514_v16, %v393_v5  ;;  %v516_v18 = vpop.f32.mrb[10].mxu0  ;;  %v1321_v16 = vld [vmem:[%s212_s28] sm:$0xff] }
 0x176   : > { %v517_v19 = vpop.f32.mrb[11].mxu0 }
 0x178   : > { %v678_v20 = vpop.f32.mrb[12].mxu1 }
 0x179   : > { %v686_v21 = vadd.f32 %v678_v20, %v561_v10  ;;  %v1488_v22 = vpop.f32.mrb[13].mxu1 }
 0x17a   : > { %v681_v23 = vpop.f32.mrb[14].mxu1 }
 0x17b   : > { %v637_v24 = vpop.f32.mrb[12].mxu0  ;;  %v1489_v25 = vpop.f32.mrb[15].mxu1 }
 0x17c   : > { %v684_v26 = vadd.f32 %v637_v24, %v559_v15  ;;  %v639_v27 = vpop.f32.mrb[13].mxu0  ;;  %v1322_v15 = vld [vmem:[%s212_s28 + $0x8] sm:$0xf]  ;;  %v1324_v25 = vcombine.high %v1321_v16, %v1321_v16 }
 0x17d   : > { %v685_v28 = vadd.f32 %v639_v27, %v560_v17  ;;  %v641_v29 = vpop.f32.mrb[14].mxu0 }
 0x17e   : > { %v642_v30 = vpop.f32.mrb[15].mxu0 }
 0x180   : > { %v803_v31 = vpop.f32.mrb[16].mxu1 }
 0x181   : > { %v811_v32 = vadd.f32 %v803_v31, %v686_v21  ;;  %v1494_v33 = vpop.f32.mrb[17].mxu1 }
 0x182   : > { %v806_v34 = vpop.f32.mrb[18].mxu1 }
 0x183   : > { %v762_v35 = vpop.f32.mrb[16].mxu0  ;;  %v1495_v36 = vpop.f32.mrb[19].mxu1 }
 0x184   : > { %v809_v37 = vadd.f32 %v762_v35, %v684_v26  ;;  %v764_v38 = vpop.f32.mrb[17].mxu0 }
 0x185   : > { %v810_v39 = vadd.f32 %v764_v38, %v685_v28  ;;  %v766_v40 = vpop.f32.mrb[18].mxu0 }
 0x186   : > { %v767_v41 = vpop.f32.mrb[19].mxu0 }
 0x188   : > { %v928_v42 = vpop.f32.mrb[20].mxu1 }
 0x189   : > { %v936_v43 = vadd.f32 %v928_v42, %v811_v32  ;;  %v1500_v44 = vpop.f32.mrb[21].mxu1 }
 0x18a   : > { %v931_v45 = vpop.f32.mrb[22].mxu1 }
 0x18b   : > { %v887_v46 = vpop.f32.mrb[20].mxu0  ;;  %v1501_v47 = vpop.f32.mrb[23].mxu1 }
 0x18c   : > { %v934_v48 = vadd.f32 %v887_v46, %v809_v37  ;;  %v889_v49 = vpop.f32.mrb[21].mxu0 }
 0x18d   : > { %v935_v50 = vadd.f32 %v889_v49, %v810_v39  ;;  %v891_v51 = vpop.f32.mrb[22].mxu0 }
 0x18e   : > { %v892_v52 = vpop.f32.mrb[23].mxu0 }
 0x190   : > { %v1053_v53 = vpop.f32.mrb[24].mxu1 }
 0x191   : > { %v1061_v54 = vadd.f32 %v1053_v53, %v936_v43  ;;  %v1506_v55 = vpop.f32.mrb[25].mxu1 }
 0x192   : > { %v1056_v56 = vpop.f32.mrb[26].mxu1 }
 0x193   : > { %v1012_v57 = vpop.f32.mrb[24].mxu0  ;;  %v1507_v58 = vpop.f32.mrb[27].mxu1 }
 0x194   : > { %v1059_v59 = vadd.f32 %v1012_v57, %v934_v48  ;;  %v1014_v3 = vpop.f32.mrb[25].mxu0 }
 0x195   : > { %v1060_v60 = vadd.f32 %v1014_v3, %v935_v50  ;;  %v1016_v61 = vpop.f32.mrb[26].mxu0 }
 0x196   : > { %v1017_v62 = vpop.f32.mrb[27].mxu0 }
 0x198   : > { %v1178_v63 = vpop.f32.mrb[28].mxu1 }
 0x199   : > { %v1186_v6 = vadd.f32 %v1178_v63, %v1061_v54  ;;  %v1512_v0 = vpop.f32.mrb[29].mxu1 }
 0x19a   : > { %v1181_v1 = vpop.f32.mrb[30].mxu1 }
 0x19b   : > { %v1137_v2 = vpop.f32.mrb[28].mxu0  ;;  %v1513_v4 = vpop.f32.mrb[31].mxu1 }
 0x19c   : > { %v1184_v5 = vadd.f32 %v1137_v2, %v1059_v59  ;;  %v1139_v7 = vpop.f32.mrb[29].mxu0 }
 0x19d   : > { %v1185_v8 = vadd.f32 %v1139_v7, %v1060_v60  ;;  %v1141_v9 = vpop.f32.mrb[30].mxu0 }
 0x19e   : > { %v1142_v10 = vpop.f32.mrb[31].mxu0 }
 0x1a0   : > { %v1303_v11 = vpop.f32.mrb[32].mxu1 }
 0x1a1   : > { %v1311_v13 = vadd.f32 %v1303_v11, %v1186_v6  ;;  %v1518_v14 = vpop.f32.mrb[33].mxu1 }
 0x1a2   : > { %v1306_v17 = vpop.f32.mrb[34].mxu1 }
 0x1a3   : > { %v1320_v18 = vadd.f32 %v1316_v12, %v1311_v13  ;;  %v1262_v19 = vpop.f32.mrb[32].mxu0  ;;  %v1519_v20 = vpop.f32.mrb[35].mxu1 }
 0x1a4   : > { %v1309_v21 = vadd.f32 %v1262_v19, %v1184_v5  ;;  %v1264_v22 = vpop.f32.mrb[33].mxu0 }
 0x1a5   : > { %v1328_v23 = vadd.f32 %v1322_v15, %v1320_v18  ;;  %v1310_v24 = vadd.f32 %v1264_v22, %v1185_v8  ;;  %v1266_v26 = vpop.f32.mrb[34].mxu0 }
 0x1a6   : > { %v1318_v27 = vadd.f32 %v1316_v12, %v1309_v21  ;;  %v1267_v28 = vpop.f32.mrb[35].mxu0 }
 0x1a7   : > { %1335 = vst.msk [vmem:[%s217_s30 + $0x8] sm:$0xf] %vm1334_vm11, %v1328_v23  ;;  %v1319_v29 = vadd.f32 %v1316_v12, %v1310_v24 }
 0x1a8   : > { %v1326_v30 = vadd.f32 %v1321_v16, %v1318_v27 }
 0x1a9   : > { %v1327_v31 = vadd.f32 %v1324_v25, %v1319_v29 }
 0x1ab   : > { %v1331_v32 = vcombine.low %v1326_v30, %v1327_v31 }
 0x1ad   : > { %1333 = vst [vmem:[%s217_s30] sm:$0xff] %v1331_v32 }
 0x1ae PF: > { %s14_s15 = sadd.s32 1, %s1558_s15  }
 0x1af   : > { %p11_p4 = scmp.ge.s32.totalorder %s14_s15, 4  }
 0x1b1   :  { %13 = sbr.rel (!%p11_p4) target bundleno = 1 (0x1), region = 77 }

// kernel: forward.27
= control target key start
LH: loop header
LB: loop body
LE: loop exit
PB: predicated region body
PF: predicated region fallthrough
CT: control target
= control target key end

     0   :  { %s1461_s20 = smov 0   ;;  %s1589_s0 = inlined_call_operand.vmem [shape: bf16[2,16,326], index: 0, kind: input, shape index: {}]   ;;  %s1590_s1 = inlined_call_operand.vmem [shape: bf16[9,4,16], index: 1, kind: input, shape index: {}]   ;;  %s1591_s2 = inlined_call_operand.vmem [shape: f32[4,1], index: 2, kind: input, shape index: {}]   ;;  %s1592_s3 = inlined_call_operand.vmem [shape: f32[1,288], index: 3, kind: input, shape index: {}]   ;;  %s1593_s4 = inlined_call_operand.<no memory space> [shape: f32[1], index: 4, kind: input, shape index: {}]   ;;  %s1594_s5 = inlined_call_operand.vmem [shape: f32[2,4,288], index: 5, kind: output, shape index: {}]  }
   0x1   :  { %10 = sst [smem:[#allocation2]] %s1593_s4 }
   0x2 LB: > { %s1271_s21 = sadd.s32 4294967295, %s1415_s20   ;;  %p1275_p0 = scmp.ge.s32.totalorder %s1415_s20, 1  ;;  %s1415_s20 = sphi %s1461_s20, %s16_s20  }
   0x3   : > { %p188_p1 = scmp.lt.s32.totalorder %s1415_s20, 3 }
   0x5   : > { %p189_p2 = pnand %p1275_p0, %p188_p1 }
   0x6   : > { %p216_p3 = scmp.lt.s32.totalorder (!%p189_p2), %s1271_s21, 1  ;;  %v1417_v0 = vmov (!%p189_p2), 0.0   ;;  %vm1418_vm0 = vmmov (!%p189_p2), 0   ;;  %v1419_v1 = vmov (!%p189_p2), 0   ;;  %s1420_s25 = smov (!%p189_p2), 127   ;;  %vm253_vm1 = vcmask (!%p189_p2), 1039360  }
   0x7   : > { %192 = sbr.rel (%p189_p2) target bundleno = 752 (0x2f0), region = 40  ;;  %1327 = vmatprep.subr.bf16.mxu1 (!%p189_p2), %v1417_v0  ;;  %1329 = vmatprep.mubr.msk.bf16.mxu1 (!%p189_p2), %vm1418_vm0, %v1417_v0  ;;  %s1421_s26 = smov (!%p189_p2), 126   ;;  %v1138_v5 = vld [vmem:[%s1591_s2] sm:$0xf] (!%p189_p2)  ;;  %vm259_vm2 = vcmask (!%p189_p2), 130048   ;;  %vm439_vm3 = vcmask (!%p189_p2), 1031168  }
   0x8   : > { %295 = vmatprep.mubr.bf16.mxu0 (!%p189_p2), %v1419_v1  ;;  %1402 = vset.pattern.permute.xlu0 (!%p189_p2), %v1419_v1  ;;  %s1422_s27 = smov (!%p189_p2), 110   ;;  %s1423_s28 = smov (!%p189_p2), 109   ;;  %v1278_v10 = vld [vmem:[%s1590_s1 + $0x2] sm:$0x3] (!%p189_p2)  ;;  %v231_v17 = vld [vmem:[%s1590_s1] sm:$0x3] (!%p189_p2) }
   0x9   : > { %s1424_s29 = smov (!%p189_p2), 108   ;;  %s1425_s30 = smov (!%p189_p2), 92   ;;  %vm540_vm4 = vcmask (!%p189_p2), 900096   ;;  %v1286_v23 = vld [vmem:[%s1590_s1 + $0x4] sm:$0x3] (!%p189_p2)  ;;  %vm641_vm5 = vcmask (!%p189_p2), 891904  }
   0xa   : > { %s1426_s6 = smov (!%p189_p2), 91   ;;  %s1427_s7 = smov (!%p189_p2), 90   ;;  %v1289_v29 = vld [vmem:[%s1590_s1 + $0x6] sm:$0x3] (!%p189_p2)  ;;  %vm742_vm6 = vcmask (!%p189_p2), 883712   ;;  %vm843_vm7 = vcmask (!%p189_p2), 752640  }
   0xb   : > { %v1292_v35 = vld [vmem:[%s1590_s1 + $0x8] sm:$0x3] (!%p189_p2)  ;;  %v1295_v41 = vld [vmem:[%s1590_s1 + $0xa] sm:$0x3] (!%p189_p2)  ;;  %vm944_vm8 = vcmask (!%p189_p2), 744448   ;;  %vm1045_vm9 = vcmask (!%p189_p2), 736256  }
   0xc   : > { %v1298_v46 = vld [vmem:[%s1590_s1 + $0xc] sm:$0x3] (!%p189_p2)  ;;  %v1301_v52 = vld [vmem:[%s1590_s1 + $0xe] sm:$0x3] (!%p189_p2)  ;;  %v1304_v54 = vld [vmem:[%s1590_s1 + $0x10] sm:$0x3] (!%p189_p2) }
   0xd   : > { %vm1167_vm10 = vcmask (!%p189_p2), 1043456   ;;  %vm1171_vm11 = vcmask (!%p189_p2), 257024  }
   0xe   : > { %s1596_s21 = smov (!%p216_p3, %s1271_s21), 1 }
   0xf   : > { %s1381_s4 = smul.u32 24, %s1596_s21 }
  0x11   : > { %s220_s24 = scalar_lea.vmem %s1589_s0, %s1381_s4 }
  0x12   : > { %v1403_v2 = vld [vmem:[%s220_s24 + $0x4] ss:$12 sps:$4 sm:$0xff]   ;;  %v1405_v3 = vld [vmem:[%s220_s24] ss:$12 sps:$4 sm:$0xff]   ;;  %v1406_v4 = vld [vmem:[%s220_s24 + $0x8] ss:$12 sps:$4 sm:$0xff]  }
  0x13   : > { %249 = vrot.lane.b32.xlu0 %v1403_v2, %s1420_s25  ;;  %247 = vrot.lane.b32.xlu1 %v1405_v3, %s1420_s25 }
  0x17   : > { %251 = vrot.lane.b32.xlu0 %v1406_v4, %s1420_s25  ;;  %435 = vrot.lane.b32.xlu1 %v1403_v2, %s1421_s26 }
  0x1b   : > { %437 = vrot.lane.b32.xlu0 %v1406_v4, %s1421_s26  ;;  %433 = vrot.lane.b32.xlu1 %v1405_v3, %s1421_s26 }
  0x1f   : > { %536 = vrot.lane.b32.xlu0 %v1403_v2, %s1422_s27  ;;  %538 = vrot.lane.b32.xlu1 %v1406_v4, %s1422_s27 }
  0x23   : > { %534 = vrot.lane.b32.xlu0 %v1405_v3, %s1422_s27  ;;  %637 = vrot.lane.b32.xlu1 %v1403_v2, %s1423_s28 }
  0x27   : > { %639 = vrot.lane.b32.xlu0 %v1406_v4, %s1423_s28  ;;  %635 = vrot.lane.b32.xlu1 %v1405_v3, %s1423_s28 }
  0x2b   : > { %738 = vrot.lane.b32.xlu0 %v1403_v2, %s1424_s29  ;;  %740 = vrot.lane.b32.xlu1 %v1406_v4, %s1424_s29 }
  0x2f   : > { %736 = vrot.lane.b32.xlu0 %v1405_v3, %s1424_s29  ;;  %839 = vrot.lane.b32.xlu1 %v1403_v2, %s1425_s30 }
  0x33   : > { %841 = vrot.lane.b32.xlu0 %v1406_v4, %s1425_s30  ;;  %837 = vrot.lane.b32.xlu1 %v1405_v3, %s1425_s30 }
  0x37   : > { %940 = vrot.lane.b32.xlu0 %v1403_v2, %s1426_s6  ;;  %942 = vrot.lane.b32.xlu1 %v1406_v4, %s1426_s6 }
  0x3b   : > { %938 = vrot.lane.b32.xlu0 %v1405_v3, %s1426_s6  ;;  %1041 = vrot.lane.b32.xlu1 %v1403_v2, %s1427_s7  ;;  %s1199_s6 = sld [smem:[#allocation2]] }
  0x3f   : > { %1043 = vrot.lane.b32.xlu0 %v1406_v4, %s1427_s7  ;;  %1039 = vrot.lane.b32.xlu1 %v1405_v3, %s1427_s7  ;;  %s1382_s7 = smul.u32 12, %s1596_s21 }
  0x41   : > { %s225_s10 = scalar_lea.vmem %s1594_s5, %s1382_s7 }
  0x43   : > { %1141 = vperm.xlu0 %1402, %v1138_v5  }
  0x85   : > { %v250_v6 = vpop.permute.xlu0 %249  ;;  %v248_v7 = vpop.permute.xlu1 %247 }
  0x86   : > { %v254_v12 = vsel %vm253_vm1, %v248_v7, %v250_v6 }
  0x89   : > { %v252_v8 = vpop.permute.xlu0 %251  ;;  %v436_v11 = vpop.permute.xlu1 %435 }
  0x8a   : > { %1328 = vmatpush3.bf16.msra.mxu1 %v252_v8  ;;  %v255_v9 = vsel %vm253_vm1, %v250_v6, %v252_v8 }
  0x8b   : > { %263 = vmatprep.subr.bf16.mxu0 %v255_v9  ;;  %1333 = vmatprep.subr.bf16.mxu1 %v1417_v0 }
  0x8c   : > { %264 = vmatpush1.bf16.msra.mxu0 %v254_v12 }
  0x8d   : > { %1330 = vmatmul.mubr.msk.bf16.vlgmr.msra.gmra.mrb[0].mxu1 %vm259_vm2, %v1278_v10  ;;  %350 = vmatprep.subr.bf16.mxu0 %v1403_v2  ;;  %v438_v13 = vpop.permute.xlu0 %437  ;;  %v434_v15 = vpop.permute.xlu1 %433 }
  0x8e   : > { %1334 = vmatpush3.bf16.msra.mxu1 %v1406_v4  ;;  %1335 = vmatprep.mubr.msk.bf16.mxu1 %vm1418_vm0, %v1417_v0  ;;  %v441_v14 = vsel %vm439_vm3, %v436_v11, %v438_v13  ;;  %v440_v19 = vsel %vm439_vm3, %v434_v15, %v436_v11 }
  0x8f   : > { %1282 = vmatmul.mubr.msk.bf16.vlgmr.msra.gmra.mrb[0].mxu0 %vm259_vm2, %v1278_v10  ;;  %1339 = vmatprep.subr.bf16.mxu1 %v1417_v0 }
  0x90   : > { %351 = vmatpush1.bf16.msra.mxu0 %v1405_v3  ;;  %382 = vmatprep.mubr.bf16.mxu0 %v1419_v1 }
  0x91   : > { %448 = vmatprep.subr.bf16.mxu0 %v441_v14  ;;  %v537_v16 = vpop.permute.xlu0 %536  ;;  %v539_v18 = vpop.permute.xlu1 %538 }
  0x92   : > { %v542_v20 = vsel %vm540_vm4, %v537_v16, %v539_v18 }
  0x95   : > { %1336 = vmatmul.mubr.msk.bf16.vlgmr.msra.gmra.mrb[4].mxu1 %vm259_vm2, %v231_v17  ;;  %v535_v21 = vpop.permute.xlu0 %534  ;;  %v638_v22 = vpop.permute.xlu1 %637 }
  0x96   : > { %1340 = vmatpush3.bf16.msra.mxu1 %v438_v13  ;;  %1341 = vmatprep.mubr.msk.bf16.mxu1 %vm1418_vm0, %v1417_v0  ;;  %v541_v25 = vsel %vm540_vm4, %v535_v21, %v537_v16 }
  0x97   : > { %1284 = vmatmul.mubr.msk.bf16.vlgmr.msra.gmra.mrb[4].mxu0 %vm259_vm2, %v231_v17  ;;  %1345 = vmatprep.subr.bf16.mxu1 %v1417_v0 }
  0x98   : > { %449 = vmatpush1.bf16.msra.mxu0 %v440_v19  ;;  %480 = vmatprep.mubr.bf16.mxu0 %v1419_v1 }
  0x99   : > { %549 = vmatprep.subr.bf16.mxu0 %v542_v20  ;;  %v640_v24 = vpop.permute.xlu0 %639  ;;  %v636_v27 = vpop.permute.xlu1 %635 }
  0x9a   : > { %v643_v26 = vsel %vm641_vm5, %v638_v22, %v640_v24  ;;  %v642_v31 = vsel %vm641_vm5, %v636_v27, %v638_v22 }
  0x9d   : > { %1342 = vmatmul.mubr.msk.bf16.vlgmr.msra.gmra.mrb[8].mxu1 %vm259_vm2, %v1286_v23  ;;  %v739_v28 = vpop.permute.xlu0 %738  ;;  %v741_v30 = vpop.permute.xlu1 %740 }
  0x9e   : > { %1346 = vmatpush3.bf16.msra.mxu1 %v539_v18  ;;  %1347 = vmatprep.mubr.msk.bf16.mxu1 %vm1418_vm0, %v1417_v0  ;;  %v744_v32 = vsel %vm742_vm6, %v739_v28, %v741_v30 }
  0x9f   : > { %1287 = vmatmul.mubr.msk.bf16.vlgmr.msra.gmra.mrb[8].mxu0 %vm259_vm2, %v1286_v23  ;;  %1351 = vmatprep.subr.bf16.mxu1 %v1417_v0 }
  0xa0   : > { %550 = vmatpush1.bf16.msra.mxu0 %v541_v25  ;;  %581 = vmatprep.mubr.bf16.mxu0 %v1419_v1 }
  0xa1   : > { %650 = vmatprep.subr.bf16.mxu0 %v643_v26  ;;  %v737_v33 = vpop.permute.xlu0 %736  ;;  %v840_v34 = vpop.permute.xlu1 %839 }
  0xa2   : > { %v743_v37 = vsel %vm742_vm6, %v737_v33, %v739_v28 }
  0xa5   : > { %1348 = vmatmul.mubr.msk.bf16.vlgmr.msra.gmra.mrb[12].mxu1 %vm259_vm2, %v1289_v29  ;;  %v842_v36 = vpop.permute.xlu0 %841  ;;  %v838_v39 = vpop.permute.xlu1 %837 }
  0xa6   : > { %1352 = vmatpush3.bf16.msra.mxu1 %v640_v24  ;;  %1353 = vmatprep.mubr.msk.bf16.mxu1 %vm1418_vm0, %v1417_v0  ;;  %v845_v38 = vsel %vm843_vm7, %v840_v34, %v842_v36  ;;  %v844_v43 = vsel %vm843_vm7, %v838_v39, %v840_v34 }
  0xa7   : > { %1290 = vmatmul.mubr.msk.bf16.vlgmr.msra.gmra.mrb[12].mxu0 %vm259_vm2, %v1289_v29  ;;  %1357 = vmatprep.subr.bf16.mxu1 %v1417_v0 }
  0xa8   : > { %651 = vmatpush1.bf16.msra.mxu0 %v642_v31  ;;  %682 = vmatprep.mubr.bf16.mxu0 %v1419_v1 }
  0xa9   : > { %751 = vmatprep.subr.bf16.mxu0 %v744_v32  ;;  %v941_v40 = vpop.permute.xlu0 %940  ;;  %v943_v42 = vpop.permute.xlu1 %942 }
  0xaa   : > { %v946_v44 = vsel %vm944_vm8, %v941_v40, %v943_v42 }
  0xad   : > { %1354 = vmatmul.mubr.msk.bf16.vlgmr.msra.gmra.mrb[16].mxu1 %vm259_vm2, %v1292_v35  ;;  %v939_v45 = vpop.permute.xlu0 %938  ;;  %v1042_v48 = vpop.permute.xlu1 %1041 }
  0xae   : > { %1358 = vmatpush3.bf16.msra.mxu1 %v741_v30  ;;  %1359 = vmatprep.mubr.msk.bf16.mxu1 %vm1418_vm0, %v1417_v0  ;;  %v945_v49 = vsel %vm944_vm8, %v939_v45, %v941_v40 }
  0xaf   : > { %1293 = vmatmul.mubr.msk.bf16.vlgmr.msra.gmra.mrb[16].mxu0 %vm259_vm2, %v1292_v35  ;;  %1363 = vmatprep.subr.bf16.mxu1 %v1417_v0 }
  0xb0   : > { %752 = vmatpush1.bf16.msra.mxu0 %v743_v37  ;;  %783 = vmatprep.mubr.bf16.mxu0 %v1419_v1 }
  0xb1   : > { %852 = vmatprep.subr.bf16.mxu0 %v845_v38  ;;  %v1044_v47 = vpop.permute.xlu0 %1043  ;;  %v1040_v51 = vpop.permute.xlu1 %1039 }
  0xb2   : > { %v1047_v50 = vsel %vm1045_vm9, %v1042_v48, %v1044_v47  ;;  %v1046_v53 = vsel %vm1045_vm9, %v1040_v51, %v1042_v48 }
  0xb5   : > { %1360 = vmatmul.mubr.msk.bf16.vlgmr.msra.gmra.mrb[20].mxu1 %vm259_vm2, %v1295_v41 }
  0xb6   : > { %1364 = vmatpush3.bf16.msra.mxu1 %v842_v36  ;;  %1365 = vmatprep.mubr.msk.bf16.mxu1 %vm1418_vm0, %v1417_v0 }
  0xb7   : > { %1296 = vmatmul.mubr.msk.bf16.vlgmr.msra.gmra.mrb[20].mxu0 %vm259_vm2, %v1295_v41  ;;  %1369 = vmatprep.subr.bf16.mxu1 %v1417_v0 }
  0xb8   : > { %853 = vmatpush1.bf16.msra.mxu0 %v844_v43  ;;  %884 = vmatprep.mubr.bf16.mxu0 %v1419_v1 }
  0xb9   : > { %953 = vmatprep.subr.bf16.mxu0 %v946_v44 }
  0xbd   : > { %1366 = vmatmul.mubr.msk.bf16.vlgmr.msra.gmra.mrb[24].mxu1 %vm259_vm2, %v1298_v46 }
  0xbe   : > { %1370 = vmatpush3.bf16.msra.mxu1 %v943_v42  ;;  %1371 = vmatprep.mubr.msk.bf16.mxu1 %vm1418_vm0, %v1417_v0 }
  0xbf   : > { %1299 = vmatmul.mubr.msk.bf16.vlgmr.msra.gmra.mrb[24].mxu0 %vm259_vm2, %v1298_v46  ;;  %1375 = vmatprep.subr.bf16.mxu1 %v1417_v0 }
  0xc0   : > { %954 = vmatpush1.bf16.msra.mxu0 %v945_v49  ;;  %985 = vmatprep.mubr.bf16.mxu0 %v1419_v1 }
  0xc1   : > { %1054 = vmatprep.subr.bf16.mxu0 %v1047_v50 }
  0xc5   : > { %1372 = vmatmul.mubr.msk.bf16.vlgmr.msra.gmra.mrb[28].mxu1 %vm259_vm2, %v1301_v52 }
  0xc6   : > { %1376 = vmatpush3.bf16.msra.mxu1 %v1044_v47  ;;  %1377 = vmatprep.mubr.msk.bf16.mxu1 %vm1418_vm0, %v1417_v0 }
  0xc7   : > { %1302 = vmatmul.mubr.msk.bf16.vlgmr.msra.gmra.mrb[28].mxu0 %vm259_vm2, %v1301_v52 }
  0xc8   : > { %1055 = vmatpush1.bf16.msra.mxu0 %v1046_v53  ;;  %1086 = vmatprep.mubr.bf16.mxu0 %v1419_v1 }
  0xcd   : > { %1378 = vmatmul.mubr.msk.bf16.vlgmr.msra.gmra.mrb[32].mxu1 %vm259_vm2, %v1304_v54 }
  0xcf   : > { %1305 = vmatmul.mubr.msk.bf16.vlgmr.msra.gmra.mrb[32].mxu0 %vm259_vm2, %v1304_v54 }
 0x160   : > { %v338_v55 = vpop.f32.mrb[0].mxu1 }
 0x161   : > { %v1331_v56 = vpop.f32.mrb[1].mxu1 }
 0x162   : > { %v297_v57 = vpop.f32.mrb[0].mxu0  ;;  %v341_v58 = vpop.f32.mrb[2].mxu1 }
 0x163   : > { %v299_v59 = vpop.f32.mrb[1].mxu0  ;;  %v1332_v60 = vpop.f32.mrb[3].mxu1 }
 0x164   : > { %v301_v61 = vpop.f32.mrb[2].mxu0 }
 0x165   : > { %v302_v62 = vpop.f32.mrb[3].mxu0 }
 0x168   : > { %v425_v63 = vpop.f32.mrb[4].mxu1 }
 0x169   : > { %v426_v0 = vadd.f32 %v425_v63, %v338_v55  ;;  %v1337_v2 = vpop.f32.mrb[5].mxu1 }
 0x16a   : > { %v384_v1 = vpop.f32.mrb[4].mxu0  ;;  %v428_v3 = vpop.f32.mrb[6].mxu1 }
 0x16b   : > { %v385_v4 = vadd.f32 %v384_v1, %v297_v57  ;;  %v386_v5 = vpop.f32.mrb[5].mxu0  ;;  %v1338_v6 = vpop.f32.mrb[7].mxu1  ;;  %v1149_v1 = vlaneseq }
 0x16c   : > { %v387_v7 = vadd.f32 %v386_v5, %v299_v59  ;;  %v388_v8 = vpop.f32.mrb[6].mxu0 }
 0x16d   : > { %v389_v9 = vpop.f32.mrb[7].mxu0 }
 0x170   : > { %v523_v10 = vpop.f32.mrb[8].mxu1 }
 0x171   : > { %v531_v11 = vadd.f32 %v523_v10, %v426_v0  ;;  %v1343_v12 = vpop.f32.mrb[9].mxu1 }
 0x172   : > { %v482_v13 = vpop.f32.mrb[8].mxu0  ;;  %v526_v14 = vpop.f32.mrb[10].mxu1  ;;  %v1150_v12 = vshrl.u32 %v1149_v1, 7 }
 0x173   : > { %v529_v15 = vadd.f32 %v482_v13, %v385_v4  ;;  %v484_v16 = vpop.f32.mrb[9].mxu0  ;;  %v1344_v17 = vpop.f32.mrb[11].mxu1 }
 0x174   : > { %v530_v18 = vadd.f32 %v484_v16, %v387_v7  ;;  %v486_v19 = vpop.f32.mrb[10].mxu0  ;;  %v1151_v14 = vsub.s32 0, %v1150_v12  ;;  %v1155_v16 = vsub.s32 1, %v1150_v12  ;;  %v1159_v17 = vsub.s32 2, %v1150_v12 }
 0x175   : > { %v487_v20 = vpop.f32.mrb[11].mxu0  ;;  %v1142_v19 = vpop.permute.xlu0 %1141 }
 0x176   : > { %v1147_v20 = vld [vmem:[%s1592_s3] sm:$0x7] }
 0x178   : > { %v624_v21 = vpop.f32.mrb[12].mxu1 }
 0x179   : > { %v632_v22 = vadd.f32 %v624_v21, %v531_v11  ;;  %v1349_v23 = vpop.f32.mrb[13].mxu1 }
 0x17a   : > { %v583_v24 = vpop.f32.mrb[12].mxu0  ;;  %v627_v25 = vpop.f32.mrb[14].mxu1 }
 0x17b   : > { %v630_v26 = vadd.f32 %v583_v24, %v529_v15  ;;  %v585_v27 = vpop.f32.mrb[13].mxu0  ;;  %v1350_v28 = vpop.f32.mrb[15].mxu1  ;;  %v1152_v25 = vrot.slane %v1147_v20, %v1151_v14 }
 0x17c   : > { %v631_v29 = vadd.f32 %v585_v27, %v530_v18  ;;  %v587_v30 = vpop.f32.mrb[14].mxu0 }
 0x17d   : > { %v588_v31 = vpop.f32.mrb[15].mxu0  ;;  %v1156_v30 = vrot.slane %v1147_v20, %v1155_v16 }
 0x180   : > { %v725_v32 = vpop.f32.mrb[16].mxu1 }
 0x181   : > { %v733_v33 = vadd.f32 %v725_v32, %v632_v22  ;;  %v1355_v34 = vpop.f32.mrb[17].mxu1  ;;  %v1160_v32 = vrot.slane %v1147_v20, %v1159_v17 }
 0x182   : > { %v684_v35 = vpop.f32.mrb[16].mxu0  ;;  %v728_v36 = vpop.f32.mrb[18].mxu1 }
 0x183   : > { %v731_v37 = vadd.f32 %v684_v35, %v630_v26  ;;  %v686_v38 = vpop.f32.mrb[17].mxu0  ;;  %v1356_v39 = vpop.f32.mrb[19].mxu1 }
 0x184   : > { %v732_v40 = vadd.f32 %v686_v38, %v631_v29  ;;  %v688_v41 = vpop.f32.mrb[18].mxu0 }
 0x185   : > { %v689_v42 = vpop.f32.mrb[19].mxu0 }
 0x188   : > { %v826_v43 = vpop.f32.mrb[20].mxu1 }
 0x189   : > { %v834_v44 = vadd.f32 %v826_v43, %v733_v33  ;;  %v1361_v45 = vpop.f32.mrb[21].mxu1 }
 0x18a   : > { %v785_v46 = vpop.f32.mrb[20].mxu0  ;;  %v829_v47 = vpop.f32.mrb[22].mxu1 }
 0x18b   : > { %v832_v48 = vadd.f32 %v785_v46, %v731_v37  ;;  %v787_v49 = vpop.f32.mrb[21].mxu0  ;;  %v1362_v50 = vpop.f32.mrb[23].mxu1 }
 0x18c   : > { %v833_v51 = vadd.f32 %v787_v49, %v732_v40  ;;  %v789_v52 = vpop.f32.mrb[22].mxu0 }
 0x18d   : > { %v790_v53 = vpop.f32.mrb[23].mxu0 }
 0x190   : > { %v927_v54 = vpop.f32.mrb[24].mxu1 }
 0x191   : > { %v935_v55 = vadd.f32 %v927_v54, %v834_v44  ;;  %v1367_v56 = vpop.f32.mrb[25].mxu1 }
 0x192   : > { %v886_v57 = vpop.f32.mrb[24].mxu0  ;;  %v930_v58 = vpop.f32.mrb[26].mxu1 }
 0x193   : > { %v933_v59 = vadd.f32 %v886_v57, %v832_v48  ;;  %v888_v60 = vpop.f32.mrb[25].mxu0  ;;  %v1368_v61 = vpop.f32.mrb[27].mxu1 }
 0x194   : > { %v934_v62 = vadd.f32 %v888_v60, %v833_v51  ;;  %v890_v63 = vpop.f32.mrb[26].mxu0 }
 0x195   : > { %v891_v0 = vpop.f32.mrb[27].mxu0 }
 0x196   : > { %v1203_v0 = vstv %s1199_s6 }
 0x198   : > { %v1028_v2 = vpop.f32.mrb[28].mxu1 }
 0x199   : > { %v1036_v3 = vadd.f32 %v1028_v2, %v935_v55  ;;  %v1373_v4 = vpop.f32.mrb[29].mxu1 }
 0x19a   : > { %v987_v5 = vpop.f32.mrb[28].mxu0  ;;  %v1031_v6 = vpop.f32.mrb[30].mxu1 }
 0x19b   : > { %v1034_v7 = vadd.f32 %v987_v5, %v933_v59  ;;  %v989_v8 = vpop.f32.mrb[29].mxu0  ;;  %v1374_v9 = vpop.f32.mrb[31].mxu1 }
 0x19c   : > { %v1035_v10 = vadd.f32 %v989_v8, %v934_v62  ;;  %v991_v11 = vpop.f32.mrb[30].mxu0 }
 0x19d   : > { %v992_v13 = vpop.f32.mrb[31].mxu0 }
 0x1a0   : > { %v1129_v15 = vpop.f32.mrb[32].mxu1 }
 0x1a1   : > { %v1137_v18 = vadd.f32 %v1129_v15, %v1036_v3  ;;  %v1379_v21 = vpop.f32.mrb[33].mxu1 }
 0x1a2   : > { %v1088_v22 = vpop.f32.mrb[32].mxu0  ;;  %v1132_v23 = vpop.f32.mrb[34].mxu1 }
 0x1a3   : > { %v1135_v24 = vadd.f32 %v1088_v22, %v1034_v7  ;;  %v1090_v26 = vpop.f32.mrb[33].mxu0  ;;  %v1380_v27 = vpop.f32.mrb[35].mxu1  ;;  %v1146_v28 = vadd.f32 %v1142_v19, %v1137_v18 }
 0x1a4   : > { %v1136_v29 = vadd.f32 %v1090_v26, %v1035_v10  ;;  %v1092_v31 = vpop.f32.mrb[34].mxu0 }
 0x1a5   : > { %v1144_v33 = vadd.f32 %v1142_v19, %v1135_v24  ;;  %v1093_v34 = vpop.f32.mrb[35].mxu0  ;;  %v1166_v38 = vmul.f32 %v1160_v32, %v1146_v28 }
 0x1a6   : > { %v1145_v35 = vadd.f32 %v1142_v19, %v1136_v29 }
 0x1a7   : > { %v1164_v36 = vmul.f32 %v1152_v25, %v1144_v33  ;;  %v1172_v42 = vsel %vm1171_vm11, %v1166_v38, 0.0 }
 0x1a8   : > { %v1165_v37 = vmul.f32 %v1156_v30, %v1145_v35 }
 0x1a9   : > { %v1168_v39 = vsel %vm1167_vm10, %v1164_v36, 0.0 }
 0x1aa   : > { %v1169_v40 = vsel %vm1167_vm10, %v1165_v37, 0.0 }
 0x1ab   : > { %v1170_v41 = vadd.f32 %v1169_v40, %v1168_v39 }
 0x1ad   : > { %v1173_v43 = vadd.f32 %v1172_v42, %v1170_v41 }
 0x1af   : > { %1174 = vadd.xlane.f32.xlu1 %v1173_v43 }
 0x23c   : > { %v1175_v44 = vpop.xlane.xlu1 %1174 }
 0x23d   : > { %v1176_v45 = vmul.f32 0.00390625, %v1175_v44 }
 0x23f   : > { %v1177_v46 = vsub.f32 %v1144_v33, %v1176_v45  ;;  %v1178_v47 = vsub.f32 %v1145_v35, %v1176_v45  ;;  %v1179_v48 = vsub.f32 %v1146_v28, %v1176_v45 }
 0x241   : > { %v1180_v49 = vmul.f32 %v1177_v46, %v1177_v46  ;;  %v1181_v50 = vmul.f32 %v1178_v47, %v1178_v47  ;;  %v1182_v51 = vmul.f32 %v1179_v48, %v1179_v48 }
 0x243   : > { %v1183_v52 = vmul.f32 %v1180_v49, %v1152_v25  ;;  %v1184_v53 = vmul.f32 %v1181_v50, %v1156_v30  ;;  %v1185_v54 = vmul.f32 %v1182_v51, %v1160_v32 }
 0x245   : > { %v1186_v55 = vsel %vm1167_vm10, %v1183_v52, 0.0  ;;  %v1187_v56 = vsel %vm1167_vm10, %v1184_v53, 0.0  ;;  %v1189_v58 = vsel %vm1171_vm11, %v1185_v54, 0.0 }
 0x246   : > { %v1188_v57 = vadd.f32 %v1187_v56, %v1186_v55 }
 0x248   : > { %v1190_v59 = vadd.f32 %v1189_v58, %v1188_v57 }
 0x24a   : > { %1191 = vadd.xlane.f32.xlu0 %v1190_v59 }
 0x2d7   : > { %v1192_v60 = vpop.xlane.xlu0 %1191 }
 0x2d8   : > { %v1193_v61 = vmul.f32 0.00390625, %v1192_v60 }
 0x2da   : > { %v1194_v62 = vadd.f32 1e-05, %v1193_v61 }
 0x2dc   : > { %1407 = vrsqrt.f32 %v1194_v62 }
 0x2e6   : > { %v1408_v63 = vpop.eup %1407 }
 0x2e7   : > { %v1196_v2 = vmul.f32 %v1408_v63, %v1177_v46  ;;  %v1197_v1 = vmul.f32 %v1408_v63, %v1178_v47  ;;  %v1198_v3 = vmul.f32 %v1408_v63, %v1179_v48 }
 0x2e9   : > { %vm1200_vm12 = vcmp.ge.f32.partialorder %v1196_v2, 0.0  ;;  %vm1201_vm13 = vcmp.ge.f32.partialorder %v1197_v1, 0.0  ;;  %vm1202_vm14 = vcmp.ge.f32.partialorder %v1198_v3, 0.0  ;;  %v1204_v4 = vmul.f32 %v1203_v0, %v1196_v2 }
 0x2ea   : > { %v1205_v5 = vmul.f32 %v1203_v0, %v1197_v1  ;;  %v1206_v6 = vmul.f32 %v1203_v0, %v1198_v3 }
 0x2eb   : > { %v1207_v7 = vsel %vm1200_vm12, %v1196_v2, %v1204_v4 }
 0x2ec   : > { %v1208_v8 = vsel %vm1201_vm13, %v1197_v1, %v1205_v5  ;;  %v1209_v9 = vsel %vm1202_vm14, %v1198_v3, %v1206_v6 }
 0x2ed   : > { %v1212_v10 = vcombine.low %v1207_v7, %v1208_v8  ;;  %1215 = vst.msk [vmem:[%s225_s10 + $0x8] sm:$0xf] %vm1171_vm11, %v1209_v9 }
 0x2ef   : > { %1214 = vst [vmem:[%s225_s10] sm:$0xff] %v1212_v10 }
 0x2f0 PF: > { %s16_s20 = sadd.s32 1, %s1415_s20  }
 0x2f1   : > { %p13_p4 = scmp.ge.s32.totalorder %s16_s20, 4  }
 0x2f3   :  { %15 = sbr.rel (!%p13_p4) target bundleno = 2 (0x2), region = 78 }

// kernel: forward.33
= control target key start
LH: loop header
LB: loop body
LE: loop exit
PB: predicated region body
PF: predicated region fallthrough
CT: control target
= control target key end

     0   :  { %9 = vsyncpa [#allocation3], 0  ;;  %s1370_s0 = inlined_call_operand.vmem [shape: f32[2,4,4,4], index: 0, kind: input, shape index: {}]   ;;  %s1371_s1 = inlined_call_operand.vmem [shape: f32[4,16], index: 1, kind: input, shape index: {}]   ;;  %s1372_s2 = inlined_call_operand.vmem [shape: f32[16,4], index: 2, kind: input, shape index: {}]   ;;  %s1373_s3 = inlined_call_operand.vmem [shape: f32[2,4,16,16], index: 3, kind: input, shape index: {}]   ;;  %s1374_s4 = inlined_call_operand.hbm [shape: f32[2,4,16,16], index: 4, kind: output, shape index: {}]  }
   0x1   :  { %11 = vsyncpa [#allocation3 + $0x1], 0  ;;  %s1201_s15 = smov 0   ;;  %s1203_s16 = smov 0  }
   0x2   :  { %s1205_s17 = smov 0   ;;  %s1207_s18 = smov 0  }
   0x3 LB: > { %s1222_s19 = sadd.s32 4294967295, %s1169_s18   ;;  %s952_s20 = sadd.s32 4294967294, %s1169_s18   ;;  %s1169_s18 = sphi %s1207_s18, %s1380_s18   ;;  %s1165_s17 = sphi %s1205_s17, %s1379_s17   ;;  %s1161_s16 = sphi %s1203_s16, %s1378_s16   ;;  %s1157_s15 = sphi %s1201_s15, %s1377_s15  }
   0x4   : > { %s1226_s21 = sadd.s32 1, %s1169_s18   ;;  %s118_s22 = sadd.s32 1, %s1165_s17 }
   0x5   : > { %s115_s23 = ssub.s32 %s1169_s18, %s1226_s21  ;;  %p128_p0 = scmp.ne.s32.totalorder %s1165_s17, %s1161_s16 }
   0x6   : > { %p116_p1 = scmp.eq.s32.totalorder %s115_s23, 0  ;;  %p129_p2 = scmp.eq.s32.totalorder %s1222_s19, 1 }
   0x7   : > { %p134_p3 = scmp.ne.s32.totalorder %s1161_s16, %s1157_s15  ;;  %p135_p4 = scmp.eq.s32.totalorder %s952_s20, 1 }
   0x8   : > { %s1237_s24 = scalar_select %p116_p1, %s1165_s17, %s118_s22  }
   0x9   : > { %p1239_p5 = por %p129_p2, %p128_p0  ;;  %p1243_p6 = por %p135_p4, %p134_p3 }
   0xa   : > { %p955_p7 = scmp.ge.s32.totalorder %s1169_s18, 1  ;;  %p175_p8 = scmp.lt.s32.totalorder %s1169_s18, 3 }
   0xc   : > { %p176_p9 = pnand %p955_p7, %p175_p8 }
   0xd   : > { %v216_v0 = vld [vmem:[%s1371_s1] sm:$0xf] (!%p176_p9)  ;;  %vm224_vm0 = vcmask (!%p176_p9), 1043456   ;;  %p206_p10 = scmp.lt.s32.totalorder (!%p176_p9), %s1222_s19, 1  ;;  %v1171_v1 = vmov (!%p176_p9), 0.0   ;;  %vm1172_vm1 = vmmov (!%p176_p9), 0  }
   0xe   : > { %179 = sbr.rel (%p176_p9) target bundleno = 482 (0x1e2), region = 36  ;;  %1024 = vmatprep.subr.mxu0 (!%p176_p9), %v1171_v1  ;;  %1026 = vmatprep.mubr.msk.f32.mxu0 (!%p176_p9), %vm1172_vm1, %v1171_v1  ;;  %vm220_vm2 = vcmask (!%p176_p9), 31744   ;;  %v217_v6 = vld [vmem:[%s1372_s2] sm:$0xff] (!%p176_p9)  ;;  %v218_v8 = vld [vmem:[%s1372_s2 + $0x8] sm:$0xff] (!%p176_p9)  ;;  %s203_s13 = sand.u32 (!%p176_p9), 1, %s1161_s16   ;;  %vm384_vm3 = vcmask (!%p176_p9), 130048  }
   0xf   : > { %1025 = vmatpush3.msk.msra.mxu0 (!%p176_p9), %vm224_vm0, %v216_v0  ;;  %1031 = vmatprep.mubr.msk.f32.mxu1 (!%p176_p9), %vm220_vm2, %v217_v6  ;;  %s956_s23 = sshll.u32 (!%p176_p9), %s203_s13, 6  ;;  %s1003_s28 = sshll.u32 (!%p176_p9), %s1222_s19, 10 }
  0x10   : > { %1034 = vmatprep.subr.mxu0 (!%p176_p9), %v1171_v1  ;;  %s205_s27 = scalar_lea.vmem (!%p176_p9), [#allocation2], %s956_s23  ;;  %s1321_s6 = scalar_lea.hbm (!%p176_p9), %s1374_s4, %s1003_s28 }
  0x11   : > { %s1173_s8 = smov (!%p176_p9), [#allocation2]  }
  0x12   : > { %s1111_s9 = sshll.u32 (!%p176_p9), %s1173_s8, 4  ;;  %s1112_s9 = int_to_ptr.vmem [resolvable:$false] %s1111_s9 }
  0x13   : > { %s1113_s10 = scalar_lea.vmem (!%p176_p9), %s1112_s9, 2048 }
  0x15   : > { %s1256_s29 = scalar_select %p206_p10, %s1222_s19, 1 }
  0x16   : > { %s1329_s19 = scalar_lea.sflag [#allocation3], %s203_s13 }
  0x17   : > { %s1001_s30 = sshll.u32 %s1256_s29, 4  ;;  %s1002_s12 = sshll.u32 %s1256_s29, 6 }
  0x18   : > { %s210_s7 = scalar_lea.vmem %s1370_s0, %s1001_s30  ;;  %s1299_s22 = scalar_lea.vmem %s1373_s3, %s1002_s12 }
  0x19   : > { %v219_v2 = vld [vmem:[%s210_s7] sm:$0xf]  ;;  %v966_v3 = vld [vmem:[%s210_s7 + $0x4] sm:$0xf]  ;;  %v976_v4 = vld [vmem:[%s210_s7 + $0x8] sm:$0xf] }
  0x1a   : > { %1027 = vmatmul.mubr.msk.f32.vlgmr.msra.gmra.mrb[0].mxu0 %vm220_vm2, %v219_v2  ;;  %v986_v5 = vld [vmem:[%s210_s7 + $0xc] sm:$0xf]  ;;  %v298_v17 = vld [vmem:[%s1299_s22] sm:$0xff]  ;;  %v970_v22 = vld [vmem:[%s1299_s22 + $0x18] sm:$0xff]  ;;  %s878_s29 = sshll.u32 %s205_s27, 4  ;;  %s1323_s29 = int_to_ptr.vmem [resolvable:$true] %s878_s29 }
  0x1b   : > { %1035 = vmatpush3.msk.msra.mxu0 %vm224_vm0, %v216_v0  ;;  %1036 = vmatprep.mubr.msk.f32.mxu0 %vm1172_vm1, %v1171_v1  ;;  %v299_v16 = vld [vmem:[%s1299_s22 + $0x8] sm:$0xff]  ;;  %v969_v23 = vld [vmem:[%s1299_s22 + $0x10] sm:$0xff]  ;;  %v979_v29 = vld [vmem:[%s1299_s22 + $0x20] sm:$0xff]  ;;  %s1107_s7 = scalar_lea.vmem %s1323_s29, 1024  ;;  %p1114_p0 = scmp.lt.s32.totalorder %s1323_s29, %s1112_s9 }
  0x1c   : > { %1044 = vmatprep.subr.mxu0 %v1171_v1  ;;  %v980_v28 = vld [vmem:[%s1299_s22 + $0x28] sm:$0xff]  ;;  %v990_v34 = vld [vmem:[%s1299_s22 + $0x38] sm:$0xff]  ;;  %v989_v35 = vld [vmem:[%s1299_s22 + $0x30] sm:$0xff]  ;;  %p1108_p11 = scmp.ne.s32.totalorder %s1323_s29, %s1107_s7  ;;  %p1115_p1 = scmp.lt.s32.totalorder %s1113_s10, %s1107_s7 }
  0x1e   : > { %1037 = vmatmul.mubr.msk.f32.vlgmr.msra.gmra.mrb[2].mxu0 %vm220_vm2, %v966_v3  ;;  %p1109_p12 = pnand %p1108_p11, %p1239_p5  ;;  %p1116_p2 = por %p1115_p1, %p1114_p0 }
  0x1f   : > { %1045 = vmatpush3.msk.msra.mxu0 %vm224_vm0, %v216_v0  ;;  %1046 = vmatprep.mubr.msk.f32.mxu0 %vm1172_vm1, %v1171_v1 }
  0x20   : > { %1054 = vmatprep.subr.mxu0 %v1171_v1  ;;  %p1110_p13 = pneg %p1109_p12 }
  0x22   : > { %1047 = vmatmul.mubr.msk.f32.vlgmr.msra.gmra.mrb[4].mxu0 %vm220_vm2, %v976_v4  ;;  %p1117_p3 = pnand %p1116_p2, %p1110_p13 }
  0x23   : > { %1055 = vmatpush3.msk.msra.mxu0 %vm224_vm0, %v216_v0  ;;  %1056 = vmatprep.mubr.msk.f32.mxu0 %vm1172_vm1, %v1171_v1 }
  0x26   : > { %1057 = vmatmul.mubr.msk.f32.vlgmr.msra.gmra.mrb[6].mxu0 %vm220_vm2, %v986_v5 }
  0xed   : > { %v294_v7 = vpop.f32.mrb[0].mxu0 }
  0xee   : > { %v1028_v9 = vpop.f32.mrb[1].mxu0  ;;  %1029 = vmatprep.subr.msk.mxu1 %vm224_vm0, %v294_v7 }
  0xef   : > { %1030 = vmatpush3.msk.msra.mxu1 %vm224_vm0, %v294_v7 }
  0xf0   : > { %1032 = vmatmul.mubr.msk.f32.vlgmr.msra.gmra.mrb[0].mxu1 %vm220_vm2, %v218_v8 }
  0xf1   : > { %v458_v10 = vpop.f32.mrb[2].mxu0  ;;  %1041 = vmatprep.mubr.msk.f32.mxu1 %vm220_vm2, %v217_v6 }
  0xf2   : > { %v1038_v11 = vpop.f32.mrb[3].mxu0  ;;  %1039 = vmatprep.subr.msk.mxu1 %vm224_vm0, %v458_v10 }
  0xf3   : > { %1040 = vmatpush3.msk.msra.mxu1 %vm224_vm0, %v458_v10 }
  0xf4   : > { %1042 = vmatmul.mubr.msk.f32.vlgmr.msra.gmra.mrb[2].mxu1 %vm220_vm2, %v218_v8 }
  0xf5   : > { %v617_v12 = vpop.f32.mrb[4].mxu0  ;;  %1051 = vmatprep.mubr.msk.f32.mxu1 %vm220_vm2, %v217_v6 }
  0xf6   : > { %v1048_v13 = vpop.f32.mrb[5].mxu0  ;;  %1049 = vmatprep.subr.msk.mxu1 %vm224_vm0, %v617_v12 }
  0xf7   : > { %1050 = vmatpush3.msk.msra.mxu1 %vm224_vm0, %v617_v12 }
  0xf8   : > { %1052 = vmatmul.mubr.msk.f32.vlgmr.msra.gmra.mrb[4].mxu1 %vm220_vm2, %v218_v8 }
  0xf9   : > { %v776_v14 = vpop.f32.mrb[6].mxu0  ;;  %1061 = vmatprep.mubr.msk.f32.mxu1 %vm220_vm2, %v217_v6 }
  0xfa   : > { %v1058_v15 = vpop.f32.mrb[7].mxu0  ;;  %1059 = vmatprep.subr.msk.mxu1 %vm224_vm0, %v776_v14 }
  0xfb   : > { %1060 = vmatpush3.msk.msra.mxu1 %vm224_vm0, %v776_v14 }
  0xfc   : > { %1062 = vmatmul.mubr.msk.f32.vlgmr.msra.gmra.mrb[6].mxu1 %vm220_vm2, %v218_v8 }
 0x1c3   : > { %v1033_v18 = vpop.f32.mrb[0].mxu1 }
 0x1c4   : > { %v381_v19 = vadd.f32 %v1033_v18, %v299_v16  ;;  %v375_v20 = vpop.f32.mrb[1].mxu1 }
 0x1c5   : > { %v376_v21 = vadd.f32 %v375_v20, %v298_v17 }
 0x1c6   : > { %386 = vst.msk [vmem:[%s205_s27 + $0x8] sm:$0xff] %vm384_vm3, %v381_v19 }
 0x1c7   : > { %385 = vst.msk [vmem:[%s205_s27] sm:$0xff] %vm384_vm3, %v376_v21  ;;  %v1043_v24 = vpop.f32.mrb[2].mxu1 }
 0x1c8   : > { %v540_v25 = vadd.f32 %v1043_v24, %v970_v22  ;;  %v534_v26 = vpop.f32.mrb[3].mxu1 }
 0x1c9   : > { %v535_v27 = vadd.f32 %v969_v23, %v534_v26 }
 0x1ca   : > { %975 = vst.msk [vmem:[%s205_s27 + $0x18] sm:$0xff] %vm384_vm3, %v540_v25 }
 0x1cb   : > { %974 = vst.msk [vmem:[%s205_s27 + $0x10] sm:$0xff] %vm384_vm3, %v535_v27  ;;  %v1053_v30 = vpop.f32.mrb[4].mxu1 }
 0x1cc   : > { %v699_v31 = vadd.f32 %v1053_v30, %v980_v28  ;;  %v693_v32 = vpop.f32.mrb[5].mxu1 }
 0x1cd   : > { %v694_v33 = vadd.f32 %v979_v29, %v693_v32 }
 0x1ce   : > { %985 = vst.msk [vmem:[%s205_s27 + $0x28] sm:$0xff] %vm384_vm3, %v699_v31 }
 0x1cf   : > { %984 = vst.msk [vmem:[%s205_s27 + $0x20] sm:$0xff] %vm384_vm3, %v694_v33  ;;  %v1063_v36 = vpop.f32.mrb[6].mxu1 }
 0x1d0   : > { %v858_v37 = vadd.f32 %v1063_v36, %v990_v34  ;;  %v852_v38 = vpop.f32.mrb[7].mxu1 }
 0x1d1   : > { %v853_v39 = vadd.f32 %v989_v35, %v852_v38 }
 0x1d2   : > { %995 = vst.msk [vmem:[%s205_s27 + $0x38] sm:$0xff] %vm384_vm3, %v858_v37 }
 0x1d3   : > { %994 = vst.msk [vmem:[%s205_s27 + $0x30] sm:$0xff] %vm384_vm3, %v853_v39 }
 0x1d4   : > { %1120 = shalt.err (!%p1117_p3)
}
 0x1d5   : > { %s1121_s11 = scalar_lea.hbm %s1321_s6, 1024  ;;  %s1125_s14 = scalar_lea.hbm %s1374_s4, 2048 }
 0x1d6   : > { %p1122_p4 = scmp.ne.s32.totalorder %s1321_s6, %s1121_s11  ;;  %p1126_p9 = scmp.lt.u32.totalorder %s1321_s6, %s1374_s4 }
 0x1d7   : > { %p1127_p10 = scmp.lt.u32.totalorder %s1125_s14, %s1121_s11  ;;  %p1129_p12 = scmp.lt.u32.totalorder %s1121_s11, %s1321_s6 }
 0x1d8   : > { %p1123_p7 = pnand %p1122_p4, %p1239_p5 }
 0x1d9   : > { %p1128_p11 = por %p1127_p10, %p1126_p9 }
 0x1da   : > { %p1124_p8 = pneg %p1123_p7 }
 0x1db   : > { %p1130_p13 = por %p1129_p12, %p1128_p11 }
 0x1dd   : > { %p1131_p0 = pnand %p1130_p13, %p1124_p8 }
 0x1df   : > { %1134 = shalt.err (!%p1131_p0)
}
 0x1e0   : > { %s1174_s23 = smov 128   ;;  %s1175_s27 = smov 8  }
 0x1e1   : > { %1064 = dma.vmem_to_hbm [thread:$0]  (%p1239_p5), %s1323_s29, 1024, %s1321_s6, %s1329_s19, %s1174_s23, %s1174_s23, %s1175_s27  }
 0x1e2 PF: > { %p1070_p1 = scmp.ge.s32.totalorder %s1169_s18, 2  ;;  %s893_s28 = sand.u32 1, %s1157_s15  }
 0x1e3   : > { %s894_s30 = scalar_lea.sflag [#allocation3], %s893_s28 }
 0x1e4   : > { %p1067_p2 = pnand %p1070_p1, %p1243_p6 }
 0x1e6   : > { %1152 = dma.done.wait (!%p1067_p2), %s894_s30, 1024  }
 0x1e7   : > { %1154 = vsyncadd (!%p1067_p2), %s894_s30, 4294966272  ;;  %p14_p3 = scmp.ge.s32.totalorder %s1226_s21, 4   ;;  %s1377_s15 = smov %s1161_s16 }
 0x1e8   : > { %s1378_s16 = smov %s1165_s17  ;;  %s1379_s17 = smov %s1237_s24 }
 0x1e9   : > { %s1380_s18 = smov %s1226_s21  ;;  %16 = sbr.rel (!%p14_p3) target bundleno = 3 (0x3), region = 83 }
 0x1f0   :  { %899 = vsyncpa [#allocation3], 1 }
 0x1f1   :  { %901 = vsyncpa [#allocation3 + $0x1], 1 }

// kernel: forward.29
= control target key start
LH: loop header
LB: loop body
LE: loop exit
PB: predicated region body
PF: predicated region fallthrough
CT: control target
= control target key end

     0   :  { %s1902_s17 = smov 0   ;;  %s2128_s0 = inlined_call_operand.vmem [shape: bf16[2,5,68], index: 0, kind: input, shape index: {}]   ;;  %s2129_s1 = inlined_call_operand.vmem [shape: bf16[25,8,5], index: 1, kind: input, shape index: {}]   ;;  %s2130_s2 = inlined_call_operand.vmem [shape: f32[8,1], index: 2, kind: input, shape index: {}]   ;;  %s2131_s3 = inlined_call_operand.<no memory space> [shape: f32[1], index: 3, kind: input, shape index: {}]   ;;  %s2132_s4 = inlined_call_operand.vmem [shape: f32[2,8,32], index: 4, kind: output, shape index: {}]  }
   0x1   :  { %9 = sst [smem:[#allocation2]] %s2131_s3 }
   0x2 LB: > { %s1541_s18 = sadd.s32 4294967295, %s1844_s17   ;;  %p1545_p0 = scmp.ge.s32.totalorder %s1844_s17, 1  ;;  %s1844_s17 = sphi %s1902_s17, %s15_s17  }
   0x3   : > { %p162_p1 = scmp.lt.s32.totalorder %s1844_s17, 3 }
   0x5   : > { %p163_p2 = pnand %p1545_p0, %p162_p1 }
   0x6   : > { %p186_p3 = scmp.lt.s32.totalorder (!%p163_p2), %s1541_s18, 1  ;;  %vm208_vm0 = vcmask (!%p163_p2), 1041408   ;;  %vm209_vm1 = vcmask (!%p163_p2), 1042432   ;;  %v1846_v0 = vmov (!%p163_p2), 65535   ;;  %v1847_v2 = vmov (!%p163_p2), 0.0   ;;  %s1849_s22 = smov (!%p163_p2), 127  }
   0x7   : > { %166 = sbr.rel (%p163_p2) target bundleno = 456 (0x1c8), region = 36  ;;  %v210_v1 = vsel (!%p163_p2), %vm208_vm0, 4294967295, %v1846_v0  ;;  %1650 = vmatprep.subr.bf16.mxu0 (!%p163_p2), %v1847_v2  ;;  %1656 = vmatprep.subr.bf16.mxu1 (!%p163_p2), %v1847_v2  ;;  %vm1848_vm2 = vmmov (!%p163_p2), 0   ;;  %s1850_s23 = smov (!%p163_p2), 125   ;;  %vm204_vm3 = vcmask (!%p163_p2), 39936   ;;  %v1474_v8 = vld [vmem:[%s2130_s2] sm:$0xff] (!%p163_p2) }
   0x8   : > { %1652 = vmatprep.mubr.msk.bf16.mxu0 (!%p163_p2), %vm1848_vm2, %v1847_v2  ;;  %1658 = vmatprep.mubr.msk.bf16.mxu1 (!%p163_p2), %vm1848_vm2, %v1847_v2  ;;  %v1919_v3 = vsel (!%p163_p2), %vm209_vm1, %v210_v1, 0  ;;  %v196_v7 = vld [vmem:[%s2129_s1] sm:$0xf] (!%p163_p2)  ;;  %s1851_s26 = smov (!%p163_p2), 126   ;;  %s1852_s27 = smov (!%p163_p2), 124   ;;  %v1873_v9 = vmov (!%p163_p2), 0  }
   0x9   : > { %s1853_s28 = smov (!%p163_p2), 120   ;;  %s1854_s29 = smov (!%p163_p2), 119   ;;  %1836 = vset.pattern.permute.xlu0 (!%p163_p2), %v1873_v9  ;;  %v1548_v14 = vld [vmem:[%s2129_s1 + $0x4] sm:$0xf] (!%p163_p2)  ;;  %v1554_v15 = vld [vmem:[%s2129_s1 + $0xc] sm:$0xf] (!%p163_p2) }
   0xa   : > { %s1855_s30 = smov (!%p163_p2), 118   ;;  %s1856_s5 = smov (!%p163_p2), 117   ;;  %v1552_v22 = vld [vmem:[%s2129_s1 + $0x8] sm:$0xf] (!%p163_p2)  ;;  %v1558_v23 = vld [vmem:[%s2129_s1 + $0x14] sm:$0xf] (!%p163_p2) }
   0xb   : > { %s1857_s6 = smov (!%p163_p2), 116   ;;  %s1858_s7 = smov (!%p163_p2), 112   ;;  %v1556_v29 = vld [vmem:[%s2129_s1 + $0x10] sm:$0xf] (!%p163_p2)  ;;  %v1562_v30 = vld [vmem:[%s2129_s1 + $0x1c] sm:$0xf] (!%p163_p2) }
   0xc   : > { %s1859_s8 = smov (!%p163_p2), 111   ;;  %s1860_s9 = smov (!%p163_p2), 110   ;;  %v1560_v35 = vld [vmem:[%s2129_s1 + $0x18] sm:$0xf] (!%p163_p2)  ;;  %v1566_v36 = vld [vmem:[%s2129_s1 + $0x24] sm:$0xf] (!%p163_p2) }
   0xd   : > { %s1861_s10 = smov (!%p163_p2), 109   ;;  %s1862_s11 = smov (!%p163_p2), 108   ;;  %v1564_v41 = vld [vmem:[%s2129_s1 + $0x20] sm:$0xf] (!%p163_p2)  ;;  %v1570_v42 = vld [vmem:[%s2129_s1 + $0x2c] sm:$0xf] (!%p163_p2) }
   0xe   : > { %s2134_s18 = smov (!%p186_p3, %s1541_s18), 1  ;;  %s1863_s12 = smov 104   ;;  %v1568_v47 = vld [vmem:[%s2129_s1 + $0x28] sm:$0xf]  ;;  %v1574_v48 = vld [vmem:[%s2129_s1 + $0x34] sm:$0xf] }
   0xf   : > { %s1546_s3 = sshll.u32 %s2134_s18, 2  ;;  %s1864_s13 = smov 103   ;;  %v1572_v53 = vld [vmem:[%s2129_s1 + $0x30] sm:$0xf]  ;;  %v1578_v54 = vld [vmem:[%s2129_s1 + $0x3c] sm:$0xf] }
  0x10   : > { %s189_s21 = scalar_lea.vmem %s2128_s0, %s1546_s3  ;;  %s1865_s14 = smov 102   ;;  %v1576_v59 = vld [vmem:[%s2129_s1 + $0x38] sm:$0xf]  ;;  %v1582_v60 = vld [vmem:[%s2129_s1 + $0x44] sm:$0xf]  ;;  %vm1486_vm4 = vcmask 261120  }
  0x11   : > { %v195_v4 = vld [vmem:[%s189_s21] sm:$0x7]  ;;  %s1866_s15 = smov 101   ;;  %s1867_s16 = smov 100   ;;  %v1584_v9 = vld [vmem:[%s2129_s1 + $0x48] sm:$0xf] }
  0x12   : > { %v1549_v5 = vcombine.low %v195_v4, %v195_v4  ;;  %v259_v6 = vand.u32 %v1919_v3, %v195_v4  ;;  %s1868_s3 = smov 96   ;;  %s1869_s19 = smov 95   ;;  %v1580_v1 = vld [vmem:[%s2129_s1 + $0x40] sm:$0xf]  ;;  %v1586_v4 = vld [vmem:[%s2129_s1 + $0x4c] sm:$0xf] }
  0x13   : > { %s1870_s20 = smov 94   ;;  %s1871_s21 = smov 93  }
  0x14   : > { %202 = vrot.lane.b32.xlu0 %v1549_v5, %s1849_s22  ;;  %354 = vrot.lane.b32.xlu1 %v1549_v5, %s1850_s23  ;;  %s1872_s22 = smov 92   ;;  %s1481_s23 = sld [smem:[#allocation2]] }
  0x15   : > { %1657 = vmatpush3.bf16.msra.mxu1 %v259_v6  ;;  %s1547_s24 = sshll.u32 %s2134_s18, 3 }
  0x16   : > { %1668 = vmatprep.subr.bf16.mxu1 %v1847_v2 }
  0x18   : > { %303 = vrot.lane.b32.xlu0 %v1549_v5, %s1851_s26  ;;  %405 = vrot.lane.b32.xlu1 %v1549_v5, %s1852_s27  ;;  %s193_s27 = scalar_lea.vmem %s2132_s4, %s1547_s24 }
  0x19   : > { %1659 = vmatmul.mubr.msk.bf16.vlgmr.msra.gmra.mrb[0].mxu1 %vm204_vm3, %v196_v7 }
  0x1a   : > { %1670 = vmatprep.mubr.msk.bf16.mxu1 %vm1848_vm2, %v1847_v2 }
  0x1c   : > { %456 = vrot.lane.b32.xlu0 %v1549_v5, %s1853_s28  ;;  %507 = vrot.lane.b32.xlu1 %v1549_v5, %s1854_s29 }
  0x20   : > { %558 = vrot.lane.b32.xlu0 %v1549_v5, %s1855_s30  ;;  %609 = vrot.lane.b32.xlu1 %v1549_v5, %s1856_s5 }
  0x24   : > { %660 = vrot.lane.b32.xlu0 %v1549_v5, %s1857_s6  ;;  %711 = vrot.lane.b32.xlu1 %v1549_v5, %s1858_s7 }
  0x28   : > { %762 = vrot.lane.b32.xlu0 %v1549_v5, %s1859_s8  ;;  %813 = vrot.lane.b32.xlu1 %v1549_v5, %s1860_s9 }
  0x2c   : > { %864 = vrot.lane.b32.xlu0 %v1549_v5, %s1861_s10  ;;  %915 = vrot.lane.b32.xlu1 %v1549_v5, %s1862_s11 }
  0x30   : > { %966 = vrot.lane.b32.xlu0 %v1549_v5, %s1863_s12  ;;  %1017 = vrot.lane.b32.xlu1 %v1549_v5, %s1864_s13 }
  0x34   : > { %1068 = vrot.lane.b32.xlu0 %v1549_v5, %s1865_s14  ;;  %1119 = vrot.lane.b32.xlu1 %v1549_v5, %s1866_s15 }
  0x38   : > { %1170 = vrot.lane.b32.xlu0 %v1549_v5, %s1867_s16  ;;  %1221 = vrot.lane.b32.xlu1 %v1549_v5, %s1868_s3 }
  0x3c   : > { %1272 = vrot.lane.b32.xlu0 %v1549_v5, %s1869_s19  ;;  %1323 = vrot.lane.b32.xlu1 %v1549_v5, %s1870_s20 }
  0x40   : > { %1374 = vrot.lane.b32.xlu0 %v1549_v5, %s1871_s21  ;;  %1425 = vrot.lane.b32.xlu1 %v1549_v5, %s1872_s22 }
  0x44   : > { %1477 = vperm.xlu0 %1836, %v1474_v8  }
  0x86   : > { %v203_v10 = vpop.permute.xlu0 %202  ;;  %v355_v11 = vpop.permute.xlu1 %354 }
  0x87   : > { %v213_v12 = vand.u32 %v1919_v3, %v203_v10  ;;  %v360_v13 = vand.u32 %v355_v11, %v1919_v3  ;;  %v1590_v10 = vld [vmem:[%s2129_s1 + $0x54] sm:$0xf] }
  0x89   : > { %1651 = vmatpush3.bf16.msra.mxu0 %v213_v12  ;;  %1669 = vmatpush3.bf16.msra.mxu1 %v360_v13 }
  0x8a   : > { %v304_v16 = vpop.permute.xlu0 %303  ;;  %1662 = vmatprep.subr.bf16.mxu0 %v1847_v2  ;;  %1680 = vmatprep.subr.bf16.mxu1 %v1847_v2  ;;  %v406_v18 = vpop.permute.xlu1 %405 }
  0x8b   : > { %v309_v17 = vand.u32 %v304_v16, %v1919_v3  ;;  %v411_v21 = vand.u32 %v406_v18, %v1919_v3  ;;  %v1592_v18 = vld [vmem:[%s2129_s1 + $0x58] sm:$0xf] }
  0x8c   : > { %1653 = vmatmul.mubr.msk.bf16.vlgmr.msra.gmra.mrb[0].mxu0 %vm204_vm3, %v1548_v14  ;;  %1671 = vmatmul.mubr.msk.bf16.vlgmr.msra.gmra.mrb[4].mxu1 %vm204_vm3, %v1554_v15  ;;  %v1588_v14 = vld [vmem:[%s2129_s1 + $0x50] sm:$0xf]  ;;  %v1594_v15 = vld [vmem:[%s2129_s1 + $0x5c] sm:$0xf] }
  0x8d   : > { %1663 = vmatpush3.bf16.msra.mxu0 %v309_v17  ;;  %1664 = vmatprep.mubr.msk.bf16.mxu0 %vm1848_vm2, %v1847_v2 }
  0x8e   : > { %1674 = vmatprep.subr.bf16.mxu0 %v1847_v2  ;;  %v457_v19 = vpop.permute.xlu0 %456  ;;  %1682 = vmatprep.mubr.msk.bf16.mxu1 %vm1848_vm2, %v1847_v2  ;;  %v508_v26 = vpop.permute.xlu1 %507 }
  0x8f   : > { %v462_v20 = vand.u32 %v457_v19, %v1919_v3  ;;  %v513_v28 = vand.u32 %v508_v26, %v1919_v3  ;;  %v1596_v19 = vld [vmem:[%s2129_s1 + $0x60] sm:$0xf] }
  0x91   : > { %1681 = vmatpush3.bf16.msra.mxu1 %v462_v20 }
  0x92   : > { %v559_v24 = vpop.permute.xlu0 %558  ;;  %1692 = vmatprep.subr.bf16.mxu1 %v1847_v2  ;;  %v610_v32 = vpop.permute.xlu1 %609 }
  0x93   : > { %v564_v25 = vand.u32 %v559_v24, %v1919_v3  ;;  %v615_v34 = vand.u32 %v610_v32, %v1919_v3 }
  0x94   : > { %1665 = vmatmul.mubr.msk.bf16.vlgmr.msra.gmra.mrb[4].mxu0 %vm204_vm3, %v1552_v22  ;;  %1683 = vmatmul.mubr.msk.bf16.vlgmr.msra.gmra.mrb[8].mxu1 %vm204_vm3, %v1558_v23 }
  0x95   : > { %1675 = vmatpush3.bf16.msra.mxu0 %v411_v21  ;;  %1676 = vmatprep.mubr.msk.bf16.mxu0 %vm1848_vm2, %v1847_v2 }
  0x96   : > { %1686 = vmatprep.subr.bf16.mxu0 %v1847_v2  ;;  %1693 = vmatpush3.bf16.msra.mxu1 %v564_v25  ;;  %v661_v27 = vpop.permute.xlu0 %660  ;;  %v712_v38 = vpop.permute.xlu1 %711 }
  0x97   : > { %1694 = vmatprep.mubr.msk.bf16.mxu1 %vm1848_vm2, %v1847_v2  ;;  %1704 = vmatprep.subr.bf16.mxu1 %v1847_v2  ;;  %v666_v31 = vand.u32 %v661_v27, %v1919_v3  ;;  %v717_v40 = vand.u32 %v712_v38, %v1919_v3 }
  0x9a   : > { %v763_v33 = vpop.permute.xlu0 %762  ;;  %v814_v44 = vpop.permute.xlu1 %813 }
  0x9b   : > { %v768_v37 = vand.u32 %v763_v33, %v1919_v3  ;;  %v819_v46 = vand.u32 %v814_v44, %v1919_v3 }
  0x9c   : > { %1677 = vmatmul.mubr.msk.bf16.vlgmr.msra.gmra.mrb[8].mxu0 %vm204_vm3, %v1556_v29  ;;  %1695 = vmatmul.mubr.msk.bf16.vlgmr.msra.gmra.mrb[12].mxu1 %vm204_vm3, %v1562_v30 }
  0x9d   : > { %1687 = vmatpush3.bf16.msra.mxu0 %v513_v28  ;;  %1688 = vmatprep.mubr.msk.bf16.mxu0 %vm1848_vm2, %v1847_v2 }
  0x9e   : > { %1698 = vmatprep.subr.bf16.mxu0 %v1847_v2  ;;  %1705 = vmatpush3.bf16.msra.mxu1 %v666_v31  ;;  %v865_v39 = vpop.permute.xlu0 %864  ;;  %v916_v50 = vpop.permute.xlu1 %915 }
  0x9f   : > { %1706 = vmatprep.mubr.msk.bf16.mxu1 %vm1848_vm2, %v1847_v2  ;;  %1716 = vmatprep.subr.bf16.mxu1 %v1847_v2  ;;  %v870_v43 = vand.u32 %v865_v39, %v1919_v3  ;;  %v921_v52 = vand.u32 %v916_v50, %v1919_v3 }
  0xa2   : > { %v967_v45 = vpop.permute.xlu0 %966  ;;  %v1018_v56 = vpop.permute.xlu1 %1017 }
  0xa3   : > { %v972_v49 = vand.u32 %v967_v45, %v1919_v3  ;;  %v1023_v58 = vand.u32 %v1018_v56, %v1919_v3 }
  0xa4   : > { %1689 = vmatmul.mubr.msk.bf16.vlgmr.msra.gmra.mrb[12].mxu0 %vm204_vm3, %v1560_v35  ;;  %1707 = vmatmul.mubr.msk.bf16.vlgmr.msra.gmra.mrb[16].mxu1 %vm204_vm3, %v1566_v36 }
  0xa5   : > { %1699 = vmatpush3.bf16.msra.mxu0 %v615_v34  ;;  %1700 = vmatprep.mubr.msk.bf16.mxu0 %vm1848_vm2, %v1847_v2 }
  0xa6   : > { %1710 = vmatprep.subr.bf16.mxu0 %v1847_v2  ;;  %1717 = vmatpush3.bf16.msra.mxu1 %v768_v37  ;;  %v1069_v51 = vpop.permute.xlu0 %1068  ;;  %v1120_v62 = vpop.permute.xlu1 %1119 }
  0xa7   : > { %1718 = vmatprep.mubr.msk.bf16.mxu1 %vm1848_vm2, %v1847_v2  ;;  %1728 = vmatprep.subr.bf16.mxu1 %v1847_v2  ;;  %v1074_v55 = vand.u32 %v1069_v51, %v1919_v3  ;;  %v1125_v0 = vand.u32 %v1120_v62, %v1919_v3 }
  0xaa   : > { %v1171_v57 = vpop.permute.xlu0 %1170  ;;  %v1222_v6 = vpop.permute.xlu1 %1221 }
  0xab   : > { %v1176_v61 = vand.u32 %v1171_v57, %v1919_v3  ;;  %v1227_v8 = vand.u32 %v1222_v6, %v1919_v3 }
  0xac   : > { %1701 = vmatmul.mubr.msk.bf16.vlgmr.msra.gmra.mrb[16].mxu0 %vm204_vm3, %v1564_v41  ;;  %1719 = vmatmul.mubr.msk.bf16.vlgmr.msra.gmra.mrb[20].mxu1 %vm204_vm3, %v1570_v42 }
  0xad   : > { %1711 = vmatpush3.bf16.msra.mxu0 %v717_v40  ;;  %1712 = vmatprep.mubr.msk.bf16.mxu0 %vm1848_vm2, %v1847_v2 }
  0xae   : > { %1722 = vmatprep.subr.bf16.mxu0 %v1847_v2  ;;  %1729 = vmatpush3.bf16.msra.mxu1 %v870_v43  ;;  %v1273_v63 = vpop.permute.xlu0 %1272  ;;  %v1324_v12 = vpop.permute.xlu1 %1323 }
  0xaf   : > { %1730 = vmatprep.mubr.msk.bf16.mxu1 %vm1848_vm2, %v1847_v2  ;;  %1740 = vmatprep.subr.bf16.mxu1 %v1847_v2  ;;  %v1278_v5 = vand.u32 %v1273_v63, %v1919_v3  ;;  %v1329_v13 = vand.u32 %v1324_v12, %v1919_v3 }
  0xb2   : > { %v1375_v7 = vpop.permute.xlu0 %1374  ;;  %v1426_v16 = vpop.permute.xlu1 %1425 }
  0xb3   : > { %v1380_v11 = vand.u32 %v1375_v7, %v1919_v3  ;;  %v1431_v17 = vand.u32 %v1426_v16, %v1919_v3 }
  0xb4   : > { %1713 = vmatmul.mubr.msk.bf16.vlgmr.msra.gmra.mrb[20].mxu0 %vm204_vm3, %v1568_v47  ;;  %1731 = vmatmul.mubr.msk.bf16.vlgmr.msra.gmra.mrb[24].mxu1 %vm204_vm3, %v1574_v48 }
  0xb5   : > { %1723 = vmatpush3.bf16.msra.mxu0 %v819_v46  ;;  %1724 = vmatprep.mubr.msk.bf16.mxu0 %vm1848_vm2, %v1847_v2 }
  0xb6   : > { %1734 = vmatprep.subr.bf16.mxu0 %v1847_v2  ;;  %1741 = vmatpush3.bf16.msra.mxu1 %v972_v49 }
  0xb7   : > { %1742 = vmatprep.mubr.msk.bf16.mxu1 %vm1848_vm2, %v1847_v2  ;;  %1752 = vmatprep.subr.bf16.mxu1 %v1847_v2 }
  0xbc   : > { %1725 = vmatmul.mubr.msk.bf16.vlgmr.msra.gmra.mrb[24].mxu0 %vm204_vm3, %v1572_v53  ;;  %1743 = vmatmul.mubr.msk.bf16.vlgmr.msra.gmra.mrb[28].mxu1 %vm204_vm3, %v1578_v54 }
  0xbd   : > { %1735 = vmatpush3.bf16.msra.mxu0 %v921_v52  ;;  %1736 = vmatprep.mubr.msk.bf16.mxu0 %vm1848_vm2, %v1847_v2 }
  0xbe   : > { %1746 = vmatprep.subr.bf16.mxu0 %v1847_v2  ;;  %1753 = vmatpush3.bf16.msra.mxu1 %v1074_v55 }
  0xbf   : > { %1754 = vmatprep.mubr.msk.bf16.mxu1 %vm1848_vm2, %v1847_v2  ;;  %1764 = vmatprep.subr.bf16.mxu1 %v1847_v2 }
  0xc4   : > { %1737 = vmatmul.mubr.msk.bf16.vlgmr.msra.gmra.mrb[28].mxu0 %vm204_vm3, %v1576_v59  ;;  %1755 = vmatmul.mubr.msk.bf16.vlgmr.msra.gmra.mrb[32].mxu1 %vm204_vm3, %v1582_v60 }
  0xc5   : > { %1747 = vmatpush3.bf16.msra.mxu0 %v1023_v58  ;;  %1748 = vmatprep.mubr.msk.bf16.mxu0 %vm1848_vm2, %v1847_v2 }
  0xc6   : > { %1758 = vmatprep.subr.bf16.mxu0 %v1847_v2  ;;  %1765 = vmatpush3.bf16.msra.mxu1 %v1176_v61 }
  0xc7   : > { %1766 = vmatprep.mubr.msk.bf16.mxu1 %vm1848_vm2, %v1847_v2  ;;  %1776 = vmatprep.subr.bf16.mxu1 %v1847_v2 }
  0xcc   : > { %1749 = vmatmul.mubr.msk.bf16.vlgmr.msra.gmra.mrb[32].mxu0 %vm204_vm3, %v1580_v1  ;;  %1767 = vmatmul.mubr.msk.bf16.vlgmr.msra.gmra.mrb[36].mxu1 %vm204_vm3, %v1586_v4 }
  0xcd   : > { %1759 = vmatpush3.bf16.msra.mxu0 %v1125_v0  ;;  %1760 = vmatprep.mubr.msk.bf16.mxu0 %vm1848_vm2, %v1847_v2 }
  0xce   : > { %1770 = vmatprep.subr.bf16.mxu0 %v1847_v2  ;;  %1777 = vmatpush3.bf16.msra.mxu1 %v1278_v5 }
  0xcf   : > { %1778 = vmatprep.mubr.msk.bf16.mxu1 %vm1848_vm2, %v1847_v2  ;;  %1788 = vmatprep.subr.bf16.mxu1 %v1847_v2 }
  0xd4   : > { %1761 = vmatmul.mubr.msk.bf16.vlgmr.msra.gmra.mrb[36].mxu0 %vm204_vm3, %v1584_v9  ;;  %1779 = vmatmul.mubr.msk.bf16.vlgmr.msra.gmra.mrb[40].mxu1 %vm204_vm3, %v1590_v10 }
  0xd5   : > { %1771 = vmatpush3.bf16.msra.mxu0 %v1227_v8  ;;  %1772 = vmatprep.mubr.msk.bf16.mxu0 %vm1848_vm2, %v1847_v2 }
  0xd6   : > { %1782 = vmatprep.subr.bf16.mxu0 %v1847_v2  ;;  %1789 = vmatpush3.bf16.msra.mxu1 %v1380_v11 }
  0xd7   : > { %1790 = vmatprep.mubr.msk.bf16.mxu1 %vm1848_vm2, %v1847_v2 }
  0xdc   : > { %1773 = vmatmul.mubr.msk.bf16.vlgmr.msra.gmra.mrb[40].mxu0 %vm204_vm3, %v1588_v14  ;;  %1791 = vmatmul.mubr.msk.bf16.vlgmr.msra.gmra.mrb[44].mxu1 %vm204_vm3, %v1594_v15 }
  0xdd   : > { %1783 = vmatpush3.bf16.msra.mxu0 %v1329_v13  ;;  %1784 = vmatprep.mubr.msk.bf16.mxu0 %vm1848_vm2, %v1847_v2 }
  0xde   : > { %1794 = vmatprep.subr.bf16.mxu0 %v1847_v2 }
  0xe4   : > { %1785 = vmatmul.mubr.msk.bf16.vlgmr.msra.gmra.mrb[44].mxu0 %vm204_vm3, %v1592_v18 }
  0xe5   : > { %1795 = vmatpush3.bf16.msra.mxu0 %v1431_v17  ;;  %1796 = vmatprep.mubr.msk.bf16.mxu0 %vm1848_vm2, %v1847_v2 }
  0xec   : > { %1797 = vmatmul.mubr.msk.bf16.vlgmr.msra.gmra.mrb[48].mxu0 %vm204_vm3, %v1596_v19  ;;  %v295_v20 = vpop.f32.mrb[0].mxu1 }
  0xed   : > { %v1660_v21 = vpop.f32.mrb[1].mxu1 }
  0xee   : > { %v298_v22 = vpop.f32.mrb[2].mxu1 }
  0xef   : > { %v1661_v3 = vpop.f32.mrb[3].mxu1 }
 0x15f   : > { %v249_v23 = vpop.f32.mrb[0].mxu0  ;;  %v396_v24 = vpop.f32.mrb[4].mxu1 }
 0x160   : > { %v1654_v25 = vpop.f32.mrb[1].mxu0  ;;  %v296_v26 = vadd.f32 %v295_v20, %v249_v23  ;;  %v1672_v27 = vpop.f32.mrb[5].mxu1 }
 0x161   : > { %v252_v28 = vpop.f32.mrb[2].mxu0  ;;  %v399_v29 = vpop.f32.mrb[6].mxu1 }
 0x162   : > { %v1655_v30 = vpop.f32.mrb[3].mxu0  ;;  %v1673_v31 = vpop.f32.mrb[7].mxu1 }
 0x167   : > { %v345_v2 = vpop.f32.mrb[4].mxu0  ;;  %v498_v32 = vpop.f32.mrb[8].mxu1 }
 0x168   : > { %v351_v33 = vadd.f32 %v345_v2, %v296_v26  ;;  %v1666_v34 = vpop.f32.mrb[5].mxu0  ;;  %v1684_v35 = vpop.f32.mrb[9].mxu1 }
 0x169   : > { %v348_v36 = vpop.f32.mrb[6].mxu0  ;;  %v501_v37 = vpop.f32.mrb[10].mxu1 }
 0x16a   : > { %v402_v38 = vadd.f32 %v396_v24, %v351_v33  ;;  %v1667_v39 = vpop.f32.mrb[7].mxu0  ;;  %v1685_v40 = vpop.f32.mrb[11].mxu1 }
 0x16f   : > { %v447_v41 = vpop.f32.mrb[8].mxu0  ;;  %v600_v42 = vpop.f32.mrb[12].mxu1 }
 0x170   : > { %v453_v43 = vadd.f32 %v447_v41, %v402_v38  ;;  %v1678_v44 = vpop.f32.mrb[9].mxu0  ;;  %v1696_v45 = vpop.f32.mrb[13].mxu1 }
 0x171   : > { %v450_v46 = vpop.f32.mrb[10].mxu0  ;;  %v603_v47 = vpop.f32.mrb[14].mxu1 }
 0x172   : > { %v504_v48 = vadd.f32 %v498_v32, %v453_v43  ;;  %v1679_v49 = vpop.f32.mrb[11].mxu0  ;;  %v1697_v50 = vpop.f32.mrb[15].mxu1 }
 0x177   : > { %v549_v51 = vpop.f32.mrb[12].mxu0  ;;  %v702_v52 = vpop.f32.mrb[16].mxu1 }
 0x178   : > { %v555_v53 = vadd.f32 %v549_v51, %v504_v48  ;;  %v1690_v54 = vpop.f32.mrb[13].mxu0  ;;  %v1708_v55 = vpop.f32.mrb[17].mxu1 }
 0x179   : > { %v552_v56 = vpop.f32.mrb[14].mxu0  ;;  %v705_v57 = vpop.f32.mrb[18].mxu1 }
 0x17a   : > { %v606_v58 = vadd.f32 %v600_v42, %v555_v53  ;;  %v1691_v59 = vpop.f32.mrb[15].mxu0  ;;  %v1709_v60 = vpop.f32.mrb[19].mxu1 }
 0x17f   : > { %v651_v61 = vpop.f32.mrb[16].mxu0  ;;  %v804_v62 = vpop.f32.mrb[20].mxu1 }
 0x180   : > { %v657_v63 = vadd.f32 %v651_v61, %v606_v58  ;;  %v1702_v0 = vpop.f32.mrb[17].mxu0  ;;  %v1720_v1 = vpop.f32.mrb[21].mxu1 }
 0x181   : > { %v654_v4 = vpop.f32.mrb[18].mxu0  ;;  %v807_v5 = vpop.f32.mrb[22].mxu1 }
 0x182   : > { %v708_v6 = vadd.f32 %v702_v52, %v657_v63  ;;  %v1703_v7 = vpop.f32.mrb[19].mxu0  ;;  %v1721_v8 = vpop.f32.mrb[23].mxu1 }
 0x187   : > { %v753_v9 = vpop.f32.mrb[20].mxu0  ;;  %v906_v10 = vpop.f32.mrb[24].mxu1 }
 0x188   : > { %v759_v11 = vadd.f32 %v753_v9, %v708_v6  ;;  %v1714_v12 = vpop.f32.mrb[21].mxu0  ;;  %v1732_v13 = vpop.f32.mrb[25].mxu1 }
 0x189   : > { %v756_v14 = vpop.f32.mrb[22].mxu0  ;;  %v909_v15 = vpop.f32.mrb[26].mxu1 }
 0x18a   : > { %v810_v16 = vadd.f32 %v804_v62, %v759_v11  ;;  %v1715_v17 = vpop.f32.mrb[23].mxu0  ;;  %v1733_v18 = vpop.f32.mrb[27].mxu1 }
 0x18b   : > { %v1478_v12 = vpop.permute.xlu0 %1477 }
 0x18f   : > { %v855_v19 = vpop.f32.mrb[24].mxu0  ;;  %v1008_v20 = vpop.f32.mrb[28].mxu1 }
 0x190   : > { %v861_v21 = vadd.f32 %v855_v19, %v810_v16  ;;  %v1726_v22 = vpop.f32.mrb[25].mxu0  ;;  %v1744_v3 = vpop.f32.mrb[29].mxu1  ;;  %v1483_v16 = vstv %s1481_s23 }
 0x191   : > { %v858_v23 = vpop.f32.mrb[26].mxu0  ;;  %v1011_v24 = vpop.f32.mrb[30].mxu1 }
 0x192   : > { %v912_v25 = vadd.f32 %v906_v10, %v861_v21  ;;  %v1727_v26 = vpop.f32.mrb[27].mxu0  ;;  %v1745_v27 = vpop.f32.mrb[31].mxu1 }
 0x197   : > { %v957_v28 = vpop.f32.mrb[28].mxu0  ;;  %v1110_v29 = vpop.f32.mrb[32].mxu1 }
 0x198   : > { %v963_v30 = vadd.f32 %v957_v28, %v912_v25  ;;  %v1738_v31 = vpop.f32.mrb[29].mxu0  ;;  %v1756_v2 = vpop.f32.mrb[33].mxu1 }
 0x199   : > { %v960_v32 = vpop.f32.mrb[30].mxu0  ;;  %v1113_v33 = vpop.f32.mrb[34].mxu1 }
 0x19a   : > { %v1014_v34 = vadd.f32 %v1008_v20, %v963_v30  ;;  %v1739_v35 = vpop.f32.mrb[31].mxu0  ;;  %v1757_v36 = vpop.f32.mrb[35].mxu1 }
 0x19f   : > { %v1059_v37 = vpop.f32.mrb[32].mxu0  ;;  %v1212_v38 = vpop.f32.mrb[36].mxu1 }
 0x1a0   : > { %v1065_v39 = vadd.f32 %v1059_v37, %v1014_v34  ;;  %v1750_v40 = vpop.f32.mrb[33].mxu0  ;;  %v1768_v41 = vpop.f32.mrb[37].mxu1 }
 0x1a1   : > { %v1062_v42 = vpop.f32.mrb[34].mxu0  ;;  %v1215_v43 = vpop.f32.mrb[38].mxu1 }
 0x1a2   : > { %v1116_v44 = vadd.f32 %v1110_v29, %v1065_v39  ;;  %v1751_v45 = vpop.f32.mrb[35].mxu0  ;;  %v1769_v46 = vpop.f32.mrb[39].mxu1 }
 0x1a7   : > { %v1161_v47 = vpop.f32.mrb[36].mxu0  ;;  %v1314_v48 = vpop.f32.mrb[40].mxu1 }
 0x1a8   : > { %v1167_v49 = vadd.f32 %v1161_v47, %v1116_v44  ;;  %v1762_v50 = vpop.f32.mrb[37].mxu0  ;;  %v1780_v51 = vpop.f32.mrb[41].mxu1 }
 0x1a9   : > { %v1164_v52 = vpop.f32.mrb[38].mxu0  ;;  %v1317_v53 = vpop.f32.mrb[42].mxu1 }
 0x1aa   : > { %v1218_v54 = vadd.f32 %v1212_v38, %v1167_v49  ;;  %v1763_v55 = vpop.f32.mrb[39].mxu0  ;;  %v1781_v56 = vpop.f32.mrb[43].mxu1 }
 0x1af   : > { %v1263_v57 = vpop.f32.mrb[40].mxu0  ;;  %v1416_v58 = vpop.f32.mrb[44].mxu1 }
 0x1b0   : > { %v1269_v59 = vadd.f32 %v1263_v57, %v1218_v54  ;;  %v1774_v60 = vpop.f32.mrb[41].mxu0  ;;  %v1792_v61 = vpop.f32.mrb[45].mxu1 }
 0x1b1   : > { %v1266_v62 = vpop.f32.mrb[42].mxu0  ;;  %v1419_v63 = vpop.f32.mrb[46].mxu1 }
 0x1b2   : > { %v1320_v0 = vadd.f32 %v1314_v48, %v1269_v59  ;;  %v1775_v1 = vpop.f32.mrb[43].mxu0  ;;  %v1793_v4 = vpop.f32.mrb[47].mxu1 }
 0x1b7   : > { %v1365_v5 = vpop.f32.mrb[44].mxu0 }
 0x1b8   : > { %v1371_v6 = vadd.f32 %v1365_v5, %v1320_v0  ;;  %v1786_v7 = vpop.f32.mrb[45].mxu0 }
 0x1b9   : > { %v1368_v8 = vpop.f32.mrb[46].mxu0 }
 0x1ba   : > { %v1422_v9 = vadd.f32 %v1416_v58, %v1371_v6  ;;  %v1787_v10 = vpop.f32.mrb[47].mxu0 }
 0x1bf   : > { %v1467_v11 = vpop.f32.mrb[48].mxu0 }
 0x1c0   : > { %v1473_v13 = vadd.f32 %v1467_v11, %v1422_v9  ;;  %v1798_v14 = vpop.f32.mrb[49].mxu0 }
 0x1c1   : > { %v1470_v15 = vpop.f32.mrb[50].mxu0 }
 0x1c2   : > { %v1480_v17 = vadd.f32 %v1478_v12, %v1473_v13  ;;  %v1799_v18 = vpop.f32.mrb[51].mxu0 }
 0x1c4   : > { %vm1482_vm5 = vcmp.ge.f32.partialorder %v1480_v17, 0.0  ;;  %v1484_v19 = vmul.f32 %v1483_v16, %v1480_v17 }
 0x1c6   : > { %v1485_v20 = vsel %vm1482_vm5, %v1480_v17, %v1484_v19 }
 0x1c7   : > { %1487 = vst.msk [vmem:[%s193_s27] sm:$0xff] %vm1486_vm4, %v1485_v20 }
 0x1c8 PF: > { %s15_s17 = sadd.s32 1, %s1844_s17  }
 0x1c9   : > { %p12_p4 = scmp.ge.s32.totalorder %s15_s17, 4  }
 0x1cb   :  { %14 = sbr.rel (!%p12_p4) target bundleno = 2 (0x2), region = 90 }

// kernel: forward.30
= control target key start
LH: loop header
LB: loop body
LE: loop exit
PB: predicated region body
PF: predicated region fallthrough
CT: control target
= control target key end

     0   :  { %s1897_s17 = smov 0   ;;  %s2121_s0 = inlined_call_operand.vmem [shape: bf16[2,8,68], index: 0, kind: input, shape index: {}]   ;;  %s2122_s1 = inlined_call_operand.vmem [shape: bf16[25,8,8], index: 1, kind: input, shape index: {}]   ;;  %s2123_s2 = inlined_call_operand.vmem [shape: f32[8,1], index: 2, kind: input, shape index: {}]   ;;  %s2124_s3 = inlined_call_operand.<no memory space> [shape: f32[1], index: 3, kind: input, shape index: {}]   ;;  %s2125_s4 = inlined_call_operand.vmem [shape: f32[2,8,32], index: 4, kind: output, shape index: {}]  }
   0x1   :  { %9 = sst [smem:[#allocation2]] %s2124_s3 }
   0x2 LB: > { %s1538_s18 = sadd.s32 4294967295, %s1840_s17   ;;  %p1542_p0 = scmp.ge.s32.totalorder %s1840_s17, 1  ;;  %s1840_s17 = sphi %s1897_s17, %s15_s17  }
   0x3   : > { %p162_p1 = scmp.lt.s32.totalorder %s1840_s17, 3 }
   0x5   : > { %p163_p2 = pnand %p1542_p0, %p162_p1 }
   0x6   : > { %p186_p3 = scmp.lt.s32.totalorder (!%p163_p2), %s1538_s18, 1  ;;  %v1842_v0 = vmov (!%p163_p2), 0.0   ;;  %vm1843_vm0 = vmmov (!%p163_p2), 0   ;;  %vm208_vm1 = vcmask (!%p163_p2), 1043456   ;;  %vm204_vm2 = vcmask (!%p163_p2), 64512   ;;  %s1844_s24 = smov (!%p163_p2), 127  }
   0x7   : > { %166 = sbr.rel (%p163_p2) target bundleno = 455 (0x1c7), region = 36  ;;  %1647 = vmatprep.subr.bf16.mxu0 (!%p163_p2), %v1842_v0  ;;  %1653 = vmatprep.subr.bf16.mxu1 (!%p163_p2), %v1842_v0  ;;  %v196_v4 = vld [vmem:[%s2122_s1] sm:$0xf] (!%p163_p2)  ;;  %s1845_s25 = smov (!%p163_p2), 125   ;;  %v1868_v6 = vmov (!%p163_p2), 0   ;;  %vm1483_vm3 = vcmask (!%p163_p2), 261120  }
   0x8   : > { %1649 = vmatprep.mubr.msk.bf16.mxu0 (!%p163_p2), %vm1843_vm0, %v1842_v0  ;;  %1655 = vmatprep.mubr.msk.bf16.mxu1 (!%p163_p2), %vm1843_vm0, %v1842_v0  ;;  %s1846_s26 = smov (!%p163_p2), 126   ;;  %s1847_s27 = smov (!%p163_p2), 124   ;;  %v1471_v5 = vld [vmem:[%s2123_s2] sm:$0xff] (!%p163_p2)  ;;  %v1551_v12 = vld [vmem:[%s2122_s1 + $0xc] sm:$0xf] (!%p163_p2) }
   0x9   : > { %s1848_s28 = smov (!%p163_p2), 120   ;;  %s1849_s29 = smov (!%p163_p2), 119   ;;  %1832 = vset.pattern.permute.xlu0 (!%p163_p2), %v1868_v6  ;;  %v1545_v11 = vld [vmem:[%s2122_s1 + $0x4] sm:$0xf] (!%p163_p2)  ;;  %v1549_v18 = vld [vmem:[%s2122_s1 + $0x8] sm:$0xf] (!%p163_p2) }
   0xa   : > { %s1850_s30 = smov (!%p163_p2), 118   ;;  %s1851_s5 = smov (!%p163_p2), 117   ;;  %v1555_v19 = vld [vmem:[%s2122_s1 + $0x14] sm:$0xf] (!%p163_p2)  ;;  %v1553_v25 = vld [vmem:[%s2122_s1 + $0x10] sm:$0xf] (!%p163_p2) }
   0xb   : > { %s1852_s6 = smov (!%p163_p2), 116   ;;  %s1853_s7 = smov (!%p163_p2), 112   ;;  %v1559_v26 = vld [vmem:[%s2122_s1 + $0x1c] sm:$0xf] (!%p163_p2)  ;;  %v1557_v31 = vld [vmem:[%s2122_s1 + $0x18] sm:$0xf] (!%p163_p2) }
   0xc   : > { %s1854_s8 = smov (!%p163_p2), 111   ;;  %s1855_s9 = smov (!%p163_p2), 110   ;;  %v1563_v32 = vld [vmem:[%s2122_s1 + $0x24] sm:$0xf] (!%p163_p2)  ;;  %v1561_v37 = vld [vmem:[%s2122_s1 + $0x20] sm:$0xf] (!%p163_p2) }
   0xd   : > { %s1856_s10 = smov (!%p163_p2), 109   ;;  %s1857_s11 = smov (!%p163_p2), 108   ;;  %v1567_v38 = vld [vmem:[%s2122_s1 + $0x2c] sm:$0xf] (!%p163_p2)  ;;  %v1565_v43 = vld [vmem:[%s2122_s1 + $0x28] sm:$0xf] (!%p163_p2) }
   0xe   : > { %s2127_s18 = smov (!%p186_p3, %s1538_s18), 1  ;;  %s1858_s12 = smov 104   ;;  %v1571_v44 = vld [vmem:[%s2122_s1 + $0x34] sm:$0xf]  ;;  %v1569_v49 = vld [vmem:[%s2122_s1 + $0x30] sm:$0xf] }
   0xf   : > { %s1543_s3 = sshll.u32 %s2127_s18, 2  ;;  %s1859_s13 = smov 103   ;;  %v1575_v50 = vld [vmem:[%s2122_s1 + $0x3c] sm:$0xf]  ;;  %v1573_v55 = vld [vmem:[%s2122_s1 + $0x38] sm:$0xf] }
  0x10   : > { %s189_s21 = scalar_lea.vmem %s2121_s0, %s1543_s3  ;;  %s1860_s14 = smov 102   ;;  %v1579_v56 = vld [vmem:[%s2122_s1 + $0x44] sm:$0xf]  ;;  %v1577_v61 = vld [vmem:[%s2122_s1 + $0x40] sm:$0xf] }
  0x11   : > { %v195_v1 = vld [vmem:[%s189_s21] sm:$0xf]  ;;  %s1861_s15 = smov 101   ;;  %s1862_s16 = smov 100   ;;  %v1583_v62 = vld [vmem:[%s2122_s1 + $0x4c] sm:$0xf] }
  0x12   : > { %v1546_v2 = vcombine.low %v195_v1, %v195_v1  ;;  %v256_v3 = vsel %vm208_vm1, %v195_v1, 0  ;;  %s1863_s3 = smov 96   ;;  %s1864_s19 = smov 95  }
  0x13   : > { %1654 = vmatpush3.bf16.msra.mxu1 %v256_v3  ;;  %s1865_s20 = smov 94   ;;  %s1866_s21 = smov 93  }
  0x14   : > { %202 = vrot.lane.b32.xlu0 %v1546_v2, %s1844_s24  ;;  %351 = vrot.lane.b32.xlu1 %v1546_v2, %s1845_s25  ;;  %s1867_s22 = smov 92   ;;  %s1478_s23 = sld [smem:[#allocation2]] }
  0x15   : > { %1665 = vmatprep.subr.bf16.mxu1 %v1842_v0  ;;  %s1544_s24 = sshll.u32 %s2127_s18, 3 }
  0x16   : > { %1656 = vmatmul.mubr.msk.bf16.vlgmr.msra.gmra.mrb[0].mxu1 %vm204_vm2, %v196_v4  ;;  %v1581_v4 = vld [vmem:[%s2122_s1 + $0x48] sm:$0xf] }
  0x17   : > { %1667 = vmatprep.mubr.msk.bf16.mxu1 %vm1843_vm0, %v1842_v0 }
  0x18   : > { %300 = vrot.lane.b32.xlu0 %v1546_v2, %s1846_s26  ;;  %402 = vrot.lane.b32.xlu1 %v1546_v2, %s1847_s27  ;;  %s193_s27 = scalar_lea.vmem %s2125_s4, %s1544_s24 }
  0x1c   : > { %453 = vrot.lane.b32.xlu0 %v1546_v2, %s1848_s28  ;;  %504 = vrot.lane.b32.xlu1 %v1546_v2, %s1849_s29 }
  0x20   : > { %555 = vrot.lane.b32.xlu0 %v1546_v2, %s1850_s30  ;;  %606 = vrot.lane.b32.xlu1 %v1546_v2, %s1851_s5 }
  0x24   : > { %657 = vrot.lane.b32.xlu0 %v1546_v2, %s1852_s6  ;;  %708 = vrot.lane.b32.xlu1 %v1546_v2, %s1853_s7 }
  0x28   : > { %759 = vrot.lane.b32.xlu0 %v1546_v2, %s1854_s8  ;;  %810 = vrot.lane.b32.xlu1 %v1546_v2, %s1855_s9 }
  0x2c   : > { %861 = vrot.lane.b32.xlu0 %v1546_v2, %s1856_s10  ;;  %912 = vrot.lane.b32.xlu1 %v1546_v2, %s1857_s11 }
  0x30   : > { %963 = vrot.lane.b32.xlu0 %v1546_v2, %s1858_s12  ;;  %1014 = vrot.lane.b32.xlu1 %v1546_v2, %s1859_s13 }
  0x34   : > { %1065 = vrot.lane.b32.xlu0 %v1546_v2, %s1860_s14  ;;  %1116 = vrot.lane.b32.xlu1 %v1546_v2, %s1861_s15 }
  0x38   : > { %1167 = vrot.lane.b32.xlu0 %v1546_v2, %s1862_s16  ;;  %1218 = vrot.lane.b32.xlu1 %v1546_v2, %s1863_s3 }
  0x3c   : > { %1269 = vrot.lane.b32.xlu0 %v1546_v2, %s1864_s19  ;;  %1320 = vrot.lane.b32.xlu1 %v1546_v2, %s1865_s20 }
  0x40   : > { %1371 = vrot.lane.b32.xlu0 %v1546_v2, %s1866_s21  ;;  %1422 = vrot.lane.b32.xlu1 %v1546_v2, %s1867_s22 }
  0x44   : > { %1474 = vperm.xlu0 %1832, %v1471_v5   ;;  %v1587_v5 = vld [vmem:[%s2122_s1 + $0x54] sm:$0xf] }
  0x86   : > { %v203_v7 = vpop.permute.xlu0 %202  ;;  %v352_v8 = vpop.permute.xlu1 %351 }
  0x87   : > { %v210_v9 = vsel %vm208_vm1, %v203_v7, 0  ;;  %v357_v10 = vsel %vm208_vm1, %v352_v8, 0 }
  0x88   : > { %1648 = vmatpush3.bf16.msra.mxu0 %v210_v9  ;;  %1666 = vmatpush3.bf16.msra.mxu1 %v357_v10  ;;  %v1585_v9 = vld [vmem:[%s2122_s1 + $0x50] sm:$0xf]  ;;  %v1591_v10 = vld [vmem:[%s2122_s1 + $0x5c] sm:$0xf] }
  0x89   : > { %1659 = vmatprep.subr.bf16.mxu0 %v1842_v0  ;;  %1677 = vmatprep.subr.bf16.mxu1 %v1842_v0 }
  0x8a   : > { %v301_v13 = vpop.permute.xlu0 %300  ;;  %v403_v15 = vpop.permute.xlu1 %402 }
  0x8b   : > { %v306_v14 = vsel %vm208_vm1, %v301_v13, 0  ;;  %1650 = vmatmul.mubr.msk.bf16.vlgmr.msra.gmra.mrb[0].mxu0 %vm204_vm2, %v1545_v11  ;;  %1668 = vmatmul.mubr.msk.bf16.vlgmr.msra.gmra.mrb[4].mxu1 %vm204_vm2, %v1551_v12  ;;  %v408_v20 = vsel %vm208_vm1, %v403_v15, 0  ;;  %v1589_v13 = vld [vmem:[%s2122_s1 + $0x58] sm:$0xf]  ;;  %v1593_v15 = vld [vmem:[%s2122_s1 + $0x60] sm:$0xf] }
  0x8c   : > { %1660 = vmatpush3.bf16.msra.mxu0 %v306_v14  ;;  %1661 = vmatprep.mubr.msk.bf16.mxu0 %vm1843_vm0, %v1842_v0 }
  0x8d   : > { %1671 = vmatprep.subr.bf16.mxu0 %v1842_v0  ;;  %1679 = vmatprep.mubr.msk.bf16.mxu1 %vm1843_vm0, %v1842_v0 }
  0x8e   : > { %v454_v16 = vpop.permute.xlu0 %453  ;;  %v505_v23 = vpop.permute.xlu1 %504 }
  0x8f   : > { %v459_v17 = vsel %vm208_vm1, %v454_v16, 0  ;;  %v510_v27 = vsel %vm208_vm1, %v505_v23, 0 }
  0x90   : > { %1678 = vmatpush3.bf16.msra.mxu1 %v459_v17 }
  0x91   : > { %1689 = vmatprep.subr.bf16.mxu1 %v1842_v0 }
  0x92   : > { %v556_v21 = vpop.permute.xlu0 %555  ;;  %v607_v29 = vpop.permute.xlu1 %606 }
  0x93   : > { %1662 = vmatmul.mubr.msk.bf16.vlgmr.msra.gmra.mrb[4].mxu0 %vm204_vm2, %v1549_v18  ;;  %1680 = vmatmul.mubr.msk.bf16.vlgmr.msra.gmra.mrb[8].mxu1 %vm204_vm2, %v1555_v19  ;;  %v561_v22 = vsel %vm208_vm1, %v556_v21, 0  ;;  %v612_v33 = vsel %vm208_vm1, %v607_v29, 0 }
  0x94   : > { %1672 = vmatpush3.bf16.msra.mxu0 %v408_v20  ;;  %1673 = vmatprep.mubr.msk.bf16.mxu0 %vm1843_vm0, %v1842_v0 }
  0x95   : > { %1683 = vmatprep.subr.bf16.mxu0 %v1842_v0  ;;  %1690 = vmatpush3.bf16.msra.mxu1 %v561_v22 }
  0x96   : > { %1691 = vmatprep.mubr.msk.bf16.mxu1 %vm1843_vm0, %v1842_v0  ;;  %1701 = vmatprep.subr.bf16.mxu1 %v1842_v0  ;;  %v658_v24 = vpop.permute.xlu0 %657  ;;  %v709_v35 = vpop.permute.xlu1 %708 }
  0x97   : > { %v663_v28 = vsel %vm208_vm1, %v658_v24, 0  ;;  %v714_v39 = vsel %vm208_vm1, %v709_v35, 0 }
  0x9a   : > { %v760_v30 = vpop.permute.xlu0 %759  ;;  %v811_v41 = vpop.permute.xlu1 %810 }
  0x9b   : > { %1674 = vmatmul.mubr.msk.bf16.vlgmr.msra.gmra.mrb[8].mxu0 %vm204_vm2, %v1553_v25  ;;  %1692 = vmatmul.mubr.msk.bf16.vlgmr.msra.gmra.mrb[12].mxu1 %vm204_vm2, %v1559_v26  ;;  %v765_v34 = vsel %vm208_vm1, %v760_v30, 0  ;;  %v816_v45 = vsel %vm208_vm1, %v811_v41, 0 }
  0x9c   : > { %1684 = vmatpush3.bf16.msra.mxu0 %v510_v27  ;;  %1685 = vmatprep.mubr.msk.bf16.mxu0 %vm1843_vm0, %v1842_v0 }
  0x9d   : > { %1695 = vmatprep.subr.bf16.mxu0 %v1842_v0  ;;  %1702 = vmatpush3.bf16.msra.mxu1 %v663_v28 }
  0x9e   : > { %1703 = vmatprep.mubr.msk.bf16.mxu1 %vm1843_vm0, %v1842_v0  ;;  %1713 = vmatprep.subr.bf16.mxu1 %v1842_v0  ;;  %v862_v36 = vpop.permute.xlu0 %861  ;;  %v913_v47 = vpop.permute.xlu1 %912 }
  0x9f   : > { %v867_v40 = vsel %vm208_vm1, %v862_v36, 0  ;;  %v918_v51 = vsel %vm208_vm1, %v913_v47, 0 }
  0xa2   : > { %v964_v42 = vpop.permute.xlu0 %963  ;;  %v1015_v53 = vpop.permute.xlu1 %1014 }
  0xa3   : > { %1686 = vmatmul.mubr.msk.bf16.vlgmr.msra.gmra.mrb[12].mxu0 %vm204_vm2, %v1557_v31  ;;  %1704 = vmatmul.mubr.msk.bf16.vlgmr.msra.gmra.mrb[16].mxu1 %vm204_vm2, %v1563_v32  ;;  %v969_v46 = vsel %vm208_vm1, %v964_v42, 0  ;;  %v1020_v57 = vsel %vm208_vm1, %v1015_v53, 0 }
  0xa4   : > { %1696 = vmatpush3.bf16.msra.mxu0 %v612_v33  ;;  %1697 = vmatprep.mubr.msk.bf16.mxu0 %vm1843_vm0, %v1842_v0 }
  0xa5   : > { %1707 = vmatprep.subr.bf16.mxu0 %v1842_v0  ;;  %1714 = vmatpush3.bf16.msra.mxu1 %v765_v34 }
  0xa6   : > { %1715 = vmatprep.mubr.msk.bf16.mxu1 %vm1843_vm0, %v1842_v0  ;;  %1725 = vmatprep.subr.bf16.mxu1 %v1842_v0  ;;  %v1066_v48 = vpop.permute.xlu0 %1065  ;;  %v1117_v59 = vpop.permute.xlu1 %1116 }
  0xa7   : > { %v1071_v52 = vsel %vm208_vm1, %v1066_v48, 0  ;;  %v1122_v63 = vsel %vm208_vm1, %v1117_v59, 0 }
  0xaa   : > { %v1168_v54 = vpop.permute.xlu0 %1167  ;;  %v1219_v2 = vpop.permute.xlu1 %1218 }
  0xab   : > { %1698 = vmatmul.mubr.msk.bf16.vlgmr.msra.gmra.mrb[16].mxu0 %vm204_vm2, %v1561_v37  ;;  %1716 = vmatmul.mubr.msk.bf16.vlgmr.msra.gmra.mrb[20].mxu1 %vm204_vm2, %v1567_v38  ;;  %v1173_v58 = vsel %vm208_vm1, %v1168_v54, 0  ;;  %v1224_v6 = vsel %vm208_vm1, %v1219_v2, 0 }
  0xac   : > { %1708 = vmatpush3.bf16.msra.mxu0 %v714_v39  ;;  %1709 = vmatprep.mubr.msk.bf16.mxu0 %vm1843_vm0, %v1842_v0 }
  0xad   : > { %1719 = vmatprep.subr.bf16.mxu0 %v1842_v0  ;;  %1726 = vmatpush3.bf16.msra.mxu1 %v867_v40 }
  0xae   : > { %1727 = vmatprep.mubr.msk.bf16.mxu1 %vm1843_vm0, %v1842_v0  ;;  %1737 = vmatprep.subr.bf16.mxu1 %v1842_v0  ;;  %v1270_v60 = vpop.permute.xlu0 %1269  ;;  %v1321_v8 = vpop.permute.xlu1 %1320 }
  0xaf   : > { %v1275_v1 = vsel %vm208_vm1, %v1270_v60, 0  ;;  %v1326_v11 = vsel %vm208_vm1, %v1321_v8, 0 }
  0xb2   : > { %v1372_v3 = vpop.permute.xlu0 %1371  ;;  %v1423_v12 = vpop.permute.xlu1 %1422 }
  0xb3   : > { %1710 = vmatmul.mubr.msk.bf16.vlgmr.msra.gmra.mrb[20].mxu0 %vm204_vm2, %v1565_v43  ;;  %1728 = vmatmul.mubr.msk.bf16.vlgmr.msra.gmra.mrb[24].mxu1 %vm204_vm2, %v1571_v44  ;;  %v1377_v7 = vsel %vm208_vm1, %v1372_v3, 0  ;;  %v1428_v14 = vsel %vm208_vm1, %v1423_v12, 0 }
  0xb4   : > { %1720 = vmatpush3.bf16.msra.mxu0 %v816_v45  ;;  %1721 = vmatprep.mubr.msk.bf16.mxu0 %vm1843_vm0, %v1842_v0 }
  0xb5   : > { %1731 = vmatprep.subr.bf16.mxu0 %v1842_v0  ;;  %1738 = vmatpush3.bf16.msra.mxu1 %v969_v46 }
  0xb6   : > { %1739 = vmatprep.mubr.msk.bf16.mxu1 %vm1843_vm0, %v1842_v0  ;;  %1749 = vmatprep.subr.bf16.mxu1 %v1842_v0 }
  0xbb   : > { %1722 = vmatmul.mubr.msk.bf16.vlgmr.msra.gmra.mrb[24].mxu0 %vm204_vm2, %v1569_v49  ;;  %1740 = vmatmul.mubr.msk.bf16.vlgmr.msra.gmra.mrb[28].mxu1 %vm204_vm2, %v1575_v50 }
  0xbc   : > { %1732 = vmatpush3.bf16.msra.mxu0 %v918_v51  ;;  %1733 = vmatprep.mubr.msk.bf16.mxu0 %vm1843_vm0, %v1842_v0 }
  0xbd   : > { %1743 = vmatprep.subr.bf16.mxu0 %v1842_v0  ;;  %1750 = vmatpush3.bf16.msra.mxu1 %v1071_v52 }
  0xbe   : > { %1751 = vmatprep.mubr.msk.bf16.mxu1 %vm1843_vm0, %v1842_v0  ;;  %1761 = vmatprep.subr.bf16.mxu1 %v1842_v0 }
  0xc3   : > { %1734 = vmatmul.mubr.msk.bf16.vlgmr.msra.gmra.mrb[28].mxu0 %vm204_vm2, %v1573_v55  ;;  %1752 = vmatmul.mubr.msk.bf16.vlgmr.msra.gmra.mrb[32].mxu1 %vm204_vm2, %v1579_v56 }
  0xc4   : > { %1744 = vmatpush3.bf16.msra.mxu0 %v1020_v57  ;;  %1745 = vmatprep.mubr.msk.bf16.mxu0 %vm1843_vm0, %v1842_v0 }
  0xc5   : > { %1755 = vmatprep.subr.bf16.mxu0 %v1842_v0  ;;  %1762 = vmatpush3.bf16.msra.mxu1 %v1173_v58 }
  0xc6   : > { %1763 = vmatprep.mubr.msk.bf16.mxu1 %vm1843_vm0, %v1842_v0  ;;  %1773 = vmatprep.subr.bf16.mxu1 %v1842_v0 }
  0xcb   : > { %1746 = vmatmul.mubr.msk.bf16.vlgmr.msra.gmra.mrb[32].mxu0 %vm204_vm2, %v1577_v61  ;;  %1764 = vmatmul.mubr.msk.bf16.vlgmr.msra.gmra.mrb[36].mxu1 %vm204_vm2, %v1583_v62 }
  0xcc   : > { %1756 = vmatpush3.bf16.msra.mxu0 %v1122_v63  ;;  %1757 = vmatprep.mubr.msk.bf16.mxu0 %vm1843_vm0, %v1842_v0 }
  0xcd   : > { %1767 = vmatprep.subr.bf16.mxu0 %v1842_v0  ;;  %1774 = vmatpush3.bf16.msra.mxu1 %v1275_v1 }
  0xce   : > { %1775 = vmatprep.mubr.msk.bf16.mxu1 %vm1843_vm0, %v1842_v0  ;;  %1785 = vmatprep.subr.bf16.mxu1 %v1842_v0 }
  0xd3   : > { %1758 = vmatmul.mubr.msk.bf16.vlgmr.msra.gmra.mrb[36].mxu0 %vm204_vm2, %v1581_v4  ;;  %1776 = vmatmul.mubr.msk.bf16.vlgmr.msra.gmra.mrb[40].mxu1 %vm204_vm2, %v1587_v5 }
  0xd4   : > { %1768 = vmatpush3.bf16.msra.mxu0 %v1224_v6  ;;  %1769 = vmatprep.mubr.msk.bf16.mxu0 %vm1843_vm0, %v1842_v0 }
  0xd5   : > { %1779 = vmatprep.subr.bf16.mxu0 %v1842_v0  ;;  %1786 = vmatpush3.bf16.msra.mxu1 %v1377_v7 }
  0xd6   : > { %1787 = vmatprep.mubr.msk.bf16.mxu1 %vm1843_vm0, %v1842_v0 }
  0xdb   : > { %1770 = vmatmul.mubr.msk.bf16.vlgmr.msra.gmra.mrb[40].mxu0 %vm204_vm2, %v1585_v9  ;;  %1788 = vmatmul.mubr.msk.bf16.vlgmr.msra.gmra.mrb[44].mxu1 %vm204_vm2, %v1591_v10 }
  0xdc   : > { %1780 = vmatpush3.bf16.msra.mxu0 %v1326_v11  ;;  %1781 = vmatprep.mubr.msk.bf16.mxu0 %vm1843_vm0, %v1842_v0 }
  0xdd   : > { %1791 = vmatprep.subr.bf16.mxu0 %v1842_v0 }
  0xe3   : > { %1782 = vmatmul.mubr.msk.bf16.vlgmr.msra.gmra.mrb[44].mxu0 %vm204_vm2, %v1589_v13 }
  0xe4   : > { %1792 = vmatpush3.bf16.msra.mxu0 %v1428_v14  ;;  %1793 = vmatprep.mubr.msk.bf16.mxu0 %vm1843_vm0, %v1842_v0 }
  0xe9   : > { %v292_v16 = vpop.f32.mrb[0].mxu1 }
  0xea   : > { %v1657_v17 = vpop.f32.mrb[1].mxu1 }
  0xeb   : > { %1794 = vmatmul.mubr.msk.bf16.vlgmr.msra.gmra.mrb[48].mxu0 %vm204_vm2, %v1593_v15  ;;  %v295_v18 = vpop.f32.mrb[2].mxu1 }
  0xec   : > { %v1658_v19 = vpop.f32.mrb[3].mxu1 }
 0x15e   : > { %v246_v20 = vpop.f32.mrb[0].mxu0  ;;  %v393_v21 = vpop.f32.mrb[4].mxu1 }
 0x15f   : > { %v1651_v22 = vpop.f32.mrb[1].mxu0  ;;  %v293_v23 = vadd.f32 %v292_v16, %v246_v20  ;;  %v1669_v24 = vpop.f32.mrb[5].mxu1 }
 0x160   : > { %v249_v25 = vpop.f32.mrb[2].mxu0  ;;  %v396_v26 = vpop.f32.mrb[6].mxu1 }
 0x161   : > { %v1652_v27 = vpop.f32.mrb[3].mxu0  ;;  %v1670_v28 = vpop.f32.mrb[7].mxu1 }
 0x166   : > { %v342_v0 = vpop.f32.mrb[4].mxu0  ;;  %v495_v29 = vpop.f32.mrb[8].mxu1 }
 0x167   : > { %v348_v30 = vadd.f32 %v342_v0, %v293_v23  ;;  %v1663_v31 = vpop.f32.mrb[5].mxu0  ;;  %v1681_v32 = vpop.f32.mrb[9].mxu1 }
 0x168   : > { %v345_v33 = vpop.f32.mrb[6].mxu0  ;;  %v498_v34 = vpop.f32.mrb[10].mxu1 }
 0x169   : > { %v399_v35 = vadd.f32 %v393_v21, %v348_v30  ;;  %v1664_v36 = vpop.f32.mrb[7].mxu0  ;;  %v1682_v37 = vpop.f32.mrb[11].mxu1 }
 0x16e   : > { %v444_v38 = vpop.f32.mrb[8].mxu0  ;;  %v597_v39 = vpop.f32.mrb[12].mxu1 }
 0x16f   : > { %v450_v40 = vadd.f32 %v444_v38, %v399_v35  ;;  %v1675_v41 = vpop.f32.mrb[9].mxu0  ;;  %v1693_v42 = vpop.f32.mrb[13].mxu1 }
 0x170   : > { %v447_v43 = vpop.f32.mrb[10].mxu0  ;;  %v600_v44 = vpop.f32.mrb[14].mxu1 }
 0x171   : > { %v501_v45 = vadd.f32 %v495_v29, %v450_v40  ;;  %v1676_v46 = vpop.f32.mrb[11].mxu0  ;;  %v1694_v47 = vpop.f32.mrb[15].mxu1 }
 0x176   : > { %v546_v48 = vpop.f32.mrb[12].mxu0  ;;  %v699_v49 = vpop.f32.mrb[16].mxu1 }
 0x177   : > { %v552_v50 = vadd.f32 %v546_v48, %v501_v45  ;;  %v1687_v51 = vpop.f32.mrb[13].mxu0  ;;  %v1705_v52 = vpop.f32.mrb[17].mxu1 }
 0x178   : > { %v549_v53 = vpop.f32.mrb[14].mxu0  ;;  %v702_v54 = vpop.f32.mrb[18].mxu1 }
 0x179   : > { %v603_v55 = vadd.f32 %v597_v39, %v552_v50  ;;  %v1688_v56 = vpop.f32.mrb[15].mxu0  ;;  %v1706_v57 = vpop.f32.mrb[19].mxu1 }
 0x17e   : > { %v648_v58 = vpop.f32.mrb[16].mxu0  ;;  %v801_v59 = vpop.f32.mrb[20].mxu1 }
 0x17f   : > { %v654_v60 = vadd.f32 %v648_v58, %v603_v55  ;;  %v1699_v61 = vpop.f32.mrb[17].mxu0  ;;  %v1717_v62 = vpop.f32.mrb[21].mxu1 }
 0x180   : > { %v651_v63 = vpop.f32.mrb[18].mxu0  ;;  %v804_v1 = vpop.f32.mrb[22].mxu1 }
 0x181   : > { %v705_v2 = vadd.f32 %v699_v49, %v654_v60  ;;  %v1700_v3 = vpop.f32.mrb[19].mxu0  ;;  %v1718_v4 = vpop.f32.mrb[23].mxu1 }
 0x186   : > { %v750_v5 = vpop.f32.mrb[20].mxu0  ;;  %v903_v6 = vpop.f32.mrb[24].mxu1 }
 0x187   : > { %v756_v7 = vadd.f32 %v750_v5, %v705_v2  ;;  %v1711_v8 = vpop.f32.mrb[21].mxu0  ;;  %v1729_v9 = vpop.f32.mrb[25].mxu1 }
 0x188   : > { %v753_v10 = vpop.f32.mrb[22].mxu0  ;;  %v906_v11 = vpop.f32.mrb[26].mxu1 }
 0x189   : > { %v807_v12 = vadd.f32 %v801_v59, %v756_v7  ;;  %v1712_v13 = vpop.f32.mrb[23].mxu0  ;;  %v1730_v14 = vpop.f32.mrb[27].mxu1 }
 0x18a   : > { %v1475_v8 = vpop.permute.xlu0 %1474 }
 0x18e   : > { %v852_v15 = vpop.f32.mrb[24].mxu0  ;;  %v1005_v16 = vpop.f32.mrb[28].mxu1 }
 0x18f   : > { %v858_v17 = vadd.f32 %v852_v15, %v807_v12  ;;  %v1723_v18 = vpop.f32.mrb[25].mxu0  ;;  %v1741_v19 = vpop.f32.mrb[29].mxu1  ;;  %v1480_v12 = vstv %s1478_s23 }
 0x190   : > { %v855_v20 = vpop.f32.mrb[26].mxu0  ;;  %v1008_v21 = vpop.f32.mrb[30].mxu1 }
 0x191   : > { %v909_v22 = vadd.f32 %v903_v6, %v858_v17  ;;  %v1724_v23 = vpop.f32.mrb[27].mxu0  ;;  %v1742_v24 = vpop.f32.mrb[31].mxu1 }
 0x196   : > { %v954_v25 = vpop.f32.mrb[28].mxu0  ;;  %v1107_v26 = vpop.f32.mrb[32].mxu1 }
 0x197   : > { %v960_v27 = vadd.f32 %v954_v25, %v909_v22  ;;  %v1735_v28 = vpop.f32.mrb[29].mxu0  ;;  %v1753_v0 = vpop.f32.mrb[33].mxu1 }
 0x198   : > { %v957_v29 = vpop.f32.mrb[30].mxu0  ;;  %v1110_v30 = vpop.f32.mrb[34].mxu1 }
 0x199   : > { %v1011_v31 = vadd.f32 %v1005_v16, %v960_v27  ;;  %v1736_v32 = vpop.f32.mrb[31].mxu0  ;;  %v1754_v33 = vpop.f32.mrb[35].mxu1 }
 0x19e   : > { %v1056_v34 = vpop.f32.mrb[32].mxu0  ;;  %v1209_v35 = vpop.f32.mrb[36].mxu1 }
 0x19f   : > { %v1062_v36 = vadd.f32 %v1056_v34, %v1011_v31  ;;  %v1747_v37 = vpop.f32.mrb[33].mxu0  ;;  %v1765_v38 = vpop.f32.mrb[37].mxu1 }
 0x1a0   : > { %v1059_v39 = vpop.f32.mrb[34].mxu0  ;;  %v1212_v40 = vpop.f32.mrb[38].mxu1 }
 0x1a1   : > { %v1113_v41 = vadd.f32 %v1107_v26, %v1062_v36  ;;  %v1748_v42 = vpop.f32.mrb[35].mxu0  ;;  %v1766_v43 = vpop.f32.mrb[39].mxu1 }
 0x1a6   : > { %v1158_v44 = vpop.f32.mrb[36].mxu0  ;;  %v1311_v45 = vpop.f32.mrb[40].mxu1 }
 0x1a7   : > { %v1164_v46 = vadd.f32 %v1158_v44, %v1113_v41  ;;  %v1759_v47 = vpop.f32.mrb[37].mxu0  ;;  %v1777_v48 = vpop.f32.mrb[41].mxu1 }
 0x1a8   : > { %v1161_v49 = vpop.f32.mrb[38].mxu0  ;;  %v1314_v50 = vpop.f32.mrb[42].mxu1 }
 0x1a9   : > { %v1215_v51 = vadd.f32 %v1209_v35, %v1164_v46  ;;  %v1760_v52 = vpop.f32.mrb[39].mxu0  ;;  %v1778_v53 = vpop.f32.mrb[43].mxu1 }
 0x1ae   : > { %v1260_v54 = vpop.f32.mrb[40].mxu0  ;;  %v1413_v55 = vpop.f32.mrb[44].mxu1 }
 0x1af   : > { %v1266_v56 = vadd.f32 %v1260_v54, %v1215_v51  ;;  %v1771_v57 = vpop.f32.mrb[41].mxu0  ;;  %v1789_v58 = vpop.f32.mrb[45].mxu1 }
 0x1b0   : > { %v1263_v59 = vpop.f32.mrb[42].mxu0  ;;  %v1416_v60 = vpop.f32.mrb[46].mxu1 }
 0x1b1   : > { %v1317_v61 = vadd.f32 %v1311_v45, %v1266_v56  ;;  %v1772_v62 = vpop.f32.mrb[43].mxu0  ;;  %v1790_v63 = vpop.f32.mrb[47].mxu1 }
 0x1b6   : > { %v1362_v1 = vpop.f32.mrb[44].mxu0 }
 0x1b7   : > { %v1368_v2 = vadd.f32 %v1362_v1, %v1317_v61  ;;  %v1783_v3 = vpop.f32.mrb[45].mxu0 }
 0x1b8   : > { %v1365_v4 = vpop.f32.mrb[46].mxu0 }
 0x1b9   : > { %v1419_v5 = vadd.f32 %v1413_v55, %v1368_v2  ;;  %v1784_v6 = vpop.f32.mrb[47].mxu0 }
 0x1be   : > { %v1464_v7 = vpop.f32.mrb[48].mxu0 }
 0x1bf   : > { %v1470_v9 = vadd.f32 %v1464_v7, %v1419_v5  ;;  %v1795_v10 = vpop.f32.mrb[49].mxu0 }
 0x1c0   : > { %v1467_v11 = vpop.f32.mrb[50].mxu0 }
 0x1c1   : > { %v1477_v13 = vadd.f32 %v1475_v8, %v1470_v9  ;;  %v1796_v14 = vpop.f32.mrb[51].mxu0 }
 0x1c3   : > { %vm1479_vm4 = vcmp.ge.f32.partialorder %v1477_v13, 0.0  ;;  %v1481_v15 = vmul.f32 %v1480_v12, %v1477_v13 }
 0x1c5   : > { %v1482_v16 = vsel %vm1479_vm4, %v1477_v13, %v1481_v15 }
 0x1c6   : > { %1484 = vst.msk [vmem:[%s193_s27] sm:$0xff] %vm1483_vm3, %v1482_v16 }
 0x1c7 PF: > { %s15_s17 = sadd.s32 1, %s1840_s17  }
 0x1c8   : > { %p12_p4 = scmp.ge.s32.totalorder %s15_s17, 4  }
 0x1ca   :  { %14 = sbr.rel (!%p12_p4) target bundleno = 2 (0x2), region = 90 }

// kernel: forward.32
= control target key start
LH: loop header
LB: loop body
LE: loop exit
PB: predicated region body
PF: predicated region fallthrough
CT: control target
= control target key end

     0   :  { %s1856_s12 = smov 0   ;;  %s2083_s0 = inlined_call_operand.vmem [shape: bf16[2,8,68], index: 0, kind: input, shape index: {}]   ;;  %s2084_s1 = inlined_call_operand.vmem [shape: bf16[25,4,8], index: 1, kind: input, shape index: {}]   ;;  %s2085_s2 = inlined_call_operand.vmem [shape: f32[4,1], index: 2, kind: input, shape index: {}]   ;;  %s2086_s3 = inlined_call_operand.vmem [shape: f32[2,4,32], index: 3, kind: output, shape index: {}]  }
   0x1 LB: > { %s1505_s13 = sadd.s32 4294967295, %s1807_s12   ;;  %p1509_p0 = scmp.ge.s32.totalorder %s1807_s12, 1  ;;  %s1807_s12 = sphi %s1856_s12, %s13_s12  }
   0x2   : > { %p136_p1 = scmp.lt.s32.totalorder %s1807_s12, 3 }
   0x4   : > { %p137_p2 = pnand %p1509_p0, %p136_p1 }
   0x5   : > { %p158_p3 = scmp.lt.s32.totalorder (!%p137_p2), %s1505_s13, 1  ;;  %v1809_v0 = vmov (!%p137_p2), 0.0   ;;  %vm1810_vm0 = vmmov (!%p137_p2), 0   ;;  %vm180_vm1 = vcmask (!%p137_p2), 1043456   ;;  %vm176_vm2 = vcmask (!%p137_p2), 64512   ;;  %s1811_s20 = smov (!%p137_p2), 127  }
   0x6   : > { %140 = sbr.rel (%p137_p2) target bundleno = 451 (0x1c3), region = 32  ;;  %1614 = vmatprep.subr.bf16.mxu0 (!%p137_p2), %v1809_v0  ;;  %1620 = vmatprep.subr.bf16.mxu1 (!%p137_p2), %v1809_v0  ;;  %v168_v4 = vld [vmem:[%s2084_s1] sm:$0x3] (!%p137_p2)  ;;  %s1812_s21 = smov (!%p137_p2), 125   ;;  %v1835_v6 = vmov (!%p137_p2), 0   ;;  %vm1450_vm3 = vcmask (!%p137_p2), 257024  }
   0x7   : > { %1616 = vmatprep.mubr.msk.bf16.mxu0 (!%p137_p2), %vm1810_vm0, %v1809_v0  ;;  %1622 = vmatprep.mubr.msk.bf16.mxu1 (!%p137_p2), %vm1810_vm0, %v1809_v0  ;;  %s1813_s22 = smov (!%p137_p2), 126   ;;  %s1814_s23 = smov (!%p137_p2), 124   ;;  %v1443_v5 = vld [vmem:[%s2085_s2] sm:$0xf] (!%p137_p2)  ;;  %v1518_v12 = vld [vmem:[%s2084_s1 + $0x6] sm:$0x3] (!%p137_p2) }
   0x8   : > { %s1815_s24 = smov (!%p137_p2), 120   ;;  %s1816_s25 = smov (!%p137_p2), 119   ;;  %1799 = vset.pattern.permute.xlu0 (!%p137_p2), %v1835_v6  ;;  %v1512_v11 = vld [vmem:[%s2084_s1 + $0x2] sm:$0x3] (!%p137_p2)  ;;  %v1516_v18 = vld [vmem:[%s2084_s1 + $0x4] sm:$0x3] (!%p137_p2) }
   0x9   : > { %s1817_s26 = smov (!%p137_p2), 118   ;;  %s1818_s27 = smov (!%p137_p2), 117   ;;  %v1522_v19 = vld [vmem:[%s2084_s1 + $0xa] sm:$0x3] (!%p137_p2)  ;;  %v1520_v25 = vld [vmem:[%s2084_s1 + $0x8] sm:$0x3] (!%p137_p2) }
   0xa   : > { %s1819_s28 = smov (!%p137_p2), 116   ;;  %s1820_s29 = smov (!%p137_p2), 112   ;;  %v1526_v26 = vld [vmem:[%s2084_s1 + $0xe] sm:$0x3] (!%p137_p2)  ;;  %v1524_v31 = vld [vmem:[%s2084_s1 + $0xc] sm:$0x3] (!%p137_p2) }
   0xb   : > { %s1821_s30 = smov (!%p137_p2), 111   ;;  %s1822_s4 = smov (!%p137_p2), 110   ;;  %v1530_v32 = vld [vmem:[%s2084_s1 + $0x12] sm:$0x3] (!%p137_p2)  ;;  %v1528_v37 = vld [vmem:[%s2084_s1 + $0x10] sm:$0x3] (!%p137_p2) }
   0xc   : > { %s1823_s5 = smov (!%p137_p2), 109   ;;  %s1824_s6 = smov (!%p137_p2), 108   ;;  %v1534_v38 = vld [vmem:[%s2084_s1 + $0x16] sm:$0x3] (!%p137_p2)  ;;  %v1532_v43 = vld [vmem:[%s2084_s1 + $0x14] sm:$0x3] (!%p137_p2) }
   0xd   : > { %s2088_s13 = smov (!%p158_p3, %s1505_s13), 1  ;;  %s1825_s7 = smov 104   ;;  %v1538_v44 = vld [vmem:[%s2084_s1 + $0x1a] sm:$0x3]  ;;  %v1536_v49 = vld [vmem:[%s2084_s1 + $0x18] sm:$0x3] }
   0xe   : > { %s1510_s14 = sshll.u32 %s2088_s13, 2  ;;  %s1826_s8 = smov 103   ;;  %v1542_v50 = vld [vmem:[%s2084_s1 + $0x1e] sm:$0x3]  ;;  %v1540_v55 = vld [vmem:[%s2084_s1 + $0x1c] sm:$0x3] }
   0xf   : > { %s161_s17 = scalar_lea.vmem %s2083_s0, %s1510_s14  ;;  %s1827_s9 = smov 102   ;;  %v1546_v56 = vld [vmem:[%s2084_s1 + $0x22] sm:$0x3]  ;;  %v1544_v61 = vld [vmem:[%s2084_s1 + $0x20] sm:$0x3] }
  0x10   : > { %v167_v1 = vld [vmem:[%s161_s17] sm:$0xf]  ;;  %s1828_s10 = smov 101   ;;  %s1829_s11 = smov 100   ;;  %v1550_v62 = vld [vmem:[%s2084_s1 + $0x26] sm:$0x3] }
  0x11   : > { %v1513_v2 = vcombine.low %v167_v1, %v167_v1  ;;  %v228_v3 = vsel %vm180_vm1, %v167_v1, 0  ;;  %s1830_s15 = smov 96   ;;  %s1831_s16 = smov 95  }
  0x12   : > { %1621 = vmatpush3.bf16.msra.mxu1 %v228_v3  ;;  %s1832_s17 = smov 94   ;;  %s1833_s18 = smov 93  }
  0x13   : > { %174 = vrot.lane.b32.xlu0 %v1513_v2, %s1811_s20  ;;  %323 = vrot.lane.b32.xlu1 %v1513_v2, %s1812_s21  ;;  %s1834_s19 = smov 92  }
  0x14   : > { %1632 = vmatprep.subr.bf16.mxu1 %v1809_v0 }
  0x15   : > { %1623 = vmatmul.mubr.msk.bf16.vlgmr.msra.gmra.mrb[0].mxu1 %vm176_vm2, %v168_v4  ;;  %v1548_v4 = vld [vmem:[%s2084_s1 + $0x24] sm:$0x3] }
  0x16   : > { %1634 = vmatprep.mubr.msk.bf16.mxu1 %vm1810_vm0, %v1809_v0 }
  0x17   : > { %272 = vrot.lane.b32.xlu0 %v1513_v2, %s1813_s22  ;;  %374 = vrot.lane.b32.xlu1 %v1513_v2, %s1814_s23 }
  0x1b   : > { %425 = vrot.lane.b32.xlu0 %v1513_v2, %s1815_s24  ;;  %476 = vrot.lane.b32.xlu1 %v1513_v2, %s1816_s25  ;;  %s165_s24 = scalar_lea.vmem %s2086_s3, %s1510_s14 }
  0x1f   : > { %527 = vrot.lane.b32.xlu0 %v1513_v2, %s1817_s26  ;;  %578 = vrot.lane.b32.xlu1 %v1513_v2, %s1818_s27 }
  0x23   : > { %629 = vrot.lane.b32.xlu0 %v1513_v2, %s1819_s28  ;;  %680 = vrot.lane.b32.xlu1 %v1513_v2, %s1820_s29 }
  0x27   : > { %731 = vrot.lane.b32.xlu0 %v1513_v2, %s1821_s30  ;;  %782 = vrot.lane.b32.xlu1 %v1513_v2, %s1822_s4 }
  0x2b   : > { %833 = vrot.lane.b32.xlu0 %v1513_v2, %s1823_s5  ;;  %884 = vrot.lane.b32.xlu1 %v1513_v2, %s1824_s6 }
  0x2f   : > { %935 = vrot.lane.b32.xlu0 %v1513_v2, %s1825_s7  ;;  %986 = vrot.lane.b32.xlu1 %v1513_v2, %s1826_s8 }
  0x33   : > { %1037 = vrot.lane.b32.xlu0 %v1513_v2, %s1827_s9  ;;  %1088 = vrot.lane.b32.xlu1 %v1513_v2, %s1828_s10 }
  0x37   : > { %1139 = vrot.lane.b32.xlu0 %v1513_v2, %s1829_s11  ;;  %1190 = vrot.lane.b32.xlu1 %v1513_v2, %s1830_s15 }
  0x3b   : > { %1241 = vrot.lane.b32.xlu0 %v1513_v2, %s1831_s16  ;;  %1292 = vrot.lane.b32.xlu1 %v1513_v2, %s1832_s17 }
  0x3f   : > { %1343 = vrot.lane.b32.xlu0 %v1513_v2, %s1833_s18  ;;  %1394 = vrot.lane.b32.xlu1 %v1513_v2, %s1834_s19 }
  0x43   : > { %1446 = vperm.xlu0 %1799, %v1443_v5   ;;  %v1554_v5 = vld [vmem:[%s2084_s1 + $0x2a] sm:$0x3] }
  0x85   : > { %v175_v7 = vpop.permute.xlu0 %174  ;;  %v324_v8 = vpop.permute.xlu1 %323 }
  0x86   : > { %v182_v9 = vsel %vm180_vm1, %v175_v7, 0  ;;  %v329_v10 = vsel %vm180_vm1, %v324_v8, 0 }
  0x87   : > { %1615 = vmatpush3.bf16.msra.mxu0 %v182_v9  ;;  %1633 = vmatpush3.bf16.msra.mxu1 %v329_v10  ;;  %v1552_v9 = vld [vmem:[%s2084_s1 + $0x28] sm:$0x3]  ;;  %v1558_v10 = vld [vmem:[%s2084_s1 + $0x2e] sm:$0x3] }
  0x88   : > { %1626 = vmatprep.subr.bf16.mxu0 %v1809_v0  ;;  %1644 = vmatprep.subr.bf16.mxu1 %v1809_v0 }
  0x89   : > { %v273_v13 = vpop.permute.xlu0 %272  ;;  %v375_v15 = vpop.permute.xlu1 %374 }
  0x8a   : > { %v278_v14 = vsel %vm180_vm1, %v273_v13, 0  ;;  %1617 = vmatmul.mubr.msk.bf16.vlgmr.msra.gmra.mrb[0].mxu0 %vm176_vm2, %v1512_v11  ;;  %1635 = vmatmul.mubr.msk.bf16.vlgmr.msra.gmra.mrb[4].mxu1 %vm176_vm2, %v1518_v12  ;;  %v380_v20 = vsel %vm180_vm1, %v375_v15, 0  ;;  %v1556_v13 = vld [vmem:[%s2084_s1 + $0x2c] sm:$0x3]  ;;  %v1560_v15 = vld [vmem:[%s2084_s1 + $0x30] sm:$0x3] }
  0x8b   : > { %1627 = vmatpush3.bf16.msra.mxu0 %v278_v14  ;;  %1628 = vmatprep.mubr.msk.bf16.mxu0 %vm1810_vm0, %v1809_v0 }
  0x8c   : > { %1638 = vmatprep.subr.bf16.mxu0 %v1809_v0  ;;  %1646 = vmatprep.mubr.msk.bf16.mxu1 %vm1810_vm0, %v1809_v0 }
  0x8d   : > { %v426_v16 = vpop.permute.xlu0 %425  ;;  %v477_v23 = vpop.permute.xlu1 %476 }
  0x8e   : > { %v431_v17 = vsel %vm180_vm1, %v426_v16, 0  ;;  %v482_v27 = vsel %vm180_vm1, %v477_v23, 0 }
  0x8f   : > { %1645 = vmatpush3.bf16.msra.mxu1 %v431_v17 }
  0x90   : > { %1656 = vmatprep.subr.bf16.mxu1 %v1809_v0 }
  0x91   : > { %v528_v21 = vpop.permute.xlu0 %527  ;;  %v579_v29 = vpop.permute.xlu1 %578 }
  0x92   : > { %1629 = vmatmul.mubr.msk.bf16.vlgmr.msra.gmra.mrb[4].mxu0 %vm176_vm2, %v1516_v18  ;;  %1647 = vmatmul.mubr.msk.bf16.vlgmr.msra.gmra.mrb[8].mxu1 %vm176_vm2, %v1522_v19  ;;  %v533_v22 = vsel %vm180_vm1, %v528_v21, 0  ;;  %v584_v33 = vsel %vm180_vm1, %v579_v29, 0 }
  0x93   : > { %1639 = vmatpush3.bf16.msra.mxu0 %v380_v20  ;;  %1640 = vmatprep.mubr.msk.bf16.mxu0 %vm1810_vm0, %v1809_v0 }
  0x94   : > { %1650 = vmatprep.subr.bf16.mxu0 %v1809_v0  ;;  %1657 = vmatpush3.bf16.msra.mxu1 %v533_v22 }
  0x95   : > { %1658 = vmatprep.mubr.msk.bf16.mxu1 %vm1810_vm0, %v1809_v0  ;;  %1668 = vmatprep.subr.bf16.mxu1 %v1809_v0  ;;  %v630_v24 = vpop.permute.xlu0 %629  ;;  %v681_v35 = vpop.permute.xlu1 %680 }
  0x96   : > { %v635_v28 = vsel %vm180_vm1, %v630_v24, 0  ;;  %v686_v39 = vsel %vm180_vm1, %v681_v35, 0 }
  0x99   : > { %v732_v30 = vpop.permute.xlu0 %731  ;;  %v783_v41 = vpop.permute.xlu1 %782 }
  0x9a   : > { %1641 = vmatmul.mubr.msk.bf16.vlgmr.msra.gmra.mrb[8].mxu0 %vm176_vm2, %v1520_v25  ;;  %1659 = vmatmul.mubr.msk.bf16.vlgmr.msra.gmra.mrb[12].mxu1 %vm176_vm2, %v1526_v26  ;;  %v737_v34 = vsel %vm180_vm1, %v732_v30, 0  ;;  %v788_v45 = vsel %vm180_vm1, %v783_v41, 0 }
  0x9b   : > { %1651 = vmatpush3.bf16.msra.mxu0 %v482_v27  ;;  %1652 = vmatprep.mubr.msk.bf16.mxu0 %vm1810_vm0, %v1809_v0 }
  0x9c   : > { %1662 = vmatprep.subr.bf16.mxu0 %v1809_v0  ;;  %1669 = vmatpush3.bf16.msra.mxu1 %v635_v28 }
  0x9d   : > { %1670 = vmatprep.mubr.msk.bf16.mxu1 %vm1810_vm0, %v1809_v0  ;;  %1680 = vmatprep.subr.bf16.mxu1 %v1809_v0  ;;  %v834_v36 = vpop.permute.xlu0 %833  ;;  %v885_v47 = vpop.permute.xlu1 %884 }
  0x9e   : > { %v839_v40 = vsel %vm180_vm1, %v834_v36, 0  ;;  %v890_v51 = vsel %vm180_vm1, %v885_v47, 0 }
  0xa1   : > { %v936_v42 = vpop.permute.xlu0 %935  ;;  %v987_v53 = vpop.permute.xlu1 %986 }
  0xa2   : > { %1653 = vmatmul.mubr.msk.bf16.vlgmr.msra.gmra.mrb[12].mxu0 %vm176_vm2, %v1524_v31  ;;  %1671 = vmatmul.mubr.msk.bf16.vlgmr.msra.gmra.mrb[16].mxu1 %vm176_vm2, %v1530_v32  ;;  %v941_v46 = vsel %vm180_vm1, %v936_v42, 0  ;;  %v992_v57 = vsel %vm180_vm1, %v987_v53, 0 }
  0xa3   : > { %1663 = vmatpush3.bf16.msra.mxu0 %v584_v33  ;;  %1664 = vmatprep.mubr.msk.bf16.mxu0 %vm1810_vm0, %v1809_v0 }
  0xa4   : > { %1674 = vmatprep.subr.bf16.mxu0 %v1809_v0  ;;  %1681 = vmatpush3.bf16.msra.mxu1 %v737_v34 }
  0xa5   : > { %1682 = vmatprep.mubr.msk.bf16.mxu1 %vm1810_vm0, %v1809_v0  ;;  %1692 = vmatprep.subr.bf16.mxu1 %v1809_v0  ;;  %v1038_v48 = vpop.permute.xlu0 %1037  ;;  %v1089_v59 = vpop.permute.xlu1 %1088 }
  0xa6   : > { %v1043_v52 = vsel %vm180_vm1, %v1038_v48, 0  ;;  %v1094_v63 = vsel %vm180_vm1, %v1089_v59, 0 }
  0xa9   : > { %v1140_v54 = vpop.permute.xlu0 %1139  ;;  %v1191_v2 = vpop.permute.xlu1 %1190 }
  0xaa   : > { %1665 = vmatmul.mubr.msk.bf16.vlgmr.msra.gmra.mrb[16].mxu0 %vm176_vm2, %v1528_v37  ;;  %1683 = vmatmul.mubr.msk.bf16.vlgmr.msra.gmra.mrb[20].mxu1 %vm176_vm2, %v1534_v38  ;;  %v1145_v58 = vsel %vm180_vm1, %v1140_v54, 0  ;;  %v1196_v6 = vsel %vm180_vm1, %v1191_v2, 0 }
  0xab   : > { %1675 = vmatpush3.bf16.msra.mxu0 %v686_v39  ;;  %1676 = vmatprep.mubr.msk.bf16.mxu0 %vm1810_vm0, %v1809_v0 }
  0xac   : > { %1686 = vmatprep.subr.bf16.mxu0 %v1809_v0  ;;  %1693 = vmatpush3.bf16.msra.mxu1 %v839_v40 }
  0xad   : > { %1694 = vmatprep.mubr.msk.bf16.mxu1 %vm1810_vm0, %v1809_v0  ;;  %1704 = vmatprep.subr.bf16.mxu1 %v1809_v0  ;;  %v1242_v60 = vpop.permute.xlu0 %1241  ;;  %v1293_v8 = vpop.permute.xlu1 %1292 }
  0xae   : > { %v1247_v1 = vsel %vm180_vm1, %v1242_v60, 0  ;;  %v1298_v11 = vsel %vm180_vm1, %v1293_v8, 0 }
  0xb1   : > { %v1344_v3 = vpop.permute.xlu0 %1343  ;;  %v1395_v12 = vpop.permute.xlu1 %1394 }
  0xb2   : > { %1677 = vmatmul.mubr.msk.bf16.vlgmr.msra.gmra.mrb[20].mxu0 %vm176_vm2, %v1532_v43  ;;  %1695 = vmatmul.mubr.msk.bf16.vlgmr.msra.gmra.mrb[24].mxu1 %vm176_vm2, %v1538_v44  ;;  %v1349_v7 = vsel %vm180_vm1, %v1344_v3, 0  ;;  %v1400_v14 = vsel %vm180_vm1, %v1395_v12, 0 }
  0xb3   : > { %1687 = vmatpush3.bf16.msra.mxu0 %v788_v45  ;;  %1688 = vmatprep.mubr.msk.bf16.mxu0 %vm1810_vm0, %v1809_v0 }
  0xb4   : > { %1698 = vmatprep.subr.bf16.mxu0 %v1809_v0  ;;  %1705 = vmatpush3.bf16.msra.mxu1 %v941_v46 }
  0xb5   : > { %1706 = vmatprep.mubr.msk.bf16.mxu1 %vm1810_vm0, %v1809_v0  ;;  %1716 = vmatprep.subr.bf16.mxu1 %v1809_v0 }
  0xba   : > { %1689 = vmatmul.mubr.msk.bf16.vlgmr.msra.gmra.mrb[24].mxu0 %vm176_vm2, %v1536_v49  ;;  %1707 = vmatmul.mubr.msk.bf16.vlgmr.msra.gmra.mrb[28].mxu1 %vm176_vm2, %v1542_v50 }
  0xbb   : > { %1699 = vmatpush3.bf16.msra.mxu0 %v890_v51  ;;  %1700 = vmatprep.mubr.msk.bf16.mxu0 %vm1810_vm0, %v1809_v0 }
  0xbc   : > { %1710 = vmatprep.subr.bf16.mxu0 %v1809_v0  ;;  %1717 = vmatpush3.bf16.msra.mxu1 %v1043_v52 }
  0xbd   : > { %1718 = vmatprep.mubr.msk.bf16.mxu1 %vm1810_vm0, %v1809_v0  ;;  %1728 = vmatprep.subr.bf16.mxu1 %v1809_v0 }
  0xc2   : > { %1701 = vmatmul.mubr.msk.bf16.vlgmr.msra.gmra.mrb[28].mxu0 %vm176_vm2, %v1540_v55  ;;  %1719 = vmatmul.mubr.msk.bf16.vlgmr.msra.gmra.mrb[32].mxu1 %vm176_vm2, %v1546_v56 }
  0xc3   : > { %1711 = vmatpush3.bf16.msra.mxu0 %v992_v57  ;;  %1712 = vmatprep.mubr.msk.bf16.mxu0 %vm1810_vm0, %v1809_v0 }
  0xc4   : > { %1722 = vmatprep.subr.bf16.mxu0 %v1809_v0  ;;  %1729 = vmatpush3.bf16.msra.mxu1 %v1145_v58 }
  0xc5   : > { %1730 = vmatprep.mubr.msk.bf16.mxu1 %vm1810_vm0, %v1809_v0  ;;  %1740 = vmatprep.subr.bf16.mxu1 %v1809_v0 }
  0xca   : > { %1713 = vmatmul.mubr.msk.bf16.vlgmr.msra.gmra.mrb[32].mxu0 %vm176_vm2, %v1544_v61  ;;  %1731 = vmatmul.mubr.msk.bf16.vlgmr.msra.gmra.mrb[36].mxu1 %vm176_vm2, %v1550_v62 }
  0xcb   : > { %1723 = vmatpush3.bf16.msra.mxu0 %v1094_v63  ;;  %1724 = vmatprep.mubr.msk.bf16.mxu0 %vm1810_vm0, %v1809_v0 }
  0xcc   : > { %1734 = vmatprep.subr.bf16.mxu0 %v1809_v0  ;;  %1741 = vmatpush3.bf16.msra.mxu1 %v1247_v1 }
  0xcd   : > { %1742 = vmatprep.mubr.msk.bf16.mxu1 %vm1810_vm0, %v1809_v0  ;;  %1752 = vmatprep.subr.bf16.mxu1 %v1809_v0 }
  0xd2   : > { %1725 = vmatmul.mubr.msk.bf16.vlgmr.msra.gmra.mrb[36].mxu0 %vm176_vm2, %v1548_v4  ;;  %1743 = vmatmul.mubr.msk.bf16.vlgmr.msra.gmra.mrb[40].mxu1 %vm176_vm2, %v1554_v5 }
  0xd3   : > { %1735 = vmatpush3.bf16.msra.mxu0 %v1196_v6  ;;  %1736 = vmatprep.mubr.msk.bf16.mxu0 %vm1810_vm0, %v1809_v0 }
  0xd4   : > { %1746 = vmatprep.subr.bf16.mxu0 %v1809_v0  ;;  %1753 = vmatpush3.bf16.msra.mxu1 %v1349_v7 }
  0xd5   : > { %1754 = vmatprep.mubr.msk.bf16.mxu1 %vm1810_vm0, %v1809_v0 }
  0xda   : > { %1737 = vmatmul.mubr.msk.bf16.vlgmr.msra.gmra.mrb[40].mxu0 %vm176_vm2, %v1552_v9  ;;  %1755 = vmatmul.mubr.msk.bf16.vlgmr.msra.gmra.mrb[44].mxu1 %vm176_vm2, %v1558_v10 }
  0xdb   : > { %1747 = vmatpush3.bf16.msra.mxu0 %v1298_v11  ;;  %1748 = vmatprep.mubr.msk.bf16.mxu0 %vm1810_vm0, %v1809_v0 }
  0xdc   : > { %1758 = vmatprep.subr.bf16.mxu0 %v1809_v0 }
  0xe2   : > { %1749 = vmatmul.mubr.msk.bf16.vlgmr.msra.gmra.mrb[44].mxu0 %vm176_vm2, %v1556_v13 }
  0xe3   : > { %1759 = vmatpush3.bf16.msra.mxu0 %v1400_v14  ;;  %1760 = vmatprep.mubr.msk.bf16.mxu0 %vm1810_vm0, %v1809_v0 }
  0xe8   : > { %v264_v16 = vpop.f32.mrb[0].mxu1 }
  0xe9   : > { %v1624_v17 = vpop.f32.mrb[1].mxu1 }
  0xea   : > { %1761 = vmatmul.mubr.msk.bf16.vlgmr.msra.gmra.mrb[48].mxu0 %vm176_vm2, %v1560_v15  ;;  %v267_v18 = vpop.f32.mrb[2].mxu1 }
  0xeb   : > { %v1625_v19 = vpop.f32.mrb[3].mxu1 }
 0x15d   : > { %v218_v20 = vpop.f32.mrb[0].mxu0  ;;  %v365_v21 = vpop.f32.mrb[4].mxu1 }
 0x15e   : > { %v1618_v22 = vpop.f32.mrb[1].mxu0  ;;  %v265_v23 = vadd.f32 %v264_v16, %v218_v20  ;;  %v1636_v24 = vpop.f32.mrb[5].mxu1 }
 0x15f   : > { %v221_v25 = vpop.f32.mrb[2].mxu0  ;;  %v368_v26 = vpop.f32.mrb[6].mxu1 }
 0x160   : > { %v1619_v27 = vpop.f32.mrb[3].mxu0  ;;  %v1637_v28 = vpop.f32.mrb[7].mxu1 }
 0x165   : > { %v314_v0 = vpop.f32.mrb[4].mxu0  ;;  %v467_v29 = vpop.f32.mrb[8].mxu1 }
 0x166   : > { %v320_v30 = vadd.f32 %v314_v0, %v265_v23  ;;  %v1630_v31 = vpop.f32.mrb[5].mxu0  ;;  %v1648_v32 = vpop.f32.mrb[9].mxu1 }
 0x167   : > { %v317_v33 = vpop.f32.mrb[6].mxu0  ;;  %v470_v34 = vpop.f32.mrb[10].mxu1 }
 0x168   : > { %v371_v35 = vadd.f32 %v365_v21, %v320_v30  ;;  %v1631_v36 = vpop.f32.mrb[7].mxu0  ;;  %v1649_v37 = vpop.f32.mrb[11].mxu1 }
 0x16d   : > { %v416_v38 = vpop.f32.mrb[8].mxu0  ;;  %v569_v39 = vpop.f32.mrb[12].mxu1 }
 0x16e   : > { %v422_v40 = vadd.f32 %v416_v38, %v371_v35  ;;  %v1642_v41 = vpop.f32.mrb[9].mxu0  ;;  %v1660_v42 = vpop.f32.mrb[13].mxu1 }
 0x16f   : > { %v419_v43 = vpop.f32.mrb[10].mxu0  ;;  %v572_v44 = vpop.f32.mrb[14].mxu1 }
 0x170   : > { %v473_v45 = vadd.f32 %v467_v29, %v422_v40  ;;  %v1643_v46 = vpop.f32.mrb[11].mxu0  ;;  %v1661_v47 = vpop.f32.mrb[15].mxu1 }
 0x175   : > { %v518_v48 = vpop.f32.mrb[12].mxu0  ;;  %v671_v49 = vpop.f32.mrb[16].mxu1 }
 0x176   : > { %v524_v50 = vadd.f32 %v518_v48, %v473_v45  ;;  %v1654_v51 = vpop.f32.mrb[13].mxu0  ;;  %v1672_v52 = vpop.f32.mrb[17].mxu1 }
 0x177   : > { %v521_v53 = vpop.f32.mrb[14].mxu0  ;;  %v674_v54 = vpop.f32.mrb[18].mxu1 }
 0x178   : > { %v575_v55 = vadd.f32 %v569_v39, %v524_v50  ;;  %v1655_v56 = vpop.f32.mrb[15].mxu0  ;;  %v1673_v57 = vpop.f32.mrb[19].mxu1 }
 0x17d   : > { %v620_v58 = vpop.f32.mrb[16].mxu0  ;;  %v773_v59 = vpop.f32.mrb[20].mxu1 }
 0x17e   : > { %v626_v60 = vadd.f32 %v620_v58, %v575_v55  ;;  %v1666_v61 = vpop.f32.mrb[17].mxu0  ;;  %v1684_v62 = vpop.f32.mrb[21].mxu1 }
 0x17f   : > { %v623_v63 = vpop.f32.mrb[18].mxu0  ;;  %v776_v1 = vpop.f32.mrb[22].mxu1 }
 0x180   : > { %v677_v2 = vadd.f32 %v671_v49, %v626_v60  ;;  %v1667_v3 = vpop.f32.mrb[19].mxu0  ;;  %v1685_v4 = vpop.f32.mrb[23].mxu1 }
 0x185   : > { %v722_v5 = vpop.f32.mrb[20].mxu0  ;;  %v875_v6 = vpop.f32.mrb[24].mxu1 }
 0x186   : > { %v728_v7 = vadd.f32 %v722_v5, %v677_v2  ;;  %v1678_v8 = vpop.f32.mrb[21].mxu0  ;;  %v1696_v9 = vpop.f32.mrb[25].mxu1 }
 0x187   : > { %v725_v10 = vpop.f32.mrb[22].mxu0  ;;  %v878_v11 = vpop.f32.mrb[26].mxu1 }
 0x188   : > { %v779_v12 = vadd.f32 %v773_v59, %v728_v7  ;;  %v1679_v13 = vpop.f32.mrb[23].mxu0  ;;  %v1697_v14 = vpop.f32.mrb[27].mxu1 }
 0x189   : > { %v1447_v8 = vpop.permute.xlu0 %1446 }
 0x18d   : > { %v824_v15 = vpop.f32.mrb[24].mxu0  ;;  %v977_v16 = vpop.f32.mrb[28].mxu1 }
 0x18e   : > { %v830_v17 = vadd.f32 %v824_v15, %v779_v12  ;;  %v1690_v18 = vpop.f32.mrb[25].mxu0  ;;  %v1708_v19 = vpop.f32.mrb[29].mxu1 }
 0x18f   : > { %v827_v20 = vpop.f32.mrb[26].mxu0  ;;  %v980_v21 = vpop.f32.mrb[30].mxu1 }
 0x190   : > { %v881_v22 = vadd.f32 %v875_v6, %v830_v17  ;;  %v1691_v23 = vpop.f32.mrb[27].mxu0  ;;  %v1709_v24 = vpop.f32.mrb[31].mxu1 }
 0x195   : > { %v926_v25 = vpop.f32.mrb[28].mxu0  ;;  %v1079_v26 = vpop.f32.mrb[32].mxu1 }
 0x196   : > { %v932_v27 = vadd.f32 %v926_v25, %v881_v22  ;;  %v1702_v28 = vpop.f32.mrb[29].mxu0  ;;  %v1720_v0 = vpop.f32.mrb[33].mxu1 }
 0x197   : > { %v929_v29 = vpop.f32.mrb[30].mxu0  ;;  %v1082_v30 = vpop.f32.mrb[34].mxu1 }
 0x198   : > { %v983_v31 = vadd.f32 %v977_v16, %v932_v27  ;;  %v1703_v32 = vpop.f32.mrb[31].mxu0  ;;  %v1721_v33 = vpop.f32.mrb[35].mxu1 }
 0x19d   : > { %v1028_v34 = vpop.f32.mrb[32].mxu0  ;;  %v1181_v35 = vpop.f32.mrb[36].mxu1 }
 0x19e   : > { %v1034_v36 = vadd.f32 %v1028_v34, %v983_v31  ;;  %v1714_v37 = vpop.f32.mrb[33].mxu0  ;;  %v1732_v38 = vpop.f32.mrb[37].mxu1 }
 0x19f   : > { %v1031_v39 = vpop.f32.mrb[34].mxu0  ;;  %v1184_v40 = vpop.f32.mrb[38].mxu1 }
 0x1a0   : > { %v1085_v41 = vadd.f32 %v1079_v26, %v1034_v36  ;;  %v1715_v42 = vpop.f32.mrb[35].mxu0  ;;  %v1733_v43 = vpop.f32.mrb[39].mxu1 }
 0x1a5   : > { %v1130_v44 = vpop.f32.mrb[36].mxu0  ;;  %v1283_v45 = vpop.f32.mrb[40].mxu1 }
 0x1a6   : > { %v1136_v46 = vadd.f32 %v1130_v44, %v1085_v41  ;;  %v1726_v47 = vpop.f32.mrb[37].mxu0  ;;  %v1744_v48 = vpop.f32.mrb[41].mxu1 }
 0x1a7   : > { %v1133_v49 = vpop.f32.mrb[38].mxu0  ;;  %v1286_v50 = vpop.f32.mrb[42].mxu1 }
 0x1a8   : > { %v1187_v51 = vadd.f32 %v1181_v35, %v1136_v46  ;;  %v1727_v52 = vpop.f32.mrb[39].mxu0  ;;  %v1745_v53 = vpop.f32.mrb[43].mxu1 }
 0x1ad   : > { %v1232_v54 = vpop.f32.mrb[40].mxu0  ;;  %v1385_v55 = vpop.f32.mrb[44].mxu1 }
 0x1ae   : > { %v1238_v56 = vadd.f32 %v1232_v54, %v1187_v51  ;;  %v1738_v57 = vpop.f32.mrb[41].mxu0  ;;  %v1756_v58 = vpop.f32.mrb[45].mxu1 }
 0x1af   : > { %v1235_v59 = vpop.f32.mrb[42].mxu0  ;;  %v1388_v60 = vpop.f32.mrb[46].mxu1 }
 0x1b0   : > { %v1289_v61 = vadd.f32 %v1283_v45, %v1238_v56  ;;  %v1739_v62 = vpop.f32.mrb[43].mxu0  ;;  %v1757_v63 = vpop.f32.mrb[47].mxu1 }
 0x1b5   : > { %v1334_v1 = vpop.f32.mrb[44].mxu0 }
 0x1b6   : > { %v1340_v2 = vadd.f32 %v1334_v1, %v1289_v61  ;;  %v1750_v3 = vpop.f32.mrb[45].mxu0 }
 0x1b7   : > { %v1337_v4 = vpop.f32.mrb[46].mxu0 }
 0x1b8   : > { %v1391_v5 = vadd.f32 %v1385_v55, %v1340_v2  ;;  %v1751_v6 = vpop.f32.mrb[47].mxu0 }
 0x1bd   : > { %v1436_v7 = vpop.f32.mrb[48].mxu0 }
 0x1be   : > { %v1442_v9 = vadd.f32 %v1436_v7, %v1391_v5  ;;  %v1762_v10 = vpop.f32.mrb[49].mxu0 }
 0x1bf   : > { %v1439_v11 = vpop.f32.mrb[50].mxu0 }
 0x1c0   : > { %v1449_v12 = vadd.f32 %v1447_v8, %v1442_v9  ;;  %v1763_v13 = vpop.f32.mrb[51].mxu0 }
 0x1c2   : > { %1451 = vst.msk [vmem:[%s165_s24] sm:$0xf] %vm1450_vm3, %v1449_v12 }
 0x1c3 PF: > { %s13_s12 = sadd.s32 1, %s1807_s12  }
 0x1c4   : > { %p10_p4 = scmp.ge.s32.totalorder %s13_s12, 4  }
 0x1c6   :  { %12 = sbr.rel (!%p10_p4) target bundleno = 1 (0x1), region = 86 }

</bundles_post_ra>
